<compile_context>
chip_gen: v7x
topology: tpu7x:2x2x1
jax: 0.10.0
libtpu: 0.0.40
codegen_flags: <defaults>
</compile_context>

<pallas_src>
import functools

import jax
import jax.numpy as jnp
from jax.experimental import pallas as pl
from jax.experimental.pallas import tpu as pltpu

# ---------------- model dimensions (small, forward-consistent) ----------------
BACKBONE_DIM = 2048      # BACKBONE_DICT['resnet50']
HIDDEN = 512             # rho: Linear(2048, 512)
NUM_OUTPUTS = 2500       # real module uses 24665; kept small here and intentionally
                         # NOT 128-aligned to exercise the padding path
BATCH = 8


def _round_up(x, m):
    return (x + m - 1) // m * m


# ------------------------------- fused kernel ----------------------------------
def st_head_kernel(x_ref, w1_ref, b1_ref, w2_ref, b2_ref, o_ref):
    """out_tile = 8 * tanh( relu(x @ W1 + b1) @ W2_tile + b2_tile ).

    x / W1 / b1 are resident (constant index_map, streamed once); W2 / b2 / out
    are tiled over output columns.  h is recomputed per tile: ~17 MFLOP on the
    MXU, orders of magnitude cheaper than one W2 tile's HBM DMA, and it keeps
    the grid axis fully parallel (megacore-safe, no init step).
    """
    h = jnp.dot(x_ref[...], w1_ref[...], preferred_element_type=jnp.float32)
    h = jnp.maximum(h + b1_ref[...], 0.0).astype(jnp.bfloat16)

    y = jnp.dot(h, w2_ref[...], preferred_element_type=jnp.float32)
    y = y + b2_ref[...]
    o_ref[...] = (8.0 * jnp.tanh(y)).astype(o_ref.dtype)


# ------------------------------- wrapper ---------------------------------------
@functools.partial(jax.jit, static_argnames=("tn", "out_dtype"))
def st_head(features, w1, b1, w2, b2, *, tn=2048, out_dtype=jnp.bfloat16):
    """8 * tanh( relu(features @ W1 + b1) @ W2 + b2 ) with bf16 weight streaming."""
    B, K = features.shape
    _, H = w1.shape
    _, N = w2.shape

    # Static tiling / padding (shapes are static under jit).
    Bp = _round_up(B, 8)                      # whole batch in a single tile
    tn = min(max(tn, 128), 4096)              # lane-dense, but keep acc in vregs
    tn = min(tn, _round_up(N, 128))
    Np = _round_up(N, tn)

    # bf16 streaming dtypes; biases stay f32 (tiny, added to the f32 accumulator).
    x = features.astype(jnp.bfloat16)
    w1b = w1.astype(jnp.bfloat16)
    w2b = w2.astype(jnp.bfloat16)
    b1f = b1.reshape(1, H).astype(jnp.float32)
    b2f = b2.reshape(1, N).astype(jnp.float32)

    if Bp != B:
        x = jnp.pad(x, ((0, Bp - B), (0, 0)))
    if Np != N:
        w2b = jnp.pad(w2b, ((0, 0), (0, Np - N)))
        b2f = jnp.pad(b2f, ((0, 0), (0, Np - N)))

    grid_j = Np // tn
    out_bytes = jnp.dtype(out_dtype).itemsize

    out = pl.pallas_call(
        st_head_kernel,
        out_shape=jax.ShapeDtypeStruct((Bp, Np), out_dtype),
        grid=(grid_j,),
        in_specs=[
            pl.BlockSpec((Bp, K), lambda j: (0, 0)),   # features (resident, 32 KiB bf16)
            pl.BlockSpec((K, H), lambda j: (0, 0)),    # W1 (resident, 2 MiB bf16)
            pl.BlockSpec((1, H), lambda j: (0, 0)),    # b1 (resident)
            pl.BlockSpec((H, tn), lambda j: (0, j)),   # W2 column tile (2 MiB bf16)
            pl.BlockSpec((1, tn), lambda j: (0, j)),   # b2 tile
        ],
        out_specs=pl.BlockSpec((Bp, tn), lambda j: (0, j)),
        compiler_params=pltpu.CompilerParams(
            dimension_semantics=("parallel",),         # v7x: split W2 stream across TCs
        ),
        cost_estimate=pl.CostEstimate(
            flops=2 * Bp * K * H * grid_j + 2 * Bp * H * Np,
            transcendentals=Bp * Np,                   # tanh
            bytes_accessed=(Bp * K * 2 + K * H * 2 + H * 4      # resident inputs (once)
                            + H * Np * 2 + Np * 4               # W2 + b2 stream
                            + Bp * Np * out_bytes),             # output writeback
        ),
    )(x, w1b, b1f, w2b, b2f)

    return out[:B, :N]


# ------------------------------- reference -------------------------------------
def xavier_uniform(key, fan_in, fan_out):
    """torch.nn.init.xavier_uniform_ for a Linear weight, stored pre-transposed
    as [in_features, out_features] so the kernel does plain x @ W + b."""
    bound = (6.0 / (fan_in + fan_out)) ** 0.5
    return jax.random.uniform(key, (fan_in, fan_out), jnp.float32,
                              minval=-bound, maxval=bound)


def reference_head(features, w1, b1, w2, b2):
    h = jnp.maximum(features @ w1 + b1.reshape(1, -1), 0.0)
    return 8.0 * jnp.tanh(h @ w2 + b2.reshape(1, -1))


if __name__ == "__main__":
    key = jax.random.PRNGKey(0)
    k_feat, k_w1, k_w2 = jax.random.split(key, 3)

    # Deterministic parameters (xavier-uniform weights, zero biases, matching
    # STModel._init_weights).
    w1 = xavier_uniform(k_w1, BACKBONE_DIM, HIDDEN)        # rho Linear
    b1 = jnp.zeros((HIDDEN,), jnp.float32)
    w2 = xavier_uniform(k_w2, HIDDEN, NUM_OUTPUTS)         # fc Linear
    b2 = jnp.zeros((NUM_OUTPUTS,), jnp.float32)

    # Backbone features standing in for backbone_model(x).
    features = jax.random.normal(k_feat, (BATCH, BACKBONE_DIM), jnp.float32)

    out = st_head(features, w1, b1, w2, b2)
    out = jax.block_until_ready(out)

    ref = reference_head(features, w1, b1, w2, b2)
    assert out.shape == (BATCH, NUM_OUTPUTS)
    # Weights/activations stream in bf16 (f32 accumulation) and the output is
    # emitted in bf16, so compare to the f32 reference with a loose tolerance
    # (output bounded in [-8, 8]; bf16 abs error at 8 is ~0.03).
    assert jnp.allclose(out.astype(jnp.float32), ref, atol=1.5e-1, rtol=5e-2), \
        "mismatch vs reference"

    print("KERNEL_OK")
</pallas_src>

<mosaic_0001>
module attributes {stable_mosaic.version = 11 : i64} {
  func.func @st_head_kernel(%arg0: i32, %arg1: memref<8x2048xbf16, #tpu.memory_space<vmem>>, %arg2: memref<2048x512xbf16, #tpu.memory_space<vmem>>, %arg3: memref<1x512xf32, #tpu.memory_space<vmem>>, %arg4: memref<512x2048xbf16, #tpu.memory_space<vmem>>, %arg5: memref<1x2048xf32, #tpu.memory_space<vmem>>, %arg6: memref<8x2048xbf16, #tpu.memory_space<vmem>>) attributes {dimension_semantics = [#tpu.dimension_semantics<parallel>], iteration_bounds = array<i64: 2>, scalar_prefetch = 0 : i64, scratch_operands = 0 : i64, tpu.core_type = #tpu.core_type<tc>, window_params = [{pipeline_mode = #tpu.pipeline_mode<synchronous>, transform_indices = @transform_0, window_bounds = array<i64: 8, 2048>}, {pipeline_mode = #tpu.pipeline_mode<synchronous>, transform_indices = @transform_1, window_bounds = array<i64: 2048, 512>}, {pipeline_mode = #tpu.pipeline_mode<synchronous>, transform_indices = @transform_2, window_bounds = array<i64: 1, 512>}, {transform_indices = @transform_3, window_bounds = array<i64: 512, 2048>}, {transform_indices = @transform_4, window_bounds = array<i64: 1, 2048>}, {transform_indices = @transform_5, window_bounds = array<i64: 8, 2048>}]} {
    %c0 = arith.constant 0 : index
    %c0_0 = arith.constant 0 : index
    %0 = vector.load %arg1[%c0, %c0_0] : memref<8x2048xbf16, #tpu.memory_space<vmem>>, vector<8x2048xbf16>
    %c0_1 = arith.constant 0 : index
    %c0_2 = arith.constant 0 : index
    %1 = vector.load %arg2[%c0_1, %c0_2] : memref<2048x512xbf16, #tpu.memory_space<vmem>>, vector<2048x512xbf16>
    %cst = arith.constant dense<0.000000e+00> : vector<8x512xf32>
    %2 = tpu.matmul %0, %1, %cst {dimension_numbers = #tpu.dot_dimension_numbers<[1], [0], [0], [1], [0, 0, 1, 1], [], []>} : vector<8x2048xbf16>, vector<2048x512xbf16>, vector<8x512xf32> -> vector<8x512xf32>
    %c0_3 = arith.constant 0 : index
    %c0_4 = arith.constant 0 : index
    %3 = vector.load %arg3[%c0_3, %c0_4] : memref<1x512xf32, #tpu.memory_space<vmem>>, vector<1x512xf32>
    %4 = vector.broadcast %3 : vector<1x512xf32> to vector<8x512xf32>
    %5 = arith.addf %2, %4 : vector<8x512xf32>
    %cst_5 = arith.constant 0.000000e+00 : f32
    %6 = vector.broadcast %cst_5 : f32 to vector<8x512xf32>
    %7 = arith.maximumf %5, %6 : vector<8x512xf32>
    %8 = arith.truncf %7 : vector<8x512xf32> to vector<8x512xbf16>
    %c0_6 = arith.constant 0 : index
    %c0_7 = arith.constant 0 : index
    %9 = vector.load %arg4[%c0_6, %c0_7] : memref<512x2048xbf16, #tpu.memory_space<vmem>>, vector<512x2048xbf16>
    %cst_8 = arith.constant dense<0.000000e+00> : vector<8x2048xf32>
    %10 = tpu.matmul %8, %9, %cst_8 {dimension_numbers = #tpu.dot_dimension_numbers<[1], [0], [0], [1], [0, 0, 1, 1], [], []>} : vector<8x512xbf16>, vector<512x2048xbf16>, vector<8x2048xf32> -> vector<8x2048xf32>
    %c0_9 = arith.constant 0 : index
    %c0_10 = arith.constant 0 : index
    %11 = vector.load %arg5[%c0_9, %c0_10] : memref<1x2048xf32, #tpu.memory_space<vmem>>, vector<1x2048xf32>
    %12 = vector.broadcast %11 : vector<1x2048xf32> to vector<8x2048xf32>
    %13 = arith.addf %10, %12 : vector<8x2048xf32>
    %14 = math.tanh %13 : vector<8x2048xf32>
    %cst_11 = arith.constant 8.000000e+00 : f32
    %15 = vector.broadcast %cst_11 : f32 to vector<8x2048xf32>
    %16 = arith.mulf %15, %14 : vector<8x2048xf32>
    %17 = arith.truncf %16 : vector<8x2048xf32> to vector<8x2048xbf16>
    %c0_12 = arith.constant 0 : index
    %c0_13 = arith.constant 0 : index
    %18 = vector.load %arg6[%c0_12, %c0_13] : memref<8x2048xbf16, #tpu.memory_space<vmem>>, vector<8x2048xbf16>
    tpu.vector_store %arg6[%c0_12, %c0_13], %17 {strides = array<i32>} : memref<8x2048xbf16, #tpu.memory_space<vmem>>, vector<8x2048xbf16>,
    return
  }
  func.func @transform_0(%arg0: i32) -> (i32, i32) {
    %c0_i32 = arith.constant 0 : i32
    %c0_i32_0 = arith.constant 0 : i32
    %c0_i32_1 = arith.constant 0 : i32
    return %c0_i32, %c0_i32_0 : i32, i32
  }
  func.func @transform_1(%arg0: i32) -> (i32, i32) {
    %c0_i32 = arith.constant 0 : i32
    %c0_i32_0 = arith.constant 0 : i32
    %c0_i32_1 = arith.constant 0 : i32
    return %c0_i32, %c0_i32_0 : i32, i32
  }
  func.func @transform_2(%arg0: i32) -> (i32, i32) {
    %c0_i32 = arith.constant 0 : i32
    %c0_i32_0 = arith.constant 0 : i32
    %c0_i32_1 = arith.constant 0 : i32
    return %c0_i32, %c0_i32_0 : i32, i32
  }
  func.func @transform_3(%arg0: i32) -> (i32, i32) {
    %c0_i32 = arith.constant 0 : i32
    %c0_i32_0 = arith.constant 0 : i32
    return %c0_i32, %arg0 : i32, i32
  }
  func.func @transform_4(%arg0: i32) -> (i32, i32) {
    %c0_i32 = arith.constant 0 : i32
    %c0_i32_0 = arith.constant 0 : i32
    return %c0_i32, %arg0 : i32, i32
  }
  func.func @transform_5(%arg0: i32) -> (i32, i32) {
    %c0_i32 = arith.constant 0 : i32
    %c0_i32_0 = arith.constant 0 : i32
    return %c0_i32, %arg0 : i32, i32
  }
}

</mosaic_0001>

<bundles_post_ra>
// kernel: st_head.1
= control target key start
LH: loop header
LB: loop body
LE: loop exit
PB: predicated region body
PF: predicated region fallthrough
CT: control target
= control target key end

     0   :  { %s11170_s18 = smov 0   ;;  %s11172_s19 = smov 0   ;;  %s14496_s0 = inlined_call_operand.vmem [shape: bf16[8,2048], index: 0, kind: input, shape index: {}]   ;;  %s14497_s1 = inlined_call_operand.vmem [shape: bf16[2048,512], index: 1, kind: input, shape index: {}]   ;;  %s14498_s2 = inlined_call_operand.vmem [shape: f32[1,512], index: 2, kind: input, shape index: {}]   ;;  %s14499_s3 = inlined_call_operand.vmem [shape: bf16[512,4096], index: 3, kind: input, shape index: {}]   ;;  %s14500_s4 = inlined_call_operand.vmem [shape: f32[1,4096], index: 4, kind: input, shape index: {}]   ;;  %s14501_s5 = inlined_call_operand.vmem [shape: bf16[8,4096], index: 5, kind: output, shape index: {}]  }
   0x1   :  { %s11174_s20 = smov 0  }
   0x2 LB: > { %s9097_s21 = sadd.s32 4294967295, %s11138_s20   ;;  %s11187_s22 = sadd.s32 1, %s11138_s20   ;;  %s11138_s20 = sphi %s11174_s20, %s14504_s20   ;;  %s11134_s19 = sphi %s11172_s19, %s14503_s19   ;;  %s11130_s18 = sphi %s11170_s18, %s14502_s18  }
   0x3   : > { %s82_s23 = ssub.s32 %s11138_s20, %s11187_s22  ;;  %s85_s24 = sadd.s32 1, %s11134_s19 }
   0x4   : > { %p83_p0 = scmp.eq.s32.totalorder %s82_s23, 0  ;;  %p92_p1 = scmp.ne.s32.totalorder %s11134_s19, %s11130_s18 }
   0x5   : > { %p93_p2 = scmp.eq.s32.totalorder %s11138_s20, 0  ;;  %p9100_p4 = scmp.ge.s32.totalorder %s11138_s20, 2 }
   0x6   : > { %s11196_s25 = scalar_select %p83_p0, %s11134_s19, %s85_s24  }
   0x7   : > { %p94_p3 = por %p93_p2, %p92_p1  ;;  %179 = sbr.rel (%p9100_p4) target bundleno = 274 (0x112), region = 28 }
   0xe   : > { %182 = sbr.rel (!%p94_p3) target bundleno = 274 (0x112), region = 32  ;;  %s184_s26 = sand.u32 (%p94_p3), 1, %s11134_s19  }
   0xf   : > { %s10159_s27 = sshll.u32 (%p94_p3), %s11138_s20, 6  ;;  %s9101_s28 = sshll.u32 (%p94_p3), %s184_s26, 12 }
  0x10   : > { %s11204_s6 = scalar_lea.vmem (%p94_p3), %s14499_s3, %s10159_s27  ;;  %s11209_s7 = scalar_lea.vmem (%p94_p3), [#allocation2], %s9101_s28 }
  0x11   : > { %v202_v0 = vld [vmem:[%s11204_s6] sm:$0xff] (%p94_p3)  ;;  %v204_v1 = vld [vmem:[%s11204_s6 + $0x8] sm:$0xff] (%p94_p3)  ;;  %v206_v2 = vld [vmem:[%s11204_s6 + $0x10] sm:$0xff] (%p94_p3) }
  0x12   : > { %203 = vst [vmem:[%s11209_s7] sm:$0xff] (%p94_p3), %v202_v0  ;;  %205 = vst [vmem:[%s11209_s7 + $0x8] sm:$0xff] (%p94_p3), %v204_v1  ;;  %v208_v3 = vld [vmem:[%s11204_s6 + $0x18] sm:$0xff] (%p94_p3)  ;;  %v210_v4 = vld [vmem:[%s11204_s6 + $0x20] sm:$0xff] (%p94_p3) }
  0x13   : > { %207 = vst [vmem:[%s11209_s7 + $0x10] sm:$0xff] (%p94_p3), %v206_v2  ;;  %v212_v5 = vld [vmem:[%s11204_s6 + $0x28] sm:$0xff] (%p94_p3)  ;;  %209 = vst [vmem:[%s11209_s7 + $0x18] sm:$0xff] (%p94_p3), %v208_v3  ;;  %v214_v6 = vld [vmem:[%s11204_s6 + $0x30] sm:$0xff] (%p94_p3) }
  0x14   : > { %211 = vst [vmem:[%s11209_s7 + $0x20] sm:$0xff] (%p94_p3), %v210_v4  ;;  %213 = vst [vmem:[%s11209_s7 + $0x28] sm:$0xff] (%p94_p3), %v212_v5  ;;  %v216_v7 = vld [vmem:[%s11204_s6 + $0x38] sm:$0xff] (%p94_p3)  ;;  %v218_v8 = vld [vmem:[%s11204_s6 + $0x80] sm:$0xff] (%p94_p3) }
  0x15   : > { %215 = vst [vmem:[%s11209_s7 + $0x30] sm:$0xff] %v214_v6  ;;  %217 = vst [vmem:[%s11209_s7 + $0x38] sm:$0xff] %v216_v7  ;;  %v220_v9 = vld [vmem:[%s11204_s6 + $0x88] sm:$0xff]  ;;  %v222_v10 = vld [vmem:[%s11204_s6 + $0x90] sm:$0xff] }
  0x16   : > { %219 = vst [vmem:[%s11209_s7 + $0x40] sm:$0xff] %v218_v8  ;;  %v224_v11 = vld [vmem:[%s11204_s6 + $0x98] sm:$0xff]  ;;  %221 = vst [vmem:[%s11209_s7 + $0x48] sm:$0xff] %v220_v9  ;;  %v226_v12 = vld [vmem:[%s11204_s6 + $0xa0] sm:$0xff] }
  0x17   : > { %223 = vst [vmem:[%s11209_s7 + $0x50] sm:$0xff] %v222_v10  ;;  %225 = vst [vmem:[%s11209_s7 + $0x58] sm:$0xff] %v224_v11  ;;  %v228_v13 = vld [vmem:[%s11204_s6 + $0xa8] sm:$0xff]  ;;  %v230_v14 = vld [vmem:[%s11204_s6 + $0xb0] sm:$0xff] }
  0x18   : > { %227 = vst [vmem:[%s11209_s7 + $0x60] sm:$0xff] %v226_v12  ;;  %229 = vst [vmem:[%s11209_s7 + $0x68] sm:$0xff] %v228_v13  ;;  %v232_v15 = vld [vmem:[%s11204_s6 + $0xb8] sm:$0xff]  ;;  %v234_v16 = vld [vmem:[%s11204_s6 + $0x100] sm:$0xff] }
  0x19   : > { %231 = vst [vmem:[%s11209_s7 + $0x70] sm:$0xff] %v230_v14  ;;  %v236_v17 = vld [vmem:[%s11204_s6 + $0x108] sm:$0xff]  ;;  %233 = vst [vmem:[%s11209_s7 + $0x78] sm:$0xff] %v232_v15  ;;  %v238_v18 = vld [vmem:[%s11204_s6 + $0x110] sm:$0xff] }
  0x1a   : > { %235 = vst [vmem:[%s11209_s7 + $0x80] sm:$0xff] %v234_v16  ;;  %237 = vst [vmem:[%s11209_s7 + $0x88] sm:$0xff] %v236_v17  ;;  %v240_v19 = vld [vmem:[%s11204_s6 + $0x118] sm:$0xff]  ;;  %v242_v20 = vld [vmem:[%s11204_s6 + $0x120] sm:$0xff] }
  0x1b   : > { %239 = vst [vmem:[%s11209_s7 + $0x90] sm:$0xff] %v238_v18  ;;  %241 = vst [vmem:[%s11209_s7 + $0x98] sm:$0xff] %v240_v19  ;;  %v244_v21 = vld [vmem:[%s11204_s6 + $0x128] sm:$0xff]  ;;  %v246_v22 = vld [vmem:[%s11204_s6 + $0x130] sm:$0xff] }
  0x1c   : > { %243 = vst [vmem:[%s11209_s7 + $0xa0] sm:$0xff] %v242_v20  ;;  %v248_v23 = vld [vmem:[%s11204_s6 + $0x138] sm:$0xff]  ;;  %245 = vst [vmem:[%s11209_s7 + $0xa8] sm:$0xff] %v244_v21  ;;  %v250_v24 = vld [vmem:[%s11204_s6 + $0x180] sm:$0xff] }
  0x1d   : > { %247 = vst [vmem:[%s11209_s7 + $0xb0] sm:$0xff] %v246_v22  ;;  %249 = vst [vmem:[%s11209_s7 + $0xb8] sm:$0xff] %v248_v23  ;;  %v252_v25 = vld [vmem:[%s11204_s6 + $0x188] sm:$0xff]  ;;  %v254_v26 = vld [vmem:[%s11204_s6 + $0x190] sm:$0xff] }
  0x1e   : > { %251 = vst [vmem:[%s11209_s7 + $0xc0] sm:$0xff] %v250_v24  ;;  %253 = vst [vmem:[%s11209_s7 + $0xc8] sm:$0xff] %v252_v25  ;;  %v256_v27 = vld [vmem:[%s11204_s6 + $0x198] sm:$0xff]  ;;  %v258_v28 = vld [vmem:[%s11204_s6 + $0x1a0] sm:$0xff] }
  0x1f   : > { %255 = vst [vmem:[%s11209_s7 + $0xd0] sm:$0xff] %v254_v26  ;;  %v260_v29 = vld [vmem:[%s11204_s6 + $0x1a8] sm:$0xff]  ;;  %257 = vst [vmem:[%s11209_s7 + $0xd8] sm:$0xff] %v256_v27  ;;  %v262_v30 = vld [vmem:[%s11204_s6 + $0x1b0] sm:$0xff] }
  0x20   : > { %259 = vst [vmem:[%s11209_s7 + $0xe0] sm:$0xff] %v258_v28  ;;  %261 = vst [vmem:[%s11209_s7 + $0xe8] sm:$0xff] %v260_v29  ;;  %v264_v31 = vld [vmem:[%s11204_s6 + $0x1b8] sm:$0xff]  ;;  %v266_v32 = vld [vmem:[%s11204_s6 + $0x200] sm:$0xff] }
  0x21   : > { %263 = vst [vmem:[%s11209_s7 + $0xf0] sm:$0xff] %v262_v30  ;;  %265 = vst [vmem:[%s11209_s7 + $0xf8] sm:$0xff] %v264_v31  ;;  %v268_v33 = vld [vmem:[%s11204_s6 + $0x208] sm:$0xff]  ;;  %v270_v34 = vld [vmem:[%s11204_s6 + $0x210] sm:$0xff] }
  0x22   : > { %267 = vst [vmem:[%s11209_s7 + $0x100] sm:$0xff] %v266_v32  ;;  %v272_v35 = vld [vmem:[%s11204_s6 + $0x218] sm:$0xff]  ;;  %269 = vst [vmem:[%s11209_s7 + $0x108] sm:$0xff] %v268_v33  ;;  %v274_v36 = vld [vmem:[%s11204_s6 + $0x220] sm:$0xff] }
  0x23   : > { %271 = vst [vmem:[%s11209_s7 + $0x110] sm:$0xff] %v270_v34  ;;  %273 = vst [vmem:[%s11209_s7 + $0x118] sm:$0xff] %v272_v35  ;;  %v276_v37 = vld [vmem:[%s11204_s6 + $0x228] sm:$0xff]  ;;  %v278_v38 = vld [vmem:[%s11204_s6 + $0x230] sm:$0xff] }
  0x24   : > { %275 = vst [vmem:[%s11209_s7 + $0x120] sm:$0xff] %v274_v36  ;;  %277 = vst [vmem:[%s11209_s7 + $0x128] sm:$0xff] %v276_v37  ;;  %v280_v39 = vld [vmem:[%s11204_s6 + $0x238] sm:$0xff]  ;;  %v282_v40 = vld [vmem:[%s11204_s6 + $0x280] sm:$0xff] }
  0x25   : > { %279 = vst [vmem:[%s11209_s7 + $0x130] sm:$0xff] %v278_v38  ;;  %v284_v41 = vld [vmem:[%s11204_s6 + $0x288] sm:$0xff]  ;;  %281 = vst [vmem:[%s11209_s7 + $0x138] sm:$0xff] %v280_v39  ;;  %v286_v42 = vld [vmem:[%s11204_s6 + $0x290] sm:$0xff] }
  0x26   : > { %283 = vst [vmem:[%s11209_s7 + $0x140] sm:$0xff] %v282_v40  ;;  %285 = vst [vmem:[%s11209_s7 + $0x148] sm:$0xff] %v284_v41  ;;  %v288_v43 = vld [vmem:[%s11204_s6 + $0x298] sm:$0xff]  ;;  %v290_v44 = vld [vmem:[%s11204_s6 + $0x2a0] sm:$0xff] }
  0x27   : > { %287 = vst [vmem:[%s11209_s7 + $0x150] sm:$0xff] %v286_v42  ;;  %289 = vst [vmem:[%s11209_s7 + $0x158] sm:$0xff] %v288_v43  ;;  %v292_v45 = vld [vmem:[%s11204_s6 + $0x2a8] sm:$0xff]  ;;  %v294_v46 = vld [vmem:[%s11204_s6 + $0x2b0] sm:$0xff] }
  0x28   : > { %291 = vst [vmem:[%s11209_s7 + $0x160] sm:$0xff] %v290_v44  ;;  %v296_v47 = vld [vmem:[%s11204_s6 + $0x2b8] sm:$0xff]  ;;  %293 = vst [vmem:[%s11209_s7 + $0x168] sm:$0xff] %v292_v45  ;;  %v298_v48 = vld [vmem:[%s11204_s6 + $0x300] sm:$0xff] }
  0x29   : > { %295 = vst [vmem:[%s11209_s7 + $0x170] sm:$0xff] %v294_v46  ;;  %297 = vst [vmem:[%s11209_s7 + $0x178] sm:$0xff] %v296_v47  ;;  %v300_v49 = vld [vmem:[%s11204_s6 + $0x308] sm:$0xff]  ;;  %v302_v50 = vld [vmem:[%s11204_s6 + $0x310] sm:$0xff] }
  0x2a   : > { %299 = vst [vmem:[%s11209_s7 + $0x180] sm:$0xff] %v298_v48  ;;  %301 = vst [vmem:[%s11209_s7 + $0x188] sm:$0xff] %v300_v49  ;;  %v304_v51 = vld [vmem:[%s11204_s6 + $0x318] sm:$0xff]  ;;  %v306_v52 = vld [vmem:[%s11204_s6 + $0x320] sm:$0xff] }
  0x2b   : > { %303 = vst [vmem:[%s11209_s7 + $0x190] sm:$0xff] %v302_v50  ;;  %v308_v53 = vld [vmem:[%s11204_s6 + $0x328] sm:$0xff]  ;;  %305 = vst [vmem:[%s11209_s7 + $0x198] sm:$0xff] %v304_v51  ;;  %v310_v54 = vld [vmem:[%s11204_s6 + $0x330] sm:$0xff] }
  0x2c   : > { %307 = vst [vmem:[%s11209_s7 + $0x1a0] sm:$0xff] %v306_v52  ;;  %309 = vst [vmem:[%s11209_s7 + $0x1a8] sm:$0xff] %v308_v53  ;;  %v312_v55 = vld [vmem:[%s11204_s6 + $0x338] sm:$0xff]  ;;  %v314_v56 = vld [vmem:[%s11204_s6 + $0x380] sm:$0xff] }
  0x2d   : > { %311 = vst [vmem:[%s11209_s7 + $0x1b0] sm:$0xff] %v310_v54  ;;  %313 = vst [vmem:[%s11209_s7 + $0x1b8] sm:$0xff] %v312_v55  ;;  %v316_v57 = vld [vmem:[%s11204_s6 + $0x388] sm:$0xff]  ;;  %v318_v58 = vld [vmem:[%s11204_s6 + $0x390] sm:$0xff] }
  0x2e   : > { %315 = vst [vmem:[%s11209_s7 + $0x1c0] sm:$0xff] %v314_v56  ;;  %v320_v59 = vld [vmem:[%s11204_s6 + $0x398] sm:$0xff]  ;;  %317 = vst [vmem:[%s11209_s7 + $0x1c8] sm:$0xff] %v316_v57  ;;  %v322_v60 = vld [vmem:[%s11204_s6 + $0x3a0] sm:$0xff] }
  0x2f   : > { %319 = vst [vmem:[%s11209_s7 + $0x1d0] sm:$0xff] %v318_v58  ;;  %321 = vst [vmem:[%s11209_s7 + $0x1d8] sm:$0xff] %v320_v59  ;;  %v324_v61 = vld [vmem:[%s11204_s6 + $0x3a8] sm:$0xff]  ;;  %v326_v62 = vld [vmem:[%s11204_s6 + $0x3b0] sm:$0xff] }
  0x30   : > { %323 = vst [vmem:[%s11209_s7 + $0x1e0] sm:$0xff] %v322_v60  ;;  %325 = vst [vmem:[%s11209_s7 + $0x1e8] sm:$0xff] %v324_v61  ;;  %v328_v63 = vld [vmem:[%s11204_s6 + $0x3b8] sm:$0xff]  ;;  %v330_v0 = vld [vmem:[%s11204_s6 + $0x400] sm:$0xff] }
  0x31   : > { %327 = vst [vmem:[%s11209_s7 + $0x1f0] sm:$0xff] %v326_v62  ;;  %v332_v1 = vld [vmem:[%s11204_s6 + $0x408] sm:$0xff]  ;;  %329 = vst [vmem:[%s11209_s7 + $0x1f8] sm:$0xff] %v328_v63  ;;  %v334_v2 = vld [vmem:[%s11204_s6 + $0x410] sm:$0xff] }
  0x32   : > { %331 = vst [vmem:[%s11209_s7 + $0x200] sm:$0xff] %v330_v0  ;;  %333 = vst [vmem:[%s11209_s7 + $0x208] sm:$0xff] %v332_v1  ;;  %v336_v3 = vld [vmem:[%s11204_s6 + $0x418] sm:$0xff]  ;;  %v338_v4 = vld [vmem:[%s11204_s6 + $0x420] sm:$0xff] }
  0x33   : > { %335 = vst [vmem:[%s11209_s7 + $0x210] sm:$0xff] %v334_v2  ;;  %337 = vst [vmem:[%s11209_s7 + $0x218] sm:$0xff] %v336_v3  ;;  %v340_v5 = vld [vmem:[%s11204_s6 + $0x428] sm:$0xff]  ;;  %v342_v6 = vld [vmem:[%s11204_s6 + $0x430] sm:$0xff] }
  0x34   : > { %339 = vst [vmem:[%s11209_s7 + $0x220] sm:$0xff] %v338_v4  ;;  %v344_v7 = vld [vmem:[%s11204_s6 + $0x438] sm:$0xff]  ;;  %341 = vst [vmem:[%s11209_s7 + $0x228] sm:$0xff] %v340_v5  ;;  %v346_v8 = vld [vmem:[%s11204_s6 + $0x480] sm:$0xff] }
  0x35   : > { %343 = vst [vmem:[%s11209_s7 + $0x230] sm:$0xff] %v342_v6  ;;  %345 = vst [vmem:[%s11209_s7 + $0x238] sm:$0xff] %v344_v7  ;;  %v348_v9 = vld [vmem:[%s11204_s6 + $0x488] sm:$0xff]  ;;  %v350_v10 = vld [vmem:[%s11204_s6 + $0x490] sm:$0xff] }
  0x36   : > { %347 = vst [vmem:[%s11209_s7 + $0x240] sm:$0xff] %v346_v8  ;;  %349 = vst [vmem:[%s11209_s7 + $0x248] sm:$0xff] %v348_v9  ;;  %v352_v11 = vld [vmem:[%s11204_s6 + $0x498] sm:$0xff]  ;;  %v354_v12 = vld [vmem:[%s11204_s6 + $0x4a0] sm:$0xff] }
  0x37   : > { %351 = vst [vmem:[%s11209_s7 + $0x250] sm:$0xff] %v350_v10  ;;  %v356_v13 = vld [vmem:[%s11204_s6 + $0x4a8] sm:$0xff]  ;;  %353 = vst [vmem:[%s11209_s7 + $0x258] sm:$0xff] %v352_v11  ;;  %v358_v14 = vld [vmem:[%s11204_s6 + $0x4b0] sm:$0xff] }
  0x38   : > { %355 = vst [vmem:[%s11209_s7 + $0x260] sm:$0xff] %v354_v12  ;;  %357 = vst [vmem:[%s11209_s7 + $0x268] sm:$0xff] %v356_v13  ;;  %v360_v15 = vld [vmem:[%s11204_s6 + $0x4b8] sm:$0xff]  ;;  %v362_v16 = vld [vmem:[%s11204_s6 + $0x500] sm:$0xff] }
  0x39   : > { %359 = vst [vmem:[%s11209_s7 + $0x270] sm:$0xff] %v358_v14  ;;  %361 = vst [vmem:[%s11209_s7 + $0x278] sm:$0xff] %v360_v15  ;;  %v364_v17 = vld [vmem:[%s11204_s6 + $0x508] sm:$0xff]  ;;  %v366_v18 = vld [vmem:[%s11204_s6 + $0x510] sm:$0xff] }
  0x3a   : > { %363 = vst [vmem:[%s11209_s7 + $0x280] sm:$0xff] %v362_v16  ;;  %v368_v19 = vld [vmem:[%s11204_s6 + $0x518] sm:$0xff]  ;;  %365 = vst [vmem:[%s11209_s7 + $0x288] sm:$0xff] %v364_v17  ;;  %v370_v20 = vld [vmem:[%s11204_s6 + $0x520] sm:$0xff] }
  0x3b   : > { %367 = vst [vmem:[%s11209_s7 + $0x290] sm:$0xff] %v366_v18  ;;  %369 = vst [vmem:[%s11209_s7 + $0x298] sm:$0xff] %v368_v19  ;;  %v372_v21 = vld [vmem:[%s11204_s6 + $0x528] sm:$0xff]  ;;  %v374_v22 = vld [vmem:[%s11204_s6 + $0x530] sm:$0xff] }
  0x3c   : > { %371 = vst [vmem:[%s11209_s7 + $0x2a0] sm:$0xff] %v370_v20  ;;  %373 = vst [vmem:[%s11209_s7 + $0x2a8] sm:$0xff] %v372_v21  ;;  %v376_v23 = vld [vmem:[%s11204_s6 + $0x538] sm:$0xff]  ;;  %v378_v24 = vld [vmem:[%s11204_s6 + $0x580] sm:$0xff] }
  0x3d   : > { %375 = vst [vmem:[%s11209_s7 + $0x2b0] sm:$0xff] %v374_v22  ;;  %v380_v25 = vld [vmem:[%s11204_s6 + $0x588] sm:$0xff]  ;;  %377 = vst [vmem:[%s11209_s7 + $0x2b8] sm:$0xff] %v376_v23  ;;  %v382_v26 = vld [vmem:[%s11204_s6 + $0x590] sm:$0xff] }
  0x3e   : > { %379 = vst [vmem:[%s11209_s7 + $0x2c0] sm:$0xff] %v378_v24  ;;  %381 = vst [vmem:[%s11209_s7 + $0x2c8] sm:$0xff] %v380_v25  ;;  %v384_v27 = vld [vmem:[%s11204_s6 + $0x598] sm:$0xff]  ;;  %v386_v28 = vld [vmem:[%s11204_s6 + $0x5a0] sm:$0xff] }
  0x3f   : > { %383 = vst [vmem:[%s11209_s7 + $0x2d0] sm:$0xff] %v382_v26  ;;  %385 = vst [vmem:[%s11209_s7 + $0x2d8] sm:$0xff] %v384_v27  ;;  %v388_v29 = vld [vmem:[%s11204_s6 + $0x5a8] sm:$0xff]  ;;  %v390_v30 = vld [vmem:[%s11204_s6 + $0x5b0] sm:$0xff] }
  0x40   : > { %387 = vst [vmem:[%s11209_s7 + $0x2e0] sm:$0xff] %v386_v28  ;;  %v392_v31 = vld [vmem:[%s11204_s6 + $0x5b8] sm:$0xff]  ;;  %389 = vst [vmem:[%s11209_s7 + $0x2e8] sm:$0xff] %v388_v29  ;;  %v394_v32 = vld [vmem:[%s11204_s6 + $0x600] sm:$0xff] }
  0x41   : > { %391 = vst [vmem:[%s11209_s7 + $0x2f0] sm:$0xff] %v390_v30  ;;  %393 = vst [vmem:[%s11209_s7 + $0x2f8] sm:$0xff] %v392_v31  ;;  %v396_v33 = vld [vmem:[%s11204_s6 + $0x608] sm:$0xff]  ;;  %v398_v34 = vld [vmem:[%s11204_s6 + $0x610] sm:$0xff] }
  0x42   : > { %395 = vst [vmem:[%s11209_s7 + $0x300] sm:$0xff] %v394_v32  ;;  %397 = vst [vmem:[%s11209_s7 + $0x308] sm:$0xff] %v396_v33  ;;  %v400_v35 = vld [vmem:[%s11204_s6 + $0x618] sm:$0xff]  ;;  %v402_v36 = vld [vmem:[%s11204_s6 + $0x620] sm:$0xff] }
  0x43   : > { %399 = vst [vmem:[%s11209_s7 + $0x310] sm:$0xff] %v398_v34  ;;  %v404_v37 = vld [vmem:[%s11204_s6 + $0x628] sm:$0xff]  ;;  %401 = vst [vmem:[%s11209_s7 + $0x318] sm:$0xff] %v400_v35  ;;  %v406_v38 = vld [vmem:[%s11204_s6 + $0x630] sm:$0xff] }
  0x44   : > { %403 = vst [vmem:[%s11209_s7 + $0x320] sm:$0xff] %v402_v36  ;;  %405 = vst [vmem:[%s11209_s7 + $0x328] sm:$0xff] %v404_v37  ;;  %v408_v39 = vld [vmem:[%s11204_s6 + $0x638] sm:$0xff]  ;;  %v410_v40 = vld [vmem:[%s11204_s6 + $0x680] sm:$0xff] }
  0x45   : > { %407 = vst [vmem:[%s11209_s7 + $0x330] sm:$0xff] %v406_v38  ;;  %409 = vst [vmem:[%s11209_s7 + $0x338] sm:$0xff] %v408_v39  ;;  %v412_v41 = vld [vmem:[%s11204_s6 + $0x688] sm:$0xff]  ;;  %v414_v42 = vld [vmem:[%s11204_s6 + $0x690] sm:$0xff] }
  0x46   : > { %411 = vst [vmem:[%s11209_s7 + $0x340] sm:$0xff] %v410_v40  ;;  %v416_v43 = vld [vmem:[%s11204_s6 + $0x698] sm:$0xff]  ;;  %413 = vst [vmem:[%s11209_s7 + $0x348] sm:$0xff] %v412_v41  ;;  %v418_v44 = vld [vmem:[%s11204_s6 + $0x6a0] sm:$0xff] }
  0x47   : > { %415 = vst [vmem:[%s11209_s7 + $0x350] sm:$0xff] %v414_v42  ;;  %417 = vst [vmem:[%s11209_s7 + $0x358] sm:$0xff] %v416_v43  ;;  %v420_v45 = vld [vmem:[%s11204_s6 + $0x6a8] sm:$0xff]  ;;  %v422_v46 = vld [vmem:[%s11204_s6 + $0x6b0] sm:$0xff] }
  0x48   : > { %419 = vst [vmem:[%s11209_s7 + $0x360] sm:$0xff] %v418_v44  ;;  %421 = vst [vmem:[%s11209_s7 + $0x368] sm:$0xff] %v420_v45  ;;  %v424_v47 = vld [vmem:[%s11204_s6 + $0x6b8] sm:$0xff]  ;;  %v426_v48 = vld [vmem:[%s11204_s6 + $0x700] sm:$0xff] }
  0x49   : > { %423 = vst [vmem:[%s11209_s7 + $0x370] sm:$0xff] %v422_v46  ;;  %v428_v49 = vld [vmem:[%s11204_s6 + $0x708] sm:$0xff]  ;;  %425 = vst [vmem:[%s11209_s7 + $0x378] sm:$0xff] %v424_v47  ;;  %v430_v50 = vld [vmem:[%s11204_s6 + $0x710] sm:$0xff] }
  0x4a   : > { %427 = vst [vmem:[%s11209_s7 + $0x380] sm:$0xff] %v426_v48  ;;  %429 = vst [vmem:[%s11209_s7 + $0x388] sm:$0xff] %v428_v49  ;;  %v432_v51 = vld [vmem:[%s11204_s6 + $0x718] sm:$0xff]  ;;  %v434_v52 = vld [vmem:[%s11204_s6 + $0x720] sm:$0xff] }
  0x4b   : > { %431 = vst [vmem:[%s11209_s7 + $0x390] sm:$0xff] %v430_v50  ;;  %433 = vst [vmem:[%s11209_s7 + $0x398] sm:$0xff] %v432_v51  ;;  %v436_v53 = vld [vmem:[%s11204_s6 + $0x728] sm:$0xff]  ;;  %v438_v54 = vld [vmem:[%s11204_s6 + $0x730] sm:$0xff] }
  0x4c   : > { %435 = vst [vmem:[%s11209_s7 + $0x3a0] sm:$0xff] %v434_v52  ;;  %v440_v55 = vld [vmem:[%s11204_s6 + $0x738] sm:$0xff]  ;;  %437 = vst [vmem:[%s11209_s7 + $0x3a8] sm:$0xff] %v436_v53  ;;  %v442_v56 = vld [vmem:[%s11204_s6 + $0x780] sm:$0xff] }
  0x4d   : > { %439 = vst [vmem:[%s11209_s7 + $0x3b0] sm:$0xff] %v438_v54  ;;  %441 = vst [vmem:[%s11209_s7 + $0x3b8] sm:$0xff] %v440_v55  ;;  %v444_v57 = vld [vmem:[%s11204_s6 + $0x788] sm:$0xff]  ;;  %v446_v58 = vld [vmem:[%s11204_s6 + $0x790] sm:$0xff] }
  0x4e   : > { %443 = vst [vmem:[%s11209_s7 + $0x3c0] sm:$0xff] %v442_v56  ;;  %445 = vst [vmem:[%s11209_s7 + $0x3c8] sm:$0xff] %v444_v57  ;;  %v448_v59 = vld [vmem:[%s11204_s6 + $0x798] sm:$0xff]  ;;  %v450_v60 = vld [vmem:[%s11204_s6 + $0x7a0] sm:$0xff] }
  0x4f   : > { %447 = vst [vmem:[%s11209_s7 + $0x3d0] sm:$0xff] %v446_v58  ;;  %v452_v61 = vld [vmem:[%s11204_s6 + $0x7a8] sm:$0xff]  ;;  %449 = vst [vmem:[%s11209_s7 + $0x3d8] sm:$0xff] %v448_v59  ;;  %v454_v62 = vld [vmem:[%s11204_s6 + $0x7b0] sm:$0xff] }
  0x50   : > { %451 = vst [vmem:[%s11209_s7 + $0x3e0] sm:$0xff] %v450_v60  ;;  %453 = vst [vmem:[%s11209_s7 + $0x3e8] sm:$0xff] %v452_v61  ;;  %v456_v63 = vld [vmem:[%s11204_s6 + $0x7b8] sm:$0xff]  ;;  %v458_v0 = vld [vmem:[%s11204_s6 + $0x800] sm:$0xff] }
  0x51   : > { %455 = vst [vmem:[%s11209_s7 + $0x3f0] sm:$0xff] %v454_v62  ;;  %457 = vst [vmem:[%s11209_s7 + $0x3f8] sm:$0xff] %v456_v63  ;;  %v460_v1 = vld [vmem:[%s11204_s6 + $0x808] sm:$0xff]  ;;  %v462_v2 = vld [vmem:[%s11204_s6 + $0x810] sm:$0xff] }
  0x52   : > { %459 = vst [vmem:[%s11209_s7 + $0x400] sm:$0xff] %v458_v0  ;;  %v464_v3 = vld [vmem:[%s11204_s6 + $0x818] sm:$0xff]  ;;  %461 = vst [vmem:[%s11209_s7 + $0x408] sm:$0xff] %v460_v1  ;;  %v466_v4 = vld [vmem:[%s11204_s6 + $0x820] sm:$0xff] }
  0x53   : > { %463 = vst [vmem:[%s11209_s7 + $0x410] sm:$0xff] %v462_v2  ;;  %465 = vst [vmem:[%s11209_s7 + $0x418] sm:$0xff] %v464_v3  ;;  %v468_v5 = vld [vmem:[%s11204_s6 + $0x828] sm:$0xff]  ;;  %v470_v6 = vld [vmem:[%s11204_s6 + $0x830] sm:$0xff] }
  0x54   : > { %467 = vst [vmem:[%s11209_s7 + $0x420] sm:$0xff] %v466_v4  ;;  %469 = vst [vmem:[%s11209_s7 + $0x428] sm:$0xff] %v468_v5  ;;  %v472_v7 = vld [vmem:[%s11204_s6 + $0x838] sm:$0xff]  ;;  %v474_v8 = vld [vmem:[%s11204_s6 + $0x880] sm:$0xff] }
  0x55   : > { %471 = vst [vmem:[%s11209_s7 + $0x430] sm:$0xff] %v470_v6  ;;  %v476_v9 = vld [vmem:[%s11204_s6 + $0x888] sm:$0xff]  ;;  %473 = vst [vmem:[%s11209_s7 + $0x438] sm:$0xff] %v472_v7  ;;  %v478_v10 = vld [vmem:[%s11204_s6 + $0x890] sm:$0xff] }
  0x56   : > { %475 = vst [vmem:[%s11209_s7 + $0x440] sm:$0xff] %v474_v8  ;;  %477 = vst [vmem:[%s11209_s7 + $0x448] sm:$0xff] %v476_v9  ;;  %v480_v11 = vld [vmem:[%s11204_s6 + $0x898] sm:$0xff]  ;;  %v482_v12 = vld [vmem:[%s11204_s6 + $0x8a0] sm:$0xff] }
  0x57   : > { %479 = vst [vmem:[%s11209_s7 + $0x450] sm:$0xff] %v478_v10  ;;  %481 = vst [vmem:[%s11209_s7 + $0x458] sm:$0xff] %v480_v11  ;;  %v484_v13 = vld [vmem:[%s11204_s6 + $0x8a8] sm:$0xff]  ;;  %v486_v14 = vld [vmem:[%s11204_s6 + $0x8b0] sm:$0xff] }
  0x58   : > { %483 = vst [vmem:[%s11209_s7 + $0x460] sm:$0xff] %v482_v12  ;;  %v488_v15 = vld [vmem:[%s11204_s6 + $0x8b8] sm:$0xff]  ;;  %485 = vst [vmem:[%s11209_s7 + $0x468] sm:$0xff] %v484_v13  ;;  %v490_v16 = vld [vmem:[%s11204_s6 + $0x900] sm:$0xff] }
  0x59   : > { %487 = vst [vmem:[%s11209_s7 + $0x470] sm:$0xff] %v486_v14  ;;  %489 = vst [vmem:[%s11209_s7 + $0x478] sm:$0xff] %v488_v15  ;;  %v492_v17 = vld [vmem:[%s11204_s6 + $0x908] sm:$0xff]  ;;  %v494_v18 = vld [vmem:[%s11204_s6 + $0x910] sm:$0xff] }
  0x5a   : > { %491 = vst [vmem:[%s11209_s7 + $0x480] sm:$0xff] %v490_v16  ;;  %493 = vst [vmem:[%s11209_s7 + $0x488] sm:$0xff] %v492_v17  ;;  %v496_v19 = vld [vmem:[%s11204_s6 + $0x918] sm:$0xff]  ;;  %v498_v20 = vld [vmem:[%s11204_s6 + $0x920] sm:$0xff] }
  0x5b   : > { %495 = vst [vmem:[%s11209_s7 + $0x490] sm:$0xff] %v494_v18  ;;  %v500_v21 = vld [vmem:[%s11204_s6 + $0x928] sm:$0xff]  ;;  %497 = vst [vmem:[%s11209_s7 + $0x498] sm:$0xff] %v496_v19  ;;  %v502_v22 = vld [vmem:[%s11204_s6 + $0x930] sm:$0xff] }
  0x5c   : > { %499 = vst [vmem:[%s11209_s7 + $0x4a0] sm:$0xff] %v498_v20  ;;  %501 = vst [vmem:[%s11209_s7 + $0x4a8] sm:$0xff] %v500_v21  ;;  %v504_v23 = vld [vmem:[%s11204_s6 + $0x938] sm:$0xff]  ;;  %v506_v24 = vld [vmem:[%s11204_s6 + $0x980] sm:$0xff] }
  0x5d   : > { %503 = vst [vmem:[%s11209_s7 + $0x4b0] sm:$0xff] %v502_v22  ;;  %505 = vst [vmem:[%s11209_s7 + $0x4b8] sm:$0xff] %v504_v23  ;;  %v508_v25 = vld [vmem:[%s11204_s6 + $0x988] sm:$0xff]  ;;  %v510_v26 = vld [vmem:[%s11204_s6 + $0x990] sm:$0xff] }
  0x5e   : > { %507 = vst [vmem:[%s11209_s7 + $0x4c0] sm:$0xff] %v506_v24  ;;  %v512_v27 = vld [vmem:[%s11204_s6 + $0x998] sm:$0xff]  ;;  %509 = vst [vmem:[%s11209_s7 + $0x4c8] sm:$0xff] %v508_v25  ;;  %v514_v28 = vld [vmem:[%s11204_s6 + $0x9a0] sm:$0xff] }
  0x5f   : > { %511 = vst [vmem:[%s11209_s7 + $0x4d0] sm:$0xff] %v510_v26  ;;  %513 = vst [vmem:[%s11209_s7 + $0x4d8] sm:$0xff] %v512_v27  ;;  %v516_v29 = vld [vmem:[%s11204_s6 + $0x9a8] sm:$0xff]  ;;  %v518_v30 = vld [vmem:[%s11204_s6 + $0x9b0] sm:$0xff] }
  0x60   : > { %515 = vst [vmem:[%s11209_s7 + $0x4e0] sm:$0xff] %v514_v28  ;;  %517 = vst [vmem:[%s11209_s7 + $0x4e8] sm:$0xff] %v516_v29  ;;  %v520_v31 = vld [vmem:[%s11204_s6 + $0x9b8] sm:$0xff]  ;;  %v522_v32 = vld [vmem:[%s11204_s6 + $0xa00] sm:$0xff] }
  0x61   : > { %519 = vst [vmem:[%s11209_s7 + $0x4f0] sm:$0xff] %v518_v30  ;;  %v524_v33 = vld [vmem:[%s11204_s6 + $0xa08] sm:$0xff]  ;;  %521 = vst [vmem:[%s11209_s7 + $0x4f8] sm:$0xff] %v520_v31  ;;  %v526_v34 = vld [vmem:[%s11204_s6 + $0xa10] sm:$0xff] }
  0x62   : > { %523 = vst [vmem:[%s11209_s7 + $0x500] sm:$0xff] %v522_v32  ;;  %525 = vst [vmem:[%s11209_s7 + $0x508] sm:$0xff] %v524_v33  ;;  %v528_v35 = vld [vmem:[%s11204_s6 + $0xa18] sm:$0xff]  ;;  %v530_v36 = vld [vmem:[%s11204_s6 + $0xa20] sm:$0xff] }
  0x63   : > { %527 = vst [vmem:[%s11209_s7 + $0x510] sm:$0xff] %v526_v34  ;;  %529 = vst [vmem:[%s11209_s7 + $0x518] sm:$0xff] %v528_v35  ;;  %v532_v37 = vld [vmem:[%s11204_s6 + $0xa28] sm:$0xff]  ;;  %v534_v38 = vld [vmem:[%s11204_s6 + $0xa30] sm:$0xff] }
  0x64   : > { %531 = vst [vmem:[%s11209_s7 + $0x520] sm:$0xff] %v530_v36  ;;  %v536_v39 = vld [vmem:[%s11204_s6 + $0xa38] sm:$0xff]  ;;  %533 = vst [vmem:[%s11209_s7 + $0x528] sm:$0xff] %v532_v37  ;;  %v538_v40 = vld [vmem:[%s11204_s6 + $0xa80] sm:$0xff] }
  0x65   : > { %535 = vst [vmem:[%s11209_s7 + $0x530] sm:$0xff] %v534_v38  ;;  %537 = vst [vmem:[%s11209_s7 + $0x538] sm:$0xff] %v536_v39  ;;  %v540_v41 = vld [vmem:[%s11204_s6 + $0xa88] sm:$0xff]  ;;  %v542_v42 = vld [vmem:[%s11204_s6 + $0xa90] sm:$0xff] }
  0x66   : > { %539 = vst [vmem:[%s11209_s7 + $0x540] sm:$0xff] %v538_v40  ;;  %541 = vst [vmem:[%s11209_s7 + $0x548] sm:$0xff] %v540_v41  ;;  %v544_v43 = vld [vmem:[%s11204_s6 + $0xa98] sm:$0xff]  ;;  %v546_v44 = vld [vmem:[%s11204_s6 + $0xaa0] sm:$0xff] }
  0x67   : > { %543 = vst [vmem:[%s11209_s7 + $0x550] sm:$0xff] %v542_v42  ;;  %v548_v45 = vld [vmem:[%s11204_s6 + $0xaa8] sm:$0xff]  ;;  %545 = vst [vmem:[%s11209_s7 + $0x558] sm:$0xff] %v544_v43  ;;  %v550_v46 = vld [vmem:[%s11204_s6 + $0xab0] sm:$0xff] }
  0x68   : > { %547 = vst [vmem:[%s11209_s7 + $0x560] sm:$0xff] %v546_v44  ;;  %549 = vst [vmem:[%s11209_s7 + $0x568] sm:$0xff] %v548_v45  ;;  %v552_v47 = vld [vmem:[%s11204_s6 + $0xab8] sm:$0xff]  ;;  %v554_v48 = vld [vmem:[%s11204_s6 + $0xb00] sm:$0xff] }
  0x69   : > { %551 = vst [vmem:[%s11209_s7 + $0x570] sm:$0xff] %v550_v46  ;;  %553 = vst [vmem:[%s11209_s7 + $0x578] sm:$0xff] %v552_v47  ;;  %v556_v49 = vld [vmem:[%s11204_s6 + $0xb08] sm:$0xff]  ;;  %v558_v50 = vld [vmem:[%s11204_s6 + $0xb10] sm:$0xff] }
  0x6a   : > { %555 = vst [vmem:[%s11209_s7 + $0x580] sm:$0xff] %v554_v48  ;;  %v560_v51 = vld [vmem:[%s11204_s6 + $0xb18] sm:$0xff]  ;;  %557 = vst [vmem:[%s11209_s7 + $0x588] sm:$0xff] %v556_v49  ;;  %v562_v52 = vld [vmem:[%s11204_s6 + $0xb20] sm:$0xff] }
  0x6b   : > { %559 = vst [vmem:[%s11209_s7 + $0x590] sm:$0xff] %v558_v50  ;;  %561 = vst [vmem:[%s11209_s7 + $0x598] sm:$0xff] %v560_v51  ;;  %v564_v53 = vld [vmem:[%s11204_s6 + $0xb28] sm:$0xff]  ;;  %v566_v54 = vld [vmem:[%s11204_s6 + $0xb30] sm:$0xff] }
  0x6c   : > { %563 = vst [vmem:[%s11209_s7 + $0x5a0] sm:$0xff] %v562_v52  ;;  %565 = vst [vmem:[%s11209_s7 + $0x5a8] sm:$0xff] %v564_v53  ;;  %v568_v55 = vld [vmem:[%s11204_s6 + $0xb38] sm:$0xff]  ;;  %v570_v56 = vld [vmem:[%s11204_s6 + $0xb80] sm:$0xff] }
  0x6d   : > { %567 = vst [vmem:[%s11209_s7 + $0x5b0] sm:$0xff] %v566_v54  ;;  %v572_v57 = vld [vmem:[%s11204_s6 + $0xb88] sm:$0xff]  ;;  %569 = vst [vmem:[%s11209_s7 + $0x5b8] sm:$0xff] %v568_v55  ;;  %v574_v58 = vld [vmem:[%s11204_s6 + $0xb90] sm:$0xff] }
  0x6e   : > { %571 = vst [vmem:[%s11209_s7 + $0x5c0] sm:$0xff] %v570_v56  ;;  %573 = vst [vmem:[%s11209_s7 + $0x5c8] sm:$0xff] %v572_v57  ;;  %v576_v59 = vld [vmem:[%s11204_s6 + $0xb98] sm:$0xff]  ;;  %v578_v60 = vld [vmem:[%s11204_s6 + $0xba0] sm:$0xff] }
  0x6f   : > { %575 = vst [vmem:[%s11209_s7 + $0x5d0] sm:$0xff] %v574_v58  ;;  %577 = vst [vmem:[%s11209_s7 + $0x5d8] sm:$0xff] %v576_v59  ;;  %v580_v61 = vld [vmem:[%s11204_s6 + $0xba8] sm:$0xff]  ;;  %v582_v62 = vld [vmem:[%s11204_s6 + $0xbb0] sm:$0xff] }
  0x70   : > { %579 = vst [vmem:[%s11209_s7 + $0x5e0] sm:$0xff] %v578_v60  ;;  %v584_v63 = vld [vmem:[%s11204_s6 + $0xbb8] sm:$0xff]  ;;  %581 = vst [vmem:[%s11209_s7 + $0x5e8] sm:$0xff] %v580_v61  ;;  %v586_v0 = vld [vmem:[%s11204_s6 + $0xc00] sm:$0xff] }
  0x71   : > { %583 = vst [vmem:[%s11209_s7 + $0x5f0] sm:$0xff] %v582_v62  ;;  %585 = vst [vmem:[%s11209_s7 + $0x5f8] sm:$0xff] %v584_v63  ;;  %v588_v1 = vld [vmem:[%s11204_s6 + $0xc08] sm:$0xff]  ;;  %v590_v2 = vld [vmem:[%s11204_s6 + $0xc10] sm:$0xff] }
  0x72   : > { %587 = vst [vmem:[%s11209_s7 + $0x600] sm:$0xff] %v586_v0  ;;  %589 = vst [vmem:[%s11209_s7 + $0x608] sm:$0xff] %v588_v1  ;;  %v592_v3 = vld [vmem:[%s11204_s6 + $0xc18] sm:$0xff]  ;;  %v594_v4 = vld [vmem:[%s11204_s6 + $0xc20] sm:$0xff] }
  0x73   : > { %591 = vst [vmem:[%s11209_s7 + $0x610] sm:$0xff] %v590_v2  ;;  %v596_v5 = vld [vmem:[%s11204_s6 + $0xc28] sm:$0xff]  ;;  %593 = vst [vmem:[%s11209_s7 + $0x618] sm:$0xff] %v592_v3  ;;  %v598_v6 = vld [vmem:[%s11204_s6 + $0xc30] sm:$0xff] }
  0x74   : > { %595 = vst [vmem:[%s11209_s7 + $0x620] sm:$0xff] %v594_v4  ;;  %597 = vst [vmem:[%s11209_s7 + $0x628] sm:$0xff] %v596_v5  ;;  %v600_v7 = vld [vmem:[%s11204_s6 + $0xc38] sm:$0xff]  ;;  %v602_v8 = vld [vmem:[%s11204_s6 + $0xc80] sm:$0xff] }
  0x75   : > { %599 = vst [vmem:[%s11209_s7 + $0x630] sm:$0xff] %v598_v6  ;;  %601 = vst [vmem:[%s11209_s7 + $0x638] sm:$0xff] %v600_v7  ;;  %v604_v9 = vld [vmem:[%s11204_s6 + $0xc88] sm:$0xff]  ;;  %v606_v10 = vld [vmem:[%s11204_s6 + $0xc90] sm:$0xff] }
  0x76   : > { %603 = vst [vmem:[%s11209_s7 + $0x640] sm:$0xff] %v602_v8  ;;  %v608_v11 = vld [vmem:[%s11204_s6 + $0xc98] sm:$0xff]  ;;  %605 = vst [vmem:[%s11209_s7 + $0x648] sm:$0xff] %v604_v9  ;;  %v610_v12 = vld [vmem:[%s11204_s6 + $0xca0] sm:$0xff] }
  0x77   : > { %607 = vst [vmem:[%s11209_s7 + $0x650] sm:$0xff] %v606_v10  ;;  %609 = vst [vmem:[%s11209_s7 + $0x658] sm:$0xff] %v608_v11  ;;  %v612_v13 = vld [vmem:[%s11204_s6 + $0xca8] sm:$0xff]  ;;  %v614_v14 = vld [vmem:[%s11204_s6 + $0xcb0] sm:$0xff] }
  0x78   : > { %611 = vst [vmem:[%s11209_s7 + $0x660] sm:$0xff] %v610_v12  ;;  %613 = vst [vmem:[%s11209_s7 + $0x668] sm:$0xff] %v612_v13  ;;  %v616_v15 = vld [vmem:[%s11204_s6 + $0xcb8] sm:$0xff]  ;;  %v618_v16 = vld [vmem:[%s11204_s6 + $0xd00] sm:$0xff] }
  0x79   : > { %615 = vst [vmem:[%s11209_s7 + $0x670] sm:$0xff] %v614_v14  ;;  %v620_v17 = vld [vmem:[%s11204_s6 + $0xd08] sm:$0xff]  ;;  %617 = vst [vmem:[%s11209_s7 + $0x678] sm:$0xff] %v616_v15  ;;  %v622_v18 = vld [vmem:[%s11204_s6 + $0xd10] sm:$0xff] }
  0x7a   : > { %619 = vst [vmem:[%s11209_s7 + $0x680] sm:$0xff] %v618_v16  ;;  %621 = vst [vmem:[%s11209_s7 + $0x688] sm:$0xff] %v620_v17  ;;  %v624_v19 = vld [vmem:[%s11204_s6 + $0xd18] sm:$0xff]  ;;  %v626_v20 = vld [vmem:[%s11204_s6 + $0xd20] sm:$0xff] }
  0x7b   : > { %623 = vst [vmem:[%s11209_s7 + $0x690] sm:$0xff] %v622_v18  ;;  %625 = vst [vmem:[%s11209_s7 + $0x698] sm:$0xff] %v624_v19  ;;  %v628_v21 = vld [vmem:[%s11204_s6 + $0xd28] sm:$0xff]  ;;  %v630_v22 = vld [vmem:[%s11204_s6 + $0xd30] sm:$0xff] }
  0x7c   : > { %627 = vst [vmem:[%s11209_s7 + $0x6a0] sm:$0xff] %v626_v20  ;;  %v632_v23 = vld [vmem:[%s11204_s6 + $0xd38] sm:$0xff]  ;;  %629 = vst [vmem:[%s11209_s7 + $0x6a8] sm:$0xff] %v628_v21  ;;  %v634_v24 = vld [vmem:[%s11204_s6 + $0xd80] sm:$0xff] }
  0x7d   : > { %631 = vst [vmem:[%s11209_s7 + $0x6b0] sm:$0xff] %v630_v22  ;;  %633 = vst [vmem:[%s11209_s7 + $0x6b8] sm:$0xff] %v632_v23  ;;  %v636_v25 = vld [vmem:[%s11204_s6 + $0xd88] sm:$0xff]  ;;  %v638_v26 = vld [vmem:[%s11204_s6 + $0xd90] sm:$0xff] }
  0x7e   : > { %635 = vst [vmem:[%s11209_s7 + $0x6c0] sm:$0xff] %v634_v24  ;;  %637 = vst [vmem:[%s11209_s7 + $0x6c8] sm:$0xff] %v636_v25  ;;  %v640_v27 = vld [vmem:[%s11204_s6 + $0xd98] sm:$0xff]  ;;  %v642_v28 = vld [vmem:[%s11204_s6 + $0xda0] sm:$0xff] }
  0x7f   : > { %639 = vst [vmem:[%s11209_s7 + $0x6d0] sm:$0xff] %v638_v26  ;;  %v644_v29 = vld [vmem:[%s11204_s6 + $0xda8] sm:$0xff]  ;;  %641 = vst [vmem:[%s11209_s7 + $0x6d8] sm:$0xff] %v640_v27  ;;  %v646_v30 = vld [vmem:[%s11204_s6 + $0xdb0] sm:$0xff] }
  0x80   : > { %643 = vst [vmem:[%s11209_s7 + $0x6e0] sm:$0xff] %v642_v28  ;;  %645 = vst [vmem:[%s11209_s7 + $0x6e8] sm:$0xff] %v644_v29  ;;  %v648_v31 = vld [vmem:[%s11204_s6 + $0xdb8] sm:$0xff]  ;;  %v650_v32 = vld [vmem:[%s11204_s6 + $0xe00] sm:$0xff] }
  0x81   : > { %647 = vst [vmem:[%s11209_s7 + $0x6f0] sm:$0xff] %v646_v30  ;;  %649 = vst [vmem:[%s11209_s7 + $0x6f8] sm:$0xff] %v648_v31  ;;  %v652_v33 = vld [vmem:[%s11204_s6 + $0xe08] sm:$0xff]  ;;  %v654_v34 = vld [vmem:[%s11204_s6 + $0xe10] sm:$0xff] }
  0x82   : > { %651 = vst [vmem:[%s11209_s7 + $0x700] sm:$0xff] %v650_v32  ;;  %v656_v35 = vld [vmem:[%s11204_s6 + $0xe18] sm:$0xff]  ;;  %653 = vst [vmem:[%s11209_s7 + $0x708] sm:$0xff] %v652_v33  ;;  %v658_v36 = vld [vmem:[%s11204_s6 + $0xe20] sm:$0xff] }
  0x83   : > { %655 = vst [vmem:[%s11209_s7 + $0x710] sm:$0xff] %v654_v34  ;;  %657 = vst [vmem:[%s11209_s7 + $0x718] sm:$0xff] %v656_v35  ;;  %v660_v37 = vld [vmem:[%s11204_s6 + $0xe28] sm:$0xff]  ;;  %v662_v38 = vld [vmem:[%s11204_s6 + $0xe30] sm:$0xff] }
  0x84   : > { %659 = vst [vmem:[%s11209_s7 + $0x720] sm:$0xff] %v658_v36  ;;  %661 = vst [vmem:[%s11209_s7 + $0x728] sm:$0xff] %v660_v37  ;;  %v664_v39 = vld [vmem:[%s11204_s6 + $0xe38] sm:$0xff]  ;;  %v666_v40 = vld [vmem:[%s11204_s6 + $0xe80] sm:$0xff] }
  0x85   : > { %663 = vst [vmem:[%s11209_s7 + $0x730] sm:$0xff] %v662_v38  ;;  %v668_v41 = vld [vmem:[%s11204_s6 + $0xe88] sm:$0xff]  ;;  %665 = vst [vmem:[%s11209_s7 + $0x738] sm:$0xff] %v664_v39  ;;  %v670_v42 = vld [vmem:[%s11204_s6 + $0xe90] sm:$0xff] }
  0x86   : > { %667 = vst [vmem:[%s11209_s7 + $0x740] sm:$0xff] %v666_v40  ;;  %669 = vst [vmem:[%s11209_s7 + $0x748] sm:$0xff] %v668_v41  ;;  %v672_v43 = vld [vmem:[%s11204_s6 + $0xe98] sm:$0xff]  ;;  %v674_v44 = vld [vmem:[%s11204_s6 + $0xea0] sm:$0xff] }
  0x87   : > { %671 = vst [vmem:[%s11209_s7 + $0x750] sm:$0xff] %v670_v42  ;;  %673 = vst [vmem:[%s11209_s7 + $0x758] sm:$0xff] %v672_v43  ;;  %v676_v45 = vld [vmem:[%s11204_s6 + $0xea8] sm:$0xff]  ;;  %v678_v46 = vld [vmem:[%s11204_s6 + $0xeb0] sm:$0xff] }
  0x88   : > { %675 = vst [vmem:[%s11209_s7 + $0x760] sm:$0xff] %v674_v44  ;;  %v680_v47 = vld [vmem:[%s11204_s6 + $0xeb8] sm:$0xff]  ;;  %677 = vst [vmem:[%s11209_s7 + $0x768] sm:$0xff] %v676_v45  ;;  %v682_v48 = vld [vmem:[%s11204_s6 + $0xf00] sm:$0xff] }
  0x89   : > { %679 = vst [vmem:[%s11209_s7 + $0x770] sm:$0xff] %v678_v46  ;;  %681 = vst [vmem:[%s11209_s7 + $0x778] sm:$0xff] %v680_v47  ;;  %v684_v49 = vld [vmem:[%s11204_s6 + $0xf08] sm:$0xff]  ;;  %v686_v50 = vld [vmem:[%s11204_s6 + $0xf10] sm:$0xff] }
  0x8a   : > { %683 = vst [vmem:[%s11209_s7 + $0x780] sm:$0xff] %v682_v48  ;;  %685 = vst [vmem:[%s11209_s7 + $0x788] sm:$0xff] %v684_v49  ;;  %v688_v51 = vld [vmem:[%s11204_s6 + $0xf18] sm:$0xff]  ;;  %v690_v52 = vld [vmem:[%s11204_s6 + $0xf20] sm:$0xff] }
  0x8b   : > { %687 = vst [vmem:[%s11209_s7 + $0x790] sm:$0xff] %v686_v50  ;;  %v692_v53 = vld [vmem:[%s11204_s6 + $0xf28] sm:$0xff]  ;;  %689 = vst [vmem:[%s11209_s7 + $0x798] sm:$0xff] %v688_v51  ;;  %v694_v54 = vld [vmem:[%s11204_s6 + $0xf30] sm:$0xff] }
  0x8c   : > { %691 = vst [vmem:[%s11209_s7 + $0x7a0] sm:$0xff] %v690_v52  ;;  %693 = vst [vmem:[%s11209_s7 + $0x7a8] sm:$0xff] %v692_v53  ;;  %v696_v55 = vld [vmem:[%s11204_s6 + $0xf38] sm:$0xff]  ;;  %v698_v56 = vld [vmem:[%s11204_s6 + $0xf80] sm:$0xff] }
  0x8d   : > { %695 = vst [vmem:[%s11209_s7 + $0x7b0] sm:$0xff] %v694_v54  ;;  %697 = vst [vmem:[%s11209_s7 + $0x7b8] sm:$0xff] %v696_v55  ;;  %v700_v57 = vld [vmem:[%s11204_s6 + $0xf88] sm:$0xff]  ;;  %v702_v58 = vld [vmem:[%s11204_s6 + $0xf90] sm:$0xff] }
  0x8e   : > { %699 = vst [vmem:[%s11209_s7 + $0x7c0] sm:$0xff] %v698_v56  ;;  %v704_v59 = vld [vmem:[%s11204_s6 + $0xf98] sm:$0xff]  ;;  %701 = vst [vmem:[%s11209_s7 + $0x7c8] sm:$0xff] %v700_v57  ;;  %v706_v60 = vld [vmem:[%s11204_s6 + $0xfa0] sm:$0xff] }
  0x8f   : > { %703 = vst [vmem:[%s11209_s7 + $0x7d0] sm:$0xff] %v702_v58  ;;  %705 = vst [vmem:[%s11209_s7 + $0x7d8] sm:$0xff] %v704_v59  ;;  %v708_v61 = vld [vmem:[%s11204_s6 + $0xfa8] sm:$0xff]  ;;  %v710_v62 = vld [vmem:[%s11204_s6 + $0xfb0] sm:$0xff] }
  0x90   : > { %707 = vst [vmem:[%s11209_s7 + $0x7e0] sm:$0xff] %v706_v60  ;;  %709 = vst [vmem:[%s11209_s7 + $0x7e8] sm:$0xff] %v708_v61  ;;  %v712_v63 = vld [vmem:[%s11204_s6 + $0xfb8] sm:$0xff]  ;;  %v714_v0 = vld [vmem:[%s11204_s6 + $0x1000] sm:$0xff] }
  0x91   : > { %711 = vst [vmem:[%s11209_s7 + $0x7f0] sm:$0xff] %v710_v62  ;;  %v716_v1 = vld [vmem:[%s11204_s6 + $0x1008] sm:$0xff]  ;;  %713 = vst [vmem:[%s11209_s7 + $0x7f8] sm:$0xff] %v712_v63  ;;  %v718_v2 = vld [vmem:[%s11204_s6 + $0x1010] sm:$0xff] }
  0x92   : > { %715 = vst [vmem:[%s11209_s7 + $0x800] sm:$0xff] %v714_v0  ;;  %717 = vst [vmem:[%s11209_s7 + $0x808] sm:$0xff] %v716_v1  ;;  %v720_v3 = vld [vmem:[%s11204_s6 + $0x1018] sm:$0xff]  ;;  %v722_v4 = vld [vmem:[%s11204_s6 + $0x1020] sm:$0xff] }
  0x93   : > { %719 = vst [vmem:[%s11209_s7 + $0x810] sm:$0xff] %v718_v2  ;;  %721 = vst [vmem:[%s11209_s7 + $0x818] sm:$0xff] %v720_v3  ;;  %v724_v5 = vld [vmem:[%s11204_s6 + $0x1028] sm:$0xff]  ;;  %v726_v6 = vld [vmem:[%s11204_s6 + $0x1030] sm:$0xff] }
  0x94   : > { %723 = vst [vmem:[%s11209_s7 + $0x820] sm:$0xff] %v722_v4  ;;  %v728_v7 = vld [vmem:[%s11204_s6 + $0x1038] sm:$0xff]  ;;  %725 = vst [vmem:[%s11209_s7 + $0x828] sm:$0xff] %v724_v5  ;;  %v730_v8 = vld [vmem:[%s11204_s6 + $0x1080] sm:$0xff] }
  0x95   : > { %727 = vst [vmem:[%s11209_s7 + $0x830] sm:$0xff] %v726_v6  ;;  %729 = vst [vmem:[%s11209_s7 + $0x838] sm:$0xff] %v728_v7  ;;  %v732_v9 = vld [vmem:[%s11204_s6 + $0x1088] sm:$0xff]  ;;  %v734_v10 = vld [vmem:[%s11204_s6 + $0x1090] sm:$0xff] }
  0x96   : > { %731 = vst [vmem:[%s11209_s7 + $0x840] sm:$0xff] %v730_v8  ;;  %733 = vst [vmem:[%s11209_s7 + $0x848] sm:$0xff] %v732_v9  ;;  %v736_v11 = vld [vmem:[%s11204_s6 + $0x1098] sm:$0xff]  ;;  %v738_v12 = vld [vmem:[%s11204_s6 + $0x10a0] sm:$0xff] }
  0x97   : > { %735 = vst [vmem:[%s11209_s7 + $0x850] sm:$0xff] %v734_v10  ;;  %v740_v13 = vld [vmem:[%s11204_s6 + $0x10a8] sm:$0xff]  ;;  %737 = vst [vmem:[%s11209_s7 + $0x858] sm:$0xff] %v736_v11  ;;  %v742_v14 = vld [vmem:[%s11204_s6 + $0x10b0] sm:$0xff] }
  0x98   : > { %739 = vst [vmem:[%s11209_s7 + $0x860] sm:$0xff] %v738_v12  ;;  %741 = vst [vmem:[%s11209_s7 + $0x868] sm:$0xff] %v740_v13  ;;  %v744_v15 = vld [vmem:[%s11204_s6 + $0x10b8] sm:$0xff]  ;;  %v746_v16 = vld [vmem:[%s11204_s6 + $0x1100] sm:$0xff] }
  0x99   : > { %743 = vst [vmem:[%s11209_s7 + $0x870] sm:$0xff] %v742_v14  ;;  %745 = vst [vmem:[%s11209_s7 + $0x878] sm:$0xff] %v744_v15  ;;  %v748_v17 = vld [vmem:[%s11204_s6 + $0x1108] sm:$0xff]  ;;  %v750_v18 = vld [vmem:[%s11204_s6 + $0x1110] sm:$0xff] }
  0x9a   : > { %747 = vst [vmem:[%s11209_s7 + $0x880] sm:$0xff] %v746_v16  ;;  %v752_v19 = vld [vmem:[%s11204_s6 + $0x1118] sm:$0xff]  ;;  %749 = vst [vmem:[%s11209_s7 + $0x888] sm:$0xff] %v748_v17  ;;  %v754_v20 = vld [vmem:[%s11204_s6 + $0x1120] sm:$0xff] }
  0x9b   : > { %751 = vst [vmem:[%s11209_s7 + $0x890] sm:$0xff] %v750_v18  ;;  %753 = vst [vmem:[%s11209_s7 + $0x898] sm:$0xff] %v752_v19  ;;  %v756_v21 = vld [vmem:[%s11204_s6 + $0x1128] sm:$0xff]  ;;  %v758_v22 = vld [vmem:[%s11204_s6 + $0x1130] sm:$0xff] }
  0x9c   : > { %755 = vst [vmem:[%s11209_s7 + $0x8a0] sm:$0xff] %v754_v20  ;;  %757 = vst [vmem:[%s11209_s7 + $0x8a8] sm:$0xff] %v756_v21  ;;  %v760_v23 = vld [vmem:[%s11204_s6 + $0x1138] sm:$0xff]  ;;  %v762_v24 = vld [vmem:[%s11204_s6 + $0x1180] sm:$0xff] }
  0x9d   : > { %759 = vst [vmem:[%s11209_s7 + $0x8b0] sm:$0xff] %v758_v22  ;;  %v764_v25 = vld [vmem:[%s11204_s6 + $0x1188] sm:$0xff]  ;;  %761 = vst [vmem:[%s11209_s7 + $0x8b8] sm:$0xff] %v760_v23  ;;  %v766_v26 = vld [vmem:[%s11204_s6 + $0x1190] sm:$0xff] }
  0x9e   : > { %763 = vst [vmem:[%s11209_s7 + $0x8c0] sm:$0xff] %v762_v24  ;;  %765 = vst [vmem:[%s11209_s7 + $0x8c8] sm:$0xff] %v764_v25  ;;  %v768_v27 = vld [vmem:[%s11204_s6 + $0x1198] sm:$0xff]  ;;  %v770_v28 = vld [vmem:[%s11204_s6 + $0x11a0] sm:$0xff] }
  0x9f   : > { %767 = vst [vmem:[%s11209_s7 + $0x8d0] sm:$0xff] %v766_v26  ;;  %769 = vst [vmem:[%s11209_s7 + $0x8d8] sm:$0xff] %v768_v27  ;;  %v772_v29 = vld [vmem:[%s11204_s6 + $0x11a8] sm:$0xff]  ;;  %v774_v30 = vld [vmem:[%s11204_s6 + $0x11b0] sm:$0xff] }
  0xa0   : > { %771 = vst [vmem:[%s11209_s7 + $0x8e0] sm:$0xff] %v770_v28  ;;  %v776_v31 = vld [vmem:[%s11204_s6 + $0x11b8] sm:$0xff]  ;;  %773 = vst [vmem:[%s11209_s7 + $0x8e8] sm:$0xff] %v772_v29  ;;  %v778_v32 = vld [vmem:[%s11204_s6 + $0x1200] sm:$0xff] }
  0xa1   : > { %775 = vst [vmem:[%s11209_s7 + $0x8f0] sm:$0xff] %v774_v30  ;;  %777 = vst [vmem:[%s11209_s7 + $0x8f8] sm:$0xff] %v776_v31  ;;  %v780_v33 = vld [vmem:[%s11204_s6 + $0x1208] sm:$0xff]  ;;  %v782_v34 = vld [vmem:[%s11204_s6 + $0x1210] sm:$0xff] }
  0xa2   : > { %779 = vst [vmem:[%s11209_s7 + $0x900] sm:$0xff] %v778_v32  ;;  %781 = vst [vmem:[%s11209_s7 + $0x908] sm:$0xff] %v780_v33  ;;  %v784_v35 = vld [vmem:[%s11204_s6 + $0x1218] sm:$0xff]  ;;  %v786_v36 = vld [vmem:[%s11204_s6 + $0x1220] sm:$0xff] }
  0xa3   : > { %783 = vst [vmem:[%s11209_s7 + $0x910] sm:$0xff] %v782_v34  ;;  %v788_v37 = vld [vmem:[%s11204_s6 + $0x1228] sm:$0xff]  ;;  %785 = vst [vmem:[%s11209_s7 + $0x918] sm:$0xff] %v784_v35  ;;  %v790_v38 = vld [vmem:[%s11204_s6 + $0x1230] sm:$0xff] }
  0xa4   : > { %787 = vst [vmem:[%s11209_s7 + $0x920] sm:$0xff] %v786_v36  ;;  %789 = vst [vmem:[%s11209_s7 + $0x928] sm:$0xff] %v788_v37  ;;  %v792_v39 = vld [vmem:[%s11204_s6 + $0x1238] sm:$0xff]  ;;  %v794_v40 = vld [vmem:[%s11204_s6 + $0x1280] sm:$0xff] }
  0xa5   : > { %791 = vst [vmem:[%s11209_s7 + $0x930] sm:$0xff] %v790_v38  ;;  %793 = vst [vmem:[%s11209_s7 + $0x938] sm:$0xff] %v792_v39  ;;  %v796_v41 = vld [vmem:[%s11204_s6 + $0x1288] sm:$0xff]  ;;  %v798_v42 = vld [vmem:[%s11204_s6 + $0x1290] sm:$0xff] }
  0xa6   : > { %795 = vst [vmem:[%s11209_s7 + $0x940] sm:$0xff] %v794_v40  ;;  %v800_v43 = vld [vmem:[%s11204_s6 + $0x1298] sm:$0xff]  ;;  %797 = vst [vmem:[%s11209_s7 + $0x948] sm:$0xff] %v796_v41  ;;  %v802_v44 = vld [vmem:[%s11204_s6 + $0x12a0] sm:$0xff] }
  0xa7   : > { %799 = vst [vmem:[%s11209_s7 + $0x950] sm:$0xff] %v798_v42  ;;  %801 = vst [vmem:[%s11209_s7 + $0x958] sm:$0xff] %v800_v43  ;;  %v804_v45 = vld [vmem:[%s11204_s6 + $0x12a8] sm:$0xff]  ;;  %v806_v46 = vld [vmem:[%s11204_s6 + $0x12b0] sm:$0xff] }
  0xa8   : > { %803 = vst [vmem:[%s11209_s7 + $0x960] sm:$0xff] %v802_v44  ;;  %805 = vst [vmem:[%s11209_s7 + $0x968] sm:$0xff] %v804_v45  ;;  %v808_v47 = vld [vmem:[%s11204_s6 + $0x12b8] sm:$0xff]  ;;  %v810_v48 = vld [vmem:[%s11204_s6 + $0x1300] sm:$0xff] }
  0xa9   : > { %807 = vst [vmem:[%s11209_s7 + $0x970] sm:$0xff] %v806_v46  ;;  %v812_v49 = vld [vmem:[%s11204_s6 + $0x1308] sm:$0xff]  ;;  %809 = vst [vmem:[%s11209_s7 + $0x978] sm:$0xff] %v808_v47  ;;  %v814_v50 = vld [vmem:[%s11204_s6 + $0x1310] sm:$0xff] }
  0xaa   : > { %811 = vst [vmem:[%s11209_s7 + $0x980] sm:$0xff] %v810_v48  ;;  %813 = vst [vmem:[%s11209_s7 + $0x988] sm:$0xff] %v812_v49  ;;  %v816_v51 = vld [vmem:[%s11204_s6 + $0x1318] sm:$0xff]  ;;  %v818_v52 = vld [vmem:[%s11204_s6 + $0x1320] sm:$0xff] }
  0xab   : > { %815 = vst [vmem:[%s11209_s7 + $0x990] sm:$0xff] %v814_v50  ;;  %817 = vst [vmem:[%s11209_s7 + $0x998] sm:$0xff] %v816_v51  ;;  %v820_v53 = vld [vmem:[%s11204_s6 + $0x1328] sm:$0xff]  ;;  %v822_v54 = vld [vmem:[%s11204_s6 + $0x1330] sm:$0xff] }
  0xac   : > { %819 = vst [vmem:[%s11209_s7 + $0x9a0] sm:$0xff] %v818_v52  ;;  %v824_v55 = vld [vmem:[%s11204_s6 + $0x1338] sm:$0xff]  ;;  %821 = vst [vmem:[%s11209_s7 + $0x9a8] sm:$0xff] %v820_v53  ;;  %v826_v56 = vld [vmem:[%s11204_s6 + $0x1380] sm:$0xff] }
  0xad   : > { %823 = vst [vmem:[%s11209_s7 + $0x9b0] sm:$0xff] %v822_v54  ;;  %825 = vst [vmem:[%s11209_s7 + $0x9b8] sm:$0xff] %v824_v55  ;;  %v828_v57 = vld [vmem:[%s11204_s6 + $0x1388] sm:$0xff]  ;;  %v830_v58 = vld [vmem:[%s11204_s6 + $0x1390] sm:$0xff] }
  0xae   : > { %827 = vst [vmem:[%s11209_s7 + $0x9c0] sm:$0xff] %v826_v56  ;;  %829 = vst [vmem:[%s11209_s7 + $0x9c8] sm:$0xff] %v828_v57  ;;  %v832_v59 = vld [vmem:[%s11204_s6 + $0x1398] sm:$0xff]  ;;  %v834_v60 = vld [vmem:[%s11204_s6 + $0x13a0] sm:$0xff] }
  0xaf   : > { %831 = vst [vmem:[%s11209_s7 + $0x9d0] sm:$0xff] %v830_v58  ;;  %v836_v61 = vld [vmem:[%s11204_s6 + $0x13a8] sm:$0xff]  ;;  %833 = vst [vmem:[%s11209_s7 + $0x9d8] sm:$0xff] %v832_v59  ;;  %v838_v62 = vld [vmem:[%s11204_s6 + $0x13b0] sm:$0xff] }
  0xb0   : > { %835 = vst [vmem:[%s11209_s7 + $0x9e0] sm:$0xff] %v834_v60  ;;  %837 = vst [vmem:[%s11209_s7 + $0x9e8] sm:$0xff] %v836_v61  ;;  %v840_v63 = vld [vmem:[%s11204_s6 + $0x13b8] sm:$0xff]  ;;  %v842_v0 = vld [vmem:[%s11204_s6 + $0x1400] sm:$0xff] }
  0xb1   : > { %839 = vst [vmem:[%s11209_s7 + $0x9f0] sm:$0xff] %v838_v62  ;;  %841 = vst [vmem:[%s11209_s7 + $0x9f8] sm:$0xff] %v840_v63  ;;  %v844_v1 = vld [vmem:[%s11204_s6 + $0x1408] sm:$0xff]  ;;  %v846_v2 = vld [vmem:[%s11204_s6 + $0x1410] sm:$0xff] }
  0xb2   : > { %843 = vst [vmem:[%s11209_s7 + $0xa00] sm:$0xff] %v842_v0  ;;  %v848_v3 = vld [vmem:[%s11204_s6 + $0x1418] sm:$0xff]  ;;  %845 = vst [vmem:[%s11209_s7 + $0xa08] sm:$0xff] %v844_v1  ;;  %v850_v4 = vld [vmem:[%s11204_s6 + $0x1420] sm:$0xff] }
  0xb3   : > { %847 = vst [vmem:[%s11209_s7 + $0xa10] sm:$0xff] %v846_v2  ;;  %849 = vst [vmem:[%s11209_s7 + $0xa18] sm:$0xff] %v848_v3  ;;  %v852_v5 = vld [vmem:[%s11204_s6 + $0x1428] sm:$0xff]  ;;  %v854_v6 = vld [vmem:[%s11204_s6 + $0x1430] sm:$0xff] }
  0xb4   : > { %851 = vst [vmem:[%s11209_s7 + $0xa20] sm:$0xff] %v850_v4  ;;  %853 = vst [vmem:[%s11209_s7 + $0xa28] sm:$0xff] %v852_v5  ;;  %v856_v7 = vld [vmem:[%s11204_s6 + $0x1438] sm:$0xff]  ;;  %v858_v8 = vld [vmem:[%s11204_s6 + $0x1480] sm:$0xff] }
  0xb5   : > { %855 = vst [vmem:[%s11209_s7 + $0xa30] sm:$0xff] %v854_v6  ;;  %v860_v9 = vld [vmem:[%s11204_s6 + $0x1488] sm:$0xff]  ;;  %857 = vst [vmem:[%s11209_s7 + $0xa38] sm:$0xff] %v856_v7  ;;  %v862_v10 = vld [vmem:[%s11204_s6 + $0x1490] sm:$0xff] }
  0xb6   : > { %859 = vst [vmem:[%s11209_s7 + $0xa40] sm:$0xff] %v858_v8  ;;  %861 = vst [vmem:[%s11209_s7 + $0xa48] sm:$0xff] %v860_v9  ;;  %v864_v11 = vld [vmem:[%s11204_s6 + $0x1498] sm:$0xff]  ;;  %v866_v12 = vld [vmem:[%s11204_s6 + $0x14a0] sm:$0xff] }
  0xb7   : > { %863 = vst [vmem:[%s11209_s7 + $0xa50] sm:$0xff] %v862_v10  ;;  %865 = vst [vmem:[%s11209_s7 + $0xa58] sm:$0xff] %v864_v11  ;;  %v868_v13 = vld [vmem:[%s11204_s6 + $0x14a8] sm:$0xff]  ;;  %v870_v14 = vld [vmem:[%s11204_s6 + $0x14b0] sm:$0xff] }
  0xb8   : > { %867 = vst [vmem:[%s11209_s7 + $0xa60] sm:$0xff] %v866_v12  ;;  %v872_v15 = vld [vmem:[%s11204_s6 + $0x14b8] sm:$0xff]  ;;  %869 = vst [vmem:[%s11209_s7 + $0xa68] sm:$0xff] %v868_v13  ;;  %v874_v16 = vld [vmem:[%s11204_s6 + $0x1500] sm:$0xff] }
  0xb9   : > { %871 = vst [vmem:[%s11209_s7 + $0xa70] sm:$0xff] %v870_v14  ;;  %873 = vst [vmem:[%s11209_s7 + $0xa78] sm:$0xff] %v872_v15  ;;  %v876_v17 = vld [vmem:[%s11204_s6 + $0x1508] sm:$0xff]  ;;  %v878_v18 = vld [vmem:[%s11204_s6 + $0x1510] sm:$0xff] }
  0xba   : > { %875 = vst [vmem:[%s11209_s7 + $0xa80] sm:$0xff] %v874_v16  ;;  %877 = vst [vmem:[%s11209_s7 + $0xa88] sm:$0xff] %v876_v17  ;;  %v880_v19 = vld [vmem:[%s11204_s6 + $0x1518] sm:$0xff]  ;;  %v882_v20 = vld [vmem:[%s11204_s6 + $0x1520] sm:$0xff] }
  0xbb   : > { %879 = vst [vmem:[%s11209_s7 + $0xa90] sm:$0xff] %v878_v18  ;;  %v884_v21 = vld [vmem:[%s11204_s6 + $0x1528] sm:$0xff]  ;;  %881 = vst [vmem:[%s11209_s7 + $0xa98] sm:$0xff] %v880_v19  ;;  %v886_v22 = vld [vmem:[%s11204_s6 + $0x1530] sm:$0xff] }
  0xbc   : > { %883 = vst [vmem:[%s11209_s7 + $0xaa0] sm:$0xff] %v882_v20  ;;  %885 = vst [vmem:[%s11209_s7 + $0xaa8] sm:$0xff] %v884_v21  ;;  %v888_v23 = vld [vmem:[%s11204_s6 + $0x1538] sm:$0xff]  ;;  %v890_v24 = vld [vmem:[%s11204_s6 + $0x1580] sm:$0xff] }
  0xbd   : > { %887 = vst [vmem:[%s11209_s7 + $0xab0] sm:$0xff] %v886_v22  ;;  %889 = vst [vmem:[%s11209_s7 + $0xab8] sm:$0xff] %v888_v23  ;;  %v892_v25 = vld [vmem:[%s11204_s6 + $0x1588] sm:$0xff]  ;;  %v894_v26 = vld [vmem:[%s11204_s6 + $0x1590] sm:$0xff] }
  0xbe   : > { %891 = vst [vmem:[%s11209_s7 + $0xac0] sm:$0xff] %v890_v24  ;;  %v896_v27 = vld [vmem:[%s11204_s6 + $0x1598] sm:$0xff]  ;;  %893 = vst [vmem:[%s11209_s7 + $0xac8] sm:$0xff] %v892_v25  ;;  %v898_v28 = vld [vmem:[%s11204_s6 + $0x15a0] sm:$0xff] }
  0xbf   : > { %895 = vst [vmem:[%s11209_s7 + $0xad0] sm:$0xff] %v894_v26  ;;  %897 = vst [vmem:[%s11209_s7 + $0xad8] sm:$0xff] %v896_v27  ;;  %v900_v29 = vld [vmem:[%s11204_s6 + $0x15a8] sm:$0xff]  ;;  %v902_v30 = vld [vmem:[%s11204_s6 + $0x15b0] sm:$0xff] }
  0xc0   : > { %899 = vst [vmem:[%s11209_s7 + $0xae0] sm:$0xff] %v898_v28  ;;  %901 = vst [vmem:[%s11209_s7 + $0xae8] sm:$0xff] %v900_v29  ;;  %v904_v31 = vld [vmem:[%s11204_s6 + $0x15b8] sm:$0xff]  ;;  %v906_v32 = vld [vmem:[%s11204_s6 + $0x1600] sm:$0xff] }
  0xc1   : > { %903 = vst [vmem:[%s11209_s7 + $0xaf0] sm:$0xff] %v902_v30  ;;  %v908_v33 = vld [vmem:[%s11204_s6 + $0x1608] sm:$0xff]  ;;  %905 = vst [vmem:[%s11209_s7 + $0xaf8] sm:$0xff] %v904_v31  ;;  %v910_v34 = vld [vmem:[%s11204_s6 + $0x1610] sm:$0xff] }
  0xc2   : > { %907 = vst [vmem:[%s11209_s7 + $0xb00] sm:$0xff] %v906_v32  ;;  %909 = vst [vmem:[%s11209_s7 + $0xb08] sm:$0xff] %v908_v33  ;;  %v912_v35 = vld [vmem:[%s11204_s6 + $0x1618] sm:$0xff]  ;;  %v914_v36 = vld [vmem:[%s11204_s6 + $0x1620] sm:$0xff] }
  0xc3   : > { %911 = vst [vmem:[%s11209_s7 + $0xb10] sm:$0xff] %v910_v34  ;;  %913 = vst [vmem:[%s11209_s7 + $0xb18] sm:$0xff] %v912_v35  ;;  %v916_v37 = vld [vmem:[%s11204_s6 + $0x1628] sm:$0xff]  ;;  %v918_v38 = vld [vmem:[%s11204_s6 + $0x1630] sm:$0xff] }
  0xc4   : > { %915 = vst [vmem:[%s11209_s7 + $0xb20] sm:$0xff] %v914_v36  ;;  %v920_v39 = vld [vmem:[%s11204_s6 + $0x1638] sm:$0xff]  ;;  %917 = vst [vmem:[%s11209_s7 + $0xb28] sm:$0xff] %v916_v37  ;;  %v922_v40 = vld [vmem:[%s11204_s6 + $0x1680] sm:$0xff] }
  0xc5   : > { %919 = vst [vmem:[%s11209_s7 + $0xb30] sm:$0xff] %v918_v38  ;;  %921 = vst [vmem:[%s11209_s7 + $0xb38] sm:$0xff] %v920_v39  ;;  %v924_v41 = vld [vmem:[%s11204_s6 + $0x1688] sm:$0xff]  ;;  %v926_v42 = vld [vmem:[%s11204_s6 + $0x1690] sm:$0xff] }
  0xc6   : > { %923 = vst [vmem:[%s11209_s7 + $0xb40] sm:$0xff] %v922_v40  ;;  %925 = vst [vmem:[%s11209_s7 + $0xb48] sm:$0xff] %v924_v41  ;;  %v928_v43 = vld [vmem:[%s11204_s6 + $0x1698] sm:$0xff]  ;;  %v930_v44 = vld [vmem:[%s11204_s6 + $0x16a0] sm:$0xff] }
  0xc7   : > { %927 = vst [vmem:[%s11209_s7 + $0xb50] sm:$0xff] %v926_v42  ;;  %v932_v45 = vld [vmem:[%s11204_s6 + $0x16a8] sm:$0xff]  ;;  %929 = vst [vmem:[%s11209_s7 + $0xb58] sm:$0xff] %v928_v43  ;;  %v934_v46 = vld [vmem:[%s11204_s6 + $0x16b0] sm:$0xff] }
  0xc8   : > { %931 = vst [vmem:[%s11209_s7 + $0xb60] sm:$0xff] %v930_v44  ;;  %933 = vst [vmem:[%s11209_s7 + $0xb68] sm:$0xff] %v932_v45  ;;  %v936_v47 = vld [vmem:[%s11204_s6 + $0x16b8] sm:$0xff]  ;;  %v938_v48 = vld [vmem:[%s11204_s6 + $0x1700] sm:$0xff] }
  0xc9   : > { %935 = vst [vmem:[%s11209_s7 + $0xb70] sm:$0xff] %v934_v46  ;;  %937 = vst [vmem:[%s11209_s7 + $0xb78] sm:$0xff] %v936_v47  ;;  %v940_v49 = vld [vmem:[%s11204_s6 + $0x1708] sm:$0xff]  ;;  %v942_v50 = vld [vmem:[%s11204_s6 + $0x1710] sm:$0xff] }
  0xca   : > { %939 = vst [vmem:[%s11209_s7 + $0xb80] sm:$0xff] %v938_v48  ;;  %v944_v51 = vld [vmem:[%s11204_s6 + $0x1718] sm:$0xff]  ;;  %941 = vst [vmem:[%s11209_s7 + $0xb88] sm:$0xff] %v940_v49  ;;  %v946_v52 = vld [vmem:[%s11204_s6 + $0x1720] sm:$0xff] }
  0xcb   : > { %943 = vst [vmem:[%s11209_s7 + $0xb90] sm:$0xff] %v942_v50  ;;  %945 = vst [vmem:[%s11209_s7 + $0xb98] sm:$0xff] %v944_v51  ;;  %v948_v53 = vld [vmem:[%s11204_s6 + $0x1728] sm:$0xff]  ;;  %v950_v54 = vld [vmem:[%s11204_s6 + $0x1730] sm:$0xff] }
  0xcc   : > { %947 = vst [vmem:[%s11209_s7 + $0xba0] sm:$0xff] %v946_v52  ;;  %949 = vst [vmem:[%s11209_s7 + $0xba8] sm:$0xff] %v948_v53  ;;  %v952_v55 = vld [vmem:[%s11204_s6 + $0x1738] sm:$0xff]  ;;  %v954_v56 = vld [vmem:[%s11204_s6 + $0x1780] sm:$0xff] }
  0xcd   : > { %951 = vst [vmem:[%s11209_s7 + $0xbb0] sm:$0xff] %v950_v54  ;;  %v956_v57 = vld [vmem:[%s11204_s6 + $0x1788] sm:$0xff]  ;;  %953 = vst [vmem:[%s11209_s7 + $0xbb8] sm:$0xff] %v952_v55  ;;  %v958_v58 = vld [vmem:[%s11204_s6 + $0x1790] sm:$0xff] }
  0xce   : > { %955 = vst [vmem:[%s11209_s7 + $0xbc0] sm:$0xff] %v954_v56  ;;  %957 = vst [vmem:[%s11209_s7 + $0xbc8] sm:$0xff] %v956_v57  ;;  %v960_v59 = vld [vmem:[%s11204_s6 + $0x1798] sm:$0xff]  ;;  %v962_v60 = vld [vmem:[%s11204_s6 + $0x17a0] sm:$0xff] }
  0xcf   : > { %959 = vst [vmem:[%s11209_s7 + $0xbd0] sm:$0xff] %v958_v58  ;;  %961 = vst [vmem:[%s11209_s7 + $0xbd8] sm:$0xff] %v960_v59  ;;  %v964_v61 = vld [vmem:[%s11204_s6 + $0x17a8] sm:$0xff]  ;;  %v966_v62 = vld [vmem:[%s11204_s6 + $0x17b0] sm:$0xff] }
  0xd0   : > { %963 = vst [vmem:[%s11209_s7 + $0xbe0] sm:$0xff] %v962_v60  ;;  %v968_v63 = vld [vmem:[%s11204_s6 + $0x17b8] sm:$0xff]  ;;  %965 = vst [vmem:[%s11209_s7 + $0xbe8] sm:$0xff] %v964_v61  ;;  %v970_v0 = vld [vmem:[%s11204_s6 + $0x1800] sm:$0xff] }
  0xd1   : > { %967 = vst [vmem:[%s11209_s7 + $0xbf0] sm:$0xff] %v966_v62  ;;  %969 = vst [vmem:[%s11209_s7 + $0xbf8] sm:$0xff] %v968_v63  ;;  %v972_v1 = vld [vmem:[%s11204_s6 + $0x1808] sm:$0xff]  ;;  %v974_v2 = vld [vmem:[%s11204_s6 + $0x1810] sm:$0xff] }
  0xd2   : > { %971 = vst [vmem:[%s11209_s7 + $0xc00] sm:$0xff] %v970_v0  ;;  %973 = vst [vmem:[%s11209_s7 + $0xc08] sm:$0xff] %v972_v1  ;;  %v976_v3 = vld [vmem:[%s11204_s6 + $0x1818] sm:$0xff]  ;;  %v978_v4 = vld [vmem:[%s11204_s6 + $0x1820] sm:$0xff] }
  0xd3   : > { %975 = vst [vmem:[%s11209_s7 + $0xc10] sm:$0xff] %v974_v2  ;;  %v980_v5 = vld [vmem:[%s11204_s6 + $0x1828] sm:$0xff]  ;;  %977 = vst [vmem:[%s11209_s7 + $0xc18] sm:$0xff] %v976_v3  ;;  %v982_v6 = vld [vmem:[%s11204_s6 + $0x1830] sm:$0xff] }
  0xd4   : > { %979 = vst [vmem:[%s11209_s7 + $0xc20] sm:$0xff] %v978_v4  ;;  %981 = vst [vmem:[%s11209_s7 + $0xc28] sm:$0xff] %v980_v5  ;;  %v984_v7 = vld [vmem:[%s11204_s6 + $0x1838] sm:$0xff]  ;;  %v986_v8 = vld [vmem:[%s11204_s6 + $0x1880] sm:$0xff] }
  0xd5   : > { %983 = vst [vmem:[%s11209_s7 + $0xc30] sm:$0xff] %v982_v6  ;;  %985 = vst [vmem:[%s11209_s7 + $0xc38] sm:$0xff] %v984_v7  ;;  %v988_v9 = vld [vmem:[%s11204_s6 + $0x1888] sm:$0xff]  ;;  %v990_v10 = vld [vmem:[%s11204_s6 + $0x1890] sm:$0xff] }
  0xd6   : > { %987 = vst [vmem:[%s11209_s7 + $0xc40] sm:$0xff] %v986_v8  ;;  %v992_v11 = vld [vmem:[%s11204_s6 + $0x1898] sm:$0xff]  ;;  %989 = vst [vmem:[%s11209_s7 + $0xc48] sm:$0xff] %v988_v9  ;;  %v994_v12 = vld [vmem:[%s11204_s6 + $0x18a0] sm:$0xff] }
  0xd7   : > { %991 = vst [vmem:[%s11209_s7 + $0xc50] sm:$0xff] %v990_v10  ;;  %993 = vst [vmem:[%s11209_s7 + $0xc58] sm:$0xff] %v992_v11  ;;  %v996_v13 = vld [vmem:[%s11204_s6 + $0x18a8] sm:$0xff]  ;;  %v998_v14 = vld [vmem:[%s11204_s6 + $0x18b0] sm:$0xff] }
  0xd8   : > { %995 = vst [vmem:[%s11209_s7 + $0xc60] sm:$0xff] %v994_v12  ;;  %997 = vst [vmem:[%s11209_s7 + $0xc68] sm:$0xff] %v996_v13  ;;  %v1000_v15 = vld [vmem:[%s11204_s6 + $0x18b8] sm:$0xff]  ;;  %v1002_v16 = vld [vmem:[%s11204_s6 + $0x1900] sm:$0xff] }
  0xd9   : > { %999 = vst [vmem:[%s11209_s7 + $0xc70] sm:$0xff] %v998_v14  ;;  %v1004_v17 = vld [vmem:[%s11204_s6 + $0x1908] sm:$0xff]  ;;  %1001 = vst [vmem:[%s11209_s7 + $0xc78] sm:$0xff] %v1000_v15  ;;  %v1006_v18 = vld [vmem:[%s11204_s6 + $0x1910] sm:$0xff] }
  0xda   : > { %1003 = vst [vmem:[%s11209_s7 + $0xc80] sm:$0xff] %v1002_v16  ;;  %1005 = vst [vmem:[%s11209_s7 + $0xc88] sm:$0xff] %v1004_v17  ;;  %v1008_v19 = vld [vmem:[%s11204_s6 + $0x1918] sm:$0xff]  ;;  %v1010_v20 = vld [vmem:[%s11204_s6 + $0x1920] sm:$0xff] }
  0xdb   : > { %1007 = vst [vmem:[%s11209_s7 + $0xc90] sm:$0xff] %v1006_v18  ;;  %1009 = vst [vmem:[%s11209_s7 + $0xc98] sm:$0xff] %v1008_v19  ;;  %v1012_v21 = vld [vmem:[%s11204_s6 + $0x1928] sm:$0xff]  ;;  %v1014_v22 = vld [vmem:[%s11204_s6 + $0x1930] sm:$0xff] }
  0xdc   : > { %1011 = vst [vmem:[%s11209_s7 + $0xca0] sm:$0xff] %v1010_v20  ;;  %v1016_v23 = vld [vmem:[%s11204_s6 + $0x1938] sm:$0xff]  ;;  %1013 = vst [vmem:[%s11209_s7 + $0xca8] sm:$0xff] %v1012_v21  ;;  %v1018_v24 = vld [vmem:[%s11204_s6 + $0x1980] sm:$0xff] }
  0xdd   : > { %1015 = vst [vmem:[%s11209_s7 + $0xcb0] sm:$0xff] %v1014_v22  ;;  %1017 = vst [vmem:[%s11209_s7 + $0xcb8] sm:$0xff] %v1016_v23  ;;  %v1020_v25 = vld [vmem:[%s11204_s6 + $0x1988] sm:$0xff]  ;;  %v1022_v26 = vld [vmem:[%s11204_s6 + $0x1990] sm:$0xff] }
  0xde   : > { %1019 = vst [vmem:[%s11209_s7 + $0xcc0] sm:$0xff] %v1018_v24  ;;  %1021 = vst [vmem:[%s11209_s7 + $0xcc8] sm:$0xff] %v1020_v25  ;;  %v1024_v27 = vld [vmem:[%s11204_s6 + $0x1998] sm:$0xff]  ;;  %v1026_v28 = vld [vmem:[%s11204_s6 + $0x19a0] sm:$0xff] }
  0xdf   : > { %1023 = vst [vmem:[%s11209_s7 + $0xcd0] sm:$0xff] %v1022_v26  ;;  %v1028_v29 = vld [vmem:[%s11204_s6 + $0x19a8] sm:$0xff]  ;;  %1025 = vst [vmem:[%s11209_s7 + $0xcd8] sm:$0xff] %v1024_v27  ;;  %v1030_v30 = vld [vmem:[%s11204_s6 + $0x19b0] sm:$0xff] }
  0xe0   : > { %1027 = vst [vmem:[%s11209_s7 + $0xce0] sm:$0xff] %v1026_v28  ;;  %1029 = vst [vmem:[%s11209_s7 + $0xce8] sm:$0xff] %v1028_v29  ;;  %v1032_v31 = vld [vmem:[%s11204_s6 + $0x19b8] sm:$0xff]  ;;  %v1034_v32 = vld [vmem:[%s11204_s6 + $0x1a00] sm:$0xff] }
  0xe1   : > { %1031 = vst [vmem:[%s11209_s7 + $0xcf0] sm:$0xff] %v1030_v30  ;;  %1033 = vst [vmem:[%s11209_s7 + $0xcf8] sm:$0xff] %v1032_v31  ;;  %v1036_v33 = vld [vmem:[%s11204_s6 + $0x1a08] sm:$0xff]  ;;  %v1038_v34 = vld [vmem:[%s11204_s6 + $0x1a10] sm:$0xff] }
  0xe2   : > { %1035 = vst [vmem:[%s11209_s7 + $0xd00] sm:$0xff] %v1034_v32  ;;  %v1040_v35 = vld [vmem:[%s11204_s6 + $0x1a18] sm:$0xff]  ;;  %1037 = vst [vmem:[%s11209_s7 + $0xd08] sm:$0xff] %v1036_v33  ;;  %v1042_v36 = vld [vmem:[%s11204_s6 + $0x1a20] sm:$0xff] }
  0xe3   : > { %1039 = vst [vmem:[%s11209_s7 + $0xd10] sm:$0xff] %v1038_v34  ;;  %1041 = vst [vmem:[%s11209_s7 + $0xd18] sm:$0xff] %v1040_v35  ;;  %v1044_v37 = vld [vmem:[%s11204_s6 + $0x1a28] sm:$0xff]  ;;  %v1046_v38 = vld [vmem:[%s11204_s6 + $0x1a30] sm:$0xff] }
  0xe4   : > { %1043 = vst [vmem:[%s11209_s7 + $0xd20] sm:$0xff] %v1042_v36  ;;  %1045 = vst [vmem:[%s11209_s7 + $0xd28] sm:$0xff] %v1044_v37  ;;  %v1048_v39 = vld [vmem:[%s11204_s6 + $0x1a38] sm:$0xff]  ;;  %v1050_v40 = vld [vmem:[%s11204_s6 + $0x1a80] sm:$0xff] }
  0xe5   : > { %1047 = vst [vmem:[%s11209_s7 + $0xd30] sm:$0xff] %v1046_v38  ;;  %v1052_v41 = vld [vmem:[%s11204_s6 + $0x1a88] sm:$0xff]  ;;  %1049 = vst [vmem:[%s11209_s7 + $0xd38] sm:$0xff] %v1048_v39  ;;  %v1054_v42 = vld [vmem:[%s11204_s6 + $0x1a90] sm:$0xff] }
  0xe6   : > { %1051 = vst [vmem:[%s11209_s7 + $0xd40] sm:$0xff] %v1050_v40  ;;  %1053 = vst [vmem:[%s11209_s7 + $0xd48] sm:$0xff] %v1052_v41  ;;  %v1056_v43 = vld [vmem:[%s11204_s6 + $0x1a98] sm:$0xff]  ;;  %v1058_v44 = vld [vmem:[%s11204_s6 + $0x1aa0] sm:$0xff] }
  0xe7   : > { %1055 = vst [vmem:[%s11209_s7 + $0xd50] sm:$0xff] %v1054_v42  ;;  %1057 = vst [vmem:[%s11209_s7 + $0xd58] sm:$0xff] %v1056_v43  ;;  %v1060_v45 = vld [vmem:[%s11204_s6 + $0x1aa8] sm:$0xff]  ;;  %v1062_v46 = vld [vmem:[%s11204_s6 + $0x1ab0] sm:$0xff] }
  0xe8   : > { %1059 = vst [vmem:[%s11209_s7 + $0xd60] sm:$0xff] %v1058_v44  ;;  %v1064_v47 = vld [vmem:[%s11204_s6 + $0x1ab8] sm:$0xff]  ;;  %1061 = vst [vmem:[%s11209_s7 + $0xd68] sm:$0xff] %v1060_v45  ;;  %v1066_v48 = vld [vmem:[%s11204_s6 + $0x1b00] sm:$0xff] }
  0xe9   : > { %1063 = vst [vmem:[%s11209_s7 + $0xd70] sm:$0xff] %v1062_v46  ;;  %1065 = vst [vmem:[%s11209_s7 + $0xd78] sm:$0xff] %v1064_v47  ;;  %v1068_v49 = vld [vmem:[%s11204_s6 + $0x1b08] sm:$0xff]  ;;  %v1070_v50 = vld [vmem:[%s11204_s6 + $0x1b10] sm:$0xff] }
  0xea   : > { %1067 = vst [vmem:[%s11209_s7 + $0xd80] sm:$0xff] %v1066_v48  ;;  %1069 = vst [vmem:[%s11209_s7 + $0xd88] sm:$0xff] %v1068_v49  ;;  %v1072_v51 = vld [vmem:[%s11204_s6 + $0x1b18] sm:$0xff]  ;;  %v1074_v52 = vld [vmem:[%s11204_s6 + $0x1b20] sm:$0xff] }
  0xeb   : > { %1071 = vst [vmem:[%s11209_s7 + $0xd90] sm:$0xff] %v1070_v50  ;;  %v1076_v53 = vld [vmem:[%s11204_s6 + $0x1b28] sm:$0xff]  ;;  %1073 = vst [vmem:[%s11209_s7 + $0xd98] sm:$0xff] %v1072_v51  ;;  %v1078_v54 = vld [vmem:[%s11204_s6 + $0x1b30] sm:$0xff] }
  0xec   : > { %1075 = vst [vmem:[%s11209_s7 + $0xda0] sm:$0xff] %v1074_v52  ;;  %1077 = vst [vmem:[%s11209_s7 + $0xda8] sm:$0xff] %v1076_v53  ;;  %v1080_v55 = vld [vmem:[%s11204_s6 + $0x1b38] sm:$0xff]  ;;  %v1082_v56 = vld [vmem:[%s11204_s6 + $0x1b80] sm:$0xff] }
  0xed   : > { %1079 = vst [vmem:[%s11209_s7 + $0xdb0] sm:$0xff] %v1078_v54  ;;  %1081 = vst [vmem:[%s11209_s7 + $0xdb8] sm:$0xff] %v1080_v55  ;;  %v1084_v57 = vld [vmem:[%s11204_s6 + $0x1b88] sm:$0xff]  ;;  %v1086_v58 = vld [vmem:[%s11204_s6 + $0x1b90] sm:$0xff] }
  0xee   : > { %1083 = vst [vmem:[%s11209_s7 + $0xdc0] sm:$0xff] %v1082_v56  ;;  %v1088_v59 = vld [vmem:[%s11204_s6 + $0x1b98] sm:$0xff]  ;;  %1085 = vst [vmem:[%s11209_s7 + $0xdc8] sm:$0xff] %v1084_v57  ;;  %v1090_v60 = vld [vmem:[%s11204_s6 + $0x1ba0] sm:$0xff] }
  0xef   : > { %1087 = vst [vmem:[%s11209_s7 + $0xdd0] sm:$0xff] %v1086_v58  ;;  %1089 = vst [vmem:[%s11209_s7 + $0xdd8] sm:$0xff] %v1088_v59  ;;  %v1092_v61 = vld [vmem:[%s11204_s6 + $0x1ba8] sm:$0xff]  ;;  %v1094_v62 = vld [vmem:[%s11204_s6 + $0x1bb0] sm:$0xff] }
  0xf0   : > { %1091 = vst [vmem:[%s11209_s7 + $0xde0] sm:$0xff] %v1090_v60  ;;  %1093 = vst [vmem:[%s11209_s7 + $0xde8] sm:$0xff] %v1092_v61  ;;  %v1096_v63 = vld [vmem:[%s11204_s6 + $0x1bb8] sm:$0xff]  ;;  %v1098_v0 = vld [vmem:[%s11204_s6 + $0x1c00] sm:$0xff] }
  0xf1   : > { %1095 = vst [vmem:[%s11209_s7 + $0xdf0] sm:$0xff] %v1094_v62  ;;  %v1100_v1 = vld [vmem:[%s11204_s6 + $0x1c08] sm:$0xff]  ;;  %1097 = vst [vmem:[%s11209_s7 + $0xdf8] sm:$0xff] %v1096_v63  ;;  %v1102_v2 = vld [vmem:[%s11204_s6 + $0x1c10] sm:$0xff] }
  0xf2   : > { %1099 = vst [vmem:[%s11209_s7 + $0xe00] sm:$0xff] %v1098_v0  ;;  %1101 = vst [vmem:[%s11209_s7 + $0xe08] sm:$0xff] %v1100_v1  ;;  %v1104_v3 = vld [vmem:[%s11204_s6 + $0x1c18] sm:$0xff]  ;;  %v1106_v4 = vld [vmem:[%s11204_s6 + $0x1c20] sm:$0xff] }
  0xf3   : > { %1103 = vst [vmem:[%s11209_s7 + $0xe10] sm:$0xff] %v1102_v2  ;;  %1105 = vst [vmem:[%s11209_s7 + $0xe18] sm:$0xff] %v1104_v3  ;;  %v1108_v5 = vld [vmem:[%s11204_s6 + $0x1c28] sm:$0xff]  ;;  %v1110_v6 = vld [vmem:[%s11204_s6 + $0x1c30] sm:$0xff] }
  0xf4   : > { %1107 = vst [vmem:[%s11209_s7 + $0xe20] sm:$0xff] %v1106_v4  ;;  %v1112_v7 = vld [vmem:[%s11204_s6 + $0x1c38] sm:$0xff]  ;;  %1109 = vst [vmem:[%s11209_s7 + $0xe28] sm:$0xff] %v1108_v5  ;;  %v1114_v8 = vld [vmem:[%s11204_s6 + $0x1c80] sm:$0xff] }
  0xf5   : > { %1111 = vst [vmem:[%s11209_s7 + $0xe30] sm:$0xff] %v1110_v6  ;;  %1113 = vst [vmem:[%s11209_s7 + $0xe38] sm:$0xff] %v1112_v7  ;;  %v1116_v9 = vld [vmem:[%s11204_s6 + $0x1c88] sm:$0xff]  ;;  %v1118_v10 = vld [vmem:[%s11204_s6 + $0x1c90] sm:$0xff] }
  0xf6   : > { %1115 = vst [vmem:[%s11209_s7 + $0xe40] sm:$0xff] %v1114_v8  ;;  %1117 = vst [vmem:[%s11209_s7 + $0xe48] sm:$0xff] %v1116_v9  ;;  %v1120_v11 = vld [vmem:[%s11204_s6 + $0x1c98] sm:$0xff]  ;;  %v1122_v12 = vld [vmem:[%s11204_s6 + $0x1ca0] sm:$0xff] }
  0xf7   : > { %1119 = vst [vmem:[%s11209_s7 + $0xe50] sm:$0xff] %v1118_v10  ;;  %v1124_v13 = vld [vmem:[%s11204_s6 + $0x1ca8] sm:$0xff]  ;;  %1121 = vst [vmem:[%s11209_s7 + $0xe58] sm:$0xff] %v1120_v11  ;;  %v1126_v14 = vld [vmem:[%s11204_s6 + $0x1cb0] sm:$0xff] }
  0xf8   : > { %1123 = vst [vmem:[%s11209_s7 + $0xe60] sm:$0xff] %v1122_v12  ;;  %1125 = vst [vmem:[%s11209_s7 + $0xe68] sm:$0xff] %v1124_v13  ;;  %v1128_v15 = vld [vmem:[%s11204_s6 + $0x1cb8] sm:$0xff]  ;;  %v1130_v16 = vld [vmem:[%s11204_s6 + $0x1d00] sm:$0xff] }
  0xf9   : > { %1127 = vst [vmem:[%s11209_s7 + $0xe70] sm:$0xff] %v1126_v14  ;;  %1129 = vst [vmem:[%s11209_s7 + $0xe78] sm:$0xff] %v1128_v15  ;;  %v1132_v17 = vld [vmem:[%s11204_s6 + $0x1d08] sm:$0xff]  ;;  %v1134_v18 = vld [vmem:[%s11204_s6 + $0x1d10] sm:$0xff] }
  0xfa   : > { %1131 = vst [vmem:[%s11209_s7 + $0xe80] sm:$0xff] %v1130_v16  ;;  %v1136_v19 = vld [vmem:[%s11204_s6 + $0x1d18] sm:$0xff]  ;;  %1133 = vst [vmem:[%s11209_s7 + $0xe88] sm:$0xff] %v1132_v17  ;;  %v1138_v20 = vld [vmem:[%s11204_s6 + $0x1d20] sm:$0xff] }
  0xfb   : > { %1135 = vst [vmem:[%s11209_s7 + $0xe90] sm:$0xff] %v1134_v18  ;;  %1137 = vst [vmem:[%s11209_s7 + $0xe98] sm:$0xff] %v1136_v19  ;;  %v1140_v21 = vld [vmem:[%s11204_s6 + $0x1d28] sm:$0xff]  ;;  %v1142_v22 = vld [vmem:[%s11204_s6 + $0x1d30] sm:$0xff] }
  0xfc   : > { %1139 = vst [vmem:[%s11209_s7 + $0xea0] sm:$0xff] %v1138_v20  ;;  %1141 = vst [vmem:[%s11209_s7 + $0xea8] sm:$0xff] %v1140_v21  ;;  %v1144_v23 = vld [vmem:[%s11204_s6 + $0x1d38] sm:$0xff]  ;;  %v1146_v24 = vld [vmem:[%s11204_s6 + $0x1d80] sm:$0xff] }
  0xfd   : > { %1143 = vst [vmem:[%s11209_s7 + $0xeb0] sm:$0xff] %v1142_v22  ;;  %v1148_v25 = vld [vmem:[%s11204_s6 + $0x1d88] sm:$0xff]  ;;  %1145 = vst [vmem:[%s11209_s7 + $0xeb8] sm:$0xff] %v1144_v23  ;;  %v1150_v26 = vld [vmem:[%s11204_s6 + $0x1d90] sm:$0xff] }
  0xfe   : > { %1147 = vst [vmem:[%s11209_s7 + $0xec0] sm:$0xff] %v1146_v24  ;;  %1149 = vst [vmem:[%s11209_s7 + $0xec8] sm:$0xff] %v1148_v25  ;;  %v1152_v27 = vld [vmem:[%s11204_s6 + $0x1d98] sm:$0xff]  ;;  %v1154_v28 = vld [vmem:[%s11204_s6 + $0x1da0] sm:$0xff] }
  0xff   : > { %1151 = vst [vmem:[%s11209_s7 + $0xed0] sm:$0xff] %v1150_v26  ;;  %1153 = vst [vmem:[%s11209_s7 + $0xed8] sm:$0xff] %v1152_v27  ;;  %v1156_v29 = vld [vmem:[%s11204_s6 + $0x1da8] sm:$0xff]  ;;  %v1158_v30 = vld [vmem:[%s11204_s6 + $0x1db0] sm:$0xff] }
 0x100   : > { %1155 = vst [vmem:[%s11209_s7 + $0xee0] sm:$0xff] %v1154_v28  ;;  %v1160_v31 = vld [vmem:[%s11204_s6 + $0x1db8] sm:$0xff]  ;;  %1157 = vst [vmem:[%s11209_s7 + $0xee8] sm:$0xff] %v1156_v29  ;;  %v1162_v32 = vld [vmem:[%s11204_s6 + $0x1e00] sm:$0xff] }
 0x101   : > { %1159 = vst [vmem:[%s11209_s7 + $0xef0] sm:$0xff] %v1158_v30  ;;  %1161 = vst [vmem:[%s11209_s7 + $0xef8] sm:$0xff] %v1160_v31  ;;  %v1164_v33 = vld [vmem:[%s11204_s6 + $0x1e08] sm:$0xff]  ;;  %v1166_v34 = vld [vmem:[%s11204_s6 + $0x1e10] sm:$0xff] }
 0x102   : > { %1163 = vst [vmem:[%s11209_s7 + $0xf00] sm:$0xff] %v1162_v32  ;;  %1165 = vst [vmem:[%s11209_s7 + $0xf08] sm:$0xff] %v1164_v33  ;;  %v1168_v35 = vld [vmem:[%s11204_s6 + $0x1e18] sm:$0xff]  ;;  %v1170_v36 = vld [vmem:[%s11204_s6 + $0x1e20] sm:$0xff] }
 0x103   : > { %1167 = vst [vmem:[%s11209_s7 + $0xf10] sm:$0xff] %v1166_v34  ;;  %v1172_v37 = vld [vmem:[%s11204_s6 + $0x1e28] sm:$0xff]  ;;  %1169 = vst [vmem:[%s11209_s7 + $0xf18] sm:$0xff] %v1168_v35  ;;  %v1174_v38 = vld [vmem:[%s11204_s6 + $0x1e30] sm:$0xff] }
 0x104   : > { %1171 = vst [vmem:[%s11209_s7 + $0xf20] sm:$0xff] %v1170_v36  ;;  %1173 = vst [vmem:[%s11209_s7 + $0xf28] sm:$0xff] %v1172_v37  ;;  %v1176_v39 = vld [vmem:[%s11204_s6 + $0x1e38] sm:$0xff]  ;;  %v1178_v40 = vld [vmem:[%s11204_s6 + $0x1e80] sm:$0xff] }
 0x105   : > { %1175 = vst [vmem:[%s11209_s7 + $0xf30] sm:$0xff] %v1174_v38  ;;  %1177 = vst [vmem:[%s11209_s7 + $0xf38] sm:$0xff] %v1176_v39  ;;  %v1180_v41 = vld [vmem:[%s11204_s6 + $0x1e88] sm:$0xff]  ;;  %v1182_v42 = vld [vmem:[%s11204_s6 + $0x1e90] sm:$0xff] }
 0x106   : > { %1179 = vst [vmem:[%s11209_s7 + $0xf40] sm:$0xff] %v1178_v40  ;;  %v1184_v43 = vld [vmem:[%s11204_s6 + $0x1e98] sm:$0xff]  ;;  %1181 = vst [vmem:[%s11209_s7 + $0xf48] sm:$0xff] %v1180_v41  ;;  %v1186_v44 = vld [vmem:[%s11204_s6 + $0x1ea0] sm:$0xff] }
 0x107   : > { %1183 = vst [vmem:[%s11209_s7 + $0xf50] sm:$0xff] %v1182_v42  ;;  %1185 = vst [vmem:[%s11209_s7 + $0xf58] sm:$0xff] %v1184_v43  ;;  %v1188_v45 = vld [vmem:[%s11204_s6 + $0x1ea8] sm:$0xff]  ;;  %v1190_v46 = vld [vmem:[%s11204_s6 + $0x1eb0] sm:$0xff] }
 0x108   : > { %1187 = vst [vmem:[%s11209_s7 + $0xf60] sm:$0xff] %v1186_v44  ;;  %1189 = vst [vmem:[%s11209_s7 + $0xf68] sm:$0xff] %v1188_v45  ;;  %v1192_v47 = vld [vmem:[%s11204_s6 + $0x1eb8] sm:$0xff]  ;;  %v1194_v48 = vld [vmem:[%s11204_s6 + $0x1f00] sm:$0xff] }
 0x109   : > { %1191 = vst [vmem:[%s11209_s7 + $0xf70] sm:$0xff] %v1190_v46  ;;  %v1196_v49 = vld [vmem:[%s11204_s6 + $0x1f08] sm:$0xff]  ;;  %1193 = vst [vmem:[%s11209_s7 + $0xf78] sm:$0xff] %v1192_v47  ;;  %v1198_v50 = vld [vmem:[%s11204_s6 + $0x1f10] sm:$0xff] }
 0x10a   : > { %1195 = vst [vmem:[%s11209_s7 + $0xf80] sm:$0xff] %v1194_v48  ;;  %1197 = vst [vmem:[%s11209_s7 + $0xf88] sm:$0xff] %v1196_v49  ;;  %v1200_v51 = vld [vmem:[%s11204_s6 + $0x1f18] sm:$0xff]  ;;  %v1202_v52 = vld [vmem:[%s11204_s6 + $0x1f20] sm:$0xff] }
 0x10b   : > { %1199 = vst [vmem:[%s11209_s7 + $0xf90] sm:$0xff] %v1198_v50  ;;  %1201 = vst [vmem:[%s11209_s7 + $0xf98] sm:$0xff] %v1200_v51  ;;  %v1204_v53 = vld [vmem:[%s11204_s6 + $0x1f28] sm:$0xff]  ;;  %v1206_v54 = vld [vmem:[%s11204_s6 + $0x1f30] sm:$0xff] }
 0x10c   : > { %1203 = vst [vmem:[%s11209_s7 + $0xfa0] sm:$0xff] %v1202_v52  ;;  %v1208_v55 = vld [vmem:[%s11204_s6 + $0x1f38] sm:$0xff]  ;;  %1205 = vst [vmem:[%s11209_s7 + $0xfa8] sm:$0xff] %v1204_v53  ;;  %v1210_v56 = vld [vmem:[%s11204_s6 + $0x1f80] sm:$0xff] }
 0x10d   : > { %1207 = vst [vmem:[%s11209_s7 + $0xfb0] sm:$0xff] %v1206_v54  ;;  %1209 = vst [vmem:[%s11209_s7 + $0xfb8] sm:$0xff] %v1208_v55  ;;  %v1212_v57 = vld [vmem:[%s11204_s6 + $0x1f88] sm:$0xff]  ;;  %v1214_v58 = vld [vmem:[%s11204_s6 + $0x1f90] sm:$0xff] }
 0x10e   : > { %1211 = vst [vmem:[%s11209_s7 + $0xfc0] sm:$0xff] %v1210_v56  ;;  %1213 = vst [vmem:[%s11209_s7 + $0xfc8] sm:$0xff] %v1212_v57  ;;  %v1216_v59 = vld [vmem:[%s11204_s6 + $0x1f98] sm:$0xff]  ;;  %v1218_v60 = vld [vmem:[%s11204_s6 + $0x1fa0] sm:$0xff] }
 0x10f   : > { %1215 = vst [vmem:[%s11209_s7 + $0xfd0] sm:$0xff] %v1214_v58  ;;  %v1220_v61 = vld [vmem:[%s11204_s6 + $0x1fa8] sm:$0xff]  ;;  %1217 = vst [vmem:[%s11209_s7 + $0xfd8] sm:$0xff] %v1216_v59  ;;  %v1222_v62 = vld [vmem:[%s11204_s6 + $0x1fb0] sm:$0xff] }
 0x110   : > { %1219 = vst [vmem:[%s11209_s7 + $0xfe0] sm:$0xff] %v1218_v60  ;;  %1221 = vst [vmem:[%s11209_s7 + $0xfe8] sm:$0xff] %v1220_v61  ;;  %v1224_v63 = vld [vmem:[%s11204_s6 + $0x1fb8] sm:$0xff] }
 0x111   : > { %1223 = vst [vmem:[%s11209_s7 + $0xff0] sm:$0xff] %v1222_v62  ;;  %1225 = vst [vmem:[%s11209_s7 + $0xff8] sm:$0xff] %v1224_v63 }
 0x112 PF: > { %p9104_p5 = scmp.ge.s32.totalorder %s11138_s20, 1  ;;  %p1238_p6 = scmp.lt.s32.totalorder %s11138_s20, 3 }
 0x114   : > { %p1239_p7 = pnand %p9104_p5, %p1238_p6 }
 0x115   : > { %v10300_v0 = vld [vmem:[%s14497_s1 + $0x4] ss:$16 sps:$4 sm:$0xff] (!%p1239_p7)   ;;  %v10302_v1 = vld [vmem:[%s14497_s1 + $0xc] ss:$16 sps:$4 sm:$0xff] (!%p1239_p7)   ;;  %v10304_v2 = vld [vmem:[%s14497_s1] ss:$16 sps:$4 sm:$0xff] (!%p1239_p7)  }
 0x116   : > { %1242 = sbr.rel (%p1239_p7) target bundleno = 1691 (0x69b), region = 59  ;;  %4446 = vmatprep.subr.bf16.mxu0 (!%p1239_p7), %v10300_v0  ;;  %v10305_v3 = vld [vmem:[%s14497_s1 + $0x8] ss:$16 sps:$4 sm:$0xff] (!%p1239_p7)   ;;  %4774 = vmatprep.subr.bf16.mxu1 (!%p1239_p7), %v10302_v1  ;;  %v10306_v4 = vld [vmem:[%s14497_s1 + $0x24] ss:$16 sps:$4 sm:$0xff] (!%p1239_p7)   ;;  %s1245_s17 = sand.u32 (!%p1239_p7), 1, %s11130_s18  }
 0x117   : > { %4447 = vmatpush1.bf16.msra.mxu0 (!%p1239_p7), %v10304_v2  ;;  %4775 = vmatpush1.bf16.msra.mxu1 (!%p1239_p7), %v10305_v3  ;;  %v10308_v5 = vld [vmem:[%s14497_s1 + $0x2c] ss:$16 sps:$4 sm:$0xff] (!%p1239_p7)   ;;  %v10310_v6 = vld [vmem:[%s14497_s1 + $0x20] ss:$16 sps:$4 sm:$0xff] (!%p1239_p7)   ;;  %v10311_v7 = vld [vmem:[%s14497_s1 + $0x28] ss:$16 sps:$4 sm:$0xff] (!%p1239_p7)  }
 0x118   : > { %4448 = vmatprep.subr.bf16.mxu0 (!%p1239_p7), %v10306_v4  ;;  %4776 = vmatprep.subr.bf16.mxu1 (!%p1239_p7), %v10308_v5  ;;  %v10312_v8 = vld [vmem:[%s14497_s1 + $0x44] ss:$16 sps:$4 sm:$0xff] (!%p1239_p7)   ;;  %v10314_v9 = vld [vmem:[%s14497_s1 + $0x4c] ss:$16 sps:$4 sm:$0xff] (!%p1239_p7)   ;;  %v10316_v10 = vld [vmem:[%s14497_s1 + $0x40] ss:$16 sps:$4 sm:$0xff] (!%p1239_p7)  }
 0x119   : > { %v10317_v11 = vld [vmem:[%s14497_s1 + $0x48] ss:$16 sps:$4 sm:$0xff] (!%p1239_p7)   ;;  %v10318_v12 = vld [vmem:[%s14497_s1 + $0x64] ss:$16 sps:$4 sm:$0xff] (!%p1239_p7)   ;;  %v10320_v13 = vld [vmem:[%s14497_s1 + $0x6c] ss:$16 sps:$4 sm:$0xff] (!%p1239_p7)  }
 0x11a   : > { %v10322_v14 = vld [vmem:[%s14497_s1 + $0x60] ss:$16 sps:$4 sm:$0xff] (!%p1239_p7)   ;;  %v10323_v15 = vld [vmem:[%s14497_s1 + $0x68] ss:$16 sps:$4 sm:$0xff] (!%p1239_p7)   ;;  %v10324_v16 = vld [vmem:[%s14497_s1 + $0x84] ss:$16 sps:$4 sm:$0xff] (!%p1239_p7)  }
 0x11b   : > { %4449 = vmatpush1.bf16.msra.mxu0 (!%p1239_p7), %v10310_v6  ;;  %4777 = vmatpush1.bf16.msra.mxu1 (!%p1239_p7), %v10311_v7  ;;  %v10326_v17 = vld [vmem:[%s14497_s1 + $0x8c] ss:$16 sps:$4 sm:$0xff] (!%p1239_p7)   ;;  %v10328_v18 = vld [vmem:[%s14497_s1 + $0x80] ss:$16 sps:$4 sm:$0xff] (!%p1239_p7)   ;;  %v10329_v19 = vld [vmem:[%s14497_s1 + $0x88] ss:$16 sps:$4 sm:$0xff] (!%p1239_p7)  }
 0x11c   : > { %4450 = vmatprep.subr.bf16.mxu0 (!%p1239_p7), %v10312_v8  ;;  %4778 = vmatprep.subr.bf16.mxu1 (!%p1239_p7), %v10314_v9  ;;  %v10330_v20 = vld [vmem:[%s14497_s1 + $0xa4] ss:$16 sps:$4 sm:$0xff] (!%p1239_p7)   ;;  %v10332_v21 = vld [vmem:[%s14497_s1 + $0xac] ss:$16 sps:$4 sm:$0xff] (!%p1239_p7)   ;;  %v10334_v22 = vld [vmem:[%s14497_s1 + $0xa0] ss:$16 sps:$4 sm:$0xff] (!%p1239_p7)  }
 0x11d   : > { %v10335_v23 = vld [vmem:[%s14497_s1 + $0xa8] ss:$16 sps:$4 sm:$0xff]   ;;  %v10336_v24 = vld [vmem:[%s14497_s1 + $0xc4] ss:$16 sps:$4 sm:$0xff]   ;;  %v10338_v25 = vld [vmem:[%s14497_s1 + $0xcc] ss:$16 sps:$4 sm:$0xff]  }
 0x11e   : > { %v10340_v26 = vld [vmem:[%s14497_s1 + $0xc0] ss:$16 sps:$4 sm:$0xff]   ;;  %v10341_v27 = vld [vmem:[%s14497_s1 + $0xc8] ss:$16 sps:$4 sm:$0xff]   ;;  %v10342_v28 = vld [vmem:[%s14497_s1 + $0xe4] ss:$16 sps:$4 sm:$0xff]  }
 0x11f   : > { %4451 = vmatpush1.bf16.msra.mxu0 %v10316_v10  ;;  %4779 = vmatpush1.bf16.msra.mxu1 %v10317_v11  ;;  %v10344_v29 = vld [vmem:[%s14497_s1 + $0xec] ss:$16 sps:$4 sm:$0xff]   ;;  %v10346_v30 = vld [vmem:[%s14497_s1 + $0xe0] ss:$16 sps:$4 sm:$0xff]   ;;  %v10347_v31 = vld [vmem:[%s14497_s1 + $0xe8] ss:$16 sps:$4 sm:$0xff]  }
 0x120   : > { %4452 = vmatprep.subr.bf16.mxu0 %v10318_v12  ;;  %4780 = vmatprep.subr.bf16.mxu1 %v10320_v13  ;;  %v10348_v32 = vld [vmem:[%s14497_s1 + $0x104] ss:$16 sps:$4 sm:$0xff]   ;;  %v10350_v33 = vld [vmem:[%s14497_s1 + $0x10c] ss:$16 sps:$4 sm:$0xff]   ;;  %v10352_v34 = vld [vmem:[%s14497_s1 + $0x100] ss:$16 sps:$4 sm:$0xff]  }
 0x121   : > { %v10353_v35 = vld [vmem:[%s14497_s1 + $0x108] ss:$16 sps:$4 sm:$0xff]   ;;  %v10354_v36 = vld [vmem:[%s14497_s1 + $0x124] ss:$16 sps:$4 sm:$0xff]   ;;  %v10356_v37 = vld [vmem:[%s14497_s1 + $0x12c] ss:$16 sps:$4 sm:$0xff]  }
 0x122   : > { %v10358_v38 = vld [vmem:[%s14497_s1 + $0x120] ss:$16 sps:$4 sm:$0xff]   ;;  %v10359_v39 = vld [vmem:[%s14497_s1 + $0x128] ss:$16 sps:$4 sm:$0xff]   ;;  %v10360_v40 = vld [vmem:[%s14497_s1 + $0x144] ss:$16 sps:$4 sm:$0xff]  }
 0x123   : > { %4453 = vmatpush1.bf16.msra.mxu0 %v10322_v14  ;;  %4781 = vmatpush1.bf16.msra.mxu1 %v10323_v15  ;;  %v10362_v41 = vld [vmem:[%s14497_s1 + $0x14c] ss:$16 sps:$4 sm:$0xff]   ;;  %v10364_v42 = vld [vmem:[%s14497_s1 + $0x140] ss:$16 sps:$4 sm:$0xff]   ;;  %v10365_v43 = vld [vmem:[%s14497_s1 + $0x148] ss:$16 sps:$4 sm:$0xff]  }
 0x124   : > { %4454 = vmatprep.subr.bf16.mxu0 %v10324_v16  ;;  %4782 = vmatprep.subr.bf16.mxu1 %v10326_v17  ;;  %v10366_v44 = vld [vmem:[%s14497_s1 + $0x164] ss:$16 sps:$4 sm:$0xff]   ;;  %v10368_v45 = vld [vmem:[%s14497_s1 + $0x16c] ss:$16 sps:$4 sm:$0xff]   ;;  %v10370_v47 = vld [vmem:[%s14497_s1 + $0x160] ss:$16 sps:$4 sm:$0xff]  }
 0x125   : > { %v1288_v46 = vld [vmem:[%s14496_s0] sm:$0xff]  ;;  %v10371_v49 = vld [vmem:[%s14497_s1 + $0x168] ss:$16 sps:$4 sm:$0xff]   ;;  %v10374_v51 = vld [vmem:[%s14497_s1 + $0x18c] ss:$16 sps:$4 sm:$0xff]   ;;  %s9105_s28 = sshll.u32 %s1245_s17, 12 }
 0x126   : > { %v9110_v48 = vcombine.high %v1288_v46, %v1288_v46  ;;  %v10372_v50 = vld [vmem:[%s14497_s1 + $0x184] ss:$16 sps:$4 sm:$0xff]   ;;  %v10376_v52 = vld [vmem:[%s14497_s1 + $0x180] ss:$16 sps:$4 sm:$0xff]   ;;  %v10377_v53 = vld [vmem:[%s14497_s1 + $0x188] ss:$16 sps:$4 sm:$0xff]   ;;  %v9109_v4 = vcombine.low %v1288_v46, %v1288_v46 }
 0x127   : > { %4455 = vmatpush1.bf16.msra.mxu0 %v10328_v18  ;;  %4783 = vmatpush1.bf16.msra.mxu1 %v10329_v19  ;;  %v10378_v54 = vld [vmem:[%s14497_s1 + $0x1a4] ss:$16 sps:$4 sm:$0xff]   ;;  %v10380_v55 = vld [vmem:[%s14497_s1 + $0x1ac] ss:$16 sps:$4 sm:$0xff]   ;;  %v10382_v56 = vld [vmem:[%s14497_s1 + $0x1a0] ss:$16 sps:$4 sm:$0xff]  }
 0x128   : > { %4456 = vmatprep.subr.bf16.mxu0 %v10330_v20  ;;  %4784 = vmatprep.subr.bf16.mxu1 %v10332_v21  ;;  %v10383_v57 = vld [vmem:[%s14497_s1 + $0x1a8] ss:$16 sps:$4 sm:$0xff]   ;;  %v10384_v58 = vld [vmem:[%s14497_s1 + $0x1c4] ss:$16 sps:$4 sm:$0xff]   ;;  %v10386_v59 = vld [vmem:[%s14497_s1 + $0x1cc] ss:$16 sps:$4 sm:$0xff]  }
 0x129   : > { %4478 = vmatprep.mubr.bf16.mxu0 %v9110_v48  ;;  %4806 = vmatprep.mubr.bf16.mxu1 %v9110_v48  ;;  %v10388_v60 = vld [vmem:[%s14497_s1 + $0x1c0] ss:$16 sps:$4 sm:$0xff]   ;;  %v10389_v61 = vld [vmem:[%s14497_s1 + $0x1c8] ss:$16 sps:$4 sm:$0xff]   ;;  %v10390_v62 = vld [vmem:[%s14497_s1 + $0x1e4] ss:$16 sps:$4 sm:$0xff]  }
 0x12a   : > { %v10392_v63 = vld [vmem:[%s14497_s1 + $0x1ec] ss:$16 sps:$4 sm:$0xff]   ;;  %v10394_v0 = vld [vmem:[%s14497_s1 + $0x1e0] ss:$16 sps:$4 sm:$0xff]   ;;  %v10395_v1 = vld [vmem:[%s14497_s1 + $0x1e8] ss:$16 sps:$4 sm:$0xff]  }
 0x12b   : > { %4457 = vmatpush1.bf16.msra.mxu0 %v10334_v22  ;;  %4785 = vmatpush1.bf16.msra.mxu1 %v10335_v23  ;;  %v10400_v2 = vld [vmem:[%s14497_s1 + $0x204] ss:$16 sps:$4 sm:$0xff]   ;;  %v10403_v3 = vld [vmem:[%s14497_s1 + $0x20c] ss:$16 sps:$4 sm:$0xff]   ;;  %v10398_v5 = vld [vmem:[%s14497_s1 + $0x200] ss:$16 sps:$4 sm:$0xff]  }
 0x12c   : > { %4458 = vmatprep.subr.bf16.mxu0 %v10336_v24  ;;  %4786 = vmatprep.subr.bf16.mxu1 %v10338_v25  ;;  %v10401_v6 = vld [vmem:[%s14497_s1 + $0x208] ss:$16 sps:$4 sm:$0xff]   ;;  %v10406_v7 = vld [vmem:[%s14497_s1 + $0x224] ss:$16 sps:$4 sm:$0xff]   ;;  %v10409_v8 = vld [vmem:[%s14497_s1 + $0x22c] ss:$16 sps:$4 sm:$0xff]  }
 0x12d   : > { %v10404_v9 = vld [vmem:[%s14497_s1 + $0x220] ss:$16 sps:$4 sm:$0xff]   ;;  %v10407_v10 = vld [vmem:[%s14497_s1 + $0x228] ss:$16 sps:$4 sm:$0xff]   ;;  %v10412_v11 = vld [vmem:[%s14497_s1 + $0x244] ss:$16 sps:$4 sm:$0xff]  }
 0x12e   : > { %v10415_v12 = vld [vmem:[%s14497_s1 + $0x24c] ss:$16 sps:$4 sm:$0xff]   ;;  %v10410_v13 = vld [vmem:[%s14497_s1 + $0x240] ss:$16 sps:$4 sm:$0xff]   ;;  %v10413_v14 = vld [vmem:[%s14497_s1 + $0x248] ss:$16 sps:$4 sm:$0xff]  }
 0x12f   : > { %4459 = vmatpush1.bf16.msra.mxu0 %v10340_v26  ;;  %4787 = vmatpush1.bf16.msra.mxu1 %v10341_v27  ;;  %v10418_v15 = vld [vmem:[%s14497_s1 + $0x264] ss:$16 sps:$4 sm:$0xff]   ;;  %v10421_v16 = vld [vmem:[%s14497_s1 + $0x26c] ss:$16 sps:$4 sm:$0xff]   ;;  %v10416_v17 = vld [vmem:[%s14497_s1 + $0x260] ss:$16 sps:$4 sm:$0xff]  }
 0x130   : > { %4460 = vmatprep.subr.bf16.mxu0 %v10342_v28  ;;  %4788 = vmatprep.subr.bf16.mxu1 %v10344_v29  ;;  %v10419_v18 = vld [vmem:[%s14497_s1 + $0x268] ss:$16 sps:$4 sm:$0xff]   ;;  %v10424_v19 = vld [vmem:[%s14497_s1 + $0x284] ss:$16 sps:$4 sm:$0xff]   ;;  %v10427_v20 = vld [vmem:[%s14497_s1 + $0x28c] ss:$16 sps:$4 sm:$0xff]  }
 0x131   : > { %v10422_v21 = vld [vmem:[%s14497_s1 + $0x280] ss:$16 sps:$4 sm:$0xff]   ;;  %v10425_v22 = vld [vmem:[%s14497_s1 + $0x288] ss:$16 sps:$4 sm:$0xff]   ;;  %v10430_v23 = vld [vmem:[%s14497_s1 + $0x2a4] ss:$16 sps:$4 sm:$0xff]  }
 0x132   : > { %v10433_v24 = vld [vmem:[%s14497_s1 + $0x2ac] ss:$16 sps:$4 sm:$0xff]   ;;  %v10428_v25 = vld [vmem:[%s14497_s1 + $0x2a0] ss:$16 sps:$4 sm:$0xff]   ;;  %v10431_v26 = vld [vmem:[%s14497_s1 + $0x2a8] ss:$16 sps:$4 sm:$0xff]  }
 0x133   : > { %4461 = vmatpush1.bf16.msra.mxu0 %v10346_v30  ;;  %4789 = vmatpush1.bf16.msra.mxu1 %v10347_v31  ;;  %v10436_v27 = vld [vmem:[%s14497_s1 + $0x2c4] ss:$16 sps:$4 sm:$0xff]   ;;  %v10439_v28 = vld [vmem:[%s14497_s1 + $0x2cc] ss:$16 sps:$4 sm:$0xff]   ;;  %v10434_v31 = vld [vmem:[%s14497_s1 + $0x2c0] ss:$16 sps:$4 sm:$0xff]  }
 0x134   : > { %4462 = vmatprep.subr.bf16.mxu0 %v10348_v32  ;;  %4790 = vmatprep.subr.bf16.mxu1 %v10350_v33  ;;  %v12510_v29 = vld [vmem:[%s14496_s0 + $0x8] sm:$0xff]  ;;  %v10442_v33 = vld [vmem:[%s14497_s1 + $0x2e4] ss:$16 sps:$4 sm:$0xff]   ;;  %s13829_s24 = scalar_lea.vmem [#allocation2], %s9105_s28  ;;  %s9106_s7 = sshll.u32 %s9097_s21, 4 }
 0x135   : > { %v9112_v30 = vcombine.high %v12510_v29, %v12510_v29  ;;  %v10437_v32 = vld [vmem:[%s14497_s1 + $0x2c8] ss:$16 sps:$4 sm:$0xff]   ;;  %v10463_v46 = vld [vmem:[%s14497_s1 + $0x34c] ss:$16 sps:$4 sm:$0xff]   ;;  %p1278_p8 = scmp.lt.s32.totalorder %s9106_s7, 31 }
 0x136   : > { %v10461_v48 = vld [vmem:[%s14497_s1 + $0x348] ss:$16 sps:$4 sm:$0xff]  }
 0x137   : > { %4463 = vmatpush1.bf16.msra.mxu0 %v10352_v34  ;;  %4791 = vmatpush1.bf16.msra.mxu1 %v10353_v35  ;;  %v10445_v34 = vld [vmem:[%s14497_s1 + $0x2ec] ss:$16 sps:$4 sm:$0xff]   ;;  %v10440_v35 = vld [vmem:[%s14497_s1 + $0x2e0] ss:$16 sps:$4 sm:$0xff]   ;;  %s14506_s7 = smov (!%p1278_p8, %s9106_s7), 31 }
 0x138   : > { %4464 = vmatprep.subr.bf16.mxu0 %v10354_v36  ;;  %4792 = vmatprep.subr.bf16.mxu1 %v10356_v37  ;;  %v10443_v36 = vld [vmem:[%s14497_s1 + $0x2e8] ss:$16 sps:$4 sm:$0xff]   ;;  %v10448_v37 = vld [vmem:[%s14497_s1 + $0x304] ss:$16 sps:$4 sm:$0xff]   ;;  %s14248_s18 = scalar_lea.vmem %s14500_s4, %s14506_s7  ;;  %s9108_s8 = sshll.u32 %s14506_s7, 2 }
 0x139   : > { %s14291_s11 = scalar_lea.vmem %s14501_s5, %s9108_s8 }
 0x13b   : > { %4465 = vmatpush1.bf16.msra.mxu0 %v10358_v38  ;;  %4793 = vmatpush1.bf16.msra.mxu1 %v10359_v39  ;;  %v10451_v38 = vld [vmem:[%s14497_s1 + $0x30c] ss:$16 sps:$4 sm:$0xff]   ;;  %v10446_v39 = vld [vmem:[%s14497_s1 + $0x300] ss:$16 sps:$4 sm:$0xff]  }
 0x13c   : > { %4466 = vmatprep.subr.bf16.mxu0 %v10360_v40  ;;  %4794 = vmatprep.subr.bf16.mxu1 %v10362_v41  ;;  %v10449_v40 = vld [vmem:[%s14497_s1 + $0x308] ss:$16 sps:$4 sm:$0xff]   ;;  %v10454_v41 = vld [vmem:[%s14497_s1 + $0x324] ss:$16 sps:$4 sm:$0xff]  }
 0x13f   : > { %4467 = vmatpush1.bf16.msra.mxu0 %v10364_v42  ;;  %4795 = vmatpush1.bf16.msra.mxu1 %v10365_v43  ;;  %v10457_v42 = vld [vmem:[%s14497_s1 + $0x32c] ss:$16 sps:$4 sm:$0xff]   ;;  %v10452_v43 = vld [vmem:[%s14497_s1 + $0x320] ss:$16 sps:$4 sm:$0xff]  }
 0x140   : > { %4468 = vmatprep.subr.bf16.mxu0 %v10366_v44  ;;  %4796 = vmatprep.subr.bf16.mxu1 %v10368_v45  ;;  %v10455_v44 = vld [vmem:[%s14497_s1 + $0x328] ss:$16 sps:$4 sm:$0xff]   ;;  %v10460_v45 = vld [vmem:[%s14497_s1 + $0x344] ss:$16 sps:$4 sm:$0xff]  }
 0x143   : > { %4469 = vmatpush1.bf16.msra.mxu0 %v10370_v47  ;;  %4797 = vmatpush1.bf16.msra.mxu1 %v10371_v49  ;;  %v10458_v47 = vld [vmem:[%s14497_s1 + $0x340] ss:$16 sps:$4 sm:$0xff]   ;;  %v10466_v49 = vld [vmem:[%s14497_s1 + $0x364] ss:$16 sps:$4 sm:$0xff]  }
 0x144   : > { %4470 = vmatprep.subr.bf16.mxu0 %v10372_v50  ;;  %4798 = vmatprep.subr.bf16.mxu1 %v10374_v51  ;;  %v10469_v50 = vld [vmem:[%s14497_s1 + $0x36c] ss:$16 sps:$4 sm:$0xff]   ;;  %v10464_v51 = vld [vmem:[%s14497_s1 + $0x360] ss:$16 sps:$4 sm:$0xff]  }
 0x147   : > { %4471 = vmatpush1.bf16.msra.mxu0 %v10376_v52  ;;  %4799 = vmatpush1.bf16.msra.mxu1 %v10377_v53  ;;  %v10467_v52 = vld [vmem:[%s14497_s1 + $0x368] ss:$16 sps:$4 sm:$0xff]   ;;  %v10472_v53 = vld [vmem:[%s14497_s1 + $0x384] ss:$16 sps:$4 sm:$0xff]  }
 0x148   : > { %4472 = vmatprep.subr.bf16.mxu0 %v10378_v54  ;;  %4800 = vmatprep.subr.bf16.mxu1 %v10380_v55  ;;  %v10475_v54 = vld [vmem:[%s14497_s1 + $0x38c] ss:$16 sps:$4 sm:$0xff]   ;;  %v10470_v55 = vld [vmem:[%s14497_s1 + $0x380] ss:$16 sps:$4 sm:$0xff]  }
 0x14b   : > { %4473 = vmatpush1.bf16.msra.mxu0 %v10382_v56  ;;  %4801 = vmatpush1.bf16.msra.mxu1 %v10383_v57  ;;  %v10473_v56 = vld [vmem:[%s14497_s1 + $0x388] ss:$16 sps:$4 sm:$0xff]   ;;  %v10478_v57 = vld [vmem:[%s14497_s1 + $0x3a4] ss:$16 sps:$4 sm:$0xff]  }
 0x14c   : > { %4474 = vmatprep.subr.bf16.mxu0 %v10384_v58  ;;  %4802 = vmatprep.subr.bf16.mxu1 %v10386_v59  ;;  %v10481_v58 = vld [vmem:[%s14497_s1 + $0x3ac] ss:$16 sps:$4 sm:$0xff]   ;;  %v10476_v59 = vld [vmem:[%s14497_s1 + $0x3a0] ss:$16 sps:$4 sm:$0xff]  }
 0x14f   : > { %4475 = vmatpush1.bf16.msra.mxu0 %v10388_v60  ;;  %4803 = vmatpush1.bf16.msra.mxu1 %v10389_v61  ;;  %v10479_v60 = vld [vmem:[%s14497_s1 + $0x3a8] ss:$16 sps:$4 sm:$0xff]   ;;  %v10484_v61 = vld [vmem:[%s14497_s1 + $0x3c4] ss:$16 sps:$4 sm:$0xff]  }
 0x150   : > { %4476 = vmatprep.subr.bf16.mxu0 %v10390_v62  ;;  %4804 = vmatprep.subr.bf16.mxu1 %v10392_v63  ;;  %v10487_v62 = vld [vmem:[%s14497_s1 + $0x3cc] ss:$16 sps:$4 sm:$0xff]   ;;  %v10482_v63 = vld [vmem:[%s14497_s1 + $0x3c0] ss:$16 sps:$4 sm:$0xff]  }
 0x153   : > { %4477 = vmatpush1.bf16.msra.mxu0 %v10394_v0  ;;  %4805 = vmatpush1.bf16.msra.mxu1 %v10395_v1  ;;  %v10485_v0 = vld [vmem:[%s14497_s1 + $0x3c8] ss:$16 sps:$4 sm:$0xff]   ;;  %v10490_v1 = vld [vmem:[%s14497_s1 + $0x3e4] ss:$16 sps:$4 sm:$0xff]  }
 0x154   : > { %4487 = vmatprep.subr.bf16.mxu0 %v10400_v2  ;;  %4815 = vmatprep.subr.bf16.mxu1 %v10403_v3  ;;  %v10493_v2 = vld [vmem:[%s14497_s1 + $0x3ec] ss:$16 sps:$4 sm:$0xff]   ;;  %v10488_v3 = vld [vmem:[%s14497_s1 + $0x3e0] ss:$16 sps:$4 sm:$0xff]  }
 0x156   : > { %4479 = vmatmul.mubr.bf16.vlgmr.msra.gmra.mrb[0].mxu0 %v9109_v4  ;;  %4807 = vmatmul.mubr.bf16.vlgmr.msra.gmra.mrb[0].mxu1 %v9109_v4  ;;  %v10491_v4 = vld [vmem:[%s14497_s1 + $0x3e8] ss:$16 sps:$4 sm:$0xff]  }
 0x157   : > { %4488 = vmatpush1.bf16.msra.mxu0 %v10398_v5  ;;  %4816 = vmatpush1.bf16.msra.mxu1 %v10401_v6  ;;  %v10498_v5 = vld [vmem:[%s14497_s1 + $0x404] ss:$16 sps:$4 sm:$0xff]   ;;  %v10501_v6 = vld [vmem:[%s14497_s1 + $0x40c] ss:$16 sps:$4 sm:$0xff]  }
 0x158   : > { %4489 = vmatprep.subr.bf16.mxu0 %v10406_v7  ;;  %4817 = vmatprep.subr.bf16.mxu1 %v10409_v8  ;;  %v9111_v7 = vcombine.low %v12510_v29, %v12510_v29  ;;  %v10496_v8 = vld [vmem:[%s14497_s1 + $0x400] ss:$16 sps:$4 sm:$0xff]   ;;  %v10531_v29 = vld [vmem:[%s14497_s1 + $0x4ac] ss:$16 sps:$4 sm:$0xff]  }
 0x159   : > { %4519 = vmatprep.mubr.bf16.mxu0 %v9112_v30  ;;  %4847 = vmatprep.mubr.bf16.mxu1 %v9112_v30  ;;  %v10526_v30 = vld [vmem:[%s14497_s1 + $0x4a0] ss:$16 sps:$4 sm:$0xff]  }
 0x15b   : > { %4490 = vmatpush1.bf16.msra.mxu0 %v10404_v9  ;;  %4818 = vmatpush1.bf16.msra.mxu1 %v10407_v10  ;;  %v10499_v9 = vld [vmem:[%s14497_s1 + $0x408] ss:$16 sps:$4 sm:$0xff]   ;;  %v10504_v10 = vld [vmem:[%s14497_s1 + $0x424] ss:$16 sps:$4 sm:$0xff]  }
 0x15c   : > { %4491 = vmatprep.subr.bf16.mxu0 %v10412_v11  ;;  %4819 = vmatprep.subr.bf16.mxu1 %v10415_v12  ;;  %v12648_v11 = vld [vmem:[%s14496_s0 + $0x10] sm:$0xff]  ;;  %v10507_v12 = vld [vmem:[%s14497_s1 + $0x42c] ss:$16 sps:$4 sm:$0xff]  }
 0x15f   : > { %4492 = vmatpush1.bf16.msra.mxu0 %v10410_v13  ;;  %4820 = vmatpush1.bf16.msra.mxu1 %v10413_v14  ;;  %v9114_v13 = vcombine.high %v12648_v11, %v12648_v11  ;;  %v10502_v14 = vld [vmem:[%s14497_s1 + $0x420] ss:$16 sps:$4 sm:$0xff]  }
 0x160   : > { %4493 = vmatprep.subr.bf16.mxu0 %v10418_v15  ;;  %4821 = vmatprep.subr.bf16.mxu1 %v10421_v16  ;;  %v10505_v15 = vld [vmem:[%s14497_s1 + $0x428] ss:$16 sps:$4 sm:$0xff]   ;;  %v10510_v16 = vld [vmem:[%s14497_s1 + $0x444] ss:$16 sps:$4 sm:$0xff]  }
 0x163   : > { %4494 = vmatpush1.bf16.msra.mxu0 %v10416_v17  ;;  %4822 = vmatpush1.bf16.msra.mxu1 %v10419_v18  ;;  %v10513_v17 = vld [vmem:[%s14497_s1 + $0x44c] ss:$16 sps:$4 sm:$0xff]   ;;  %v10508_v18 = vld [vmem:[%s14497_s1 + $0x440] ss:$16 sps:$4 sm:$0xff]  }
 0x164   : > { %4495 = vmatprep.subr.bf16.mxu0 %v10424_v19  ;;  %4823 = vmatprep.subr.bf16.mxu1 %v10427_v20  ;;  %v10511_v19 = vld [vmem:[%s14497_s1 + $0x448] ss:$16 sps:$4 sm:$0xff]   ;;  %v10516_v20 = vld [vmem:[%s14497_s1 + $0x464] ss:$16 sps:$4 sm:$0xff]  }
 0x167   : > { %4496 = vmatpush1.bf16.msra.mxu0 %v10422_v21  ;;  %4824 = vmatpush1.bf16.msra.mxu1 %v10425_v22  ;;  %v10519_v21 = vld [vmem:[%s14497_s1 + $0x46c] ss:$16 sps:$4 sm:$0xff]   ;;  %v10514_v22 = vld [vmem:[%s14497_s1 + $0x460] ss:$16 sps:$4 sm:$0xff]  }
 0x168   : > { %4497 = vmatprep.subr.bf16.mxu0 %v10430_v23  ;;  %4825 = vmatprep.subr.bf16.mxu1 %v10433_v24  ;;  %v10517_v23 = vld [vmem:[%s14497_s1 + $0x468] ss:$16 sps:$4 sm:$0xff]   ;;  %v10522_v24 = vld [vmem:[%s14497_s1 + $0x484] ss:$16 sps:$4 sm:$0xff]  }
 0x16b   : > { %4498 = vmatpush1.bf16.msra.mxu0 %v10428_v25  ;;  %4826 = vmatpush1.bf16.msra.mxu1 %v10431_v26  ;;  %v10525_v25 = vld [vmem:[%s14497_s1 + $0x48c] ss:$16 sps:$4 sm:$0xff]   ;;  %v10520_v26 = vld [vmem:[%s14497_s1 + $0x480] ss:$16 sps:$4 sm:$0xff]  }
 0x16c   : > { %4499 = vmatprep.subr.bf16.mxu0 %v10436_v27  ;;  %4827 = vmatprep.subr.bf16.mxu1 %v10439_v28  ;;  %v10523_v27 = vld [vmem:[%s14497_s1 + $0x488] ss:$16 sps:$4 sm:$0xff]   ;;  %v10528_v28 = vld [vmem:[%s14497_s1 + $0x4a4] ss:$16 sps:$4 sm:$0xff]  }
 0x16f   : > { %4500 = vmatpush1.bf16.msra.mxu0 %v10434_v31  ;;  %4828 = vmatpush1.bf16.msra.mxu1 %v10437_v32  ;;  %v10529_v31 = vld [vmem:[%s14497_s1 + $0x4a8] ss:$16 sps:$4 sm:$0xff]   ;;  %v10534_v32 = vld [vmem:[%s14497_s1 + $0x4c4] ss:$16 sps:$4 sm:$0xff]  }
 0x170   : > { %4501 = vmatprep.subr.bf16.mxu0 %v10442_v33  ;;  %4829 = vmatprep.subr.bf16.mxu1 %v10445_v34  ;;  %v10537_v33 = vld [vmem:[%s14497_s1 + $0x4cc] ss:$16 sps:$4 sm:$0xff]   ;;  %v10532_v34 = vld [vmem:[%s14497_s1 + $0x4c0] ss:$16 sps:$4 sm:$0xff]  }
 0x173   : > { %4502 = vmatpush1.bf16.msra.mxu0 %v10440_v35  ;;  %4830 = vmatpush1.bf16.msra.mxu1 %v10443_v36  ;;  %v10535_v35 = vld [vmem:[%s14497_s1 + $0x4c8] ss:$16 sps:$4 sm:$0xff]   ;;  %v10540_v36 = vld [vmem:[%s14497_s1 + $0x4e4] ss:$16 sps:$4 sm:$0xff]  }
 0x174   : > { %4503 = vmatprep.subr.bf16.mxu0 %v10448_v37  ;;  %4831 = vmatprep.subr.bf16.mxu1 %v10451_v38  ;;  %v10543_v37 = vld [vmem:[%s14497_s1 + $0x4ec] ss:$16 sps:$4 sm:$0xff]   ;;  %v10538_v38 = vld [vmem:[%s14497_s1 + $0x4e0] ss:$16 sps:$4 sm:$0xff]  }
 0x177   : > { %4504 = vmatpush1.bf16.msra.mxu0 %v10446_v39  ;;  %4832 = vmatpush1.bf16.msra.mxu1 %v10449_v40  ;;  %v10541_v39 = vld [vmem:[%s14497_s1 + $0x4e8] ss:$16 sps:$4 sm:$0xff]   ;;  %v10546_v40 = vld [vmem:[%s14497_s1 + $0x504] ss:$16 sps:$4 sm:$0xff]  }
 0x178   : > { %4505 = vmatprep.subr.bf16.mxu0 %v10454_v41  ;;  %4833 = vmatprep.subr.bf16.mxu1 %v10457_v42  ;;  %v10549_v41 = vld [vmem:[%s14497_s1 + $0x50c] ss:$16 sps:$4 sm:$0xff]   ;;  %v10544_v42 = vld [vmem:[%s14497_s1 + $0x500] ss:$16 sps:$4 sm:$0xff]  }
 0x17b   : > { %4506 = vmatpush1.bf16.msra.mxu0 %v10452_v43  ;;  %4834 = vmatpush1.bf16.msra.mxu1 %v10455_v44  ;;  %v10547_v43 = vld [vmem:[%s14497_s1 + $0x508] ss:$16 sps:$4 sm:$0xff]   ;;  %v10552_v44 = vld [vmem:[%s14497_s1 + $0x524] ss:$16 sps:$4 sm:$0xff]  }
 0x17c   : > { %4507 = vmatprep.subr.bf16.mxu0 %v10460_v45  ;;  %4835 = vmatprep.subr.bf16.mxu1 %v10463_v46  ;;  %v10555_v45 = vld [vmem:[%s14497_s1 + $0x52c] ss:$16 sps:$4 sm:$0xff]   ;;  %v10550_v46 = vld [vmem:[%s14497_s1 + $0x520] ss:$16 sps:$4 sm:$0xff]  }
 0x17f   : > { %4508 = vmatpush1.bf16.msra.mxu0 %v10458_v47  ;;  %4836 = vmatpush1.bf16.msra.mxu1 %v10461_v48  ;;  %v10553_v47 = vld [vmem:[%s14497_s1 + $0x528] ss:$16 sps:$4 sm:$0xff]   ;;  %v10558_v48 = vld [vmem:[%s14497_s1 + $0x544] ss:$16 sps:$4 sm:$0xff]  }
 0x180   : > { %4509 = vmatprep.subr.bf16.mxu0 %v10466_v49  ;;  %4837 = vmatprep.subr.bf16.mxu1 %v10469_v50  ;;  %v10561_v49 = vld [vmem:[%s14497_s1 + $0x54c] ss:$16 sps:$4 sm:$0xff]   ;;  %v10556_v50 = vld [vmem:[%s14497_s1 + $0x540] ss:$16 sps:$4 sm:$0xff]  }
 0x183   : > { %4510 = vmatpush1.bf16.msra.mxu0 %v10464_v51  ;;  %4838 = vmatpush1.bf16.msra.mxu1 %v10467_v52  ;;  %v10559_v51 = vld [vmem:[%s14497_s1 + $0x548] ss:$16 sps:$4 sm:$0xff]   ;;  %v10564_v52 = vld [vmem:[%s14497_s1 + $0x564] ss:$16 sps:$4 sm:$0xff]  }
 0x184   : > { %4511 = vmatprep.subr.bf16.mxu0 %v10472_v53  ;;  %4839 = vmatprep.subr.bf16.mxu1 %v10475_v54  ;;  %v10567_v53 = vld [vmem:[%s14497_s1 + $0x56c] ss:$16 sps:$4 sm:$0xff]   ;;  %v10562_v54 = vld [vmem:[%s14497_s1 + $0x560] ss:$16 sps:$4 sm:$0xff]  }
 0x187   : > { %4512 = vmatpush1.bf16.msra.mxu0 %v10470_v55  ;;  %4840 = vmatpush1.bf16.msra.mxu1 %v10473_v56  ;;  %v10565_v55 = vld [vmem:[%s14497_s1 + $0x568] ss:$16 sps:$4 sm:$0xff]   ;;  %v10570_v56 = vld [vmem:[%s14497_s1 + $0x584] ss:$16 sps:$4 sm:$0xff]  }
 0x188   : > { %4513 = vmatprep.subr.bf16.mxu0 %v10478_v57  ;;  %4841 = vmatprep.subr.bf16.mxu1 %v10481_v58  ;;  %v10573_v57 = vld [vmem:[%s14497_s1 + $0x58c] ss:$16 sps:$4 sm:$0xff]   ;;  %v10568_v58 = vld [vmem:[%s14497_s1 + $0x580] ss:$16 sps:$4 sm:$0xff]  }
 0x18b   : > { %4514 = vmatpush1.bf16.msra.mxu0 %v10476_v59  ;;  %4842 = vmatpush1.bf16.msra.mxu1 %v10479_v60  ;;  %v10571_v59 = vld [vmem:[%s14497_s1 + $0x588] ss:$16 sps:$4 sm:$0xff]   ;;  %v10576_v60 = vld [vmem:[%s14497_s1 + $0x5a4] ss:$16 sps:$4 sm:$0xff]  }
 0x18c   : > { %4515 = vmatprep.subr.bf16.mxu0 %v10484_v61  ;;  %4843 = vmatprep.subr.bf16.mxu1 %v10487_v62  ;;  %v10579_v61 = vld [vmem:[%s14497_s1 + $0x5ac] ss:$16 sps:$4 sm:$0xff]   ;;  %v10574_v62 = vld [vmem:[%s14497_s1 + $0x5a0] ss:$16 sps:$4 sm:$0xff]  }
 0x18f   : > { %4516 = vmatpush1.bf16.msra.mxu0 %v10482_v63  ;;  %4844 = vmatpush1.bf16.msra.mxu1 %v10485_v0  ;;  %v10577_v63 = vld [vmem:[%s14497_s1 + $0x5a8] ss:$16 sps:$4 sm:$0xff]   ;;  %v10582_v0 = vld [vmem:[%s14497_s1 + $0x5c4] ss:$16 sps:$4 sm:$0xff]  }
 0x190   : > { %4517 = vmatprep.subr.bf16.mxu0 %v10490_v1  ;;  %4845 = vmatprep.subr.bf16.mxu1 %v10493_v2  ;;  %v10585_v1 = vld [vmem:[%s14497_s1 + $0x5cc] ss:$16 sps:$4 sm:$0xff]   ;;  %v10580_v2 = vld [vmem:[%s14497_s1 + $0x5c0] ss:$16 sps:$4 sm:$0xff]  }
 0x193   : > { %4518 = vmatpush1.bf16.msra.mxu0 %v10488_v3  ;;  %4846 = vmatpush1.bf16.msra.mxu1 %v10491_v4  ;;  %v10583_v3 = vld [vmem:[%s14497_s1 + $0x5c8] ss:$16 sps:$4 sm:$0xff]   ;;  %v10588_v4 = vld [vmem:[%s14497_s1 + $0x5e4] ss:$16 sps:$4 sm:$0xff]  }
 0x194   : > { %4528 = vmatprep.subr.bf16.mxu0 %v10498_v5  ;;  %4856 = vmatprep.subr.bf16.mxu1 %v10501_v6  ;;  %v10591_v5 = vld [vmem:[%s14497_s1 + $0x5ec] ss:$16 sps:$4 sm:$0xff]   ;;  %v10586_v6 = vld [vmem:[%s14497_s1 + $0x5e0] ss:$16 sps:$4 sm:$0xff]  }
 0x196   : > { %4520 = vmatmul.mubr.bf16.vlgmr.msra.gmra.mrb[0].mxu0 %v9111_v7  ;;  %4848 = vmatmul.mubr.bf16.vlgmr.msra.gmra.mrb[0].mxu1 %v9111_v7  ;;  %v10589_v7 = vld [vmem:[%s14497_s1 + $0x5e8] ss:$16 sps:$4 sm:$0xff]  }
 0x197   : > { %4529 = vmatpush1.bf16.msra.mxu0 %v10496_v8  ;;  %4857 = vmatpush1.bf16.msra.mxu1 %v10499_v9  ;;  %v10596_v8 = vld [vmem:[%s14497_s1 + $0x604] ss:$16 sps:$4 sm:$0xff]   ;;  %v10599_v9 = vld [vmem:[%s14497_s1 + $0x60c] ss:$16 sps:$4 sm:$0xff]  }
 0x198   : > { %4530 = vmatprep.subr.bf16.mxu0 %v10504_v10  ;;  %4858 = vmatprep.subr.bf16.mxu1 %v10507_v12  ;;  %v10594_v10 = vld [vmem:[%s14497_s1 + $0x600] ss:$16 sps:$4 sm:$0xff]   ;;  %v9113_v12 = vcombine.low %v12648_v11, %v12648_v11  ;;  %v10605_v11 = vld [vmem:[%s14497_s1 + $0x62c] ss:$16 sps:$4 sm:$0xff]  }
 0x199   : > { %4560 = vmatprep.mubr.bf16.mxu0 %v9114_v13  ;;  %4888 = vmatprep.mubr.bf16.mxu1 %v9114_v13  ;;  %v10597_v13 = vld [vmem:[%s14497_s1 + $0x608] ss:$16 sps:$4 sm:$0xff]  }
 0x19b   : > { %4531 = vmatpush1.bf16.msra.mxu0 %v10502_v14  ;;  %4859 = vmatpush1.bf16.msra.mxu1 %v10505_v15  ;;  %v12846_v14 = vld [vmem:[%s14496_s0 + $0x18] sm:$0xff]  ;;  %v10602_v15 = vld [vmem:[%s14497_s1 + $0x624] ss:$16 sps:$4 sm:$0xff]  }
 0x19c   : > { %4532 = vmatprep.subr.bf16.mxu0 %v10510_v16  ;;  %4860 = vmatprep.subr.bf16.mxu1 %v10513_v17  ;;  %v9116_v16 = vcombine.high %v12846_v14, %v12846_v14  ;;  %v10600_v17 = vld [vmem:[%s14497_s1 + $0x620] ss:$16 sps:$4 sm:$0xff]  }
 0x19f   : > { %4533 = vmatpush1.bf16.msra.mxu0 %v10508_v18  ;;  %4861 = vmatpush1.bf16.msra.mxu1 %v10511_v19  ;;  %v10603_v18 = vld [vmem:[%s14497_s1 + $0x628] ss:$16 sps:$4 sm:$0xff]   ;;  %v10608_v19 = vld [vmem:[%s14497_s1 + $0x644] ss:$16 sps:$4 sm:$0xff]  }
 0x1a0   : > { %4534 = vmatprep.subr.bf16.mxu0 %v10516_v20  ;;  %4862 = vmatprep.subr.bf16.mxu1 %v10519_v21  ;;  %v10611_v20 = vld [vmem:[%s14497_s1 + $0x64c] ss:$16 sps:$4 sm:$0xff]   ;;  %v10606_v21 = vld [vmem:[%s14497_s1 + $0x640] ss:$16 sps:$4 sm:$0xff]  }
 0x1a3   : > { %4535 = vmatpush1.bf16.msra.mxu0 %v10514_v22  ;;  %4863 = vmatpush1.bf16.msra.mxu1 %v10517_v23  ;;  %v10609_v22 = vld [vmem:[%s14497_s1 + $0x648] ss:$16 sps:$4 sm:$0xff]   ;;  %v10614_v23 = vld [vmem:[%s14497_s1 + $0x664] ss:$16 sps:$4 sm:$0xff]  }
 0x1a4   : > { %4536 = vmatprep.subr.bf16.mxu0 %v10522_v24  ;;  %4864 = vmatprep.subr.bf16.mxu1 %v10525_v25  ;;  %v10617_v24 = vld [vmem:[%s14497_s1 + $0x66c] ss:$16 sps:$4 sm:$0xff]   ;;  %v10612_v25 = vld [vmem:[%s14497_s1 + $0x660] ss:$16 sps:$4 sm:$0xff]  }
 0x1a7   : > { %4537 = vmatpush1.bf16.msra.mxu0 %v10520_v26  ;;  %4865 = vmatpush1.bf16.msra.mxu1 %v10523_v27  ;;  %v10615_v26 = vld [vmem:[%s14497_s1 + $0x668] ss:$16 sps:$4 sm:$0xff]   ;;  %v10620_v27 = vld [vmem:[%s14497_s1 + $0x684] ss:$16 sps:$4 sm:$0xff]  }
 0x1a8   : > { %4538 = vmatprep.subr.bf16.mxu0 %v10528_v28  ;;  %4866 = vmatprep.subr.bf16.mxu1 %v10531_v29  ;;  %v10623_v28 = vld [vmem:[%s14497_s1 + $0x68c] ss:$16 sps:$4 sm:$0xff]   ;;  %v10618_v29 = vld [vmem:[%s14497_s1 + $0x680] ss:$16 sps:$4 sm:$0xff]  }
 0x1ab   : > { %4539 = vmatpush1.bf16.msra.mxu0 %v10526_v30  ;;  %4867 = vmatpush1.bf16.msra.mxu1 %v10529_v31  ;;  %v10621_v30 = vld [vmem:[%s14497_s1 + $0x688] ss:$16 sps:$4 sm:$0xff]   ;;  %v10626_v31 = vld [vmem:[%s14497_s1 + $0x6a4] ss:$16 sps:$4 sm:$0xff]  }
 0x1ac   : > { %4540 = vmatprep.subr.bf16.mxu0 %v10534_v32  ;;  %4868 = vmatprep.subr.bf16.mxu1 %v10537_v33  ;;  %v10629_v32 = vld [vmem:[%s14497_s1 + $0x6ac] ss:$16 sps:$4 sm:$0xff]   ;;  %v10624_v33 = vld [vmem:[%s14497_s1 + $0x6a0] ss:$16 sps:$4 sm:$0xff]  }
 0x1af   : > { %4541 = vmatpush1.bf16.msra.mxu0 %v10532_v34  ;;  %4869 = vmatpush1.bf16.msra.mxu1 %v10535_v35  ;;  %v10627_v34 = vld [vmem:[%s14497_s1 + $0x6a8] ss:$16 sps:$4 sm:$0xff]   ;;  %v10632_v35 = vld [vmem:[%s14497_s1 + $0x6c4] ss:$16 sps:$4 sm:$0xff]  }
 0x1b0   : > { %4542 = vmatprep.subr.bf16.mxu0 %v10540_v36  ;;  %4870 = vmatprep.subr.bf16.mxu1 %v10543_v37  ;;  %v10635_v36 = vld [vmem:[%s14497_s1 + $0x6cc] ss:$16 sps:$4 sm:$0xff]   ;;  %v10630_v37 = vld [vmem:[%s14497_s1 + $0x6c0] ss:$16 sps:$4 sm:$0xff]  }
 0x1b3   : > { %4543 = vmatpush1.bf16.msra.mxu0 %v10538_v38  ;;  %4871 = vmatpush1.bf16.msra.mxu1 %v10541_v39  ;;  %v10633_v38 = vld [vmem:[%s14497_s1 + $0x6c8] ss:$16 sps:$4 sm:$0xff]   ;;  %v10638_v39 = vld [vmem:[%s14497_s1 + $0x6e4] ss:$16 sps:$4 sm:$0xff]  }
 0x1b4   : > { %4544 = vmatprep.subr.bf16.mxu0 %v10546_v40  ;;  %4872 = vmatprep.subr.bf16.mxu1 %v10549_v41  ;;  %v10641_v40 = vld [vmem:[%s14497_s1 + $0x6ec] ss:$16 sps:$4 sm:$0xff]   ;;  %v10636_v41 = vld [vmem:[%s14497_s1 + $0x6e0] ss:$16 sps:$4 sm:$0xff]  }
 0x1b7   : > { %4545 = vmatpush1.bf16.msra.mxu0 %v10544_v42  ;;  %4873 = vmatpush1.bf16.msra.mxu1 %v10547_v43  ;;  %v10639_v42 = vld [vmem:[%s14497_s1 + $0x6e8] ss:$16 sps:$4 sm:$0xff]   ;;  %v10644_v43 = vld [vmem:[%s14497_s1 + $0x704] ss:$16 sps:$4 sm:$0xff]  }
 0x1b8   : > { %4546 = vmatprep.subr.bf16.mxu0 %v10552_v44  ;;  %4874 = vmatprep.subr.bf16.mxu1 %v10555_v45  ;;  %v10647_v44 = vld [vmem:[%s14497_s1 + $0x70c] ss:$16 sps:$4 sm:$0xff]   ;;  %v10642_v45 = vld [vmem:[%s14497_s1 + $0x700] ss:$16 sps:$4 sm:$0xff]  }
 0x1bb   : > { %4547 = vmatpush1.bf16.msra.mxu0 %v10550_v46  ;;  %4875 = vmatpush1.bf16.msra.mxu1 %v10553_v47  ;;  %v10645_v46 = vld [vmem:[%s14497_s1 + $0x708] ss:$16 sps:$4 sm:$0xff]   ;;  %v10650_v47 = vld [vmem:[%s14497_s1 + $0x724] ss:$16 sps:$4 sm:$0xff]  }
 0x1bc   : > { %4548 = vmatprep.subr.bf16.mxu0 %v10558_v48  ;;  %4876 = vmatprep.subr.bf16.mxu1 %v10561_v49  ;;  %v10653_v48 = vld [vmem:[%s14497_s1 + $0x72c] ss:$16 sps:$4 sm:$0xff]   ;;  %v10648_v49 = vld [vmem:[%s14497_s1 + $0x720] ss:$16 sps:$4 sm:$0xff]  }
 0x1bf   : > { %4549 = vmatpush1.bf16.msra.mxu0 %v10556_v50  ;;  %4877 = vmatpush1.bf16.msra.mxu1 %v10559_v51  ;;  %v10651_v50 = vld [vmem:[%s14497_s1 + $0x728] ss:$16 sps:$4 sm:$0xff]   ;;  %v10656_v51 = vld [vmem:[%s14497_s1 + $0x744] ss:$16 sps:$4 sm:$0xff]  }
 0x1c0   : > { %4550 = vmatprep.subr.bf16.mxu0 %v10564_v52  ;;  %4878 = vmatprep.subr.bf16.mxu1 %v10567_v53  ;;  %v10659_v52 = vld [vmem:[%s14497_s1 + $0x74c] ss:$16 sps:$4 sm:$0xff]   ;;  %v10654_v53 = vld [vmem:[%s14497_s1 + $0x740] ss:$16 sps:$4 sm:$0xff]  }
 0x1c3   : > { %4551 = vmatpush1.bf16.msra.mxu0 %v10562_v54  ;;  %4879 = vmatpush1.bf16.msra.mxu1 %v10565_v55  ;;  %v10657_v54 = vld [vmem:[%s14497_s1 + $0x748] ss:$16 sps:$4 sm:$0xff]   ;;  %v10662_v55 = vld [vmem:[%s14497_s1 + $0x764] ss:$16 sps:$4 sm:$0xff]  }
 0x1c4   : > { %4552 = vmatprep.subr.bf16.mxu0 %v10570_v56  ;;  %4880 = vmatprep.subr.bf16.mxu1 %v10573_v57  ;;  %v10665_v56 = vld [vmem:[%s14497_s1 + $0x76c] ss:$16 sps:$4 sm:$0xff]   ;;  %v10660_v57 = vld [vmem:[%s14497_s1 + $0x760] ss:$16 sps:$4 sm:$0xff]  }
 0x1c7   : > { %4553 = vmatpush1.bf16.msra.mxu0 %v10568_v58  ;;  %4881 = vmatpush1.bf16.msra.mxu1 %v10571_v59  ;;  %v10663_v58 = vld [vmem:[%s14497_s1 + $0x768] ss:$16 sps:$4 sm:$0xff]   ;;  %v10668_v59 = vld [vmem:[%s14497_s1 + $0x784] ss:$16 sps:$4 sm:$0xff]  }
 0x1c8   : > { %4554 = vmatprep.subr.bf16.mxu0 %v10576_v60  ;;  %4882 = vmatprep.subr.bf16.mxu1 %v10579_v61  ;;  %v10671_v60 = vld [vmem:[%s14497_s1 + $0x78c] ss:$16 sps:$4 sm:$0xff]   ;;  %v10666_v61 = vld [vmem:[%s14497_s1 + $0x780] ss:$16 sps:$4 sm:$0xff]  }
 0x1cb   : > { %4555 = vmatpush1.bf16.msra.mxu0 %v10574_v62  ;;  %4883 = vmatpush1.bf16.msra.mxu1 %v10577_v63  ;;  %v10669_v62 = vld [vmem:[%s14497_s1 + $0x788] ss:$16 sps:$4 sm:$0xff]   ;;  %v10674_v63 = vld [vmem:[%s14497_s1 + $0x7a4] ss:$16 sps:$4 sm:$0xff]  }
 0x1cc   : > { %4556 = vmatprep.subr.bf16.mxu0 %v10582_v0  ;;  %4884 = vmatprep.subr.bf16.mxu1 %v10585_v1  ;;  %v10677_v0 = vld [vmem:[%s14497_s1 + $0x7ac] ss:$16 sps:$4 sm:$0xff]   ;;  %v10672_v1 = vld [vmem:[%s14497_s1 + $0x7a0] ss:$16 sps:$4 sm:$0xff]  }
 0x1cf   : > { %4557 = vmatpush1.bf16.msra.mxu0 %v10580_v2  ;;  %4885 = vmatpush1.bf16.msra.mxu1 %v10583_v3  ;;  %v10675_v2 = vld [vmem:[%s14497_s1 + $0x7a8] ss:$16 sps:$4 sm:$0xff]   ;;  %v10680_v3 = vld [vmem:[%s14497_s1 + $0x7c4] ss:$16 sps:$4 sm:$0xff]  }
 0x1d0   : > { %4558 = vmatprep.subr.bf16.mxu0 %v10588_v4  ;;  %4886 = vmatprep.subr.bf16.mxu1 %v10591_v5  ;;  %v10683_v4 = vld [vmem:[%s14497_s1 + $0x7cc] ss:$16 sps:$4 sm:$0xff]   ;;  %v10678_v5 = vld [vmem:[%s14497_s1 + $0x7c0] ss:$16 sps:$4 sm:$0xff]  }
 0x1d3   : > { %4559 = vmatpush1.bf16.msra.mxu0 %v10586_v6  ;;  %4887 = vmatpush1.bf16.msra.mxu1 %v10589_v7  ;;  %v10681_v6 = vld [vmem:[%s14497_s1 + $0x7c8] ss:$16 sps:$4 sm:$0xff]   ;;  %v10686_v7 = vld [vmem:[%s14497_s1 + $0x7e4] ss:$16 sps:$4 sm:$0xff]  }
 0x1d4   : > { %4569 = vmatprep.subr.bf16.mxu0 %v10596_v8  ;;  %4897 = vmatprep.subr.bf16.mxu1 %v10599_v9  ;;  %v10689_v8 = vld [vmem:[%s14497_s1 + $0x7ec] ss:$16 sps:$4 sm:$0xff]   ;;  %v10684_v9 = vld [vmem:[%s14497_s1 + $0x7e0] ss:$16 sps:$4 sm:$0xff]  }
 0x1d6   : > { %4561 = vmatmul.mubr.bf16.vlgmr.msra.gmra.mrb[0].mxu0 %v9113_v12  ;;  %4889 = vmatmul.mubr.bf16.vlgmr.msra.gmra.mrb[0].mxu1 %v9113_v12  ;;  %v10694_v12 = vld [vmem:[%s14497_s1 + $0x804] ss:$16 sps:$4 sm:$0xff]  }
 0x1d7   : > { %4570 = vmatpush1.bf16.msra.mxu0 %v10594_v10  ;;  %4898 = vmatpush1.bf16.msra.mxu1 %v10597_v13  ;;  %v10687_v10 = vld [vmem:[%s14497_s1 + $0x7e8] ss:$16 sps:$4 sm:$0xff]   ;;  %v10697_v13 = vld [vmem:[%s14497_s1 + $0x80c] ss:$16 sps:$4 sm:$0xff]  }
 0x1d8   : > { %4571 = vmatprep.subr.bf16.mxu0 %v10602_v15  ;;  %4899 = vmatprep.subr.bf16.mxu1 %v10605_v11  ;;  %v10692_v15 = vld [vmem:[%s14497_s1 + $0x800] ss:$16 sps:$4 sm:$0xff]   ;;  %v9115_v11 = vcombine.low %v12846_v14, %v12846_v14  ;;  %v10703_v14 = vld [vmem:[%s14497_s1 + $0x82c] ss:$16 sps:$4 sm:$0xff]  }
 0x1d9   : > { %4601 = vmatprep.mubr.bf16.mxu0 %v9116_v16  ;;  %4929 = vmatprep.mubr.bf16.mxu1 %v9116_v16  ;;  %v13044_v16 = vld [vmem:[%s14496_s0 + $0x20] sm:$0xff] }
 0x1db   : > { %4572 = vmatpush1.bf16.msra.mxu0 %v10600_v17  ;;  %4900 = vmatpush1.bf16.msra.mxu1 %v10603_v18  ;;  %v10695_v17 = vld [vmem:[%s14497_s1 + $0x808] ss:$16 sps:$4 sm:$0xff]   ;;  %v10700_v18 = vld [vmem:[%s14497_s1 + $0x824] ss:$16 sps:$4 sm:$0xff]  }
 0x1dc   : > { %4573 = vmatprep.subr.bf16.mxu0 %v10608_v19  ;;  %4901 = vmatprep.subr.bf16.mxu1 %v10611_v20  ;;  %v9118_v19 = vcombine.high %v13044_v16, %v13044_v16  ;;  %v10698_v20 = vld [vmem:[%s14497_s1 + $0x820] ss:$16 sps:$4 sm:$0xff]  }
 0x1df   : > { %4574 = vmatpush1.bf16.msra.mxu0 %v10606_v21  ;;  %4902 = vmatpush1.bf16.msra.mxu1 %v10609_v22  ;;  %v10701_v21 = vld [vmem:[%s14497_s1 + $0x828] ss:$16 sps:$4 sm:$0xff]   ;;  %v10706_v22 = vld [vmem:[%s14497_s1 + $0x844] ss:$16 sps:$4 sm:$0xff]  }
 0x1e0   : > { %4575 = vmatprep.subr.bf16.mxu0 %v10614_v23  ;;  %4903 = vmatprep.subr.bf16.mxu1 %v10617_v24  ;;  %v10709_v23 = vld [vmem:[%s14497_s1 + $0x84c] ss:$16 sps:$4 sm:$0xff]   ;;  %v10704_v24 = vld [vmem:[%s14497_s1 + $0x840] ss:$16 sps:$4 sm:$0xff]  }
 0x1e3   : > { %4576 = vmatpush1.bf16.msra.mxu0 %v10612_v25  ;;  %4904 = vmatpush1.bf16.msra.mxu1 %v10615_v26  ;;  %v10707_v25 = vld [vmem:[%s14497_s1 + $0x848] ss:$16 sps:$4 sm:$0xff]   ;;  %v10712_v26 = vld [vmem:[%s14497_s1 + $0x864] ss:$16 sps:$4 sm:$0xff]  }
 0x1e4   : > { %4577 = vmatprep.subr.bf16.mxu0 %v10620_v27  ;;  %4905 = vmatprep.subr.bf16.mxu1 %v10623_v28  ;;  %v10715_v27 = vld [vmem:[%s14497_s1 + $0x86c] ss:$16 sps:$4 sm:$0xff]   ;;  %v10710_v28 = vld [vmem:[%s14497_s1 + $0x860] ss:$16 sps:$4 sm:$0xff]  }
 0x1e7   : > { %4578 = vmatpush1.bf16.msra.mxu0 %v10618_v29  ;;  %4906 = vmatpush1.bf16.msra.mxu1 %v10621_v30  ;;  %v10713_v29 = vld [vmem:[%s14497_s1 + $0x868] ss:$16 sps:$4 sm:$0xff]   ;;  %v10718_v30 = vld [vmem:[%s14497_s1 + $0x884] ss:$16 sps:$4 sm:$0xff]  }
 0x1e8   : > { %4579 = vmatprep.subr.bf16.mxu0 %v10626_v31  ;;  %4907 = vmatprep.subr.bf16.mxu1 %v10629_v32  ;;  %v10721_v31 = vld [vmem:[%s14497_s1 + $0x88c] ss:$16 sps:$4 sm:$0xff]   ;;  %v10716_v32 = vld [vmem:[%s14497_s1 + $0x880] ss:$16 sps:$4 sm:$0xff]  }
 0x1eb   : > { %4580 = vmatpush1.bf16.msra.mxu0 %v10624_v33  ;;  %4908 = vmatpush1.bf16.msra.mxu1 %v10627_v34  ;;  %v10719_v33 = vld [vmem:[%s14497_s1 + $0x888] ss:$16 sps:$4 sm:$0xff]   ;;  %v10724_v34 = vld [vmem:[%s14497_s1 + $0x8a4] ss:$16 sps:$4 sm:$0xff]  }
 0x1ec   : > { %4581 = vmatprep.subr.bf16.mxu0 %v10632_v35  ;;  %4909 = vmatprep.subr.bf16.mxu1 %v10635_v36  ;;  %v10727_v35 = vld [vmem:[%s14497_s1 + $0x8ac] ss:$16 sps:$4 sm:$0xff]   ;;  %v10722_v36 = vld [vmem:[%s14497_s1 + $0x8a0] ss:$16 sps:$4 sm:$0xff]  }
 0x1ef   : > { %4582 = vmatpush1.bf16.msra.mxu0 %v10630_v37  ;;  %4910 = vmatpush1.bf16.msra.mxu1 %v10633_v38  ;;  %v10725_v37 = vld [vmem:[%s14497_s1 + $0x8a8] ss:$16 sps:$4 sm:$0xff]   ;;  %v10730_v38 = vld [vmem:[%s14497_s1 + $0x8c4] ss:$16 sps:$4 sm:$0xff]  }
 0x1f0   : > { %4583 = vmatprep.subr.bf16.mxu0 %v10638_v39  ;;  %4911 = vmatprep.subr.bf16.mxu1 %v10641_v40  ;;  %v10733_v39 = vld [vmem:[%s14497_s1 + $0x8cc] ss:$16 sps:$4 sm:$0xff]   ;;  %v10728_v40 = vld [vmem:[%s14497_s1 + $0x8c0] ss:$16 sps:$4 sm:$0xff]  }
 0x1f3   : > { %4584 = vmatpush1.bf16.msra.mxu0 %v10636_v41  ;;  %4912 = vmatpush1.bf16.msra.mxu1 %v10639_v42  ;;  %v10731_v41 = vld [vmem:[%s14497_s1 + $0x8c8] ss:$16 sps:$4 sm:$0xff]   ;;  %v10736_v42 = vld [vmem:[%s14497_s1 + $0x8e4] ss:$16 sps:$4 sm:$0xff]  }
 0x1f4   : > { %4585 = vmatprep.subr.bf16.mxu0 %v10644_v43  ;;  %4913 = vmatprep.subr.bf16.mxu1 %v10647_v44  ;;  %v10739_v43 = vld [vmem:[%s14497_s1 + $0x8ec] ss:$16 sps:$4 sm:$0xff]   ;;  %v10734_v44 = vld [vmem:[%s14497_s1 + $0x8e0] ss:$16 sps:$4 sm:$0xff]  }
 0x1f7   : > { %4586 = vmatpush1.bf16.msra.mxu0 %v10642_v45  ;;  %4914 = vmatpush1.bf16.msra.mxu1 %v10645_v46  ;;  %v10737_v45 = vld [vmem:[%s14497_s1 + $0x8e8] ss:$16 sps:$4 sm:$0xff]   ;;  %v10742_v46 = vld [vmem:[%s14497_s1 + $0x904] ss:$16 sps:$4 sm:$0xff]  }
 0x1f8   : > { %4587 = vmatprep.subr.bf16.mxu0 %v10650_v47  ;;  %4915 = vmatprep.subr.bf16.mxu1 %v10653_v48  ;;  %v10745_v47 = vld [vmem:[%s14497_s1 + $0x90c] ss:$16 sps:$4 sm:$0xff]   ;;  %v10740_v48 = vld [vmem:[%s14497_s1 + $0x900] ss:$16 sps:$4 sm:$0xff]  }
 0x1fb   : > { %4588 = vmatpush1.bf16.msra.mxu0 %v10648_v49  ;;  %4916 = vmatpush1.bf16.msra.mxu1 %v10651_v50  ;;  %v10743_v49 = vld [vmem:[%s14497_s1 + $0x908] ss:$16 sps:$4 sm:$0xff]   ;;  %v10748_v50 = vld [vmem:[%s14497_s1 + $0x924] ss:$16 sps:$4 sm:$0xff]  }
 0x1fc   : > { %4589 = vmatprep.subr.bf16.mxu0 %v10656_v51  ;;  %4917 = vmatprep.subr.bf16.mxu1 %v10659_v52  ;;  %v10751_v51 = vld [vmem:[%s14497_s1 + $0x92c] ss:$16 sps:$4 sm:$0xff]   ;;  %v10746_v52 = vld [vmem:[%s14497_s1 + $0x920] ss:$16 sps:$4 sm:$0xff]  }
 0x1ff   : > { %4590 = vmatpush1.bf16.msra.mxu0 %v10654_v53  ;;  %4918 = vmatpush1.bf16.msra.mxu1 %v10657_v54  ;;  %v10749_v53 = vld [vmem:[%s14497_s1 + $0x928] ss:$16 sps:$4 sm:$0xff]   ;;  %v10754_v54 = vld [vmem:[%s14497_s1 + $0x944] ss:$16 sps:$4 sm:$0xff]  }
 0x200   : > { %4591 = vmatprep.subr.bf16.mxu0 %v10662_v55  ;;  %4919 = vmatprep.subr.bf16.mxu1 %v10665_v56  ;;  %v10757_v55 = vld [vmem:[%s14497_s1 + $0x94c] ss:$16 sps:$4 sm:$0xff]   ;;  %v10752_v56 = vld [vmem:[%s14497_s1 + $0x940] ss:$16 sps:$4 sm:$0xff]  }
 0x203   : > { %4592 = vmatpush1.bf16.msra.mxu0 %v10660_v57  ;;  %4920 = vmatpush1.bf16.msra.mxu1 %v10663_v58  ;;  %v10755_v57 = vld [vmem:[%s14497_s1 + $0x948] ss:$16 sps:$4 sm:$0xff]   ;;  %v10760_v58 = vld [vmem:[%s14497_s1 + $0x964] ss:$16 sps:$4 sm:$0xff]  }
 0x204   : > { %4593 = vmatprep.subr.bf16.mxu0 %v10668_v59  ;;  %4921 = vmatprep.subr.bf16.mxu1 %v10671_v60  ;;  %v10763_v59 = vld [vmem:[%s14497_s1 + $0x96c] ss:$16 sps:$4 sm:$0xff]   ;;  %v10758_v60 = vld [vmem:[%s14497_s1 + $0x960] ss:$16 sps:$4 sm:$0xff]  }
 0x207   : > { %4594 = vmatpush1.bf16.msra.mxu0 %v10666_v61  ;;  %4922 = vmatpush1.bf16.msra.mxu1 %v10669_v62  ;;  %v10761_v61 = vld [vmem:[%s14497_s1 + $0x968] ss:$16 sps:$4 sm:$0xff]   ;;  %v10766_v62 = vld [vmem:[%s14497_s1 + $0x984] ss:$16 sps:$4 sm:$0xff]  }
 0x208   : > { %4595 = vmatprep.subr.bf16.mxu0 %v10674_v63  ;;  %4923 = vmatprep.subr.bf16.mxu1 %v10677_v0  ;;  %v10769_v63 = vld [vmem:[%s14497_s1 + $0x98c] ss:$16 sps:$4 sm:$0xff]   ;;  %v10764_v0 = vld [vmem:[%s14497_s1 + $0x980] ss:$16 sps:$4 sm:$0xff]  }
 0x20b   : > { %4596 = vmatpush1.bf16.msra.mxu0 %v10672_v1  ;;  %4924 = vmatpush1.bf16.msra.mxu1 %v10675_v2  ;;  %v10767_v1 = vld [vmem:[%s14497_s1 + $0x988] ss:$16 sps:$4 sm:$0xff]   ;;  %v10772_v2 = vld [vmem:[%s14497_s1 + $0x9a4] ss:$16 sps:$4 sm:$0xff]  }
 0x20c   : > { %4597 = vmatprep.subr.bf16.mxu0 %v10680_v3  ;;  %4925 = vmatprep.subr.bf16.mxu1 %v10683_v4  ;;  %v10775_v3 = vld [vmem:[%s14497_s1 + $0x9ac] ss:$16 sps:$4 sm:$0xff]   ;;  %v10770_v4 = vld [vmem:[%s14497_s1 + $0x9a0] ss:$16 sps:$4 sm:$0xff]  }
 0x20f   : > { %4598 = vmatpush1.bf16.msra.mxu0 %v10678_v5  ;;  %4926 = vmatpush1.bf16.msra.mxu1 %v10681_v6  ;;  %v10773_v5 = vld [vmem:[%s14497_s1 + $0x9a8] ss:$16 sps:$4 sm:$0xff]   ;;  %v10778_v6 = vld [vmem:[%s14497_s1 + $0x9c4] ss:$16 sps:$4 sm:$0xff]  }
 0x210   : > { %4599 = vmatprep.subr.bf16.mxu0 %v10686_v7  ;;  %4927 = vmatprep.subr.bf16.mxu1 %v10689_v8  ;;  %v10781_v7 = vld [vmem:[%s14497_s1 + $0x9cc] ss:$16 sps:$4 sm:$0xff]   ;;  %v10776_v8 = vld [vmem:[%s14497_s1 + $0x9c0] ss:$16 sps:$4 sm:$0xff]  }
 0x213   : > { %4600 = vmatpush1.bf16.msra.mxu0 %v10684_v9  ;;  %4928 = vmatpush1.bf16.msra.mxu1 %v10687_v10  ;;  %v10779_v9 = vld [vmem:[%s14497_s1 + $0x9c8] ss:$16 sps:$4 sm:$0xff]   ;;  %v10784_v10 = vld [vmem:[%s14497_s1 + $0x9e4] ss:$16 sps:$4 sm:$0xff]  }
 0x214   : > { %4610 = vmatprep.subr.bf16.mxu0 %v10694_v12  ;;  %4938 = vmatprep.subr.bf16.mxu1 %v10697_v13  ;;  %v10787_v12 = vld [vmem:[%s14497_s1 + $0x9ec] ss:$16 sps:$4 sm:$0xff]   ;;  %v10782_v13 = vld [vmem:[%s14497_s1 + $0x9e0] ss:$16 sps:$4 sm:$0xff]  }
 0x216   : > { %4602 = vmatmul.mubr.bf16.vlgmr.msra.gmra.mrb[0].mxu0 %v9115_v11  ;;  %4930 = vmatmul.mubr.bf16.vlgmr.msra.gmra.mrb[0].mxu1 %v9115_v11  ;;  %v10792_v11 = vld [vmem:[%s14497_s1 + $0xa04] ss:$16 sps:$4 sm:$0xff]  }
 0x217   : > { %4611 = vmatpush1.bf16.msra.mxu0 %v10692_v15  ;;  %4939 = vmatpush1.bf16.msra.mxu1 %v10695_v17  ;;  %v10785_v15 = vld [vmem:[%s14497_s1 + $0x9e8] ss:$16 sps:$4 sm:$0xff]   ;;  %v10795_v17 = vld [vmem:[%s14497_s1 + $0xa0c] ss:$16 sps:$4 sm:$0xff]  }
 0x218   : > { %4612 = vmatprep.subr.bf16.mxu0 %v10700_v18  ;;  %4940 = vmatprep.subr.bf16.mxu1 %v10703_v14  ;;  %v13240_v18 = vld [vmem:[%s14496_s0 + $0x28] sm:$0xff]  ;;  %v9117_v14 = vcombine.low %v13044_v16, %v13044_v16 }
 0x219   : > { %4642 = vmatprep.mubr.bf16.mxu0 %v9118_v19  ;;  %4970 = vmatprep.mubr.bf16.mxu1 %v9118_v19  ;;  %v10790_v19 = vld [vmem:[%s14497_s1 + $0xa00] ss:$16 sps:$4 sm:$0xff]   ;;  %v10801_v16 = vld [vmem:[%s14497_s1 + $0xa2c] ss:$16 sps:$4 sm:$0xff]  }
 0x21b   : > { %4613 = vmatpush1.bf16.msra.mxu0 %v10698_v20  ;;  %4941 = vmatpush1.bf16.msra.mxu1 %v10701_v21  ;;  %v10793_v20 = vld [vmem:[%s14497_s1 + $0xa08] ss:$16 sps:$4 sm:$0xff]   ;;  %v10798_v21 = vld [vmem:[%s14497_s1 + $0xa24] ss:$16 sps:$4 sm:$0xff]  }
 0x21c   : > { %4614 = vmatprep.subr.bf16.mxu0 %v10706_v22  ;;  %4942 = vmatprep.subr.bf16.mxu1 %v10709_v23  ;;  %v9120_v22 = vcombine.high %v13240_v18, %v13240_v18  ;;  %v10796_v23 = vld [vmem:[%s14497_s1 + $0xa20] ss:$16 sps:$4 sm:$0xff]  }
 0x21f   : > { %4615 = vmatpush1.bf16.msra.mxu0 %v10704_v24  ;;  %4943 = vmatpush1.bf16.msra.mxu1 %v10707_v25  ;;  %v10799_v24 = vld [vmem:[%s14497_s1 + $0xa28] ss:$16 sps:$4 sm:$0xff]   ;;  %v10804_v25 = vld [vmem:[%s14497_s1 + $0xa44] ss:$16 sps:$4 sm:$0xff]  }
 0x220   : > { %4616 = vmatprep.subr.bf16.mxu0 %v10712_v26  ;;  %4944 = vmatprep.subr.bf16.mxu1 %v10715_v27  ;;  %v10807_v26 = vld [vmem:[%s14497_s1 + $0xa4c] ss:$16 sps:$4 sm:$0xff]   ;;  %v10802_v27 = vld [vmem:[%s14497_s1 + $0xa40] ss:$16 sps:$4 sm:$0xff]  }
 0x223   : > { %4617 = vmatpush1.bf16.msra.mxu0 %v10710_v28  ;;  %4945 = vmatpush1.bf16.msra.mxu1 %v10713_v29  ;;  %v10805_v28 = vld [vmem:[%s14497_s1 + $0xa48] ss:$16 sps:$4 sm:$0xff]   ;;  %v10810_v29 = vld [vmem:[%s14497_s1 + $0xa64] ss:$16 sps:$4 sm:$0xff]  }
 0x224   : > { %4618 = vmatprep.subr.bf16.mxu0 %v10718_v30  ;;  %4946 = vmatprep.subr.bf16.mxu1 %v10721_v31  ;;  %v10813_v30 = vld [vmem:[%s14497_s1 + $0xa6c] ss:$16 sps:$4 sm:$0xff]   ;;  %v10808_v31 = vld [vmem:[%s14497_s1 + $0xa60] ss:$16 sps:$4 sm:$0xff]  }
 0x227   : > { %4619 = vmatpush1.bf16.msra.mxu0 %v10716_v32  ;;  %4947 = vmatpush1.bf16.msra.mxu1 %v10719_v33  ;;  %v10811_v32 = vld [vmem:[%s14497_s1 + $0xa68] ss:$16 sps:$4 sm:$0xff]   ;;  %v10816_v33 = vld [vmem:[%s14497_s1 + $0xa84] ss:$16 sps:$4 sm:$0xff]  }
 0x228   : > { %4620 = vmatprep.subr.bf16.mxu0 %v10724_v34  ;;  %4948 = vmatprep.subr.bf16.mxu1 %v10727_v35  ;;  %v10819_v34 = vld [vmem:[%s14497_s1 + $0xa8c] ss:$16 sps:$4 sm:$0xff]   ;;  %v10814_v35 = vld [vmem:[%s14497_s1 + $0xa80] ss:$16 sps:$4 sm:$0xff]  }
 0x22b   : > { %4621 = vmatpush1.bf16.msra.mxu0 %v10722_v36  ;;  %4949 = vmatpush1.bf16.msra.mxu1 %v10725_v37  ;;  %v10817_v36 = vld [vmem:[%s14497_s1 + $0xa88] ss:$16 sps:$4 sm:$0xff]   ;;  %v10822_v37 = vld [vmem:[%s14497_s1 + $0xaa4] ss:$16 sps:$4 sm:$0xff]  }
 0x22c   : > { %4622 = vmatprep.subr.bf16.mxu0 %v10730_v38  ;;  %4950 = vmatprep.subr.bf16.mxu1 %v10733_v39  ;;  %v10825_v38 = vld [vmem:[%s14497_s1 + $0xaac] ss:$16 sps:$4 sm:$0xff]   ;;  %v10820_v39 = vld [vmem:[%s14497_s1 + $0xaa0] ss:$16 sps:$4 sm:$0xff]  }
 0x22f   : > { %4623 = vmatpush1.bf16.msra.mxu0 %v10728_v40  ;;  %4951 = vmatpush1.bf16.msra.mxu1 %v10731_v41  ;;  %v10823_v40 = vld [vmem:[%s14497_s1 + $0xaa8] ss:$16 sps:$4 sm:$0xff]   ;;  %v10828_v41 = vld [vmem:[%s14497_s1 + $0xac4] ss:$16 sps:$4 sm:$0xff]  }
 0x230   : > { %4624 = vmatprep.subr.bf16.mxu0 %v10736_v42  ;;  %4952 = vmatprep.subr.bf16.mxu1 %v10739_v43  ;;  %v10831_v42 = vld [vmem:[%s14497_s1 + $0xacc] ss:$16 sps:$4 sm:$0xff]   ;;  %v10826_v43 = vld [vmem:[%s14497_s1 + $0xac0] ss:$16 sps:$4 sm:$0xff]  }
 0x233   : > { %4625 = vmatpush1.bf16.msra.mxu0 %v10734_v44  ;;  %4953 = vmatpush1.bf16.msra.mxu1 %v10737_v45  ;;  %v10829_v44 = vld [vmem:[%s14497_s1 + $0xac8] ss:$16 sps:$4 sm:$0xff]   ;;  %v10834_v45 = vld [vmem:[%s14497_s1 + $0xae4] ss:$16 sps:$4 sm:$0xff]  }
 0x234   : > { %4626 = vmatprep.subr.bf16.mxu0 %v10742_v46  ;;  %4954 = vmatprep.subr.bf16.mxu1 %v10745_v47  ;;  %v10837_v46 = vld [vmem:[%s14497_s1 + $0xaec] ss:$16 sps:$4 sm:$0xff]   ;;  %v10832_v47 = vld [vmem:[%s14497_s1 + $0xae0] ss:$16 sps:$4 sm:$0xff]  }
 0x237   : > { %4627 = vmatpush1.bf16.msra.mxu0 %v10740_v48  ;;  %4955 = vmatpush1.bf16.msra.mxu1 %v10743_v49  ;;  %v10835_v48 = vld [vmem:[%s14497_s1 + $0xae8] ss:$16 sps:$4 sm:$0xff]   ;;  %v10840_v49 = vld [vmem:[%s14497_s1 + $0xb04] ss:$16 sps:$4 sm:$0xff]  }
 0x238   : > { %4628 = vmatprep.subr.bf16.mxu0 %v10748_v50  ;;  %4956 = vmatprep.subr.bf16.mxu1 %v10751_v51  ;;  %v10843_v50 = vld [vmem:[%s14497_s1 + $0xb0c] ss:$16 sps:$4 sm:$0xff]   ;;  %v10838_v51 = vld [vmem:[%s14497_s1 + $0xb00] ss:$16 sps:$4 sm:$0xff]  }
 0x23b   : > { %4629 = vmatpush1.bf16.msra.mxu0 %v10746_v52  ;;  %4957 = vmatpush1.bf16.msra.mxu1 %v10749_v53  ;;  %v10841_v52 = vld [vmem:[%s14497_s1 + $0xb08] ss:$16 sps:$4 sm:$0xff]   ;;  %v10846_v53 = vld [vmem:[%s14497_s1 + $0xb24] ss:$16 sps:$4 sm:$0xff]  }
 0x23c   : > { %4630 = vmatprep.subr.bf16.mxu0 %v10754_v54  ;;  %4958 = vmatprep.subr.bf16.mxu1 %v10757_v55  ;;  %v10849_v54 = vld [vmem:[%s14497_s1 + $0xb2c] ss:$16 sps:$4 sm:$0xff]   ;;  %v10844_v55 = vld [vmem:[%s14497_s1 + $0xb20] ss:$16 sps:$4 sm:$0xff]  }
 0x23f   : > { %4631 = vmatpush1.bf16.msra.mxu0 %v10752_v56  ;;  %4959 = vmatpush1.bf16.msra.mxu1 %v10755_v57  ;;  %v10847_v56 = vld [vmem:[%s14497_s1 + $0xb28] ss:$16 sps:$4 sm:$0xff]   ;;  %v10852_v57 = vld [vmem:[%s14497_s1 + $0xb44] ss:$16 sps:$4 sm:$0xff]  }
 0x240   : > { %4632 = vmatprep.subr.bf16.mxu0 %v10760_v58  ;;  %4960 = vmatprep.subr.bf16.mxu1 %v10763_v59  ;;  %v10855_v58 = vld [vmem:[%s14497_s1 + $0xb4c] ss:$16 sps:$4 sm:$0xff]   ;;  %v10850_v59 = vld [vmem:[%s14497_s1 + $0xb40] ss:$16 sps:$4 sm:$0xff]  }
 0x243   : > { %4633 = vmatpush1.bf16.msra.mxu0 %v10758_v60  ;;  %4961 = vmatpush1.bf16.msra.mxu1 %v10761_v61  ;;  %v10853_v60 = vld [vmem:[%s14497_s1 + $0xb48] ss:$16 sps:$4 sm:$0xff]   ;;  %v10858_v61 = vld [vmem:[%s14497_s1 + $0xb64] ss:$16 sps:$4 sm:$0xff]  }
 0x244   : > { %4634 = vmatprep.subr.bf16.mxu0 %v10766_v62  ;;  %4962 = vmatprep.subr.bf16.mxu1 %v10769_v63  ;;  %v10861_v62 = vld [vmem:[%s14497_s1 + $0xb6c] ss:$16 sps:$4 sm:$0xff]   ;;  %v10856_v63 = vld [vmem:[%s14497_s1 + $0xb60] ss:$16 sps:$4 sm:$0xff]  }
 0x247   : > { %4635 = vmatpush1.bf16.msra.mxu0 %v10764_v0  ;;  %4963 = vmatpush1.bf16.msra.mxu1 %v10767_v1  ;;  %v10859_v0 = vld [vmem:[%s14497_s1 + $0xb68] ss:$16 sps:$4 sm:$0xff]   ;;  %v10864_v1 = vld [vmem:[%s14497_s1 + $0xb84] ss:$16 sps:$4 sm:$0xff]  }
 0x248   : > { %4636 = vmatprep.subr.bf16.mxu0 %v10772_v2  ;;  %4964 = vmatprep.subr.bf16.mxu1 %v10775_v3  ;;  %v10867_v2 = vld [vmem:[%s14497_s1 + $0xb8c] ss:$16 sps:$4 sm:$0xff]   ;;  %v10862_v3 = vld [vmem:[%s14497_s1 + $0xb80] ss:$16 sps:$4 sm:$0xff]  }
 0x24b   : > { %4637 = vmatpush1.bf16.msra.mxu0 %v10770_v4  ;;  %4965 = vmatpush1.bf16.msra.mxu1 %v10773_v5  ;;  %v10865_v4 = vld [vmem:[%s14497_s1 + $0xb88] ss:$16 sps:$4 sm:$0xff]   ;;  %v10870_v5 = vld [vmem:[%s14497_s1 + $0xba4] ss:$16 sps:$4 sm:$0xff]  }
 0x24c   : > { %4638 = vmatprep.subr.bf16.mxu0 %v10778_v6  ;;  %4966 = vmatprep.subr.bf16.mxu1 %v10781_v7  ;;  %v10873_v6 = vld [vmem:[%s14497_s1 + $0xbac] ss:$16 sps:$4 sm:$0xff]   ;;  %v10868_v7 = vld [vmem:[%s14497_s1 + $0xba0] ss:$16 sps:$4 sm:$0xff]  }
 0x24f   : > { %4639 = vmatpush1.bf16.msra.mxu0 %v10776_v8  ;;  %4967 = vmatpush1.bf16.msra.mxu1 %v10779_v9  ;;  %v10871_v8 = vld [vmem:[%s14497_s1 + $0xba8] ss:$16 sps:$4 sm:$0xff]   ;;  %v10876_v9 = vld [vmem:[%s14497_s1 + $0xbc4] ss:$16 sps:$4 sm:$0xff]  }
 0x250   : > { %4640 = vmatprep.subr.bf16.mxu0 %v10784_v10  ;;  %4968 = vmatprep.subr.bf16.mxu1 %v10787_v12  ;;  %v10879_v10 = vld [vmem:[%s14497_s1 + $0xbcc] ss:$16 sps:$4 sm:$0xff]   ;;  %v10874_v12 = vld [vmem:[%s14497_s1 + $0xbc0] ss:$16 sps:$4 sm:$0xff]  }
 0x253   : > { %4641 = vmatpush1.bf16.msra.mxu0 %v10782_v13  ;;  %4969 = vmatpush1.bf16.msra.mxu1 %v10785_v15  ;;  %v10877_v13 = vld [vmem:[%s14497_s1 + $0xbc8] ss:$16 sps:$4 sm:$0xff]   ;;  %v10882_v15 = vld [vmem:[%s14497_s1 + $0xbe4] ss:$16 sps:$4 sm:$0xff]  }
 0x254   : > { %4651 = vmatprep.subr.bf16.mxu0 %v10792_v11  ;;  %4979 = vmatprep.subr.bf16.mxu1 %v10795_v17  ;;  %v10885_v11 = vld [vmem:[%s14497_s1 + $0xbec] ss:$16 sps:$4 sm:$0xff]   ;;  %v10880_v17 = vld [vmem:[%s14497_s1 + $0xbe0] ss:$16 sps:$4 sm:$0xff]  }
 0x256   : > { %4643 = vmatmul.mubr.bf16.vlgmr.msra.gmra.mrb[0].mxu0 %v9117_v14  ;;  %4971 = vmatmul.mubr.bf16.vlgmr.msra.gmra.mrb[0].mxu1 %v9117_v14  ;;  %v10883_v14 = vld [vmem:[%s14497_s1 + $0xbe8] ss:$16 sps:$4 sm:$0xff]  }
 0x257   : > { %4652 = vmatpush1.bf16.msra.mxu0 %v10790_v19  ;;  %4980 = vmatpush1.bf16.msra.mxu1 %v10793_v20  ;;  %v10890_v19 = vld [vmem:[%s14497_s1 + $0xc04] ss:$16 sps:$4 sm:$0xff]   ;;  %v10893_v20 = vld [vmem:[%s14497_s1 + $0xc0c] ss:$16 sps:$4 sm:$0xff]  }
 0x258   : > { %4653 = vmatprep.subr.bf16.mxu0 %v10798_v21  ;;  %4981 = vmatprep.subr.bf16.mxu1 %v10801_v16  ;;  %v9119_v21 = vcombine.low %v13240_v18, %v13240_v18  ;;  %v13443_v16 = vld [vmem:[%s14496_s0 + $0x30] sm:$0xff] }
 0x259   : > { %4683 = vmatprep.mubr.bf16.mxu0 %v9120_v22  ;;  %5011 = vmatprep.mubr.bf16.mxu1 %v9120_v22  ;;  %v10888_v22 = vld [vmem:[%s14497_s1 + $0xc00] ss:$16 sps:$4 sm:$0xff]   ;;  %v10896_v18 = vld [vmem:[%s14497_s1 + $0xc24] ss:$16 sps:$4 sm:$0xff]  }
 0x25b   : > { %4654 = vmatpush1.bf16.msra.mxu0 %v10796_v23  ;;  %4982 = vmatpush1.bf16.msra.mxu1 %v10799_v24  ;;  %v10891_v23 = vld [vmem:[%s14497_s1 + $0xc08] ss:$16 sps:$4 sm:$0xff]   ;;  %v10899_v24 = vld [vmem:[%s14497_s1 + $0xc2c] ss:$16 sps:$4 sm:$0xff]  }
 0x25c   : > { %4655 = vmatprep.subr.bf16.mxu0 %v10804_v25  ;;  %4983 = vmatprep.subr.bf16.mxu1 %v10807_v26  ;;  %v9122_v25 = vcombine.high %v13443_v16, %v13443_v16  ;;  %v10894_v26 = vld [vmem:[%s14497_s1 + $0xc20] ss:$16 sps:$4 sm:$0xff]  }
 0x25f   : > { %4656 = vmatpush1.bf16.msra.mxu0 %v10802_v27  ;;  %4984 = vmatpush1.bf16.msra.mxu1 %v10805_v28  ;;  %v10897_v27 = vld [vmem:[%s14497_s1 + $0xc28] ss:$16 sps:$4 sm:$0xff]   ;;  %v10902_v28 = vld [vmem:[%s14497_s1 + $0xc44] ss:$16 sps:$4 sm:$0xff]  }
 0x260   : > { %4657 = vmatprep.subr.bf16.mxu0 %v10810_v29  ;;  %4985 = vmatprep.subr.bf16.mxu1 %v10813_v30  ;;  %v10905_v29 = vld [vmem:[%s14497_s1 + $0xc4c] ss:$16 sps:$4 sm:$0xff]   ;;  %v10900_v30 = vld [vmem:[%s14497_s1 + $0xc40] ss:$16 sps:$4 sm:$0xff]  }
 0x263   : > { %4658 = vmatpush1.bf16.msra.mxu0 %v10808_v31  ;;  %4986 = vmatpush1.bf16.msra.mxu1 %v10811_v32  ;;  %v10903_v31 = vld [vmem:[%s14497_s1 + $0xc48] ss:$16 sps:$4 sm:$0xff]   ;;  %v10908_v32 = vld [vmem:[%s14497_s1 + $0xc64] ss:$16 sps:$4 sm:$0xff]  }
 0x264   : > { %4659 = vmatprep.subr.bf16.mxu0 %v10816_v33  ;;  %4987 = vmatprep.subr.bf16.mxu1 %v10819_v34  ;;  %v10911_v33 = vld [vmem:[%s14497_s1 + $0xc6c] ss:$16 sps:$4 sm:$0xff]   ;;  %v10906_v34 = vld [vmem:[%s14497_s1 + $0xc60] ss:$16 sps:$4 sm:$0xff]  }
 0x267   : > { %4660 = vmatpush1.bf16.msra.mxu0 %v10814_v35  ;;  %4988 = vmatpush1.bf16.msra.mxu1 %v10817_v36  ;;  %v10909_v35 = vld [vmem:[%s14497_s1 + $0xc68] ss:$16 sps:$4 sm:$0xff]   ;;  %v10914_v36 = vld [vmem:[%s14497_s1 + $0xc84] ss:$16 sps:$4 sm:$0xff]  }
 0x268   : > { %4661 = vmatprep.subr.bf16.mxu0 %v10822_v37  ;;  %4989 = vmatprep.subr.bf16.mxu1 %v10825_v38  ;;  %v10917_v37 = vld [vmem:[%s14497_s1 + $0xc8c] ss:$16 sps:$4 sm:$0xff]   ;;  %v10912_v38 = vld [vmem:[%s14497_s1 + $0xc80] ss:$16 sps:$4 sm:$0xff]  }
 0x26b   : > { %4662 = vmatpush1.bf16.msra.mxu0 %v10820_v39  ;;  %4990 = vmatpush1.bf16.msra.mxu1 %v10823_v40  ;;  %v10915_v39 = vld [vmem:[%s14497_s1 + $0xc88] ss:$16 sps:$4 sm:$0xff]   ;;  %v10920_v40 = vld [vmem:[%s14497_s1 + $0xca4] ss:$16 sps:$4 sm:$0xff]  }
 0x26c   : > { %4663 = vmatprep.subr.bf16.mxu0 %v10828_v41  ;;  %4991 = vmatprep.subr.bf16.mxu1 %v10831_v42  ;;  %v10923_v41 = vld [vmem:[%s14497_s1 + $0xcac] ss:$16 sps:$4 sm:$0xff]   ;;  %v10918_v42 = vld [vmem:[%s14497_s1 + $0xca0] ss:$16 sps:$4 sm:$0xff]  }
 0x26f   : > { %4664 = vmatpush1.bf16.msra.mxu0 %v10826_v43  ;;  %4992 = vmatpush1.bf16.msra.mxu1 %v10829_v44  ;;  %v10921_v43 = vld [vmem:[%s14497_s1 + $0xca8] ss:$16 sps:$4 sm:$0xff]   ;;  %v10926_v44 = vld [vmem:[%s14497_s1 + $0xcc4] ss:$16 sps:$4 sm:$0xff]  }
 0x270   : > { %4665 = vmatprep.subr.bf16.mxu0 %v10834_v45  ;;  %4993 = vmatprep.subr.bf16.mxu1 %v10837_v46  ;;  %v10929_v45 = vld [vmem:[%s14497_s1 + $0xccc] ss:$16 sps:$4 sm:$0xff]   ;;  %v10924_v46 = vld [vmem:[%s14497_s1 + $0xcc0] ss:$16 sps:$4 sm:$0xff]  }
 0x273   : > { %4666 = vmatpush1.bf16.msra.mxu0 %v10832_v47  ;;  %4994 = vmatpush1.bf16.msra.mxu1 %v10835_v48  ;;  %v10927_v47 = vld [vmem:[%s14497_s1 + $0xcc8] ss:$16 sps:$4 sm:$0xff]   ;;  %v10932_v48 = vld [vmem:[%s14497_s1 + $0xce4] ss:$16 sps:$4 sm:$0xff]  }
 0x274   : > { %4667 = vmatprep.subr.bf16.mxu0 %v10840_v49  ;;  %4995 = vmatprep.subr.bf16.mxu1 %v10843_v50  ;;  %v10935_v49 = vld [vmem:[%s14497_s1 + $0xcec] ss:$16 sps:$4 sm:$0xff]   ;;  %v10930_v50 = vld [vmem:[%s14497_s1 + $0xce0] ss:$16 sps:$4 sm:$0xff]  }
 0x277   : > { %4668 = vmatpush1.bf16.msra.mxu0 %v10838_v51  ;;  %4996 = vmatpush1.bf16.msra.mxu1 %v10841_v52  ;;  %v10933_v51 = vld [vmem:[%s14497_s1 + $0xce8] ss:$16 sps:$4 sm:$0xff]   ;;  %v10938_v52 = vld [vmem:[%s14497_s1 + $0xd04] ss:$16 sps:$4 sm:$0xff]  }
 0x278   : > { %4669 = vmatprep.subr.bf16.mxu0 %v10846_v53  ;;  %4997 = vmatprep.subr.bf16.mxu1 %v10849_v54  ;;  %v10941_v53 = vld [vmem:[%s14497_s1 + $0xd0c] ss:$16 sps:$4 sm:$0xff]   ;;  %v10936_v54 = vld [vmem:[%s14497_s1 + $0xd00] ss:$16 sps:$4 sm:$0xff]  }
 0x27b   : > { %4670 = vmatpush1.bf16.msra.mxu0 %v10844_v55  ;;  %4998 = vmatpush1.bf16.msra.mxu1 %v10847_v56  ;;  %v10939_v55 = vld [vmem:[%s14497_s1 + $0xd08] ss:$16 sps:$4 sm:$0xff]   ;;  %v10944_v56 = vld [vmem:[%s14497_s1 + $0xd24] ss:$16 sps:$4 sm:$0xff]  }
 0x27c   : > { %4671 = vmatprep.subr.bf16.mxu0 %v10852_v57  ;;  %4999 = vmatprep.subr.bf16.mxu1 %v10855_v58  ;;  %v10947_v57 = vld [vmem:[%s14497_s1 + $0xd2c] ss:$16 sps:$4 sm:$0xff]   ;;  %v10942_v58 = vld [vmem:[%s14497_s1 + $0xd20] ss:$16 sps:$4 sm:$0xff]  }
 0x27f   : > { %4672 = vmatpush1.bf16.msra.mxu0 %v10850_v59  ;;  %5000 = vmatpush1.bf16.msra.mxu1 %v10853_v60  ;;  %v10945_v59 = vld [vmem:[%s14497_s1 + $0xd28] ss:$16 sps:$4 sm:$0xff]   ;;  %v10950_v60 = vld [vmem:[%s14497_s1 + $0xd44] ss:$16 sps:$4 sm:$0xff]  }
 0x280   : > { %4673 = vmatprep.subr.bf16.mxu0 %v10858_v61  ;;  %5001 = vmatprep.subr.bf16.mxu1 %v10861_v62  ;;  %v10953_v61 = vld [vmem:[%s14497_s1 + $0xd4c] ss:$16 sps:$4 sm:$0xff]   ;;  %v10948_v62 = vld [vmem:[%s14497_s1 + $0xd40] ss:$16 sps:$4 sm:$0xff]  }
 0x283   : > { %4674 = vmatpush1.bf16.msra.mxu0 %v10856_v63  ;;  %5002 = vmatpush1.bf16.msra.mxu1 %v10859_v0  ;;  %v10951_v63 = vld [vmem:[%s14497_s1 + $0xd48] ss:$16 sps:$4 sm:$0xff]   ;;  %v10956_v0 = vld [vmem:[%s14497_s1 + $0xd64] ss:$16 sps:$4 sm:$0xff]  }
 0x284   : > { %4675 = vmatprep.subr.bf16.mxu0 %v10864_v1  ;;  %5003 = vmatprep.subr.bf16.mxu1 %v10867_v2  ;;  %v10959_v1 = vld [vmem:[%s14497_s1 + $0xd6c] ss:$16 sps:$4 sm:$0xff]   ;;  %v10954_v2 = vld [vmem:[%s14497_s1 + $0xd60] ss:$16 sps:$4 sm:$0xff]  }
 0x287   : > { %4676 = vmatpush1.bf16.msra.mxu0 %v10862_v3  ;;  %5004 = vmatpush1.bf16.msra.mxu1 %v10865_v4  ;;  %v10957_v3 = vld [vmem:[%s14497_s1 + $0xd68] ss:$16 sps:$4 sm:$0xff]   ;;  %v10962_v4 = vld [vmem:[%s14497_s1 + $0xd84] ss:$16 sps:$4 sm:$0xff]  }
 0x288   : > { %4677 = vmatprep.subr.bf16.mxu0 %v10870_v5  ;;  %5005 = vmatprep.subr.bf16.mxu1 %v10873_v6  ;;  %v10965_v5 = vld [vmem:[%s14497_s1 + $0xd8c] ss:$16 sps:$4 sm:$0xff]   ;;  %v10960_v6 = vld [vmem:[%s14497_s1 + $0xd80] ss:$16 sps:$4 sm:$0xff]  }
 0x28b   : > { %4678 = vmatpush1.bf16.msra.mxu0 %v10868_v7  ;;  %5006 = vmatpush1.bf16.msra.mxu1 %v10871_v8  ;;  %v10963_v7 = vld [vmem:[%s14497_s1 + $0xd88] ss:$16 sps:$4 sm:$0xff]   ;;  %v10968_v8 = vld [vmem:[%s14497_s1 + $0xda4] ss:$16 sps:$4 sm:$0xff]  }
 0x28c   : > { %4679 = vmatprep.subr.bf16.mxu0 %v10876_v9  ;;  %5007 = vmatprep.subr.bf16.mxu1 %v10879_v10  ;;  %v10971_v9 = vld [vmem:[%s14497_s1 + $0xdac] ss:$16 sps:$4 sm:$0xff]   ;;  %v10966_v10 = vld [vmem:[%s14497_s1 + $0xda0] ss:$16 sps:$4 sm:$0xff]  }
 0x28f   : > { %4680 = vmatpush1.bf16.msra.mxu0 %v10874_v12  ;;  %5008 = vmatpush1.bf16.msra.mxu1 %v10877_v13  ;;  %v10969_v12 = vld [vmem:[%s14497_s1 + $0xda8] ss:$16 sps:$4 sm:$0xff]   ;;  %v10974_v13 = vld [vmem:[%s14497_s1 + $0xdc4] ss:$16 sps:$4 sm:$0xff]  }
 0x290   : > { %4681 = vmatprep.subr.bf16.mxu0 %v10882_v15  ;;  %5009 = vmatprep.subr.bf16.mxu1 %v10885_v11  ;;  %v10977_v15 = vld [vmem:[%s14497_s1 + $0xdcc] ss:$16 sps:$4 sm:$0xff]   ;;  %v10972_v11 = vld [vmem:[%s14497_s1 + $0xdc0] ss:$16 sps:$4 sm:$0xff]  }
 0x293   : > { %4682 = vmatpush1.bf16.msra.mxu0 %v10880_v17  ;;  %5010 = vmatpush1.bf16.msra.mxu1 %v10883_v14  ;;  %v10975_v17 = vld [vmem:[%s14497_s1 + $0xdc8] ss:$16 sps:$4 sm:$0xff]   ;;  %v10980_v14 = vld [vmem:[%s14497_s1 + $0xde4] ss:$16 sps:$4 sm:$0xff]  }
 0x294   : > { %4692 = vmatprep.subr.bf16.mxu0 %v10890_v19  ;;  %5020 = vmatprep.subr.bf16.mxu1 %v10893_v20  ;;  %v10983_v19 = vld [vmem:[%s14497_s1 + $0xdec] ss:$16 sps:$4 sm:$0xff]   ;;  %v10978_v20 = vld [vmem:[%s14497_s1 + $0xde0] ss:$16 sps:$4 sm:$0xff]  }
 0x296   : > { %4684 = vmatmul.mubr.bf16.vlgmr.msra.gmra.mrb[0].mxu0 %v9119_v21  ;;  %5012 = vmatmul.mubr.bf16.vlgmr.msra.gmra.mrb[0].mxu1 %v9119_v21  ;;  %v10981_v21 = vld [vmem:[%s14497_s1 + $0xde8] ss:$16 sps:$4 sm:$0xff]  }
 0x297   : > { %4693 = vmatpush1.bf16.msra.mxu0 %v10888_v22  ;;  %5021 = vmatpush1.bf16.msra.mxu1 %v10891_v23  ;;  %v10988_v22 = vld [vmem:[%s14497_s1 + $0xe04] ss:$16 sps:$4 sm:$0xff]   ;;  %v10991_v23 = vld [vmem:[%s14497_s1 + $0xe0c] ss:$16 sps:$4 sm:$0xff]  }
 0x298   : > { %4694 = vmatprep.subr.bf16.mxu0 %v10896_v18  ;;  %5022 = vmatprep.subr.bf16.mxu1 %v10899_v24  ;;  %v9121_v18 = vcombine.low %v13443_v16, %v13443_v16  ;;  %v13644_v24 = vld [vmem:[%s14496_s0 + $0x38] sm:$0xff]  ;;  %v10994_v16 = vld [vmem:[%s14497_s1 + $0xe24] ss:$16 sps:$4 sm:$0xff]  }
 0x299   : > { %4724 = vmatprep.mubr.bf16.mxu0 %v9122_v25  ;;  %5052 = vmatprep.mubr.bf16.mxu1 %v9122_v25  ;;  %v10986_v25 = vld [vmem:[%s14497_s1 + $0xe00] ss:$16 sps:$4 sm:$0xff]  }
 0x29b   : > { %4695 = vmatpush1.bf16.msra.mxu0 %v10894_v26  ;;  %5023 = vmatpush1.bf16.msra.mxu1 %v10897_v27  ;;  %v10989_v26 = vld [vmem:[%s14497_s1 + $0xe08] ss:$16 sps:$4 sm:$0xff]   ;;  %v10997_v27 = vld [vmem:[%s14497_s1 + $0xe2c] ss:$16 sps:$4 sm:$0xff]  }
 0x29c   : > { %4696 = vmatprep.subr.bf16.mxu0 %v10902_v28  ;;  %5024 = vmatprep.subr.bf16.mxu1 %v10905_v29  ;;  %v9124_v28 = vcombine.high %v13644_v24, %v13644_v24  ;;  %v10992_v29 = vld [vmem:[%s14497_s1 + $0xe20] ss:$16 sps:$4 sm:$0xff]  }
 0x29f   : > { %4697 = vmatpush1.bf16.msra.mxu0 %v10900_v30  ;;  %5025 = vmatpush1.bf16.msra.mxu1 %v10903_v31  ;;  %v10995_v30 = vld [vmem:[%s14497_s1 + $0xe28] ss:$16 sps:$4 sm:$0xff]   ;;  %v11000_v31 = vld [vmem:[%s14497_s1 + $0xe44] ss:$16 sps:$4 sm:$0xff]  }
 0x2a0   : > { %4698 = vmatprep.subr.bf16.mxu0 %v10908_v32  ;;  %5026 = vmatprep.subr.bf16.mxu1 %v10911_v33  ;;  %v11003_v32 = vld [vmem:[%s14497_s1 + $0xe4c] ss:$16 sps:$4 sm:$0xff]   ;;  %v10998_v33 = vld [vmem:[%s14497_s1 + $0xe40] ss:$16 sps:$4 sm:$0xff]  }
 0x2a3   : > { %4699 = vmatpush1.bf16.msra.mxu0 %v10906_v34  ;;  %5027 = vmatpush1.bf16.msra.mxu1 %v10909_v35  ;;  %v11001_v34 = vld [vmem:[%s14497_s1 + $0xe48] ss:$16 sps:$4 sm:$0xff]   ;;  %v11006_v35 = vld [vmem:[%s14497_s1 + $0xe64] ss:$16 sps:$4 sm:$0xff]  }
 0x2a4   : > { %4700 = vmatprep.subr.bf16.mxu0 %v10914_v36  ;;  %5028 = vmatprep.subr.bf16.mxu1 %v10917_v37  ;;  %v11009_v36 = vld [vmem:[%s14497_s1 + $0xe6c] ss:$16 sps:$4 sm:$0xff]   ;;  %v11004_v37 = vld [vmem:[%s14497_s1 + $0xe60] ss:$16 sps:$4 sm:$0xff]  }
 0x2a7   : > { %4701 = vmatpush1.bf16.msra.mxu0 %v10912_v38  ;;  %5029 = vmatpush1.bf16.msra.mxu1 %v10915_v39  ;;  %v11007_v38 = vld [vmem:[%s14497_s1 + $0xe68] ss:$16 sps:$4 sm:$0xff]   ;;  %v11012_v39 = vld [vmem:[%s14497_s1 + $0xe84] ss:$16 sps:$4 sm:$0xff]  }
 0x2a8   : > { %4702 = vmatprep.subr.bf16.mxu0 %v10920_v40  ;;  %5030 = vmatprep.subr.bf16.mxu1 %v10923_v41  ;;  %v11015_v40 = vld [vmem:[%s14497_s1 + $0xe8c] ss:$16 sps:$4 sm:$0xff]   ;;  %v11010_v41 = vld [vmem:[%s14497_s1 + $0xe80] ss:$16 sps:$4 sm:$0xff]  }
 0x2ab   : > { %4703 = vmatpush1.bf16.msra.mxu0 %v10918_v42  ;;  %5031 = vmatpush1.bf16.msra.mxu1 %v10921_v43  ;;  %v11013_v42 = vld [vmem:[%s14497_s1 + $0xe88] ss:$16 sps:$4 sm:$0xff]   ;;  %v11018_v43 = vld [vmem:[%s14497_s1 + $0xea4] ss:$16 sps:$4 sm:$0xff]  }
 0x2ac   : > { %4704 = vmatprep.subr.bf16.mxu0 %v10926_v44  ;;  %5032 = vmatprep.subr.bf16.mxu1 %v10929_v45  ;;  %v11021_v44 = vld [vmem:[%s14497_s1 + $0xeac] ss:$16 sps:$4 sm:$0xff]   ;;  %v11016_v45 = vld [vmem:[%s14497_s1 + $0xea0] ss:$16 sps:$4 sm:$0xff]  }
 0x2af   : > { %4705 = vmatpush1.bf16.msra.mxu0 %v10924_v46  ;;  %5033 = vmatpush1.bf16.msra.mxu1 %v10927_v47  ;;  %v11019_v46 = vld [vmem:[%s14497_s1 + $0xea8] ss:$16 sps:$4 sm:$0xff]   ;;  %v11024_v47 = vld [vmem:[%s14497_s1 + $0xec4] ss:$16 sps:$4 sm:$0xff]  }
 0x2b0   : > { %4706 = vmatprep.subr.bf16.mxu0 %v10932_v48  ;;  %5034 = vmatprep.subr.bf16.mxu1 %v10935_v49  ;;  %v11027_v48 = vld [vmem:[%s14497_s1 + $0xecc] ss:$16 sps:$4 sm:$0xff]   ;;  %v11022_v49 = vld [vmem:[%s14497_s1 + $0xec0] ss:$16 sps:$4 sm:$0xff]  }
 0x2b3   : > { %4707 = vmatpush1.bf16.msra.mxu0 %v10930_v50  ;;  %5035 = vmatpush1.bf16.msra.mxu1 %v10933_v51  ;;  %v11025_v50 = vld [vmem:[%s14497_s1 + $0xec8] ss:$16 sps:$4 sm:$0xff]   ;;  %v11030_v51 = vld [vmem:[%s14497_s1 + $0xee4] ss:$16 sps:$4 sm:$0xff]  }
 0x2b4   : > { %4708 = vmatprep.subr.bf16.mxu0 %v10938_v52  ;;  %5036 = vmatprep.subr.bf16.mxu1 %v10941_v53  ;;  %v11033_v52 = vld [vmem:[%s14497_s1 + $0xeec] ss:$16 sps:$4 sm:$0xff]   ;;  %v11028_v53 = vld [vmem:[%s14497_s1 + $0xee0] ss:$16 sps:$4 sm:$0xff]  }
 0x2b7   : > { %4709 = vmatpush1.bf16.msra.mxu0 %v10936_v54  ;;  %5037 = vmatpush1.bf16.msra.mxu1 %v10939_v55  ;;  %v11031_v54 = vld [vmem:[%s14497_s1 + $0xee8] ss:$16 sps:$4 sm:$0xff]   ;;  %v11036_v55 = vld [vmem:[%s14497_s1 + $0xf04] ss:$16 sps:$4 sm:$0xff]  }
 0x2b8   : > { %4710 = vmatprep.subr.bf16.mxu0 %v10944_v56  ;;  %5038 = vmatprep.subr.bf16.mxu1 %v10947_v57  ;;  %v11039_v56 = vld [vmem:[%s14497_s1 + $0xf0c] ss:$16 sps:$4 sm:$0xff]   ;;  %v11034_v57 = vld [vmem:[%s14497_s1 + $0xf00] ss:$16 sps:$4 sm:$0xff]  }
 0x2bb   : > { %4711 = vmatpush1.bf16.msra.mxu0 %v10942_v58  ;;  %5039 = vmatpush1.bf16.msra.mxu1 %v10945_v59  ;;  %v11037_v58 = vld [vmem:[%s14497_s1 + $0xf08] ss:$16 sps:$4 sm:$0xff]   ;;  %v11042_v59 = vld [vmem:[%s14497_s1 + $0xf24] ss:$16 sps:$4 sm:$0xff]  }
 0x2bc   : > { %4712 = vmatprep.subr.bf16.mxu0 %v10950_v60  ;;  %5040 = vmatprep.subr.bf16.mxu1 %v10953_v61  ;;  %v11045_v60 = vld [vmem:[%s14497_s1 + $0xf2c] ss:$16 sps:$4 sm:$0xff]   ;;  %v11040_v61 = vld [vmem:[%s14497_s1 + $0xf20] ss:$16 sps:$4 sm:$0xff]  }
 0x2bf   : > { %4713 = vmatpush1.bf16.msra.mxu0 %v10948_v62  ;;  %5041 = vmatpush1.bf16.msra.mxu1 %v10951_v63  ;;  %v11043_v62 = vld [vmem:[%s14497_s1 + $0xf28] ss:$16 sps:$4 sm:$0xff]   ;;  %v11048_v63 = vld [vmem:[%s14497_s1 + $0xf44] ss:$16 sps:$4 sm:$0xff]  }
 0x2c0   : > { %4714 = vmatprep.subr.bf16.mxu0 %v10956_v0  ;;  %5042 = vmatprep.subr.bf16.mxu1 %v10959_v1  ;;  %v11051_v0 = vld [vmem:[%s14497_s1 + $0xf4c] ss:$16 sps:$4 sm:$0xff]   ;;  %v11046_v1 = vld [vmem:[%s14497_s1 + $0xf40] ss:$16 sps:$4 sm:$0xff]  }
 0x2c3   : > { %4715 = vmatpush1.bf16.msra.mxu0 %v10954_v2  ;;  %5043 = vmatpush1.bf16.msra.mxu1 %v10957_v3  ;;  %v11049_v2 = vld [vmem:[%s14497_s1 + $0xf48] ss:$16 sps:$4 sm:$0xff]   ;;  %v11054_v3 = vld [vmem:[%s14497_s1 + $0xf64] ss:$16 sps:$4 sm:$0xff]  }
 0x2c4   : > { %4716 = vmatprep.subr.bf16.mxu0 %v10962_v4  ;;  %5044 = vmatprep.subr.bf16.mxu1 %v10965_v5  ;;  %v11057_v4 = vld [vmem:[%s14497_s1 + $0xf6c] ss:$16 sps:$4 sm:$0xff]   ;;  %v11052_v5 = vld [vmem:[%s14497_s1 + $0xf60] ss:$16 sps:$4 sm:$0xff]  }
 0x2c7   : > { %4717 = vmatpush1.bf16.msra.mxu0 %v10960_v6  ;;  %5045 = vmatpush1.bf16.msra.mxu1 %v10963_v7  ;;  %v11055_v6 = vld [vmem:[%s14497_s1 + $0xf68] ss:$16 sps:$4 sm:$0xff]   ;;  %v11060_v7 = vld [vmem:[%s14497_s1 + $0xf84] ss:$16 sps:$4 sm:$0xff]  }
 0x2c8   : > { %4718 = vmatprep.subr.bf16.mxu0 %v10968_v8  ;;  %5046 = vmatprep.subr.bf16.mxu1 %v10971_v9  ;;  %v11063_v8 = vld [vmem:[%s14497_s1 + $0xf8c] ss:$16 sps:$4 sm:$0xff]   ;;  %v11058_v9 = vld [vmem:[%s14497_s1 + $0xf80] ss:$16 sps:$4 sm:$0xff]  }
 0x2cb   : > { %4719 = vmatpush1.bf16.msra.mxu0 %v10966_v10  ;;  %5047 = vmatpush1.bf16.msra.mxu1 %v10969_v12  ;;  %v11061_v10 = vld [vmem:[%s14497_s1 + $0xf88] ss:$16 sps:$4 sm:$0xff]   ;;  %v11066_v12 = vld [vmem:[%s14497_s1 + $0xfa4] ss:$16 sps:$4 sm:$0xff]  }
 0x2cc   : > { %4720 = vmatprep.subr.bf16.mxu0 %v10974_v13  ;;  %5048 = vmatprep.subr.bf16.mxu1 %v10977_v15  ;;  %v11069_v13 = vld [vmem:[%s14497_s1 + $0xfac] ss:$16 sps:$4 sm:$0xff]   ;;  %v11064_v15 = vld [vmem:[%s14497_s1 + $0xfa0] ss:$16 sps:$4 sm:$0xff]  }
 0x2cf   : > { %4721 = vmatpush1.bf16.msra.mxu0 %v10972_v11  ;;  %5049 = vmatpush1.bf16.msra.mxu1 %v10975_v17  ;;  %v11067_v11 = vld [vmem:[%s14497_s1 + $0xfa8] ss:$16 sps:$4 sm:$0xff]   ;;  %v11072_v17 = vld [vmem:[%s14497_s1 + $0xfc4] ss:$16 sps:$4 sm:$0xff]  }
 0x2d0   : > { %4722 = vmatprep.subr.bf16.mxu0 %v10980_v14  ;;  %5050 = vmatprep.subr.bf16.mxu1 %v10983_v19  ;;  %v11075_v14 = vld [vmem:[%s14497_s1 + $0xfcc] ss:$16 sps:$4 sm:$0xff]   ;;  %v11070_v19 = vld [vmem:[%s14497_s1 + $0xfc0] ss:$16 sps:$4 sm:$0xff]  }
 0x2d3   : > { %4723 = vmatpush1.bf16.msra.mxu0 %v10978_v20  ;;  %5051 = vmatpush1.bf16.msra.mxu1 %v10981_v21  ;;  %v11073_v20 = vld [vmem:[%s14497_s1 + $0xfc8] ss:$16 sps:$4 sm:$0xff]   ;;  %v11078_v21 = vld [vmem:[%s14497_s1 + $0xfe4] ss:$16 sps:$4 sm:$0xff]  }
 0x2d4   : > { %4733 = vmatprep.subr.bf16.mxu0 %v10988_v22  ;;  %5061 = vmatprep.subr.bf16.mxu1 %v10991_v23  ;;  %v11081_v22 = vld [vmem:[%s14497_s1 + $0xfec] ss:$16 sps:$4 sm:$0xff]   ;;  %v5110_v23 = vld [vmem:[%s13829_s24] sm:$0xff] }
 0x2d6   : > { %4725 = vmatmul.mubr.bf16.vlgmr.msra.gmra.mrb[0].mxu0 %v9121_v18  ;;  %5053 = vmatmul.mubr.bf16.vlgmr.msra.gmra.mrb[0].mxu1 %v9121_v18  ;;  %v5118_v18 = vld [vmem:[%s13829_s24 + $0x40] sm:$0xff] }
 0x2d7   : > { %4734 = vmatpush1.bf16.msra.mxu0 %v10986_v25  ;;  %5062 = vmatpush1.bf16.msra.mxu1 %v10989_v26  ;;  %v5111_v25 = vld [vmem:[%s13829_s24 + $0x8] sm:$0xff] }
 0x2d8   : > { %4735 = vmatprep.subr.bf16.mxu0 %v10994_v16  ;;  %5063 = vmatprep.subr.bf16.mxu1 %v10997_v27  ;;  %v5119_v26 = vld [vmem:[%s13829_s24 + $0x48] sm:$0xff]  ;;  %v11076_v16 = vld [vmem:[%s14497_s1 + $0xfe0] ss:$16 sps:$4 sm:$0xff]  }
 0x2d9   : > { %4765 = vmatprep.mubr.bf16.mxu0 %v9124_v28  ;;  %5093 = vmatprep.mubr.bf16.mxu1 %v9124_v28  ;;  %v11079_v27 = vld [vmem:[%s14497_s1 + $0xfe8] ss:$16 sps:$4 sm:$0xff]   ;;  %v9638_v28 = vcombine.high %v5110_v23, %v5118_v18 }
 0x2db   : > { %4736 = vmatpush1.bf16.msra.mxu0 %v10992_v29  ;;  %5064 = vmatpush1.bf16.msra.mxu1 %v10995_v30  ;;  %v9640_v29 = vcombine.high %v5111_v25, %v5119_v26  ;;  %v5126_v30 = vld [vmem:[%s13829_s24 + $0x80] sm:$0xff] }
 0x2dc   : > { %4737 = vmatprep.subr.bf16.mxu0 %v11000_v31  ;;  %5065 = vmatprep.subr.bf16.mxu1 %v11003_v32  ;;  %v5134_v31 = vld [vmem:[%s13829_s24 + $0xc0] sm:$0xff]  ;;  %v5127_v32 = vld [vmem:[%s13829_s24 + $0x88] sm:$0xff] }
 0x2df   : > { %4738 = vmatpush1.bf16.msra.mxu0 %v10998_v33  ;;  %5066 = vmatpush1.bf16.msra.mxu1 %v11001_v34  ;;  %v5135_v33 = vld [vmem:[%s13829_s24 + $0xc8] sm:$0xff]  ;;  %v9123_v34 = vcombine.low %v13644_v24, %v13644_v24  ;;  %v9653_v24 = vcombine.low %v5126_v30, %v5134_v31 }
 0x2e0   : > { %4739 = vmatprep.subr.bf16.mxu0 %v11006_v35  ;;  %5067 = vmatprep.subr.bf16.mxu1 %v11009_v36  ;;  %v9637_v35 = vcombine.low %v5110_v23, %v5118_v18  ;;  %v9639_v36 = vcombine.low %v5111_v25, %v5119_v26  ;;  %v5238_v18 = vld [vmem:[%s13829_s24 + $0x400] sm:$0xff]  ;;  %v5239_v26 = vld [vmem:[%s13829_s24 + $0x408] sm:$0xff] }
 0x2e1   : > { %v5246_v25 = vld [vmem:[%s13829_s24 + $0x440] sm:$0xff] }
 0x2e3   : > { %4740 = vmatpush1.bf16.msra.mxu0 %v11004_v37  ;;  %5068 = vmatpush1.bf16.msra.mxu1 %v11007_v38  ;;  %v9654_v37 = vcombine.high %v5126_v30, %v5134_v31  ;;  %v9656_v38 = vcombine.high %v5127_v32, %v5135_v33  ;;  %v5254_v31 = vld [vmem:[%s13829_s24 + $0x480] sm:$0xff] }
 0x2e4   : > { %4741 = vmatprep.subr.bf16.mxu0 %v11012_v39  ;;  %5069 = vmatprep.subr.bf16.mxu1 %v11015_v40  ;;  %v5142_v39 = vld [vmem:[%s13829_s24 + $0x100] sm:$0xff] }
 0x2e5   : > { %v5150_v40 = vld [vmem:[%s13829_s24 + $0x140] sm:$0xff] }
 0x2e7   : > { %4742 = vmatpush1.bf16.msra.mxu0 %v11010_v41  ;;  %5070 = vmatpush1.bf16.msra.mxu1 %v11013_v42  ;;  %v5143_v41 = vld [vmem:[%s13829_s24 + $0x108] sm:$0xff] }
 0x2e8   : > { %4743 = vmatprep.subr.bf16.mxu0 %v11018_v43  ;;  %5071 = vmatprep.subr.bf16.mxu1 %v11021_v44  ;;  %v5151_v42 = vld [vmem:[%s13829_s24 + $0x148] sm:$0xff]  ;;  %v9655_v43 = vcombine.low %v5127_v32, %v5135_v33  ;;  %v9670_v44 = vcombine.high %v5142_v39, %v5150_v40  ;;  %v5262_v32 = vld [vmem:[%s13829_s24 + $0x4c0] sm:$0xff] }
 0x2e9   : > { %v5255_v33 = vld [vmem:[%s13829_s24 + $0x488] sm:$0xff] }
 0x2eb   : > { %4744 = vmatpush1.bf16.msra.mxu0 %v11016_v45  ;;  %5072 = vmatpush1.bf16.msra.mxu1 %v11019_v46  ;;  %v9672_v45 = vcombine.high %v5143_v41, %v5151_v42  ;;  %v5158_v46 = vld [vmem:[%s13829_s24 + $0x180] sm:$0xff] }
 0x2ec   : > { %4745 = vmatprep.subr.bf16.mxu0 %v11024_v47  ;;  %5073 = vmatprep.subr.bf16.mxu1 %v11027_v48  ;;  %v5166_v47 = vld [vmem:[%s13829_s24 + $0x1c0] sm:$0xff]  ;;  %v5159_v48 = vld [vmem:[%s13829_s24 + $0x188] sm:$0xff] }
 0x2ef   : > { %4746 = vmatpush1.bf16.msra.mxu0 %v11022_v49  ;;  %5074 = vmatpush1.bf16.msra.mxu1 %v11025_v50  ;;  %v5167_v49 = vld [vmem:[%s13829_s24 + $0x1c8] sm:$0xff]  ;;  %v9669_v50 = vcombine.low %v5142_v39, %v5150_v40  ;;  %v5270_v39 = vld [vmem:[%s13829_s24 + $0x500] sm:$0xff] }
 0x2f0   : > { %4747 = vmatprep.subr.bf16.mxu0 %v11030_v51  ;;  %5075 = vmatprep.subr.bf16.mxu1 %v11033_v52  ;;  %v9671_v51 = vcombine.low %v5143_v41, %v5151_v42  ;;  %v9686_v52 = vcombine.high %v5158_v46, %v5166_v47  ;;  %v5278_v40 = vld [vmem:[%s13829_s24 + $0x540] sm:$0xff]  ;;  %v5271_v41 = vld [vmem:[%s13829_s24 + $0x508] sm:$0xff] }
 0x2f1   : > { %v5279_v42 = vld [vmem:[%s13829_s24 + $0x548] sm:$0xff] }
 0x2f3   : > { %4748 = vmatpush1.bf16.msra.mxu0 %v11028_v53  ;;  %5076 = vmatpush1.bf16.msra.mxu1 %v11031_v54  ;;  %v9688_v53 = vcombine.high %v5159_v48, %v5167_v49  ;;  %v5174_v54 = vld [vmem:[%s13829_s24 + $0x200] sm:$0xff] }
 0x2f4   : > { %4749 = vmatprep.subr.bf16.mxu0 %v11036_v55  ;;  %5077 = vmatprep.subr.bf16.mxu1 %v11039_v56  ;;  %v5182_v55 = vld [vmem:[%s13829_s24 + $0x240] sm:$0xff]  ;;  %v5175_v56 = vld [vmem:[%s13829_s24 + $0x208] sm:$0xff] }
 0x2f7   : > { %4750 = vmatpush1.bf16.msra.mxu0 %v11034_v57  ;;  %5078 = vmatpush1.bf16.msra.mxu1 %v11037_v58  ;;  %v5183_v57 = vld [vmem:[%s13829_s24 + $0x248] sm:$0xff]  ;;  %v9685_v58 = vcombine.low %v5158_v46, %v5166_v47  ;;  %v5286_v46 = vld [vmem:[%s13829_s24 + $0x580] sm:$0xff] }
 0x2f8   : > { %4751 = vmatprep.subr.bf16.mxu0 %v11042_v59  ;;  %5079 = vmatprep.subr.bf16.mxu1 %v11045_v60  ;;  %v9687_v59 = vcombine.low %v5159_v48, %v5167_v49  ;;  %v9702_v60 = vcombine.high %v5174_v54, %v5182_v55  ;;  %v5294_v47 = vld [vmem:[%s13829_s24 + $0x5c0] sm:$0xff]  ;;  %v5287_v48 = vld [vmem:[%s13829_s24 + $0x588] sm:$0xff] }
 0x2f9   : > { %v5295_v49 = vld [vmem:[%s13829_s24 + $0x5c8] sm:$0xff] }
 0x2fb   : > { %4752 = vmatpush1.bf16.msra.mxu0 %v11040_v61  ;;  %5080 = vmatpush1.bf16.msra.mxu1 %v11043_v62  ;;  %v9704_v61 = vcombine.high %v5175_v56, %v5183_v57  ;;  %v5190_v62 = vld [vmem:[%s13829_s24 + $0x280] sm:$0xff] }
 0x2fc   : > { %4753 = vmatprep.subr.bf16.mxu0 %v11048_v63  ;;  %5081 = vmatprep.subr.bf16.mxu1 %v11051_v0  ;;  %v5198_v63 = vld [vmem:[%s13829_s24 + $0x2c0] sm:$0xff]  ;;  %v5191_v0 = vld [vmem:[%s13829_s24 + $0x288] sm:$0xff] }
 0x2ff   : > { %4754 = vmatpush1.bf16.msra.mxu0 %v11046_v1  ;;  %5082 = vmatpush1.bf16.msra.mxu1 %v11049_v2  ;;  %v5199_v1 = vld [vmem:[%s13829_s24 + $0x2c8] sm:$0xff]  ;;  %v9701_v2 = vcombine.low %v5174_v54, %v5182_v55  ;;  %v5302_v54 = vld [vmem:[%s13829_s24 + $0x600] sm:$0xff] }
 0x300   : > { %4755 = vmatprep.subr.bf16.mxu0 %v11054_v3  ;;  %5083 = vmatprep.subr.bf16.mxu1 %v11057_v4  ;;  %v9703_v3 = vcombine.low %v5175_v56, %v5183_v57  ;;  %v9718_v4 = vcombine.high %v5190_v62, %v5198_v63  ;;  %v5310_v55 = vld [vmem:[%s13829_s24 + $0x640] sm:$0xff]  ;;  %v5303_v56 = vld [vmem:[%s13829_s24 + $0x608] sm:$0xff] }
 0x301   : > { %v5311_v57 = vld [vmem:[%s13829_s24 + $0x648] sm:$0xff] }
 0x303   : > { %4756 = vmatpush1.bf16.msra.mxu0 %v11052_v5  ;;  %5084 = vmatpush1.bf16.msra.mxu1 %v11055_v6  ;;  %v9720_v5 = vcombine.high %v5191_v0, %v5199_v1  ;;  %v5206_v6 = vld [vmem:[%s13829_s24 + $0x300] sm:$0xff] }
 0x304   : > { %4757 = vmatprep.subr.bf16.mxu0 %v11060_v7  ;;  %5085 = vmatprep.subr.bf16.mxu1 %v11063_v8  ;;  %v5214_v7 = vld [vmem:[%s13829_s24 + $0x340] sm:$0xff]  ;;  %v5207_v8 = vld [vmem:[%s13829_s24 + $0x308] sm:$0xff] }
 0x307   : > { %4758 = vmatpush1.bf16.msra.mxu0 %v11058_v9  ;;  %5086 = vmatpush1.bf16.msra.mxu1 %v11061_v10  ;;  %v5215_v9 = vld [vmem:[%s13829_s24 + $0x348] sm:$0xff]  ;;  %v9717_v10 = vcombine.low %v5190_v62, %v5198_v63  ;;  %v5318_v62 = vld [vmem:[%s13829_s24 + $0x680] sm:$0xff] }
 0x308   : > { %4759 = vmatprep.subr.bf16.mxu0 %v11066_v12  ;;  %5087 = vmatprep.subr.bf16.mxu1 %v11069_v13  ;;  %v9719_v12 = vcombine.low %v5191_v0, %v5199_v1  ;;  %v9734_v13 = vcombine.high %v5206_v6, %v5214_v7  ;;  %v5326_v63 = vld [vmem:[%s13829_s24 + $0x6c0] sm:$0xff]  ;;  %v5319_v0 = vld [vmem:[%s13829_s24 + $0x688] sm:$0xff] }
 0x309   : > { %v5327_v1 = vld [vmem:[%s13829_s24 + $0x6c8] sm:$0xff] }
 0x30b   : > { %4760 = vmatpush1.bf16.msra.mxu0 %v11064_v15  ;;  %5088 = vmatpush1.bf16.msra.mxu1 %v11067_v11  ;;  %v9736_v15 = vcombine.high %v5207_v8, %v5215_v9  ;;  %v5222_v11 = vld [vmem:[%s13829_s24 + $0x380] sm:$0xff] }
 0x30c   : > { %4761 = vmatprep.subr.bf16.mxu0 %v11072_v17  ;;  %5089 = vmatprep.subr.bf16.mxu1 %v11075_v14  ;;  %v5230_v17 = vld [vmem:[%s13829_s24 + $0x3c0] sm:$0xff]  ;;  %v5223_v14 = vld [vmem:[%s13829_s24 + $0x388] sm:$0xff] }
 0x30f   : > { %4762 = vmatpush1.bf16.msra.mxu0 %v11070_v19  ;;  %5090 = vmatpush1.bf16.msra.mxu1 %v11073_v20  ;;  %v5231_v19 = vld [vmem:[%s13829_s24 + $0x3c8] sm:$0xff]  ;;  %v9733_v20 = vcombine.low %v5206_v6, %v5214_v7  ;;  %v9845_v6 = vcombine.low %v5318_v62, %v5326_v63  ;;  %v9847_v7 = vcombine.low %v5319_v0, %v5327_v1 }
 0x310   : > { %4763 = vmatprep.subr.bf16.mxu0 %v11078_v21  ;;  %5091 = vmatprep.subr.bf16.mxu1 %v11081_v22  ;;  %v9735_v21 = vcombine.low %v5207_v8, %v5215_v9  ;;  %v9750_v22 = vcombine.high %v5222_v11, %v5230_v17  ;;  %v9752_v23 = vcombine.high %v5223_v14, %v5231_v19  ;;  %v5334_v8 = vld [vmem:[%s13829_s24 + $0x700] sm:$0xff] }
 0x311   : > { %v5342_v9 = vld [vmem:[%s13829_s24 + $0x740] sm:$0xff] }
 0x313   : > { %4764 = vmatpush1.bf16.msra.mxu0 %v11076_v16  ;;  %5092 = vmatpush1.bf16.msra.mxu1 %v11079_v27  ;;  %v5247_v16 = vld [vmem:[%s13829_s24 + $0x448] sm:$0xff]  ;;  %v9749_v27 = vcombine.low %v5222_v11, %v5230_v17 }
 0x314   : > { %8266 = vmatprep.subr.bf16.mxu0 %v9638_v28  ;;  %8348 = vmatprep.subr.bf16.mxu1 %v9640_v29  ;;  %v9751_v28 = vcombine.low %v5223_v14, %v5231_v19  ;;  %v9766_v29 = vcombine.high %v5238_v18, %v5246_v25  ;;  %v9768_v30 = vcombine.high %v5239_v26, %v5247_v16  ;;  %v5350_v14 = vld [vmem:[%s13829_s24 + $0x780] sm:$0xff] }
 0x315   : > { %v5358_v19 = vld [vmem:[%s13829_s24 + $0x7c0] sm:$0xff] }
 0x316   : > { %4766 = vmatmul.mubr.bf16.vlgmr.msra.gmra.mrb[0].mxu0 %v9123_v34  ;;  %5094 = vmatmul.mubr.bf16.vlgmr.msra.gmra.mrb[0].mxu1 %v9123_v34  ;;  %v5263_v34 = vld [vmem:[%s13829_s24 + $0x4c8] sm:$0xff] }
 0x317   : > { %8267 = vmatpush1.bf16.msra.mxu0 %v9637_v35  ;;  %8349 = vmatpush1.bf16.msra.mxu1 %v9639_v36  ;;  %v9765_v35 = vcombine.low %v5238_v18, %v5246_v25  ;;  %v9767_v36 = vcombine.low %v5239_v26, %v5247_v16  ;;  %v5366_v26 = vld [vmem:[%s13829_s24 + $0x800] sm:$0xff] }
 0x318   : > { %8268 = vmatprep.subr.bf16.mxu0 %v9654_v37  ;;  %8350 = vmatprep.subr.bf16.mxu1 %v9656_v38  ;;  %v9782_v37 = vcombine.high %v5254_v31, %v5262_v32  ;;  %v9784_v38 = vcombine.high %v5255_v33, %v5263_v34  ;;  %v5374_v16 = vld [vmem:[%s13829_s24 + $0x840] sm:$0xff] }
 0x31b   : > { %8269 = vmatpush1.bf16.msra.mxu0 %v9653_v24  ;;  %8351 = vmatpush1.bf16.msra.mxu1 %v9655_v43  ;;  %v9781_v24 = vcombine.low %v5254_v31, %v5262_v32  ;;  %v9783_v43 = vcombine.low %v5255_v33, %v5263_v34  ;;  %v1810_v33 = vlaneseq }
 0x31c   : > { %8270 = vmatprep.subr.bf16.mxu0 %v9670_v44  ;;  %8352 = vmatprep.subr.bf16.mxu1 %v9672_v45  ;;  %v9798_v44 = vcombine.high %v5270_v39, %v5278_v40  ;;  %v9800_v45 = vcombine.high %v5271_v41, %v5279_v42 }
 0x31d   : > { %v13907_v34 = vshrl.u32 %v1810_v33, 7  ;;  %v5462_v33 = vld [vmem:[%s13829_s24 + $0xb00] sm:$0xff] }
 0x31f   : > { %8271 = vmatpush1.bf16.msra.mxu0 %v9669_v50  ;;  %8353 = vmatpush1.bf16.msra.mxu1 %v9671_v51  ;;  %v9797_v50 = vcombine.low %v5270_v39, %v5278_v40  ;;  %v9799_v51 = vcombine.low %v5271_v41, %v5279_v42 }
 0x320   : > { %8272 = vmatprep.subr.bf16.mxu0 %v9686_v52  ;;  %8354 = vmatprep.subr.bf16.mxu1 %v9688_v53  ;;  %v9814_v52 = vcombine.high %v5286_v46, %v5294_v47  ;;  %v9816_v53 = vcombine.high %v5287_v48, %v5295_v49 }
 0x323   : > { %8273 = vmatpush1.bf16.msra.mxu0 %v9685_v58  ;;  %8355 = vmatpush1.bf16.msra.mxu1 %v9687_v59  ;;  %v9813_v58 = vcombine.low %v5286_v46, %v5294_v47  ;;  %v9815_v59 = vcombine.low %v5287_v48, %v5295_v49 }
 0x324   : > { %8274 = vmatprep.subr.bf16.mxu0 %v9702_v60  ;;  %8356 = vmatprep.subr.bf16.mxu1 %v9704_v61  ;;  %v9830_v60 = vcombine.high %v5302_v54, %v5310_v55  ;;  %v9832_v61 = vcombine.high %v5303_v56, %v5311_v57 }
 0x327   : > { %8275 = vmatpush1.bf16.msra.mxu0 %v9701_v2  ;;  %8357 = vmatpush1.bf16.msra.mxu1 %v9703_v3  ;;  %v9829_v2 = vcombine.low %v5302_v54, %v5310_v55  ;;  %v9831_v3 = vcombine.low %v5303_v56, %v5311_v57  ;;  %v5382_v54 = vld [vmem:[%s13829_s24 + $0x880] sm:$0xff]  ;;  %v5383_v57 = vld [vmem:[%s13829_s24 + $0x888] sm:$0xff] }
 0x328   : > { %8276 = vmatprep.subr.bf16.mxu0 %v9718_v4  ;;  %8358 = vmatprep.subr.bf16.mxu1 %v9720_v5  ;;  %v9846_v4 = vcombine.high %v5318_v62, %v5326_v63  ;;  %v9848_v5 = vcombine.high %v5319_v0, %v5327_v1  ;;  %v5390_v56 = vld [vmem:[%s13829_s24 + $0x8c0] sm:$0xff]  ;;  %v5399_v1 = vld [vmem:[%s13829_s24 + $0x908] sm:$0xff] }
 0x329   : > { %v9910_v62 = vcombine.high %v5382_v54, %v5390_v56  ;;  %v5406_v0 = vld [vmem:[%s13829_s24 + $0x940] sm:$0xff] }
 0x32b   : > { %8277 = vmatpush1.bf16.msra.mxu0 %v9717_v10  ;;  %8359 = vmatpush1.bf16.msra.mxu1 %v9719_v12  ;;  %v5335_v10 = vld [vmem:[%s13829_s24 + $0x708] sm:$0xff]  ;;  %v9862_v12 = vcombine.high %v5334_v8, %v5342_v9 }
 0x32c   : > { %8278 = vmatprep.subr.bf16.mxu0 %v9734_v13  ;;  %8360 = vmatprep.subr.bf16.mxu1 %v9736_v15  ;;  %v5343_v13 = vld [vmem:[%s13829_s24 + $0x748] sm:$0xff]  ;;  %v9861_v15 = vcombine.low %v5334_v8, %v5342_v9  ;;  %v5414_v8 = vld [vmem:[%s13829_s24 + $0x980] sm:$0xff] }
 0x32d   : > { %v9863_v11 = vcombine.low %v5335_v10, %v5343_v13  ;;  %v9864_v17 = vcombine.high %v5335_v10, %v5343_v13  ;;  %v5422_v9 = vld [vmem:[%s13829_s24 + $0x9c0] sm:$0xff]  ;;  %v5415_v10 = vld [vmem:[%s13829_s24 + $0x988] sm:$0xff] }
 0x32f   : > { %8279 = vmatpush1.bf16.msra.mxu0 %v9733_v20  ;;  %8361 = vmatpush1.bf16.msra.mxu1 %v9735_v21  ;;  %v5351_v20 = vld [vmem:[%s13829_s24 + $0x788] sm:$0xff]  ;;  %v9878_v21 = vcombine.high %v5350_v14, %v5358_v19 }
 0x330   : > { %8280 = vmatprep.subr.bf16.mxu0 %v9750_v22  ;;  %8362 = vmatprep.subr.bf16.mxu1 %v9752_v23  ;;  %v5359_v22 = vld [vmem:[%s13829_s24 + $0x7c8] sm:$0xff]  ;;  %v9877_v23 = vcombine.low %v5350_v14, %v5358_v19  ;;  %v5430_v14 = vld [vmem:[%s13829_s24 + $0xa00] sm:$0xff] }
 0x331   : > { %v9879_v18 = vcombine.low %v5351_v20, %v5359_v22  ;;  %v9880_v25 = vcombine.high %v5351_v20, %v5359_v22  ;;  %v5438_v19 = vld [vmem:[%s13829_s24 + $0xa40] sm:$0xff]  ;;  %v5431_v20 = vld [vmem:[%s13829_s24 + $0xa08] sm:$0xff]  ;;  %v9941_v22 = vcombine.low %v5414_v8, %v5422_v9 }
 0x333   : > { %8281 = vmatpush1.bf16.msra.mxu0 %v9749_v27  ;;  %8363 = vmatpush1.bf16.msra.mxu1 %v9751_v28  ;;  %v5367_v27 = vld [vmem:[%s13829_s24 + $0x808] sm:$0xff]  ;;  %v9894_v28 = vcombine.high %v5366_v26, %v5374_v16 }
 0x334   : > { %8282 = vmatprep.subr.bf16.mxu0 %v9766_v29  ;;  %8364 = vmatprep.subr.bf16.mxu1 %v9768_v30  ;;  %v5375_v29 = vld [vmem:[%s13829_s24 + $0x848] sm:$0xff]  ;;  %v9893_v30 = vcombine.low %v5366_v26, %v5374_v16  ;;  %v5446_v26 = vld [vmem:[%s13829_s24 + $0xa80] sm:$0xff] }
 0x335   : > { %v9895_v31 = vcombine.low %v5367_v27, %v5375_v29  ;;  %v9896_v32 = vcombine.high %v5367_v27, %v5375_v29  ;;  %v5454_v16 = vld [vmem:[%s13829_s24 + $0xac0] sm:$0xff]  ;;  %v5447_v27 = vld [vmem:[%s13829_s24 + $0xa88] sm:$0xff]  ;;  %v9957_v29 = vcombine.low %v5430_v14, %v5438_v19 }
 0x337   : > { %8283 = vmatpush1.bf16.msra.mxu0 %v9765_v35  ;;  %8365 = vmatpush1.bf16.msra.mxu1 %v9767_v36  ;;  %v13910_v35 = vsub.s32 0, %v13907_v34  ;;  %v13915_v36 = vld [vmem:[%s14498_s2] sm:$0xf] }
 0x338   : > { %8284 = vmatprep.subr.bf16.mxu0 %v9782_v37  ;;  %8366 = vmatprep.subr.bf16.mxu1 %v9784_v38  ;;  %v13918_v37 = vsub.s32 1, %v13907_v34  ;;  %v13921_v38 = vsub.s32 3, %v13907_v34 }
 0x339   : > { %v1813_v39 = vrot.slane %v13915_v36, %v13910_v35 }
 0x33a   : > { %v1817_v40 = vrot.slane %v13915_v36, %v13918_v37  ;;  %v1825_v41 = vrot.slane %v13915_v36, %v13921_v38 }
 0x33b   : > { %8285 = vmatpush1.bf16.msra.mxu0 %v9781_v24  ;;  %8367 = vmatpush1.bf16.msra.mxu1 %v9783_v43 }
 0x33c   : > { %8286 = vmatprep.subr.bf16.mxu0 %v9798_v44  ;;  %8368 = vmatprep.subr.bf16.mxu1 %v9800_v45 }
 0x33f   : > { %8287 = vmatpush1.bf16.msra.mxu0 %v9797_v50  ;;  %8369 = vmatpush1.bf16.msra.mxu1 %v9799_v51 }
 0x340   : > { %8288 = vmatprep.subr.bf16.mxu0 %v9814_v52  ;;  %8370 = vmatprep.subr.bf16.mxu1 %v9816_v53 }
 0x343   : > { %8289 = vmatpush1.bf16.msra.mxu0 %v9813_v58  ;;  %8371 = vmatpush1.bf16.msra.mxu1 %v9815_v59  ;;  %v5391_v58 = vld [vmem:[%s13829_s24 + $0x8c8] sm:$0xff] }
 0x344   : > { %8290 = vmatprep.subr.bf16.mxu0 %v9830_v60  ;;  %8372 = vmatprep.subr.bf16.mxu1 %v9832_v61  ;;  %v5398_v61 = vld [vmem:[%s13829_s24 + $0x900] sm:$0xff]  ;;  %v9912_v63 = vcombine.high %v5383_v57, %v5391_v58 }
 0x345   : > { %v9925_v13 = vcombine.low %v5398_v61, %v5406_v0 }
 0x347   : > { %8291 = vmatpush1.bf16.msra.mxu0 %v9829_v2  ;;  %8373 = vmatpush1.bf16.msra.mxu1 %v9831_v3  ;;  %v5407_v2 = vld [vmem:[%s13829_s24 + $0x948] sm:$0xff] }
 0x348   : > { %8292 = vmatprep.subr.bf16.mxu0 %v9846_v4  ;;  %8374 = vmatprep.subr.bf16.mxu1 %v9848_v5  ;;  %v9909_v4 = vcombine.low %v5382_v54, %v5390_v56  ;;  %v9911_v5 = vcombine.low %v5383_v57, %v5391_v58  ;;  %v5494_v54 = vld [vmem:[%s13829_s24 + $0xc00] sm:$0xff]  ;;  %v5495_v56 = vld [vmem:[%s13829_s24 + $0xc08] sm:$0xff] }
 0x349   : > { %v5503_v57 = vld [vmem:[%s13829_s24 + $0xc48] sm:$0xff] }
 0x34b   : > { %8293 = vmatpush1.bf16.msra.mxu0 %v9845_v6  ;;  %8375 = vmatpush1.bf16.msra.mxu1 %v9847_v7  ;;  %v9926_v6 = vcombine.high %v5398_v61, %v5406_v0  ;;  %v9928_v7 = vcombine.high %v5399_v1, %v5407_v2  ;;  %v5510_v0 = vld [vmem:[%s13829_s24 + $0xc80] sm:$0xff] }
 0x34c   : > { %8294 = vmatprep.subr.bf16.mxu0 %v9862_v12  ;;  %8376 = vmatprep.subr.bf16.mxu1 %v9864_v17  ;;  %v5423_v12 = vld [vmem:[%s13829_s24 + $0x9c8] sm:$0xff] }
 0x34d   : > { %v9944_v17 = vcombine.high %v5415_v10, %v5423_v12 }
 0x34f   : > { %8295 = vmatpush1.bf16.msra.mxu0 %v9861_v15  ;;  %8377 = vmatpush1.bf16.msra.mxu1 %v9863_v11  ;;  %v9927_v15 = vcombine.low %v5399_v1, %v5407_v2  ;;  %v9942_v11 = vcombine.high %v5414_v8, %v5422_v9  ;;  %v5518_v1 = vld [vmem:[%s13829_s24 + $0xcc0] sm:$0xff]  ;;  %v5511_v2 = vld [vmem:[%s13829_s24 + $0xc88] sm:$0xff] }
 0x350   : > { %8296 = vmatprep.subr.bf16.mxu0 %v9878_v21  ;;  %8378 = vmatprep.subr.bf16.mxu1 %v9880_v25  ;;  %v5439_v21 = vld [vmem:[%s13829_s24 + $0xa48] sm:$0xff]  ;;  %v5526_v9 = vld [vmem:[%s13829_s24 + $0xd00] sm:$0xff] }
 0x351   : > { %v9960_v25 = vcombine.high %v5431_v20, %v5439_v21 }
 0x353   : > { %8297 = vmatpush1.bf16.msra.mxu0 %v9877_v23  ;;  %8379 = vmatpush1.bf16.msra.mxu1 %v9879_v18  ;;  %v9943_v23 = vcombine.low %v5415_v10, %v5423_v12  ;;  %v9958_v18 = vcombine.high %v5430_v14, %v5438_v19  ;;  %v5534_v10 = vld [vmem:[%s13829_s24 + $0xd40] sm:$0xff]  ;;  %v5527_v12 = vld [vmem:[%s13829_s24 + $0xd08] sm:$0xff] }
 0x354   : > { %8307 = vmatprep.subr.bf16.mxu0 %v9894_v28  ;;  %8389 = vmatprep.subr.bf16.mxu1 %v9896_v32  ;;  %v5455_v28 = vld [vmem:[%s13829_s24 + $0xac8] sm:$0xff]  ;;  %v5542_v19 = vld [vmem:[%s13829_s24 + $0xd80] sm:$0xff] }
 0x355   : > { %v9976_v32 = vcombine.high %v5447_v27, %v5455_v28 }
 0x3e9   : > { %v4767_v42 = vpop.f32.mrb[0].mxu0  ;;  %v13929_v24 = vpop.f32.mrb[0].mxu1 }
 0x3ea   : > { %v10168_v43 = vadd.f32 %v4767_v42, %v1813_v39  ;;  %v4769_v44 = vpop.f32.mrb[1].mxu0  ;;  %v5097_v45 = vpop.f32.mrb[1].mxu1  ;;  %v5470_v39 = vld [vmem:[%s13829_s24 + $0xb40] sm:$0xff]  ;;  %v9973_v42 = vcombine.low %v5446_v26, %v5454_v16 }
 0x3eb   : > { %v10169_v46 = vadd.f32 %v4769_v44, %v1817_v40  ;;  %v10171_v47 = vadd.f32 %v5097_v45, %v1825_v41  ;;  %v4771_v48 = vpop.f32.mrb[2].mxu0  ;;  %v5099_v49 = vpop.f32.mrb[2].mxu1  ;;  %v5463_v40 = vld [vmem:[%s13829_s24 + $0xb08] sm:$0xff]  ;;  %v9990_v44 = vcombine.high %v5462_v33, %v5470_v39 }
 0x3ec   : > { %v5102_v50 = vmax.f32 %v10168_v43, 0.0  ;;  %v4772_v51 = vpop.f32.mrb[3].mxu0  ;;  %v5100_v52 = vpop.f32.mrb[3].mxu1  ;;  %v5471_v41 = vld [vmem:[%s13829_s24 + $0xb48] sm:$0xff]  ;;  %v9975_v43 = vcombine.low %v5447_v27, %v5455_v28  ;;  %v5566_v27 = vld [vmem:[%s13829_s24 + $0xe40] sm:$0xff] }
 0x3ed   : > { %v5103_v53 = vmax.f32 %v10169_v46, 0.0  ;;  %v5105_v55 = vmax.f32 %v10171_v47, 0.0  ;;  %v9992_v45 = vcombine.high %v5463_v40, %v5471_v41  ;;  %v5478_v46 = vld [vmem:[%s13829_s24 + $0xb80] sm:$0xff]  ;;  %v5479_v48 = vld [vmem:[%s13829_s24 + $0xb88] sm:$0xff]  ;;  %v9991_v51 = vcombine.low %v5463_v40, %v5471_v41 }
 0x3ee   : > { %v13937_v60 = vpack.c.bf16 %v5102_v50, %v5102_v50  ;;  %v5486_v47 = vld [vmem:[%s13829_s24 + $0xbc0] sm:$0xff]  ;;  %v5487_v49 = vld [vmem:[%s13829_s24 + $0xbc8] sm:$0xff]  ;;  %v9989_v50 = vcombine.low %v5462_v33, %v5470_v39 }
 0x3ef   : > { %v13935_v59 = vpack.c.bf16 %v5103_v53, %v5103_v53  ;;  %v13945_v3 = vpack.c.bf16 %v5105_v55, %v5105_v55  ;;  %v10006_v52 = vcombine.high %v5478_v46, %v5486_v47  ;;  %v10008_v53 = vcombine.high %v5479_v48, %v5487_v49  ;;  %v5502_v55 = vld [vmem:[%s13829_s24 + $0xc40] sm:$0xff]  ;;  %v5559_v28 = vld [vmem:[%s13829_s24 + $0xe08] sm:$0xff] }
 0x3f0   : > { %v10005_v58 = vcombine.low %v5478_v46, %v5486_v47  ;;  %v10007_v61 = vcombine.low %v5479_v48, %v5487_v49  ;;  %v5574_v39 = vld [vmem:[%s13829_s24 + $0xe80] sm:$0xff]  ;;  %v5575_v41 = vld [vmem:[%s13829_s24 + $0xe88] sm:$0xff] }
 0x3f1   : > { %8298 = vmatprep.mubr.bf16.mxu0 %v13935_v59  ;;  %8380 = vmatprep.mubr.bf16.mxu1 %v13935_v59  ;;  %v5582_v40 = vld [vmem:[%s13829_s24 + $0xec0] sm:$0xff] }
 0x3f2   : > { %8299 = vmatmul.mubr.bf16.vlgmr.msra.gmra.mrb[4].mxu0 %v13937_v60  ;;  %8381 = vmatmul.mubr.bf16.vlgmr.msra.gmra.mrb[4].mxu1 %v13937_v60  ;;  %v10102_v46 = vcombine.high %v5574_v39, %v5582_v40  ;;  %v5590_v48 = vld [vmem:[%s13829_s24 + $0xf00] sm:$0xff] }
 0x3f3   : > { %8308 = vmatpush1.bf16.msra.mxu0 %v9893_v30  ;;  %8390 = vmatpush1.bf16.msra.mxu1 %v9895_v31  ;;  %v9959_v30 = vcombine.low %v5431_v20, %v5439_v21  ;;  %v9974_v31 = vcombine.high %v5446_v26, %v5454_v16  ;;  %v5550_v20 = vld [vmem:[%s13829_s24 + $0xdc0] sm:$0xff]  ;;  %v5543_v21 = vld [vmem:[%s13829_s24 + $0xd88] sm:$0xff] }
 0x3f4   : > { %8339 = vmatprep.mubr.bf16.mxu0 %v13945_v3  ;;  %8421 = vmatprep.mubr.bf16.mxu1 %v13945_v3  ;;  %v5558_v16 = vld [vmem:[%s13829_s24 + $0xe00] sm:$0xff] }
 0x3f5   : > { %8309 = vmatprep.subr.bf16.mxu0 %v9910_v62  ;;  %8391 = vmatprep.subr.bf16.mxu1 %v9912_v63  ;;  %v10022_v62 = vcombine.high %v5494_v54, %v5502_v55  ;;  %v10024_v63 = vcombine.high %v5495_v56, %v5503_v57  ;;  %v5598_v49 = vld [vmem:[%s13829_s24 + $0xf40] sm:$0xff] }
 0x3f7   : > { %8310 = vmatpush1.bf16.msra.mxu0 %v9909_v4  ;;  %8392 = vmatpush1.bf16.msra.mxu1 %v9911_v5  ;;  %v5519_v4 = vld [vmem:[%s13829_s24 + $0xcc8] sm:$0xff]  ;;  %v10021_v5 = vcombine.low %v5494_v54, %v5502_v55  ;;  %v10118_v55 = vcombine.high %v5590_v48, %v5598_v49 }
 0x3f8   : > { %8311 = vmatprep.subr.bf16.mxu0 %v9926_v6  ;;  %8393 = vmatprep.subr.bf16.mxu1 %v9928_v7  ;;  %v10023_v6 = vcombine.low %v5495_v56, %v5503_v57  ;;  %v10038_v7 = vcombine.high %v5510_v0, %v5518_v1  ;;  %v10040_v8 = vcombine.high %v5511_v2, %v5519_v4  ;;  %v5606_v57 = vld [vmem:[%s13829_s24 + $0xf80] sm:$0xff] }
 0x3fb   : > { %8312 = vmatpush1.bf16.msra.mxu0 %v9925_v13  ;;  %8394 = vmatpush1.bf16.msra.mxu1 %v9927_v15  ;;  %v5535_v13 = vld [vmem:[%s13829_s24 + $0xd48] sm:$0xff]  ;;  %v10037_v15 = vcombine.low %v5510_v0, %v5518_v1 }
 0x3fc   : > { %8313 = vmatprep.subr.bf16.mxu0 %v9942_v11  ;;  %8395 = vmatprep.subr.bf16.mxu1 %v9944_v17  ;;  %v10039_v11 = vcombine.low %v5511_v2, %v5519_v4  ;;  %v10054_v17 = vcombine.high %v5526_v9, %v5534_v10  ;;  %v10056_v14 = vcombine.high %v5527_v12, %v5535_v13  ;;  %v5112_v4 = vld [vmem:[%s13829_s24 + $0x10] sm:$0xff] }
 0x3ff   : > { %8314 = vmatpush1.bf16.msra.mxu0 %v9941_v22  ;;  %8396 = vmatpush1.bf16.msra.mxu1 %v9943_v23  ;;  %v5551_v22 = vld [vmem:[%s13829_s24 + $0xdc8] sm:$0xff]  ;;  %v10053_v23 = vcombine.low %v5526_v9, %v5534_v10 }
 0x400   : > { %8315 = vmatprep.subr.bf16.mxu0 %v9958_v18  ;;  %8397 = vmatprep.subr.bf16.mxu1 %v9960_v25  ;;  %v10055_v18 = vcombine.low %v5527_v12, %v5535_v13  ;;  %v10070_v25 = vcombine.high %v5542_v19, %v5550_v20  ;;  %v10072_v26 = vcombine.high %v5543_v21, %v5551_v22  ;;  %v5128_v13 = vld [vmem:[%s13829_s24 + $0x90] sm:$0xff] }
 0x403   : > { %8316 = vmatpush1.bf16.msra.mxu0 %v9957_v29  ;;  %8398 = vmatpush1.bf16.msra.mxu1 %v9959_v30  ;;  %v5567_v29 = vld [vmem:[%s13829_s24 + $0xe48] sm:$0xff]  ;;  %v10069_v30 = vcombine.low %v5542_v19, %v5550_v20 }
 0x404   : > { %8317 = vmatprep.subr.bf16.mxu0 %v9974_v31  ;;  %8399 = vmatprep.subr.bf16.mxu1 %v9976_v32  ;;  %v10071_v31 = vcombine.low %v5543_v21, %v5551_v22  ;;  %v10086_v32 = vcombine.high %v5558_v16, %v5566_v27  ;;  %v10088_v33 = vcombine.high %v5559_v28, %v5567_v29 }
 0x407   : > { %8318 = vmatpush1.bf16.msra.mxu0 %v9973_v42  ;;  %8400 = vmatpush1.bf16.msra.mxu1 %v9975_v43  ;;  %v5583_v42 = vld [vmem:[%s13829_s24 + $0xec8] sm:$0xff]  ;;  %v10085_v43 = vcombine.low %v5558_v16, %v5566_v27 }
 0x408   : > { %8319 = vmatprep.subr.bf16.mxu0 %v9990_v44  ;;  %8401 = vmatprep.subr.bf16.mxu1 %v9992_v45  ;;  %v10087_v44 = vcombine.low %v5559_v28, %v5567_v29  ;;  %v13996_v45 = vsub.s32 2, %v13907_v34  ;;  %v10104_v47 = vcombine.high %v5575_v41, %v5583_v42 }
 0x40a   : > { %v1821_v54 = vrot.slane %v13915_v36, %v13996_v45 }
 0x40b   : > { %8320 = vmatpush1.bf16.msra.mxu0 %v9989_v50  ;;  %8402 = vmatpush1.bf16.msra.mxu1 %v9991_v51  ;;  %v5591_v50 = vld [vmem:[%s13829_s24 + $0xf08] sm:$0xff] }
 0x40c   : > { %8321 = vmatprep.subr.bf16.mxu0 %v10006_v52  ;;  %8403 = vmatprep.subr.bf16.mxu1 %v10008_v53  ;;  %v5599_v51 = vld [vmem:[%s13829_s24 + $0xf48] sm:$0xff]  ;;  %v10101_v52 = vcombine.low %v5574_v39, %v5582_v40  ;;  %v10103_v53 = vcombine.low %v5575_v41, %v5583_v42  ;;  %v10170_v1 = vadd.f32 %v13929_v24, %v1821_v54  ;;  %v5193_v54 = vld [vmem:[%s13829_s24 + $0x298] sm:$0xff] }
 0x40d   : > { %v10120_v56 = vcombine.high %v5591_v50, %v5599_v51  ;;  %v10119_v0 = vcombine.low %v5591_v50, %v5599_v51 }
 0x40e   : > { %v5104_v10 = vmax.f32 %v10170_v1, 0.0  ;;  %v5217_v1 = vld [vmem:[%s13829_s24 + $0x358] sm:$0xff] }
 0x40f   : > { %8322 = vmatpush1.bf16.msra.mxu0 %v10005_v58  ;;  %8404 = vmatpush1.bf16.msra.mxu1 %v10007_v61  ;;  %v5614_v58 = vld [vmem:[%s13829_s24 + $0xfc0] sm:$0xff]  ;;  %v5607_v61 = vld [vmem:[%s13829_s24 + $0xf88] sm:$0xff] }
 0x410   : > { %8323 = vmatprep.subr.bf16.mxu0 %v10022_v62  ;;  %8405 = vmatprep.subr.bf16.mxu1 %v10024_v63  ;;  %v5615_v62 = vld [vmem:[%s13829_s24 + $0xfc8] sm:$0xff]  ;;  %v10117_v63 = vcombine.low %v5590_v48, %v5598_v49  ;;  %v10134_v36 = vcombine.high %v5606_v57, %v5614_v58  ;;  %v14017_v19 = vpack.c.bf16 %v5104_v10, %v5104_v10 }
 0x411   : > { %v10136_v2 = vcombine.high %v5607_v61, %v5615_v62  ;;  %v10135_v9 = vcombine.low %v5607_v61, %v5615_v62  ;;  %v5208_v62 = vld [vmem:[%s13829_s24 + $0x310] sm:$0xff] }
 0x413   : > { %8324 = vmatpush1.bf16.msra.mxu0 %v10021_v5  ;;  %8406 = vmatpush1.bf16.msra.mxu1 %v10023_v6  ;;  %v5120_v5 = vld [vmem:[%s13829_s24 + $0x50] sm:$0xff]  ;;  %v5113_v6 = vld [vmem:[%s13829_s24 + $0x18] sm:$0xff] }
 0x414   : > { %8325 = vmatprep.subr.bf16.mxu0 %v10038_v7  ;;  %8407 = vmatprep.subr.bf16.mxu1 %v10040_v8  ;;  %v5121_v7 = vld [vmem:[%s13829_s24 + $0x58] sm:$0xff]  ;;  %v10133_v8 = vcombine.low %v5606_v57, %v5614_v58  ;;  %v9642_v24 = vcombine.high %v5112_v4, %v5120_v5 }
 0x415   : > { %v9644_v12 = vcombine.high %v5113_v6, %v5121_v7  ;;  %v9643_v20 = vcombine.low %v5113_v6, %v5121_v7  ;;  %v5224_v6 = vld [vmem:[%s13829_s24 + $0x390] sm:$0xff] }
 0x416   : > { %v5232_v7 = vld [vmem:[%s13829_s24 + $0x3d0] sm:$0xff] }
 0x417   : > { %8326 = vmatpush1.bf16.msra.mxu0 %v10037_v15  ;;  %8408 = vmatpush1.bf16.msra.mxu1 %v10039_v11  ;;  %v5136_v15 = vld [vmem:[%s13829_s24 + $0xd0] sm:$0xff]  ;;  %v5129_v11 = vld [vmem:[%s13829_s24 + $0x98] sm:$0xff] }
 0x418   : > { %8327 = vmatprep.subr.bf16.mxu0 %v10054_v17  ;;  %8409 = vmatprep.subr.bf16.mxu1 %v10056_v14  ;;  %v5137_v17 = vld [vmem:[%s13829_s24 + $0xd8] sm:$0xff]  ;;  %v9641_v14 = vcombine.low %v5112_v4, %v5120_v5  ;;  %v9658_v21 = vcombine.high %v5128_v13, %v5136_v15  ;;  %v9657_v16 = vcombine.low %v5128_v13, %v5136_v15  ;;  %v5240_v15 = vld [vmem:[%s13829_s24 + $0x410] sm:$0xff] }
 0x419   : > { %v9660_v22 = vcombine.high %v5129_v11, %v5137_v17  ;;  %v9659_v27 = vcombine.low %v5129_v11, %v5137_v17  ;;  %v5248_v11 = vld [vmem:[%s13829_s24 + $0x450] sm:$0xff]  ;;  %v5241_v17 = vld [vmem:[%s13829_s24 + $0x418] sm:$0xff] }
 0x41b   : > { %8328 = vmatpush1.bf16.msra.mxu0 %v10053_v23  ;;  %8410 = vmatpush1.bf16.msra.mxu1 %v10055_v18  ;;  %v5144_v23 = vld [vmem:[%s13829_s24 + $0x110] sm:$0xff] }
 0x41c   : > { %8329 = vmatprep.subr.bf16.mxu0 %v10070_v25  ;;  %8411 = vmatprep.subr.bf16.mxu1 %v10072_v26  ;;  %v5152_v18 = vld [vmem:[%s13829_s24 + $0x150] sm:$0xff]  ;;  %v5145_v25 = vld [vmem:[%s13829_s24 + $0x118] sm:$0xff] }
 0x41d   : > { %v5153_v26 = vld [vmem:[%s13829_s24 + $0x158] sm:$0xff]  ;;  %v9674_v28 = vcombine.high %v5144_v23, %v5152_v18  ;;  %v9673_v39 = vcombine.low %v5144_v23, %v5152_v18  ;;  %v5256_v18 = vld [vmem:[%s13829_s24 + $0x490] sm:$0xff] }
 0x41e   : > { %v9676_v29 = vcombine.high %v5145_v25, %v5153_v26  ;;  %v9675_v40 = vcombine.low %v5145_v25, %v5153_v26  ;;  %v5264_v25 = vld [vmem:[%s13829_s24 + $0x4d0] sm:$0xff]  ;;  %v5257_v26 = vld [vmem:[%s13829_s24 + $0x498] sm:$0xff] }
 0x41f   : > { %8330 = vmatpush1.bf16.msra.mxu0 %v10069_v30  ;;  %8412 = vmatpush1.bf16.msra.mxu1 %v10071_v31  ;;  %v5160_v30 = vld [vmem:[%s13829_s24 + $0x190] sm:$0xff] }
 0x420   : > { %8331 = vmatprep.subr.bf16.mxu0 %v10086_v32  ;;  %8413 = vmatprep.subr.bf16.mxu1 %v10088_v33  ;;  %v5168_v31 = vld [vmem:[%s13829_s24 + $0x1d0] sm:$0xff]  ;;  %v5161_v32 = vld [vmem:[%s13829_s24 + $0x198] sm:$0xff] }
 0x421   : > { %v5169_v33 = vld [vmem:[%s13829_s24 + $0x1d8] sm:$0xff]  ;;  %v9690_v41 = vcombine.high %v5160_v30, %v5168_v31  ;;  %v9689_v48 = vcombine.low %v5160_v30, %v5168_v31  ;;  %v5272_v31 = vld [vmem:[%s13829_s24 + $0x510] sm:$0xff] }
 0x422   : > { %v9692_v42 = vcombine.high %v5161_v32, %v5169_v33  ;;  %v9691_v49 = vcombine.low %v5161_v32, %v5169_v33  ;;  %v5280_v32 = vld [vmem:[%s13829_s24 + $0x550] sm:$0xff]  ;;  %v5273_v33 = vld [vmem:[%s13829_s24 + $0x518] sm:$0xff] }
 0x423   : > { %8332 = vmatpush1.bf16.msra.mxu0 %v10085_v43  ;;  %8414 = vmatpush1.bf16.msra.mxu1 %v10087_v44  ;;  %v5176_v43 = vld [vmem:[%s13829_s24 + $0x210] sm:$0xff] }
 0x424   : > { %8333 = vmatprep.subr.bf16.mxu0 %v10102_v46  ;;  %8415 = vmatprep.subr.bf16.mxu1 %v10104_v47  ;;  %v5184_v44 = vld [vmem:[%s13829_s24 + $0x250] sm:$0xff]  ;;  %v5177_v46 = vld [vmem:[%s13829_s24 + $0x218] sm:$0xff] }
 0x425   : > { %v5185_v47 = vld [vmem:[%s13829_s24 + $0x258] sm:$0xff]  ;;  %v9706_v50 = vcombine.high %v5176_v43, %v5184_v44 }
 0x426   : > { %v9708_v51 = vcombine.high %v5177_v46, %v5185_v47  ;;  %v9707_v57 = vcombine.low %v5177_v46, %v5185_v47  ;;  %v5296_v46 = vld [vmem:[%s13829_s24 + $0x5d0] sm:$0xff]  ;;  %v5289_v47 = vld [vmem:[%s13829_s24 + $0x598] sm:$0xff] }
 0x427   : > { %8334 = vmatpush1.bf16.msra.mxu0 %v10101_v52  ;;  %8416 = vmatpush1.bf16.msra.mxu1 %v10103_v53  ;;  %v5192_v52 = vld [vmem:[%s13829_s24 + $0x290] sm:$0xff] }
 0x428   : > { %8335 = vmatprep.subr.bf16.mxu0 %v10118_v55  ;;  %8417 = vmatprep.subr.bf16.mxu1 %v10120_v56  ;;  %v5200_v53 = vld [vmem:[%s13829_s24 + $0x2d0] sm:$0xff]  ;;  %v5201_v55 = vld [vmem:[%s13829_s24 + $0x2d8] sm:$0xff]  ;;  %v9705_v56 = vcombine.low %v5176_v43, %v5184_v44 }
 0x429   : > { %v9722_v58 = vcombine.high %v5192_v52, %v5200_v53  ;;  %v9724_v61 = vcombine.high %v5193_v54, %v5201_v55  ;;  %v5288_v44 = vld [vmem:[%s13829_s24 + $0x590] sm:$0xff] }
 0x42b   : > { %8336 = vmatpush1.bf16.msra.mxu0 %v10117_v63  ;;  %8418 = vmatpush1.bf16.msra.mxu1 %v10119_v0  ;;  %v5216_v63 = vld [vmem:[%s13829_s24 + $0x350] sm:$0xff]  ;;  %v5209_v0 = vld [vmem:[%s13829_s24 + $0x318] sm:$0xff] }
 0x42c   : > { %8337 = vmatprep.subr.bf16.mxu0 %v10134_v36  ;;  %8419 = vmatprep.subr.bf16.mxu1 %v10136_v2  ;;  %v9721_v36 = vcombine.low %v5192_v52, %v5200_v53  ;;  %v9723_v2 = vcombine.low %v5193_v54, %v5201_v55  ;;  %v9738_v4 = vcombine.high %v5208_v62, %v5216_v63  ;;  %v5304_v53 = vld [vmem:[%s13829_s24 + $0x610] sm:$0xff]  ;;  %v5305_v55 = vld [vmem:[%s13829_s24 + $0x618] sm:$0xff] }
 0x42d   : > { %v9740_v5 = vcombine.high %v5209_v0, %v5217_v1  ;;  %v9737_v10 = vcombine.low %v5208_v62, %v5216_v63  ;;  %v5312_v54 = vld [vmem:[%s13829_s24 + $0x650] sm:$0xff] }
 0x42e   : > { %v5320_v63 = vld [vmem:[%s13829_s24 + $0x690] sm:$0xff] }
 0x42f   : > { %8338 = vmatpush1.bf16.msra.mxu0 %v10133_v8  ;;  %8420 = vmatpush1.bf16.msra.mxu1 %v10135_v9  ;;  %v5225_v8 = vld [vmem:[%s13829_s24 + $0x398] sm:$0xff] }
 0x430   : > { %8430 = vmatprep.subr.bf16.mxu0 %v9642_v24  ;;  %8512 = vmatprep.subr.bf16.mxu1 %v9644_v12  ;;  %v5233_v9 = vld [vmem:[%s13829_s24 + $0x3d8] sm:$0xff]  ;;  %v9739_v24 = vcombine.low %v5209_v0, %v5217_v1  ;;  %v9754_v12 = vcombine.high %v5224_v6, %v5232_v7  ;;  %v5328_v0 = vld [vmem:[%s13829_s24 + $0x6d0] sm:$0xff] }
 0x431   : > { %v9756_v13 = vcombine.high %v5225_v8, %v5233_v9  ;;  %v5321_v1 = vld [vmem:[%s13829_s24 + $0x698] sm:$0xff] }
 0x432   : > { %8340 = vmatmul.mubr.bf16.vlgmr.msra.gmra.mrb[4].mxu0 %v14017_v19  ;;  %8422 = vmatmul.mubr.bf16.vlgmr.msra.gmra.mrb[4].mxu1 %v14017_v19 }
 0x433   : > { %8431 = vmatpush1.bf16.msra.mxu0 %v9641_v14  ;;  %8462 = vmatprep.mubr.bf16.mxu0 %v13935_v59  ;;  %v5249_v14 = vld [vmem:[%s13829_s24 + $0x458] sm:$0xff] }
 0x434   : > { %8513 = vmatpush1.bf16.msra.mxu1 %v9643_v20  ;;  %8544 = vmatprep.mubr.bf16.mxu1 %v13935_v59  ;;  %v9753_v20 = vcombine.low %v5224_v6, %v5232_v7  ;;  %v9772_v23 = vcombine.high %v5241_v17, %v5249_v14  ;;  %v5336_v7 = vld [vmem:[%s13829_s24 + $0x710] sm:$0xff] }
 0x435   : > { %8432 = vmatprep.subr.bf16.mxu0 %v9658_v21  ;;  %8514 = vmatprep.subr.bf16.mxu1 %v9660_v22  ;;  %v9755_v21 = vcombine.low %v5225_v8, %v5233_v9  ;;  %v9770_v22 = vcombine.high %v5240_v15, %v5248_v11  ;;  %v5344_v8 = vld [vmem:[%s13829_s24 + $0x750] sm:$0xff]  ;;  %v5337_v9 = vld [vmem:[%s13829_s24 + $0x718] sm:$0xff] }
 0x437   : > { %8433 = vmatpush1.bf16.msra.mxu0 %v9657_v16  ;;  %v5265_v16 = vld [vmem:[%s13829_s24 + $0x4d8] sm:$0xff] }
 0x438   : > { %8515 = vmatpush1.bf16.msra.mxu1 %v9659_v27  ;;  %8434 = vmatprep.subr.bf16.mxu0 %v9674_v28  ;;  %v9769_v27 = vcombine.low %v5240_v15, %v5248_v11  ;;  %v9771_v28 = vcombine.low %v5241_v17, %v5249_v14  ;;  %v9788_v30 = vcombine.high %v5257_v26, %v5265_v16  ;;  %v5352_v11 = vld [vmem:[%s13829_s24 + $0x790] sm:$0xff]  ;;  %v5353_v14 = vld [vmem:[%s13829_s24 + $0x798] sm:$0xff] }
 0x439   : > { %8516 = vmatprep.subr.bf16.mxu1 %v9676_v29  ;;  %v9786_v29 = vcombine.high %v5256_v18, %v5264_v25  ;;  %v5360_v17 = vld [vmem:[%s13829_s24 + $0x7d0] sm:$0xff] }
 0x43b   : > { %8435 = vmatpush1.bf16.msra.mxu0 %v9673_v39  ;;  %v5281_v39 = vld [vmem:[%s13829_s24 + $0x558] sm:$0xff] }
 0x43c   : > { %8517 = vmatpush1.bf16.msra.mxu1 %v9675_v40  ;;  %8436 = vmatprep.subr.bf16.mxu0 %v9690_v41  ;;  %v9785_v40 = vcombine.low %v5256_v18, %v5264_v25  ;;  %v9787_v41 = vcombine.low %v5257_v26, %v5265_v16  ;;  %v9804_v43 = vcombine.high %v5273_v33, %v5281_v39  ;;  %v5368_v25 = vld [vmem:[%s13829_s24 + $0x810] sm:$0xff]  ;;  %v5369_v16 = vld [vmem:[%s13829_s24 + $0x818] sm:$0xff] }
 0x43d   : > { %8518 = vmatprep.subr.bf16.mxu1 %v9692_v42  ;;  %v9802_v42 = vcombine.high %v5272_v31, %v5280_v32  ;;  %v5376_v26 = vld [vmem:[%s13829_s24 + $0x850] sm:$0xff] }
 0x43f   : > { %8437 = vmatpush1.bf16.msra.mxu0 %v9689_v48  ;;  %v5297_v48 = vld [vmem:[%s13829_s24 + $0x5d8] sm:$0xff] }
 0x440   : > { %8519 = vmatpush1.bf16.msra.mxu1 %v9691_v49  ;;  %8438 = vmatprep.subr.bf16.mxu0 %v9706_v50  ;;  %v9801_v49 = vcombine.low %v5272_v31, %v5280_v32  ;;  %v9803_v50 = vcombine.low %v5273_v33, %v5281_v39  ;;  %v9820_v52 = vcombine.high %v5289_v47, %v5297_v48  ;;  %v5384_v32 = vld [vmem:[%s13829_s24 + $0x890] sm:$0xff] }
 0x441   : > { %8520 = vmatprep.subr.bf16.mxu1 %v9708_v51  ;;  %v9818_v51 = vcombine.high %v5288_v44, %v5296_v46  ;;  %v5392_v33 = vld [vmem:[%s13829_s24 + $0x8d0] sm:$0xff]  ;;  %v9897_v39 = vcombine.low %v5368_v25, %v5376_v26 }
 0x443   : > { %8439 = vmatpush1.bf16.msra.mxu0 %v9705_v56  ;;  %v5313_v56 = vld [vmem:[%s13829_s24 + $0x658] sm:$0xff] }
 0x444   : > { %8521 = vmatpush1.bf16.msra.mxu1 %v9707_v57  ;;  %8440 = vmatprep.subr.bf16.mxu0 %v9722_v58  ;;  %v9817_v57 = vcombine.low %v5288_v44, %v5296_v46  ;;  %v9819_v58 = vcombine.low %v5289_v47, %v5297_v48  ;;  %v9836_v62 = vcombine.high %v5305_v55, %v5313_v56  ;;  %v5400_v44 = vld [vmem:[%s13829_s24 + $0x910] sm:$0xff]  ;;  %v5401_v48 = vld [vmem:[%s13829_s24 + $0x918] sm:$0xff] }
 0x445   : > { %8522 = vmatprep.subr.bf16.mxu1 %v9724_v61  ;;  %v9834_v61 = vcombine.high %v5304_v53, %v5312_v54  ;;  %v5408_v46 = vld [vmem:[%s13829_s24 + $0x950] sm:$0xff] }
 0x447   : > { %8441 = vmatpush1.bf16.msra.mxu0 %v9721_v36  ;;  %v5329_v36 = vld [vmem:[%s13829_s24 + $0x6d8] sm:$0xff] }
 0x448   : > { %8523 = vmatpush1.bf16.msra.mxu1 %v9723_v2  ;;  %8442 = vmatprep.subr.bf16.mxu0 %v9738_v4  ;;  %v9833_v2 = vcombine.low %v5304_v53, %v5312_v54  ;;  %v9835_v4 = vcombine.low %v5305_v55, %v5313_v56  ;;  %v9852_v6 = vcombine.high %v5321_v1, %v5329_v36  ;;  %v5416_v54 = vld [vmem:[%s13829_s24 + $0x990] sm:$0xff]  ;;  %v5417_v56 = vld [vmem:[%s13829_s24 + $0x998] sm:$0xff] }
 0x449   : > { %8524 = vmatprep.subr.bf16.mxu1 %v9740_v5  ;;  %v9850_v5 = vcombine.high %v5320_v63, %v5328_v0  ;;  %v5424_v55 = vld [vmem:[%s13829_s24 + $0x9d0] sm:$0xff] }
 0x44b   : > { %8443 = vmatpush1.bf16.msra.mxu0 %v9737_v10  ;;  %v5345_v10 = vld [vmem:[%s13829_s24 + $0x758] sm:$0xff] }
 0x44c   : > { %8525 = vmatpush1.bf16.msra.mxu1 %v9739_v24  ;;  %8444 = vmatprep.subr.bf16.mxu0 %v9754_v12  ;;  %v9849_v24 = vcombine.low %v5320_v63, %v5328_v0  ;;  %v9851_v12 = vcombine.low %v5321_v1, %v5329_v36  ;;  %v9868_v15 = vcombine.high %v5337_v9, %v5345_v10  ;;  %v5432_v0 = vld [vmem:[%s13829_s24 + $0xa10] sm:$0xff]  ;;  %v5433_v36 = vld [vmem:[%s13829_s24 + $0xa18] sm:$0xff] }
 0x44d   : > { %8526 = vmatprep.subr.bf16.mxu1 %v9756_v13  ;;  %v9866_v13 = vcombine.high %v5336_v7, %v5344_v8  ;;  %v5440_v1 = vld [vmem:[%s13829_s24 + $0xa50] sm:$0xff] }
 0x44f   : > { %8445 = vmatpush1.bf16.msra.mxu0 %v9753_v20  ;;  %v5361_v20 = vld [vmem:[%s13829_s24 + $0x7d8] sm:$0xff] }
 0x450   : > { %8527 = vmatpush1.bf16.msra.mxu1 %v9755_v21  ;;  %8446 = vmatprep.subr.bf16.mxu0 %v9770_v22  ;;  %v9865_v21 = vcombine.low %v5336_v7, %v5344_v8  ;;  %v9867_v22 = vcombine.low %v5337_v9, %v5345_v10  ;;  %v9884_v18 = vcombine.high %v5353_v14, %v5361_v20  ;;  %v5448_v8 = vld [vmem:[%s13829_s24 + $0xa90] sm:$0xff]  ;;  %v5449_v10 = vld [vmem:[%s13829_s24 + $0xa98] sm:$0xff] }
 0x451   : > { %8528 = vmatprep.subr.bf16.mxu1 %v9772_v23  ;;  %v9882_v23 = vcombine.high %v5352_v11, %v5360_v17  ;;  %v5456_v9 = vld [vmem:[%s13829_s24 + $0xad0] sm:$0xff] }
 0x453   : > { %8447 = vmatpush1.bf16.msra.mxu0 %v9769_v27  ;;  %v5377_v27 = vld [vmem:[%s13829_s24 + $0x858] sm:$0xff] }
 0x454   : > { %8529 = vmatpush1.bf16.msra.mxu1 %v9771_v28  ;;  %8448 = vmatprep.subr.bf16.mxu0 %v9786_v29  ;;  %v9881_v28 = vcombine.low %v5352_v11, %v5360_v17  ;;  %v9883_v29 = vcombine.low %v5353_v14, %v5361_v20  ;;  %v9900_v31 = vcombine.high %v5369_v16, %v5377_v27  ;;  %v5464_v17 = vld [vmem:[%s13829_s24 + $0xb10] sm:$0xff]  ;;  %v5465_v20 = vld [vmem:[%s13829_s24 + $0xb18] sm:$0xff] }
 0x455   : > { %8530 = vmatprep.subr.bf16.mxu1 %v9788_v30  ;;  %v9898_v30 = vcombine.high %v5368_v25, %v5376_v26  ;;  %v5472_v14 = vld [vmem:[%s13829_s24 + $0xb50] sm:$0xff] }
 0x456   : > { %v5480_v26 = vld [vmem:[%s13829_s24 + $0xb90] sm:$0xff] }
 0x457   : > { %8449 = vmatpush1.bf16.msra.mxu0 %v9785_v40  ;;  %v5385_v40 = vld [vmem:[%s13829_s24 + $0x898] sm:$0xff] }
 0x458   : > { %8531 = vmatpush1.bf16.msra.mxu1 %v9787_v41  ;;  %8450 = vmatprep.subr.bf16.mxu0 %v9802_v42  ;;  %v5393_v41 = vld [vmem:[%s13829_s24 + $0x8d8] sm:$0xff]  ;;  %v9899_v42 = vcombine.low %v5369_v16, %v5377_v27  ;;  %v5488_v16 = vld [vmem:[%s13829_s24 + $0xbd0] sm:$0xff] }
 0x459   : > { %8532 = vmatprep.subr.bf16.mxu1 %v9804_v43  ;;  %v9914_v43 = vcombine.high %v5384_v32, %v5392_v33  ;;  %v9916_v47 = vcombine.high %v5385_v40, %v5393_v41  ;;  %v5481_v27 = vld [vmem:[%s13829_s24 + $0xb98] sm:$0xff] }
 0x45b   : > { %8451 = vmatpush1.bf16.msra.mxu0 %v9801_v49  ;;  %v5409_v49 = vld [vmem:[%s13829_s24 + $0x958] sm:$0xff] }
 0x45c   : > { %8533 = vmatpush1.bf16.msra.mxu1 %v9803_v50  ;;  %8452 = vmatprep.subr.bf16.mxu0 %v9818_v51  ;;  %v9913_v50 = vcombine.low %v5384_v32, %v5392_v33  ;;  %v9915_v51 = vcombine.low %v5385_v40, %v5393_v41  ;;  %v9932_v53 = vcombine.high %v5401_v48, %v5409_v49  ;;  %v5496_v33 = vld [vmem:[%s13829_s24 + $0xc10] sm:$0xff]  ;;  %v5497_v40 = vld [vmem:[%s13829_s24 + $0xc18] sm:$0xff] }
 0x45d   : > { %8534 = vmatprep.subr.bf16.mxu1 %v9820_v52  ;;  %v9930_v52 = vcombine.high %v5400_v44, %v5408_v46  ;;  %v5505_v41 = vld [vmem:[%s13829_s24 + $0xc58] sm:$0xff] }
 0x45f   : > { %8453 = vmatpush1.bf16.msra.mxu0 %v9817_v57  ;;  %v5425_v57 = vld [vmem:[%s13829_s24 + $0x9d8] sm:$0xff] }
 0x460   : > { %8535 = vmatpush1.bf16.msra.mxu1 %v9819_v58  ;;  %8454 = vmatprep.subr.bf16.mxu0 %v9834_v61  ;;  %v9929_v58 = vcombine.low %v5400_v44, %v5408_v46  ;;  %v9931_v61 = vcombine.low %v5401_v48, %v5409_v49  ;;  %v9948_v63 = vcombine.high %v5417_v56, %v5425_v57  ;;  %v5520_v48 = vld [vmem:[%s13829_s24 + $0xcd0] sm:$0xff]  ;;  %v5513_v49 = vld [vmem:[%s13829_s24 + $0xc98] sm:$0xff] }
 0x461   : > { %8536 = vmatprep.subr.bf16.mxu1 %v9836_v62  ;;  %v9946_v62 = vcombine.high %v5416_v54, %v5424_v55  ;;  %v10028_v46 = vcombine.high %v5497_v40, %v5505_v41 }
 0x463   : > { %8455 = vmatpush1.bf16.msra.mxu0 %v9833_v2  ;;  %v5441_v2 = vld [vmem:[%s13829_s24 + $0xa58] sm:$0xff] }
 0x464   : > { %8537 = vmatpush1.bf16.msra.mxu1 %v9835_v4  ;;  %8456 = vmatprep.subr.bf16.mxu0 %v9850_v5  ;;  %v9945_v4 = vcombine.low %v5416_v54, %v5424_v55  ;;  %v9947_v5 = vcombine.low %v5417_v56, %v5425_v57  ;;  %v9964_v7 = vcombine.high %v5433_v36, %v5441_v2  ;;  %v5528_v55 = vld [vmem:[%s13829_s24 + $0xd10] sm:$0xff]  ;;  %v5529_v57 = vld [vmem:[%s13829_s24 + $0xd18] sm:$0xff] }
 0x465   : > { %8538 = vmatprep.subr.bf16.mxu1 %v9852_v6  ;;  %v9962_v6 = vcombine.high %v5432_v0, %v5440_v1  ;;  %v5536_v56 = vld [vmem:[%s13829_s24 + $0xd50] sm:$0xff] }
 0x467   : > { %8457 = vmatpush1.bf16.msra.mxu0 %v9849_v24  ;;  %v5457_v24 = vld [vmem:[%s13829_s24 + $0xad8] sm:$0xff] }
 0x468   : > { %8539 = vmatpush1.bf16.msra.mxu1 %v9851_v12  ;;  %8458 = vmatprep.subr.bf16.mxu0 %v9866_v13  ;;  %v9961_v12 = vcombine.low %v5432_v0, %v5440_v1  ;;  %v9963_v13 = vcombine.low %v5433_v36, %v5441_v2  ;;  %v9980_v11 = vcombine.high %v5449_v10, %v5457_v24  ;;  %v5544_v1 = vld [vmem:[%s13829_s24 + $0xd90] sm:$0xff]  ;;  %v5545_v2 = vld [vmem:[%s13829_s24 + $0xd98] sm:$0xff] }
 0x469   : > { %8540 = vmatprep.subr.bf16.mxu1 %v9868_v15  ;;  %v9978_v15 = vcombine.high %v5448_v8, %v5456_v9  ;;  %v5552_v36 = vld [vmem:[%s13829_s24 + $0xdd0] sm:$0xff] }
 0x46b   : > { %8459 = vmatpush1.bf16.msra.mxu0 %v9865_v21  ;;  %v5473_v21 = vld [vmem:[%s13829_s24 + $0xb58] sm:$0xff] }
 0x46c   : > { %8541 = vmatpush1.bf16.msra.mxu1 %v9867_v22  ;;  %8460 = vmatprep.subr.bf16.mxu0 %v9882_v23  ;;  %v9977_v22 = vcombine.low %v5448_v8, %v5456_v9  ;;  %v9979_v23 = vcombine.low %v5449_v10, %v5457_v24  ;;  %v9996_v25 = vcombine.high %v5465_v20, %v5473_v21  ;;  %v5560_v9 = vld [vmem:[%s13829_s24 + $0xe10] sm:$0xff]  ;;  %v5561_v24 = vld [vmem:[%s13829_s24 + $0xe18] sm:$0xff] }
 0x46d   : > { %8542 = vmatprep.subr.bf16.mxu1 %v9884_v18  ;;  %v9994_v18 = vcombine.high %v5464_v17, %v5472_v14  ;;  %v5568_v10 = vld [vmem:[%s13829_s24 + $0xe50] sm:$0xff] }
 0x46f   : > { %8461 = vmatpush1.bf16.msra.mxu0 %v9881_v28  ;;  %v5489_v28 = vld [vmem:[%s13829_s24 + $0xbd8] sm:$0xff] }
 0x470   : > { %8543 = vmatpush1.bf16.msra.mxu1 %v9883_v29  ;;  %8471 = vmatprep.subr.bf16.mxu0 %v9898_v30  ;;  %v9993_v29 = vcombine.low %v5464_v17, %v5472_v14  ;;  %v9995_v30 = vcombine.low %v5465_v20, %v5473_v21  ;;  %v10012_v32 = vcombine.high %v5481_v27, %v5489_v28  ;;  %v5576_v14 = vld [vmem:[%s13829_s24 + $0xe90] sm:$0xff]  ;;  %v5577_v21 = vld [vmem:[%s13829_s24 + $0xe98] sm:$0xff] }
 0x471   : > { %8553 = vmatprep.subr.bf16.mxu1 %v9900_v31  ;;  %v10010_v31 = vcombine.high %v5480_v26, %v5488_v16  ;;  %v5584_v20 = vld [vmem:[%s13829_s24 + $0xed0] sm:$0xff] }
 0x472   : > { %8463 = vmatmul.mubr.bf16.vlgmr.msra.gmra.mrb[8].mxu0 %v13937_v60 }
 0x473   : > { %8545 = vmatmul.mubr.bf16.vlgmr.msra.gmra.mrb[8].mxu1 %v13937_v60  ;;  %8472 = vmatpush1.bf16.msra.mxu0 %v9897_v39  ;;  %v5504_v39 = vld [vmem:[%s13829_s24 + $0xc50] sm:$0xff] }
 0x474   : > { %8503 = vmatprep.mubr.bf16.mxu0 %v13945_v3  ;;  %8554 = vmatpush1.bf16.msra.mxu1 %v9899_v42  ;;  %v10009_v42 = vcombine.low %v5480_v26, %v5488_v16  ;;  %v10026_v44 = vcombine.high %v5496_v33, %v5504_v39  ;;  %v5592_v16 = vld [vmem:[%s13829_s24 + $0xf10] sm:$0xff] }
 0x475   : > { %8585 = vmatprep.mubr.bf16.mxu1 %v13945_v3  ;;  %8473 = vmatprep.subr.bf16.mxu0 %v9914_v43  ;;  %v10011_v43 = vcombine.low %v5481_v27, %v5489_v28  ;;  %v5600_v27 = vld [vmem:[%s13829_s24 + $0xf50] sm:$0xff]  ;;  %v5593_v28 = vld [vmem:[%s13829_s24 + $0xf18] sm:$0xff] }
 0x476   : > { %8555 = vmatprep.subr.bf16.mxu1 %v9916_v47  ;;  %v5512_v47 = vld [vmem:[%s13829_s24 + $0xc90] sm:$0xff] }
 0x477   : > { %8474 = vmatpush1.bf16.msra.mxu0 %v9913_v50  ;;  %v5521_v50 = vld [vmem:[%s13829_s24 + $0xcd8] sm:$0xff] }
 0x478   : > { %8556 = vmatpush1.bf16.msra.mxu1 %v9915_v51  ;;  %8475 = vmatprep.subr.bf16.mxu0 %v9930_v52  ;;  %v10025_v51 = vcombine.low %v5496_v33, %v5504_v39  ;;  %v10027_v52 = vcombine.low %v5497_v40, %v5505_v41  ;;  %v10044_v54 = vcombine.high %v5513_v49, %v5521_v50  ;;  %v5608_v39 = vld [vmem:[%s13829_s24 + $0xf90] sm:$0xff]  ;;  %v5609_v41 = vld [vmem:[%s13829_s24 + $0xf98] sm:$0xff] }
 0x479   : > { %8557 = vmatprep.subr.bf16.mxu1 %v9932_v53  ;;  %v10042_v53 = vcombine.high %v5512_v47, %v5520_v48  ;;  %v5616_v40 = vld [vmem:[%s13829_s24 + $0xfd0] sm:$0xff] }
 0x47b   : > { %8476 = vmatpush1.bf16.msra.mxu0 %v9929_v58  ;;  %v5537_v58 = vld [vmem:[%s13829_s24 + $0xd58] sm:$0xff] }
 0x47c   : > { %8558 = vmatpush1.bf16.msra.mxu1 %v9931_v61  ;;  %8477 = vmatprep.subr.bf16.mxu0 %v9946_v62  ;;  %v10041_v61 = vcombine.low %v5512_v47, %v5520_v48  ;;  %v10043_v62 = vcombine.low %v5513_v49, %v5521_v50  ;;  %v10060_v0 = vcombine.high %v5529_v57, %v5537_v58  ;;  %v5114_v48 = vld [vmem:[%s13829_s24 + $0x20] sm:$0xff]  ;;  %v5115_v50 = vld [vmem:[%s13829_s24 + $0x28] sm:$0xff] }
 0x47d   : > { %8559 = vmatprep.subr.bf16.mxu1 %v9948_v63  ;;  %v10058_v63 = vcombine.high %v5528_v55, %v5536_v56  ;;  %v5122_v49 = vld [vmem:[%s13829_s24 + $0x60] sm:$0xff] }
 0x47f   : > { %8478 = vmatpush1.bf16.msra.mxu0 %v9945_v4  ;;  %v5553_v4 = vld [vmem:[%s13829_s24 + $0xdd8] sm:$0xff] }
 0x480   : > { %8560 = vmatpush1.bf16.msra.mxu1 %v9947_v5  ;;  %8479 = vmatprep.subr.bf16.mxu0 %v9962_v6  ;;  %v10057_v5 = vcombine.low %v5528_v55, %v5536_v56  ;;  %v10059_v6 = vcombine.low %v5529_v57, %v5537_v58  ;;  %v10076_v8 = vcombine.high %v5545_v2, %v5553_v4  ;;  %v5130_v56 = vld [vmem:[%s13829_s24 + $0xa0] sm:$0xff] }
 0x481   : > { %8561 = vmatprep.subr.bf16.mxu1 %v9964_v7  ;;  %v10074_v7 = vcombine.high %v5544_v1, %v5552_v36  ;;  %v5138_v57 = vld [vmem:[%s13829_s24 + $0xe0] sm:$0xff]  ;;  %v9645_v58 = vcombine.low %v5114_v48, %v5122_v49 }
 0x483   : > { %8480 = vmatpush1.bf16.msra.mxu0 %v9961_v12  ;;  %v5569_v12 = vld [vmem:[%s13829_s24 + $0xe58] sm:$0xff] }
 0x484   : > { %8562 = vmatpush1.bf16.msra.mxu1 %v9963_v13  ;;  %8481 = vmatprep.subr.bf16.mxu0 %v9978_v15  ;;  %v10073_v13 = vcombine.low %v5544_v1, %v5552_v36  ;;  %v10075_v15 = vcombine.low %v5545_v2, %v5553_v4  ;;  %v10092_v17 = vcombine.high %v5561_v24, %v5569_v12  ;;  %v5146_v1 = vld [vmem:[%s13829_s24 + $0x120] sm:$0xff]  ;;  %v5147_v4 = vld [vmem:[%s13829_s24 + $0x128] sm:$0xff] }
 0x485   : > { %8563 = vmatprep.subr.bf16.mxu1 %v9980_v11  ;;  %v10090_v11 = vcombine.high %v5560_v9, %v5568_v10  ;;  %v5154_v36 = vld [vmem:[%s13829_s24 + $0x160] sm:$0xff] }
 0x487   : > { %8482 = vmatpush1.bf16.msra.mxu0 %v9977_v22  ;;  %v5585_v22 = vld [vmem:[%s13829_s24 + $0xed8] sm:$0xff] }
 0x488   : > { %8564 = vmatpush1.bf16.msra.mxu1 %v9979_v23  ;;  %8483 = vmatprep.subr.bf16.mxu0 %v9994_v18  ;;  %v10089_v23 = vcombine.low %v5560_v9, %v5568_v10  ;;  %v10091_v18 = vcombine.low %v5561_v24, %v5569_v12  ;;  %v10108_v26 = vcombine.high %v5577_v21, %v5585_v22  ;;  %v5162_v10 = vld [vmem:[%s13829_s24 + $0x1a0] sm:$0xff]  ;;  %v5163_v12 = vld [vmem:[%s13829_s24 + $0x1a8] sm:$0xff] }
 0x489   : > { %8565 = vmatprep.subr.bf16.mxu1 %v9996_v25  ;;  %v10106_v25 = vcombine.high %v5576_v14, %v5584_v20  ;;  %v5170_v24 = vld [vmem:[%s13829_s24 + $0x1e0] sm:$0xff] }
 0x48b   : > { %8484 = vmatpush1.bf16.msra.mxu0 %v9993_v29  ;;  %v5601_v29 = vld [vmem:[%s13829_s24 + $0xf58] sm:$0xff] }
 0x48c   : > { %8566 = vmatpush1.bf16.msra.mxu1 %v9995_v30  ;;  %8485 = vmatprep.subr.bf16.mxu0 %v10010_v31  ;;  %v10105_v30 = vcombine.low %v5576_v14, %v5584_v20  ;;  %v10107_v31 = vcombine.low %v5577_v21, %v5585_v22  ;;  %v10124_v33 = vcombine.high %v5593_v28, %v5601_v29  ;;  %v5178_v20 = vld [vmem:[%s13829_s24 + $0x220] sm:$0xff]  ;;  %v5179_v22 = vld [vmem:[%s13829_s24 + $0x228] sm:$0xff] }
 0x48d   : > { %8567 = vmatprep.subr.bf16.mxu1 %v10012_v32  ;;  %v10122_v32 = vcombine.high %v5592_v16, %v5600_v27  ;;  %v5186_v21 = vld [vmem:[%s13829_s24 + $0x260] sm:$0xff] }
 0x48f   : > { %8486 = vmatpush1.bf16.msra.mxu0 %v10009_v42  ;;  %v5617_v42 = vld [vmem:[%s13829_s24 + $0xfd8] sm:$0xff] }
 0x490   : > { %8568 = vmatpush1.bf16.msra.mxu1 %v10011_v43  ;;  %8487 = vmatprep.subr.bf16.mxu0 %v10026_v44  ;;  %v10121_v43 = vcombine.low %v5592_v16, %v5600_v27  ;;  %v10123_v44 = vcombine.low %v5593_v28, %v5601_v29  ;;  %v10140_v47 = vcombine.high %v5609_v41, %v5617_v42  ;;  %v5194_v27 = vld [vmem:[%s13829_s24 + $0x2a0] sm:$0xff]  ;;  %v5195_v29 = vld [vmem:[%s13829_s24 + $0x2a8] sm:$0xff] }
 0x491   : > { %8569 = vmatprep.subr.bf16.mxu1 %v10028_v46  ;;  %v10138_v46 = vcombine.high %v5608_v39, %v5616_v40  ;;  %v5202_v28 = vld [vmem:[%s13829_s24 + $0x2e0] sm:$0xff] }
 0x493   : > { %8488 = vmatpush1.bf16.msra.mxu0 %v10025_v51  ;;  %v5123_v51 = vld [vmem:[%s13829_s24 + $0x68] sm:$0xff] }
 0x494   : > { %8570 = vmatpush1.bf16.msra.mxu1 %v10027_v52  ;;  %8489 = vmatprep.subr.bf16.mxu0 %v10042_v53  ;;  %v10137_v52 = vcombine.low %v5608_v39, %v5616_v40  ;;  %v10139_v53 = vcombine.low %v5609_v41, %v5617_v42  ;;  %v9648_v55 = vcombine.high %v5115_v50, %v5123_v51  ;;  %v5210_v40 = vld [vmem:[%s13829_s24 + $0x320] sm:$0xff]  ;;  %v5211_v42 = vld [vmem:[%s13829_s24 + $0x328] sm:$0xff] }
 0x495   : > { %8571 = vmatprep.subr.bf16.mxu1 %v10044_v54  ;;  %v9646_v54 = vcombine.high %v5114_v48, %v5122_v49  ;;  %v5218_v41 = vld [vmem:[%s13829_s24 + $0x360] sm:$0xff] }
 0x496   : > { %v5226_v49 = vld [vmem:[%s13829_s24 + $0x3a0] sm:$0xff] }
 0x497   : > { %8490 = vmatpush1.bf16.msra.mxu0 %v10041_v61  ;;  %v5131_v61 = vld [vmem:[%s13829_s24 + $0xa8] sm:$0xff] }
 0x498   : > { %8572 = vmatpush1.bf16.msra.mxu1 %v10043_v62  ;;  %8491 = vmatprep.subr.bf16.mxu0 %v10058_v63  ;;  %v5139_v62 = vld [vmem:[%s13829_s24 + $0xe8] sm:$0xff]  ;;  %v9647_v63 = vcombine.low %v5115_v50, %v5123_v51  ;;  %v5234_v50 = vld [vmem:[%s13829_s24 + $0x3e0] sm:$0xff] }
 0x499   : > { %8573 = vmatprep.subr.bf16.mxu1 %v10060_v0  ;;  %v9662_v0 = vcombine.high %v5130_v56, %v5138_v57  ;;  %v9664_v2 = vcombine.high %v5131_v61, %v5139_v62  ;;  %v5227_v51 = vld [vmem:[%s13829_s24 + $0x3a8] sm:$0xff] }
 0x49b   : > { %8492 = vmatpush1.bf16.msra.mxu0 %v10057_v5  ;;  %v5155_v5 = vld [vmem:[%s13829_s24 + $0x168] sm:$0xff] }
 0x49c   : > { %8574 = vmatpush1.bf16.msra.mxu1 %v10059_v6  ;;  %8493 = vmatprep.subr.bf16.mxu0 %v10074_v7  ;;  %v9661_v6 = vcombine.low %v5130_v56, %v5138_v57  ;;  %v9663_v7 = vcombine.low %v5131_v61, %v5139_v62  ;;  %v9680_v9 = vcombine.high %v5147_v4, %v5155_v5  ;;  %v5242_v57 = vld [vmem:[%s13829_s24 + $0x420] sm:$0xff]  ;;  %v5243_v61 = vld [vmem:[%s13829_s24 + $0x428] sm:$0xff] }
 0x49d   : > { %8575 = vmatprep.subr.bf16.mxu1 %v10076_v8  ;;  %v9678_v8 = vcombine.high %v5146_v1, %v5154_v36  ;;  %v5251_v62 = vld [vmem:[%s13829_s24 + $0x468] sm:$0xff] }
 0x49f   : > { %8494 = vmatpush1.bf16.msra.mxu0 %v10073_v13  ;;  %v5171_v13 = vld [vmem:[%s13829_s24 + $0x1e8] sm:$0xff] }
 0x4a0   : > { %8576 = vmatpush1.bf16.msra.mxu1 %v10075_v15  ;;  %8495 = vmatprep.subr.bf16.mxu0 %v10090_v11  ;;  %v9677_v15 = vcombine.low %v5146_v1, %v5154_v36  ;;  %v9679_v11 = vcombine.low %v5147_v4, %v5155_v5  ;;  %v9696_v14 = vcombine.high %v5163_v12, %v5171_v13  ;;  %v5266_v4 = vld [vmem:[%s13829_s24 + $0x4e0] sm:$0xff]  ;;  %v5259_v5 = vld [vmem:[%s13829_s24 + $0x4a8] sm:$0xff] }
 0x4a1   : > { %8577 = vmatprep.subr.bf16.mxu1 %v10092_v17  ;;  %v9694_v17 = vcombine.high %v5162_v10, %v5170_v24  ;;  %v9776_v36 = vcombine.high %v5243_v61, %v5251_v62 }
 0x4a3   : > { %8496 = vmatpush1.bf16.msra.mxu0 %v10089_v23  ;;  %v5187_v23 = vld [vmem:[%s13829_s24 + $0x268] sm:$0xff] }
 0x4a4   : > { %8578 = vmatpush1.bf16.msra.mxu1 %v10091_v18  ;;  %8497 = vmatprep.subr.bf16.mxu0 %v10106_v25  ;;  %v9693_v18 = vcombine.low %v5162_v10, %v5170_v24  ;;  %v9695_v25 = vcombine.low %v5163_v12, %v5171_v13  ;;  %v9712_v16 = vcombine.high %v5179_v22, %v5187_v23  ;;  %v5274_v24 = vld [vmem:[%s13829_s24 + $0x520] sm:$0xff]  ;;  %v5275_v13 = vld [vmem:[%s13829_s24 + $0x528] sm:$0xff] }
 0x4a5   : > { %8579 = vmatprep.subr.bf16.mxu1 %v10108_v26  ;;  %v9710_v26 = vcombine.high %v5178_v20, %v5186_v21  ;;  %v5282_v12 = vld [vmem:[%s13829_s24 + $0x560] sm:$0xff] }
 0x4a7   : > { %8498 = vmatpush1.bf16.msra.mxu0 %v10105_v30  ;;  %v5203_v30 = vld [vmem:[%s13829_s24 + $0x2e8] sm:$0xff] }
 0x4a8   : > { %8580 = vmatpush1.bf16.msra.mxu1 %v10107_v31  ;;  %8499 = vmatprep.subr.bf16.mxu0 %v10122_v32  ;;  %v9709_v31 = vcombine.low %v5178_v20, %v5186_v21  ;;  %v9711_v32 = vcombine.low %v5179_v22, %v5187_v23  ;;  %v9728_v39 = vcombine.high %v5195_v29, %v5203_v30  ;;  %v5290_v21 = vld [vmem:[%s13829_s24 + $0x5a0] sm:$0xff]  ;;  %v5291_v23 = vld [vmem:[%s13829_s24 + $0x5a8] sm:$0xff] }
 0x4a9   : > { %8581 = vmatprep.subr.bf16.mxu1 %v10124_v33  ;;  %v9726_v33 = vcombine.high %v5194_v27, %v5202_v28  ;;  %v5298_v22 = vld [vmem:[%s13829_s24 + $0x5e0] sm:$0xff] }
 0x4ab   : > { %8500 = vmatpush1.bf16.msra.mxu0 %v10121_v43  ;;  %v5219_v43 = vld [vmem:[%s13829_s24 + $0x368] sm:$0xff] }
 0x4ac   : > { %8582 = vmatpush1.bf16.msra.mxu1 %v10123_v44  ;;  %8501 = vmatprep.subr.bf16.mxu0 %v10138_v46  ;;  %v9725_v44 = vcombine.low %v5194_v27, %v5202_v28  ;;  %v9727_v46 = vcombine.low %v5195_v29, %v5203_v30  ;;  %v9744_v48 = vcombine.high %v5211_v42, %v5219_v43  ;;  %v5306_v28 = vld [vmem:[%s13829_s24 + $0x620] sm:$0xff]  ;;  %v5307_v30 = vld [vmem:[%s13829_s24 + $0x628] sm:$0xff] }
 0x4ad   : > { %8583 = vmatprep.subr.bf16.mxu1 %v10140_v47  ;;  %v9742_v47 = vcombine.high %v5210_v40, %v5218_v41  ;;  %v5314_v29 = vld [vmem:[%s13829_s24 + $0x660] sm:$0xff] }
 0x4af   : > { %8502 = vmatpush1.bf16.msra.mxu0 %v10137_v52  ;;  %v5235_v52 = vld [vmem:[%s13829_s24 + $0x3e8] sm:$0xff] }
 0x4b0   : > { %8584 = vmatpush1.bf16.msra.mxu1 %v10139_v53  ;;  %8594 = vmatprep.subr.bf16.mxu0 %v9646_v54  ;;  %v9741_v53 = vcombine.low %v5210_v40, %v5218_v41  ;;  %v9743_v54 = vcombine.low %v5211_v42, %v5219_v43  ;;  %v9760_v56 = vcombine.high %v5227_v51, %v5235_v52  ;;  %v5322_v41 = vld [vmem:[%s13829_s24 + $0x6a0] sm:$0xff]  ;;  %v5323_v43 = vld [vmem:[%s13829_s24 + $0x6a8] sm:$0xff] }
 0x4b1   : > { %8676 = vmatprep.subr.bf16.mxu1 %v9648_v55  ;;  %v9758_v55 = vcombine.high %v5226_v49, %v5234_v50  ;;  %v5330_v42 = vld [vmem:[%s13829_s24 + $0x6e0] sm:$0xff] }
 0x4b2   : > { %8504 = vmatmul.mubr.bf16.vlgmr.msra.gmra.mrb[8].mxu0 %v14017_v19 }
 0x4b3   : > { %8586 = vmatmul.mubr.bf16.vlgmr.msra.gmra.mrb[8].mxu1 %v14017_v19  ;;  %8595 = vmatpush1.bf16.msra.mxu0 %v9645_v58  ;;  %v5250_v58 = vld [vmem:[%s13829_s24 + $0x460] sm:$0xff] }
 0x4b4   : > { %8626 = vmatprep.mubr.bf16.mxu0 %v13935_v59  ;;  %8677 = vmatpush1.bf16.msra.mxu1 %v9647_v63  ;;  %v9757_v63 = vcombine.low %v5226_v49, %v5234_v50  ;;  %v9774_v1 = vcombine.high %v5242_v57, %v5250_v58  ;;  %v5338_v50 = vld [vmem:[%s13829_s24 + $0x720] sm:$0xff] }
 0x4b5   : > { %8708 = vmatprep.mubr.bf16.mxu1 %v13935_v59  ;;  %8596 = vmatprep.subr.bf16.mxu0 %v9662_v0  ;;  %v9759_v0 = vcombine.low %v5227_v51, %v5235_v52  ;;  %v5346_v51 = vld [vmem:[%s13829_s24 + $0x760] sm:$0xff]  ;;  %v5339_v52 = vld [vmem:[%s13829_s24 + $0x728] sm:$0xff] }
 0x4b6   : > { %8678 = vmatprep.subr.bf16.mxu1 %v9664_v2  ;;  %v5258_v2 = vld [vmem:[%s13829_s24 + $0x4a0] sm:$0xff] }
 0x4b7   : > { %8597 = vmatpush1.bf16.msra.mxu0 %v9661_v6  ;;  %v5267_v6 = vld [vmem:[%s13829_s24 + $0x4e8] sm:$0xff] }
 0x4b8   : > { %8679 = vmatpush1.bf16.msra.mxu1 %v9663_v7  ;;  %8598 = vmatprep.subr.bf16.mxu0 %v9678_v8  ;;  %v9773_v7 = vcombine.low %v5242_v57, %v5250_v58  ;;  %v9775_v8 = vcombine.low %v5243_v61, %v5251_v62  ;;  %v9792_v10 = vcombine.high %v5259_v5, %v5267_v6  ;;  %v5354_v58 = vld [vmem:[%s13829_s24 + $0x7a0] sm:$0xff]  ;;  %v5355_v62 = vld [vmem:[%s13829_s24 + $0x7a8] sm:$0xff] }
 0x4b9   : > { %8680 = vmatprep.subr.bf16.mxu1 %v9680_v9  ;;  %v9790_v9 = vcombine.high %v5258_v2, %v5266_v4  ;;  %v5362_v61 = vld [vmem:[%s13829_s24 + $0x7e0] sm:$0xff] }
 0x4bb   : > { %8599 = vmatpush1.bf16.msra.mxu0 %v9677_v15  ;;  %v5283_v15 = vld [vmem:[%s13829_s24 + $0x568] sm:$0xff] }
 0x4bc   : > { %8681 = vmatpush1.bf16.msra.mxu1 %v9679_v11  ;;  %8600 = vmatprep.subr.bf16.mxu0 %v9694_v17  ;;  %v9789_v11 = vcombine.low %v5258_v2, %v5266_v4  ;;  %v9791_v17 = vcombine.low %v5259_v5, %v5267_v6  ;;  %v9808_v20 = vcombine.high %v5275_v13, %v5283_v15  ;;  %v5370_v4 = vld [vmem:[%s13829_s24 + $0x820] sm:$0xff]  ;;  %v5371_v6 = vld [vmem:[%s13829_s24 + $0x828] sm:$0xff] }
 0x4bd   : > { %8682 = vmatprep.subr.bf16.mxu1 %v9696_v14  ;;  %v9806_v14 = vcombine.high %v5274_v24, %v5282_v12  ;;  %v5378_v5 = vld [vmem:[%s13829_s24 + $0x860] sm:$0xff] }
 0x4bf   : > { %8601 = vmatpush1.bf16.msra.mxu0 %v9693_v18  ;;  %v5299_v18 = vld [vmem:[%s13829_s24 + $0x5e8] sm:$0xff] }
 0x4c0   : > { %8683 = vmatpush1.bf16.msra.mxu1 %v9695_v25  ;;  %8602 = vmatprep.subr.bf16.mxu0 %v9710_v26  ;;  %v9805_v25 = vcombine.low %v5274_v24, %v5282_v12  ;;  %v9807_v26 = vcombine.low %v5275_v13, %v5283_v15  ;;  %v9824_v27 = vcombine.high %v5291_v23, %v5299_v18  ;;  %v5386_v12 = vld [vmem:[%s13829_s24 + $0x8a0] sm:$0xff] }
 0x4c1   : > { %8684 = vmatprep.subr.bf16.mxu1 %v9712_v16  ;;  %v9822_v16 = vcombine.high %v5290_v21, %v5298_v22  ;;  %v5394_v13 = vld [vmem:[%s13829_s24 + $0x8e0] sm:$0xff]  ;;  %v9901_v15 = vcombine.low %v5370_v4, %v5378_v5 }
 0x4c3   : > { %8603 = vmatpush1.bf16.msra.mxu0 %v9709_v31  ;;  %v5315_v31 = vld [vmem:[%s13829_s24 + $0x668] sm:$0xff] }
 0x4c4   : > { %8685 = vmatpush1.bf16.msra.mxu1 %v9711_v32  ;;  %8604 = vmatprep.subr.bf16.mxu0 %v9726_v33  ;;  %v9821_v32 = vcombine.low %v5290_v21, %v5298_v22  ;;  %v9823_v33 = vcombine.low %v5291_v23, %v5299_v18  ;;  %v9840_v40 = vcombine.high %v5307_v30, %v5315_v31  ;;  %v5402_v21 = vld [vmem:[%s13829_s24 + $0x920] sm:$0xff]  ;;  %v5403_v18 = vld [vmem:[%s13829_s24 + $0x928] sm:$0xff] }
 0x4c5   : > { %8686 = vmatprep.subr.bf16.mxu1 %v9728_v39  ;;  %v9838_v39 = vcombine.high %v5306_v28, %v5314_v29  ;;  %v5410_v22 = vld [vmem:[%s13829_s24 + $0x960] sm:$0xff] }
 0x4c7   : > { %8605 = vmatpush1.bf16.msra.mxu0 %v9725_v44  ;;  %v5331_v44 = vld [vmem:[%s13829_s24 + $0x6e8] sm:$0xff] }
 0x4c8   : > { %8687 = vmatpush1.bf16.msra.mxu1 %v9727_v46  ;;  %8606 = vmatprep.subr.bf16.mxu0 %v9742_v47  ;;  %v9837_v46 = vcombine.low %v5306_v28, %v5314_v29  ;;  %v9839_v47 = vcombine.low %v5307_v30, %v5315_v31  ;;  %v9856_v49 = vcombine.high %v5323_v43, %v5331_v44  ;;  %v5418_v29 = vld [vmem:[%s13829_s24 + $0x9a0] sm:$0xff]  ;;  %v5419_v31 = vld [vmem:[%s13829_s24 + $0x9a8] sm:$0xff] }
 0x4c9   : > { %8688 = vmatprep.subr.bf16.mxu1 %v9744_v48  ;;  %v9854_v48 = vcombine.high %v5322_v41, %v5330_v42  ;;  %v5426_v30 = vld [vmem:[%s13829_s24 + $0x9e0] sm:$0xff] }
 0x4cb   : > { %8607 = vmatpush1.bf16.msra.mxu0 %v9741_v53  ;;  %v5347_v53 = vld [vmem:[%s13829_s24 + $0x768] sm:$0xff] }
 0x4cc   : > { %8689 = vmatpush1.bf16.msra.mxu1 %v9743_v54  ;;  %8608 = vmatprep.subr.bf16.mxu0 %v9758_v55  ;;  %v9853_v54 = vcombine.low %v5322_v41, %v5330_v42  ;;  %v9855_v55 = vcombine.low %v5323_v43, %v5331_v44  ;;  %v9872_v57 = vcombine.high %v5339_v52, %v5347_v53  ;;  %v5434_v42 = vld [vmem:[%s13829_s24 + $0xa20] sm:$0xff]  ;;  %v5435_v44 = vld [vmem:[%s13829_s24 + $0xa28] sm:$0xff] }
 0x4cd   : > { %8690 = vmatprep.subr.bf16.mxu1 %v9760_v56  ;;  %v9870_v56 = vcombine.high %v5338_v50, %v5346_v51  ;;  %v5442_v43 = vld [vmem:[%s13829_s24 + $0xa60] sm:$0xff] }
 0x4cf   : > { %8609 = vmatpush1.bf16.msra.mxu0 %v9757_v63  ;;  %v5363_v63 = vld [vmem:[%s13829_s24 + $0x7e8] sm:$0xff] }
 0x4d0   : > { %8691 = vmatpush1.bf16.msra.mxu1 %v9759_v0  ;;  %8610 = vmatprep.subr.bf16.mxu0 %v9774_v1  ;;  %v9869_v0 = vcombine.low %v5338_v50, %v5346_v51  ;;  %v9871_v1 = vcombine.low %v5339_v52, %v5347_v53  ;;  %v9888_v2 = vcombine.high %v5355_v62, %v5363_v63  ;;  %v5450_v51 = vld [vmem:[%s13829_s24 + $0xaa0] sm:$0xff]  ;;  %v5451_v53 = vld [vmem:[%s13829_s24 + $0xaa8] sm:$0xff] }
 0x4d1   : > { %8692 = vmatprep.subr.bf16.mxu1 %v9776_v36  ;;  %v9886_v36 = vcombine.high %v5354_v58, %v5362_v61  ;;  %v5458_v52 = vld [vmem:[%s13829_s24 + $0xae0] sm:$0xff] }
 0x4d3   : > { %8611 = vmatpush1.bf16.msra.mxu0 %v9773_v7  ;;  %v5379_v7 = vld [vmem:[%s13829_s24 + $0x868] sm:$0xff] }
 0x4d4   : > { %8693 = vmatpush1.bf16.msra.mxu1 %v9775_v8  ;;  %8612 = vmatprep.subr.bf16.mxu0 %v9790_v9  ;;  %v9885_v8 = vcombine.low %v5354_v58, %v5362_v61  ;;  %v9887_v9 = vcombine.low %v5355_v62, %v5363_v63  ;;  %v9904_v24 = vcombine.high %v5371_v6, %v5379_v7  ;;  %v5466_v62 = vld [vmem:[%s13829_s24 + $0xb20] sm:$0xff] }
 0x4d5   : > { %8694 = vmatprep.subr.bf16.mxu1 %v9792_v10  ;;  %v9902_v10 = vcombine.high %v5370_v4, %v5378_v5  ;;  %v9982_v58 = vcombine.high %v5450_v51, %v5458_v52  ;;  %v5474_v63 = vld [vmem:[%s13829_s24 + $0xb60] sm:$0xff] }
 0x4d7   : > { %8613 = vmatpush1.bf16.msra.mxu0 %v9789_v11  ;;  %v5387_v11 = vld [vmem:[%s13829_s24 + $0x8a8] sm:$0xff] }
 0x4d8   : > { %8695 = vmatpush1.bf16.msra.mxu1 %v9791_v17  ;;  %8614 = vmatprep.subr.bf16.mxu0 %v9806_v14  ;;  %v5395_v17 = vld [vmem:[%s13829_s24 + $0x8e8] sm:$0xff]  ;;  %v9903_v14 = vcombine.low %v5371_v6, %v5379_v7  ;;  %v9981_v6 = vcombine.low %v5450_v51, %v5458_v52 }
 0x4d9   : > { %8696 = vmatprep.subr.bf16.mxu1 %v9808_v20  ;;  %v9918_v20 = vcombine.high %v5386_v12, %v5394_v13  ;;  %v9920_v23 = vcombine.high %v5387_v11, %v5395_v17 }
 0x4db   : > { %8615 = vmatpush1.bf16.msra.mxu0 %v9805_v25  ;;  %v5411_v25 = vld [vmem:[%s13829_s24 + $0x968] sm:$0xff] }
 0x4dc   : > { %8697 = vmatpush1.bf16.msra.mxu1 %v9807_v26  ;;  %8616 = vmatprep.subr.bf16.mxu0 %v9822_v16  ;;  %v9917_v26 = vcombine.low %v5386_v12, %v5394_v13  ;;  %v9919_v16 = vcombine.low %v5387_v11, %v5395_v17  ;;  %v9936_v28 = vcombine.high %v5403_v18, %v5411_v25  ;;  %v5482_v12 = vld [vmem:[%s13829_s24 + $0xba0] sm:$0xff] }
 0x4dd   : > { %8698 = vmatprep.subr.bf16.mxu1 %v9824_v27  ;;  %v9934_v27 = vcombine.high %v5402_v21, %v5410_v22  ;;  %v5490_v13 = vld [vmem:[%s13829_s24 + $0xbe0] sm:$0xff] }
 0x4df   : > { %8617 = vmatpush1.bf16.msra.mxu0 %v9821_v32  ;;  %v5427_v32 = vld [vmem:[%s13829_s24 + $0x9e8] sm:$0xff] }
 0x4e0   : > { %8699 = vmatpush1.bf16.msra.mxu1 %v9823_v33  ;;  %8618 = vmatprep.subr.bf16.mxu0 %v9838_v39  ;;  %v9933_v33 = vcombine.low %v5402_v21, %v5410_v22  ;;  %v9935_v39 = vcombine.low %v5403_v18, %v5411_v25  ;;  %v9952_v41 = vcombine.high %v5419_v31, %v5427_v32  ;;  %v5491_v21 = vld [vmem:[%s13829_s24 + $0xbe8] sm:$0xff] }
 0x4e1   : > { %8700 = vmatprep.subr.bf16.mxu1 %v9840_v40  ;;  %v9950_v40 = vcombine.high %v5418_v29, %v5426_v30 }
 0x4e3   : > { %8619 = vmatpush1.bf16.msra.mxu0 %v9837_v46  ;;  %v5443_v46 = vld [vmem:[%s13829_s24 + $0xa68] sm:$0xff] }
 0x4e4   : > { %8701 = vmatpush1.bf16.msra.mxu1 %v9839_v47  ;;  %8620 = vmatprep.subr.bf16.mxu0 %v9854_v48  ;;  %v9949_v47 = vcombine.low %v5418_v29, %v5426_v30  ;;  %v9951_v48 = vcombine.low %v5419_v31, %v5427_v32  ;;  %v9968_v50 = vcombine.high %v5435_v44, %v5443_v46  ;;  %v5498_v31 = vld [vmem:[%s13829_s24 + $0xc20] sm:$0xff] }
 0x4e5   : > { %8702 = vmatprep.subr.bf16.mxu1 %v9856_v49  ;;  %v9966_v49 = vcombine.high %v5434_v42, %v5442_v43  ;;  %v10014_v29 = vcombine.high %v5482_v12, %v5490_v13  ;;  %v5506_v32 = vld [vmem:[%s13829_s24 + $0xc60] sm:$0xff] }
 0x4e7   : > { %8621 = vmatpush1.bf16.msra.mxu0 %v9853_v54  ;;  %v5459_v54 = vld [vmem:[%s13829_s24 + $0xae8] sm:$0xff] }
 0x4e8   : > { %8703 = vmatpush1.bf16.msra.mxu1 %v9855_v55  ;;  %8622 = vmatprep.subr.bf16.mxu0 %v9870_v56  ;;  %v9965_v55 = vcombine.low %v5434_v42, %v5442_v43  ;;  %v14255_v56 = vld [vmem:[%s14248_s18] sm:$0xff]  ;;  %v9984_v61 = vcombine.high %v5451_v53, %v5459_v54  ;;  %v9983_v7 = vcombine.low %v5451_v53, %v5459_v54 }
 0x4e9   : > { %8704 = vmatprep.subr.bf16.mxu1 %v9872_v57  ;;  %v9967_v57 = vcombine.low %v5435_v44, %v5443_v46  ;;  %v5633_v4 = vrot.slane %v14255_v56, %v13918_v37  ;;  %v5641_v5 = vrot.slane %v14255_v56, %v13921_v38  ;;  %v10030_v42 = vcombine.high %v5498_v31, %v5506_v32  ;;  %v5514_v44 = vld [vmem:[%s13829_s24 + $0xca0] sm:$0xff] }
 0x4ea   : > { %v5522_v46 = vld [vmem:[%s13829_s24 + $0xce0] sm:$0xff] }
 0x4eb   : > { %8623 = vmatpush1.bf16.msra.mxu0 %v9869_v0  ;;  %v5629_v0 = vrot.slane %v14255_v56, %v13910_v35  ;;  %v10046_v51 = vcombine.high %v5514_v44, %v5522_v46  ;;  %v5530_v53 = vld [vmem:[%s13829_s24 + $0xd20] sm:$0xff] }
 0x4ec   : > { %8705 = vmatpush1.bf16.msra.mxu1 %v9871_v1  ;;  %8624 = vmatprep.subr.bf16.mxu0 %v9886_v36  ;;  %v5637_v1 = vrot.slane %v14255_v56, %v13996_v45  ;;  %v5467_v36 = vld [vmem:[%s13829_s24 + $0xb28] sm:$0xff]  ;;  %v5538_v54 = vld [vmem:[%s13829_s24 + $0xd60] sm:$0xff] }
 0x4ed   : > { %8706 = vmatprep.subr.bf16.mxu1 %v9888_v2  ;;  %v5475_v2 = vld [vmem:[%s13829_s24 + $0xb68] sm:$0xff] }
 0x4ef   : > { %8625 = vmatpush1.bf16.msra.mxu0 %v9885_v8  ;;  %v9998_v8 = vcombine.high %v5466_v62, %v5474_v63 }
 0x4f0   : > { %8707 = vmatpush1.bf16.msra.mxu1 %v9887_v9  ;;  %8635 = vmatprep.subr.bf16.mxu0 %v9902_v10 }
 0x4f1   : > { %8717 = vmatprep.subr.bf16.mxu1 %v9904_v24  ;;  %v10000_v24 = vcombine.high %v5467_v36, %v5475_v2 }
 0x4f2   : > { %8627 = vmatmul.mubr.bf16.vlgmr.msra.gmra.mrb[12].mxu0 %v13937_v60 }
 0x4f3   : > { %8709 = vmatmul.mubr.bf16.vlgmr.msra.gmra.mrb[12].mxu1 %v13937_v60  ;;  %8636 = vmatpush1.bf16.msra.mxu0 %v9901_v15 }
 0x4f4   : > { %8667 = vmatprep.mubr.bf16.mxu0 %v13945_v3  ;;  %8718 = vmatpush1.bf16.msra.mxu1 %v9903_v14 }
 0x4f5   : > { %8749 = vmatprep.mubr.bf16.mxu1 %v13945_v3  ;;  %8637 = vmatprep.subr.bf16.mxu0 %v9918_v20  ;;  %v5483_v20 = vld [vmem:[%s13829_s24 + $0xba8] sm:$0xff] }
 0x4f6   : > { %8719 = vmatprep.subr.bf16.mxu1 %v9920_v23  ;;  %v10016_v30 = vcombine.high %v5483_v20, %v5491_v21 }
 0x4f7   : > { %8638 = vmatpush1.bf16.msra.mxu0 %v9917_v26  ;;  %v9997_v26 = vcombine.low %v5466_v62, %v5474_v63  ;;  %v10045_v63 = vcombine.low %v5514_v44, %v5522_v46 }
 0x4f8   : > { %8720 = vmatpush1.bf16.msra.mxu1 %v9919_v16  ;;  %8639 = vmatprep.subr.bf16.mxu0 %v9934_v27 }
 0x4f9   : > { %8721 = vmatprep.subr.bf16.mxu1 %v9936_v28  ;;  %v9999_v28 = vcombine.low %v5467_v36, %v5475_v2  ;;  %v10062_v2 = vcombine.high %v5530_v53, %v5538_v54 }
 0x4fb   : > { %8640 = vmatpush1.bf16.msra.mxu0 %v9933_v33  ;;  %v5499_v33 = vld [vmem:[%s13829_s24 + $0xc28] sm:$0xff] }
 0x4fc   : > { %8722 = vmatpush1.bf16.msra.mxu1 %v9935_v39  ;;  %8641 = vmatprep.subr.bf16.mxu0 %v9950_v40  ;;  %v5507_v39 = vld [vmem:[%s13829_s24 + $0xc68] sm:$0xff]  ;;  %v10013_v40 = vcombine.low %v5482_v12, %v5490_v13  ;;  %v10061_v13 = vcombine.low %v5530_v53, %v5538_v54 }
 0x4fd   : > { %8723 = vmatprep.subr.bf16.mxu1 %v9952_v41  ;;  %v10015_v41 = vcombine.low %v5483_v20, %v5491_v21  ;;  %v10032_v43 = vcombine.high %v5499_v33, %v5507_v39  ;;  %v5562_v20 = vld [vmem:[%s13829_s24 + $0xe20] sm:$0xff] }
 0x4fe   : > { %v5570_v21 = vld [vmem:[%s13829_s24 + $0xe60] sm:$0xff] }
 0x4ff   : > { %8642 = vmatpush1.bf16.msra.mxu0 %v9949_v47  ;;  %v5515_v47 = vld [vmem:[%s13829_s24 + $0xca8] sm:$0xff] }
 0x500   : > { %8724 = vmatpush1.bf16.msra.mxu1 %v9951_v48  ;;  %8643 = vmatprep.subr.bf16.mxu0 %v9966_v49  ;;  %v5523_v48 = vld [vmem:[%s13829_s24 + $0xce8] sm:$0xff]  ;;  %v10029_v49 = vcombine.low %v5498_v31, %v5506_v32  ;;  %v10093_v31 = vcombine.low %v5562_v20, %v5570_v21 }
 0x501   : > { %8725 = vmatprep.subr.bf16.mxu1 %v9968_v50  ;;  %v10031_v50 = vcombine.low %v5499_v33, %v5507_v39  ;;  %v10048_v52 = vcombine.high %v5515_v47, %v5523_v48  ;;  %v10047_v36 = vcombine.low %v5515_v47, %v5523_v48 }
 0x503   : > { %8644 = vmatpush1.bf16.msra.mxu0 %v9965_v55 }
 0x504   : > { %8726 = vmatpush1.bf16.msra.mxu1 %v9967_v57  ;;  %8645 = vmatprep.subr.bf16.mxu0 %v9982_v58  ;;  %v5531_v57 = vld [vmem:[%s13829_s24 + $0xd28] sm:$0xff] }
 0x505   : > { %v8341_v9 = vpop.f32.mrb[4].mxu0  ;;  %v8423_v10 = vpop.f32.mrb[4].mxu1  ;;  %8727 = vmatprep.subr.bf16.mxu1 %v9984_v61  ;;  %v5539_v58 = vld [vmem:[%s13829_s24 + $0xd68] sm:$0xff] }
 0x506   : > { %v10172_v15 = vadd.f32 %v8341_v9, %v5629_v0  ;;  %v10174_v11 = vadd.f32 %v8423_v10, %v5637_v1  ;;  %v8343_v17 = vpop.f32.mrb[5].mxu0  ;;  %v8425_v14 = vpop.f32.mrb[5].mxu1  ;;  %v5547_v10 = vld [vmem:[%s13829_s24 + $0xda8] sm:$0xff] }
 0x507   : > { %v10173_v22 = vadd.f32 %v8343_v17, %v5633_v4  ;;  %v10175_v23 = vadd.f32 %v8425_v14, %v5641_v5  ;;  %v8345_v18 = vpop.f32.mrb[6].mxu0  ;;  %v8427_v25 = vpop.f32.mrb[6].mxu1  ;;  %8646 = vmatpush1.bf16.msra.mxu0 %v9981_v6  ;;  %v10064_v6 = vcombine.high %v5531_v57, %v5539_v58 }
 0x508   : > { %11084 = vtanh.f32 %v10172_v15  ;;  %8728 = vmatpush1.bf16.msra.mxu1 %v9983_v7  ;;  %v8346_v16 = vpop.f32.mrb[7].mxu0  ;;  %v8428_v27 = vpop.f32.mrb[7].mxu1  ;;  %8647 = vmatprep.subr.bf16.mxu0 %v9998_v8  ;;  %v5546_v7 = vld [vmem:[%s13829_s24 + $0xda0] sm:$0xff] }
 0x509   : > { %11086 = vtanh.f32 %v10174_v11  ;;  %8729 = vmatprep.subr.bf16.mxu1 %v10000_v24  ;;  %v5554_v8 = vld [vmem:[%s13829_s24 + $0xde0] sm:$0xff]  ;;  %v5555_v24 = vld [vmem:[%s13829_s24 + $0xde8] sm:$0xff]  ;;  %v10063_v11 = vcombine.low %v5531_v57, %v5539_v58  ;;  %v5116_v58 = vld [vmem:[%s13829_s24 + $0x30] sm:$0xff] }
 0x50a   : > { %11088 = vtanh.f32 %v10173_v22  ;;  %v10078_v17 = vcombine.high %v5546_v7, %v5554_v8  ;;  %v10080_v14 = vcombine.high %v5547_v10, %v5555_v24  ;;  %v5563_v22 = vld [vmem:[%s13829_s24 + $0xe28] sm:$0xff]  ;;  %v10077_v18 = vcombine.low %v5546_v7, %v5554_v8  ;;  %v5578_v27 = vld [vmem:[%s13829_s24 + $0xea0] sm:$0xff]  ;;  %v5133_v7 = vld [vmem:[%s13829_s24 + $0xb8] sm:$0xff] }
 0x50b   : > { %11090 = vtanh.f32 %v10175_v23  ;;  %8648 = vmatpush1.bf16.msra.mxu0 %v9997_v26  ;;  %v5571_v23 = vld [vmem:[%s13829_s24 + $0xe68] sm:$0xff]  ;;  %v10079_v25 = vcombine.low %v5547_v10, %v5555_v24  ;;  %v10094_v26 = vcombine.high %v5562_v20, %v5570_v21  ;;  %v5141_v8 = vld [vmem:[%s13829_s24 + $0xf8] sm:$0xff]  ;;  %v5148_v24 = vld [vmem:[%s13829_s24 + $0x130] sm:$0xff] }
 0x50c   : > { %8730 = vmatpush1.bf16.msra.mxu1 %v9999_v28  ;;  %8649 = vmatprep.subr.bf16.mxu0 %v10014_v29  ;;  %v10096_v16 = vcombine.high %v5563_v22, %v5571_v23  ;;  %v5586_v28 = vld [vmem:[%s13829_s24 + $0xee0] sm:$0xff]  ;;  %v5579_v29 = vld [vmem:[%s13829_s24 + $0xea8] sm:$0xff]  ;;  %v10095_v32 = vcombine.low %v5563_v22, %v5571_v23  ;;  %v5164_v22 = vld [vmem:[%s13829_s24 + $0x1b0] sm:$0xff] }
 0x50d   : > { %8731 = vmatprep.subr.bf16.mxu1 %v10016_v30  ;;  %v5587_v30 = vld [vmem:[%s13829_s24 + $0xee8] sm:$0xff]  ;;  %v10110_v33 = vcombine.high %v5578_v27, %v5586_v28  ;;  %v10109_v44 = vcombine.low %v5578_v27, %v5586_v28  ;;  %v5172_v23 = vld [vmem:[%s13829_s24 + $0x1f0] sm:$0xff] }
 0x50e   : > { %v10112_v39 = vcombine.high %v5579_v29, %v5587_v30  ;;  %v10111_v46 = vcombine.low %v5579_v29, %v5587_v30  ;;  %v9698_v27 = vcombine.high %v5164_v22, %v5172_v23  ;;  %v5180_v28 = vld [vmem:[%s13829_s24 + $0x230] sm:$0xff]  ;;  %v5181_v30 = vld [vmem:[%s13829_s24 + $0x238] sm:$0xff] }
 0x50f   : > { %8650 = vmatpush1.bf16.msra.mxu0 %v10013_v40  ;;  %v5594_v40 = vld [vmem:[%s13829_s24 + $0xf20] sm:$0xff]  ;;  %v5188_v29 = vld [vmem:[%s13829_s24 + $0x270] sm:$0xff] }
 0x510   : > { %8732 = vmatpush1.bf16.msra.mxu1 %v10015_v41  ;;  %8651 = vmatprep.subr.bf16.mxu0 %v10030_v42  ;;  %v5602_v41 = vld [vmem:[%s13829_s24 + $0xf60] sm:$0xff]  ;;  %v5595_v42 = vld [vmem:[%s13829_s24 + $0xf28] sm:$0xff] }
 0x511   : > { %8733 = vmatprep.subr.bf16.mxu1 %v10032_v43  ;;  %v5603_v43 = vld [vmem:[%s13829_s24 + $0xf68] sm:$0xff]  ;;  %v10126_v47 = vcombine.high %v5594_v40, %v5602_v41  ;;  %v10125_v53 = vcombine.low %v5594_v40, %v5602_v41  ;;  %v5196_v41 = vld [vmem:[%s13829_s24 + $0x2b0] sm:$0xff] }
 0x512   : > { %v11085_v55 = vpop.eup %11084  ;;  %v10128_v48 = vcombine.high %v5595_v42, %v5603_v43  ;;  %v10127_v54 = vcombine.low %v5595_v42, %v5603_v43  ;;  %v5204_v42 = vld [vmem:[%s13829_s24 + $0x2f0] sm:$0xff]  ;;  %v5197_v43 = vld [vmem:[%s13829_s24 + $0x2b8] sm:$0xff] }
 0x513   : > { %v11087_v61 = vpop.eup %11086  ;;  %v8938_v62 = vmul.f32 8.0, %v11085_v55  ;;  %8652 = vmatpush1.bf16.msra.mxu0 %v10029_v49  ;;  %v5610_v49 = vld [vmem:[%s13829_s24 + $0xfa0] sm:$0xff] }
 0x514   : > { %v11089_v0 = vpop.eup %11088  ;;  %v8940_v1 = vmul.f32 8.0, %v11087_v61  ;;  %8734 = vmatpush1.bf16.msra.mxu1 %v10031_v50  ;;  %8653 = vmatprep.subr.bf16.mxu0 %v10046_v51  ;;  %v5618_v50 = vld [vmem:[%s13829_s24 + $0xfe0] sm:$0xff]  ;;  %v5611_v51 = vld [vmem:[%s13829_s24 + $0xfa8] sm:$0xff]  ;;  %v5124_v61 = vld [vmem:[%s13829_s24 + $0x70] sm:$0xff] }
 0x515   : > { %v11091_v4 = vpop.eup %11090  ;;  %v8939_v5 = vmul.f32 8.0, %v11089_v0  ;;  %8735 = vmatprep.subr.bf16.mxu1 %v10048_v52  ;;  %v5619_v52 = vld [vmem:[%s13829_s24 + $0xfe8] sm:$0xff]  ;;  %v10142_v55 = vcombine.high %v5610_v49, %v5618_v50  ;;  %v10141_v0 = vcombine.low %v5610_v49, %v5618_v50  ;;  %v5212_v50 = vld [vmem:[%s13829_s24 + $0x330] sm:$0xff] }
 0x516   : > { %v8941_v9 = vmul.f32 8.0, %v11091_v4  ;;  %v10144_v57 = vcombine.high %v5611_v51, %v5619_v52  ;;  %v5132_v4 = vld [vmem:[%s13829_s24 + $0xb0] sm:$0xff] }
 0x517   : > { %v10160_v12 = vpack.c.bf16 %v8939_v5, %v8938_v62  ;;  %8654 = vmatpush1.bf16.msra.mxu0 %v10045_v63  ;;  %v5117_v62 = vld [vmem:[%s13829_s24 + $0x38] sm:$0xff]  ;;  %v5140_v5 = vld [vmem:[%s13829_s24 + $0xf0] sm:$0xff] }
 0x518   : > { %v10161_v15 = vpack.c.bf16 %v8941_v9, %v8940_v1  ;;  %8736 = vmatpush1.bf16.msra.mxu1 %v10047_v36  ;;  %8655 = vmatprep.subr.bf16.mxu0 %v10062_v2  ;;  %v5125_v63 = vld [vmem:[%s13829_s24 + $0x78] sm:$0xff]  ;;  %v10143_v1 = vcombine.low %v5611_v51, %v5619_v52  ;;  %v9650_v36 = vcombine.high %v5116_v58, %v5124_v61  ;;  %v5220_v51 = vld [vmem:[%s13829_s24 + $0x370] sm:$0xff] }
 0x519   : > { %9018 = vst [vmem:[%s14291_s11] sm:$0xff] %v10160_v12  ;;  %8737 = vmatprep.subr.bf16.mxu1 %v10064_v6  ;;  %v9652_v2 = vcombine.high %v5117_v62, %v5125_v63  ;;  %v9649_v6 = vcombine.low %v5116_v58, %v5124_v61  ;;  %v9651_v9 = vcombine.low %v5117_v62, %v5125_v63  ;;  %v5156_v12 = vld [vmem:[%s13829_s24 + $0x170] sm:$0xff]  ;;  %v5213_v52 = vld [vmem:[%s13829_s24 + $0x338] sm:$0xff] }
 0x51a   : > { %9019 = vst [vmem:[%s14291_s11 + $0x8] sm:$0xff] %v10161_v15  ;;  %v9666_v10 = vcombine.high %v5132_v4, %v5140_v5  ;;  %v5149_v15 = vld [vmem:[%s13829_s24 + $0x138] sm:$0xff]  ;;  %v9682_v20 = vcombine.high %v5148_v24, %v5156_v12  ;;  %v5228_v61 = vld [vmem:[%s13829_s24 + $0x3b0] sm:$0xff] }
 0x51b   : > { %8656 = vmatpush1.bf16.msra.mxu0 %v10061_v13  ;;  %v9668_v13 = vcombine.high %v5133_v7, %v5141_v8  ;;  %v5236_v62 = vld [vmem:[%s13829_s24 + $0x3f0] sm:$0xff]  ;;  %v5229_v63 = vld [vmem:[%s13829_s24 + $0x3b8] sm:$0xff] }
 0x51c   : > { %8738 = vmatpush1.bf16.msra.mxu1 %v10063_v11  ;;  %8657 = vmatprep.subr.bf16.mxu0 %v10078_v17  ;;  %v5157_v11 = vld [vmem:[%s13829_s24 + $0x178] sm:$0xff]  ;;  %v9665_v17 = vcombine.low %v5132_v4, %v5140_v5  ;;  %v5244_v5 = vld [vmem:[%s13829_s24 + $0x430] sm:$0xff] }
 0x51d   : > { %8739 = vmatprep.subr.bf16.mxu1 %v10080_v14  ;;  %v9667_v14 = vcombine.low %v5133_v7, %v5141_v8  ;;  %v9684_v21 = vcombine.high %v5149_v15, %v5157_v11  ;;  %v5245_v7 = vld [vmem:[%s13829_s24 + $0x438] sm:$0xff] }
 0x51e   : > { %v5253_v8 = vld [vmem:[%s13829_s24 + $0x478] sm:$0xff] }
 0x51f   : > { %8658 = vmatpush1.bf16.msra.mxu0 %v10077_v18  ;;  %v5165_v18 = vld [vmem:[%s13829_s24 + $0x1b8] sm:$0xff] }
 0x520   : > { %8740 = vmatpush1.bf16.msra.mxu1 %v10079_v25  ;;  %8659 = vmatprep.subr.bf16.mxu0 %v10094_v26  ;;  %v5173_v25 = vld [vmem:[%s13829_s24 + $0x1f8] sm:$0xff]  ;;  %v9681_v26 = vcombine.low %v5148_v24, %v5156_v12  ;;  %v9780_v12 = vcombine.high %v5245_v7, %v5253_v8 }
 0x521   : > { %8741 = vmatprep.subr.bf16.mxu1 %v10096_v16  ;;  %v9683_v16 = vcombine.low %v5149_v15, %v5157_v11  ;;  %v5268_v15 = vld [vmem:[%s13829_s24 + $0x4f0] sm:$0xff]  ;;  %v5261_v11 = vld [vmem:[%s13829_s24 + $0x4b8] sm:$0xff] }
 0x523   : > { %8660 = vmatpush1.bf16.msra.mxu0 %v10093_v31  ;;  %v5189_v31 = vld [vmem:[%s13829_s24 + $0x278] sm:$0xff] }
 0x524   : > { %8742 = vmatpush1.bf16.msra.mxu1 %v10095_v32  ;;  %8661 = vmatprep.subr.bf16.mxu0 %v10110_v33  ;;  %v9697_v32 = vcombine.low %v5164_v22, %v5172_v23  ;;  %v9699_v33 = vcombine.low %v5165_v18, %v5173_v25  ;;  %v9716_v40 = vcombine.high %v5181_v30, %v5189_v31  ;;  %v5276_v23 = vld [vmem:[%s13829_s24 + $0x530] sm:$0xff] }
 0x525   : > { %8743 = vmatprep.subr.bf16.mxu1 %v10112_v39  ;;  %v9714_v39 = vcombine.high %v5180_v28, %v5188_v29 }
 0x527   : > { %8662 = vmatpush1.bf16.msra.mxu0 %v10109_v44  ;;  %v5205_v44 = vld [vmem:[%s13829_s24 + $0x2f8] sm:$0xff] }
 0x528   : > { %8744 = vmatpush1.bf16.msra.mxu1 %v10111_v46  ;;  %8663 = vmatprep.subr.bf16.mxu0 %v10126_v47  ;;  %v9713_v46 = vcombine.low %v5180_v28, %v5188_v29  ;;  %v9715_v47 = vcombine.low %v5181_v30, %v5189_v31  ;;  %v9732_v49 = vcombine.high %v5197_v43, %v5205_v44  ;;  %v5292_v29 = vld [vmem:[%s13829_s24 + $0x5b0] sm:$0xff]  ;;  %v5293_v31 = vld [vmem:[%s13829_s24 + $0x5b8] sm:$0xff] }
 0x529   : > { %8745 = vmatprep.subr.bf16.mxu1 %v10128_v48  ;;  %v9730_v48 = vcombine.high %v5196_v41, %v5204_v42  ;;  %v5300_v30 = vld [vmem:[%s13829_s24 + $0x5f0] sm:$0xff] }
 0x52b   : > { %8664 = vmatpush1.bf16.msra.mxu0 %v10125_v53  ;;  %v5221_v53 = vld [vmem:[%s13829_s24 + $0x378] sm:$0xff] }
 0x52c   : > { %8746 = vmatpush1.bf16.msra.mxu1 %v10127_v54  ;;  %8665 = vmatprep.subr.bf16.mxu0 %v10142_v55  ;;  %v9729_v54 = vcombine.low %v5196_v41, %v5204_v42  ;;  %v9731_v55 = vcombine.low %v5197_v43, %v5205_v44  ;;  %v9748_v58 = vcombine.high %v5213_v52, %v5221_v53  ;;  %v5308_v42 = vld [vmem:[%s13829_s24 + $0x630] sm:$0xff]  ;;  %v5309_v44 = vld [vmem:[%s13829_s24 + $0x638] sm:$0xff] }
 0x52d   : > { %8747 = vmatprep.subr.bf16.mxu1 %v10144_v57  ;;  %v9746_v57 = vcombine.high %v5212_v50, %v5220_v51  ;;  %v5316_v43 = vld [vmem:[%s13829_s24 + $0x670] sm:$0xff] }
 0x52f   : > { %8666 = vmatpush1.bf16.msra.mxu0 %v10141_v0  ;;  %v5237_v0 = vld [vmem:[%s13829_s24 + $0x3f8] sm:$0xff] }
 0x530   : > { %8748 = vmatpush1.bf16.msra.mxu1 %v10143_v1  ;;  %8758 = vmatprep.subr.bf16.mxu0 %v9650_v36  ;;  %v9745_v1 = vcombine.low %v5212_v50, %v5220_v51  ;;  %v9747_v36 = vcombine.low %v5213_v52, %v5221_v53  ;;  %v9764_v4 = vcombine.high %v5229_v63, %v5237_v0  ;;  %v5324_v51 = vld [vmem:[%s13829_s24 + $0x6b0] sm:$0xff]  ;;  %v5325_v53 = vld [vmem:[%s13829_s24 + $0x6b8] sm:$0xff] }
 0x531   : > { %8840 = vmatprep.subr.bf16.mxu1 %v9652_v2  ;;  %v9762_v2 = vcombine.high %v5228_v61, %v5236_v62  ;;  %v5332_v52 = vld [vmem:[%s13829_s24 + $0x6f0] sm:$0xff] }
 0x532   : > { %8668 = vmatmul.mubr.bf16.vlgmr.msra.gmra.mrb[12].mxu0 %v14017_v19 }
 0x533   : > { %8750 = vmatmul.mubr.bf16.vlgmr.msra.gmra.mrb[12].mxu1 %v14017_v19  ;;  %8759 = vmatpush1.bf16.msra.mxu0 %v9649_v6  ;;  %v5252_v6 = vld [vmem:[%s13829_s24 + $0x470] sm:$0xff] }
 0x534   : > { %8790 = vmatprep.mubr.bf16.mxu0 %v13935_v59  ;;  %8841 = vmatpush1.bf16.msra.mxu1 %v9651_v9  ;;  %v9761_v9 = vcombine.low %v5228_v61, %v5236_v62  ;;  %v9778_v24 = vcombine.high %v5244_v5, %v5252_v6  ;;  %v5340_v62 = vld [vmem:[%s13829_s24 + $0x730] sm:$0xff] }
 0x535   : > { %8872 = vmatprep.mubr.bf16.mxu1 %v13935_v59  ;;  %8760 = vmatprep.subr.bf16.mxu0 %v9666_v10  ;;  %v9700_v59 = vcombine.high %v5165_v18, %v5173_v25  ;;  %v9763_v10 = vcombine.low %v5229_v63, %v5237_v0  ;;  %v5284_v18 = vld [vmem:[%s13829_s24 + $0x570] sm:$0xff]  ;;  %v5277_v25 = vld [vmem:[%s13829_s24 + $0x538] sm:$0xff] }
 0x536   : > { %8842 = vmatprep.subr.bf16.mxu1 %v9668_v13  ;;  %v5260_v13 = vld [vmem:[%s13829_s24 + $0x4b0] sm:$0xff]  ;;  %v5341_v0 = vld [vmem:[%s13829_s24 + $0x738] sm:$0xff] }
 0x537   : > { %8761 = vmatpush1.bf16.msra.mxu0 %v9665_v17  ;;  %v5269_v17 = vld [vmem:[%s13829_s24 + $0x4f8] sm:$0xff]  ;;  %v5348_v63 = vld [vmem:[%s13829_s24 + $0x770] sm:$0xff] }
 0x538   : > { %8843 = vmatpush1.bf16.msra.mxu1 %v9667_v14  ;;  %8762 = vmatprep.subr.bf16.mxu0 %v9682_v20  ;;  %v9777_v14 = vcombine.low %v5244_v5, %v5252_v6  ;;  %v9779_v20 = vcombine.low %v5245_v7, %v5253_v8  ;;  %v9796_v22 = vcombine.high %v5261_v11, %v5269_v17  ;;  %v5356_v6 = vld [vmem:[%s13829_s24 + $0x7b0] sm:$0xff]  ;;  %v5357_v8 = vld [vmem:[%s13829_s24 + $0x7b8] sm:$0xff] }
 0x539   : > { %8844 = vmatprep.subr.bf16.mxu1 %v9684_v21  ;;  %v9794_v21 = vcombine.high %v5260_v13, %v5268_v15  ;;  %v5364_v7 = vld [vmem:[%s13829_s24 + $0x7f0] sm:$0xff] }
 0x53b   : > { %8763 = vmatpush1.bf16.msra.mxu0 %v9681_v26  ;;  %v5285_v26 = vld [vmem:[%s13829_s24 + $0x578] sm:$0xff] }
 0x53c   : > { %8845 = vmatpush1.bf16.msra.mxu1 %v9683_v16  ;;  %8764 = vmatprep.subr.bf16.mxu0 %v9698_v27  ;;  %v9793_v16 = vcombine.low %v5260_v13, %v5268_v15  ;;  %v9795_v27 = vcombine.low %v5261_v11, %v5269_v17  ;;  %v9812_v28 = vcombine.high %v5277_v25, %v5285_v26  ;;  %v5372_v15 = vld [vmem:[%s13829_s24 + $0x830] sm:$0xff]  ;;  %v5373_v17 = vld [vmem:[%s13829_s24 + $0x838] sm:$0xff] }
 0x53d   : > { %8846 = vmatprep.subr.bf16.mxu1 %v9700_v59  ;;  %v9810_v59 = vcombine.high %v5276_v23, %v5284_v18  ;;  %v5380_v11 = vld [vmem:[%s13829_s24 + $0x870] sm:$0xff] }
 0x53f   : > { %8765 = vmatpush1.bf16.msra.mxu0 %v9697_v32  ;;  %v5301_v32 = vld [vmem:[%s13829_s24 + $0x5f8] sm:$0xff] }
 0x540   : > { %8847 = vmatpush1.bf16.msra.mxu1 %v9699_v33  ;;  %8766 = vmatprep.subr.bf16.mxu0 %v9714_v39  ;;  %v9809_v33 = vcombine.low %v5276_v23, %v5284_v18  ;;  %v9811_v39 = vcombine.low %v5277_v25, %v5285_v26  ;;  %v9828_v41 = vcombine.high %v5293_v31, %v5301_v32  ;;  %v5388_v18 = vld [vmem:[%s13829_s24 + $0x8b0] sm:$0xff] }
 0x541   : > { %8848 = vmatprep.subr.bf16.mxu1 %v9716_v40  ;;  %v9826_v40 = vcombine.high %v5292_v29, %v5300_v30  ;;  %v5396_v25 = vld [vmem:[%s13829_s24 + $0x8f0] sm:$0xff]  ;;  %v9905_v26 = vcombine.low %v5372_v15, %v5380_v11 }
 0x543   : > { %8767 = vmatpush1.bf16.msra.mxu0 %v9713_v46  ;;  %v5317_v46 = vld [vmem:[%s13829_s24 + $0x678] sm:$0xff] }
 0x544   : > { %8849 = vmatpush1.bf16.msra.mxu1 %v9715_v47  ;;  %8768 = vmatprep.subr.bf16.mxu0 %v9730_v48  ;;  %v9825_v47 = vcombine.low %v5292_v29, %v5300_v30  ;;  %v9827_v48 = vcombine.low %v5293_v31, %v5301_v32  ;;  %v9844_v50 = vcombine.high %v5309_v44, %v5317_v46  ;;  %v5404_v29 = vld [vmem:[%s13829_s24 + $0x930] sm:$0xff]  ;;  %v5405_v32 = vld [vmem:[%s13829_s24 + $0x938] sm:$0xff] }
 0x545   : > { %8850 = vmatprep.subr.bf16.mxu1 %v9732_v49  ;;  %v9842_v49 = vcombine.high %v5308_v42, %v5316_v43  ;;  %v5412_v30 = vld [vmem:[%s13829_s24 + $0x970] sm:$0xff] }
 0x547   : > { %8769 = vmatpush1.bf16.msra.mxu0 %v9729_v54  ;;  %v5333_v54 = vld [vmem:[%s13829_s24 + $0x6f8] sm:$0xff] }
 0x548   : > { %8851 = vmatpush1.bf16.msra.mxu1 %v9731_v55  ;;  %8770 = vmatprep.subr.bf16.mxu0 %v9746_v57  ;;  %v9841_v55 = vcombine.low %v5308_v42, %v5316_v43  ;;  %v9843_v57 = vcombine.low %v5309_v44, %v5317_v46  ;;  %v9860_v61 = vcombine.high %v5325_v53, %v5333_v54  ;;  %v5420_v43 = vld [vmem:[%s13829_s24 + $0x9b0] sm:$0xff]  ;;  %v5421_v46 = vld [vmem:[%s13829_s24 + $0x9b8] sm:$0xff] }
 0x549   : > { %8852 = vmatprep.subr.bf16.mxu1 %v9748_v58  ;;  %v9858_v58 = vcombine.high %v5324_v51, %v5332_v52  ;;  %v5428_v44 = vld [vmem:[%s13829_s24 + $0x9f0] sm:$0xff] }
 0x54b   : > { %8771 = vmatpush1.bf16.msra.mxu0 %v9745_v1  ;;  %v5349_v1 = vld [vmem:[%s13829_s24 + $0x778] sm:$0xff] }
 0x54c   : > { %8853 = vmatpush1.bf16.msra.mxu1 %v9747_v36  ;;  %8772 = vmatprep.subr.bf16.mxu0 %v9762_v2  ;;  %v9857_v36 = vcombine.low %v5324_v51, %v5332_v52  ;;  %v9859_v2 = vcombine.low %v5325_v53, %v5333_v54  ;;  %v9876_v5 = vcombine.high %v5341_v0, %v5349_v1  ;;  %v5444_v51 = vld [vmem:[%s13829_s24 + $0xa70] sm:$0xff]  ;;  %v5437_v52 = vld [vmem:[%s13829_s24 + $0xa38] sm:$0xff] }
 0x54d   : > { %8854 = vmatprep.subr.bf16.mxu1 %v9764_v4  ;;  %v9874_v4 = vcombine.high %v5340_v62, %v5348_v63  ;;  %v5445_v53 = vld [vmem:[%s13829_s24 + $0xa78] sm:$0xff]  ;;  %v9953_v54 = vcombine.low %v5420_v43, %v5428_v44 }
 0x54f   : > { %8773 = vmatpush1.bf16.msra.mxu0 %v9761_v9  ;;  %v5365_v9 = vld [vmem:[%s13829_s24 + $0x7f8] sm:$0xff] }
 0x550   : > { %8855 = vmatpush1.bf16.msra.mxu1 %v9763_v10  ;;  %8774 = vmatprep.subr.bf16.mxu0 %v9778_v24  ;;  %v9873_v10 = vcombine.low %v5340_v62, %v5348_v63  ;;  %v9875_v24 = vcombine.low %v5341_v0, %v5349_v1  ;;  %v9892_v13 = vcombine.high %v5357_v8, %v5365_v9  ;;  %v5460_v62 = vld [vmem:[%s13829_s24 + $0xaf0] sm:$0xff]  ;;  %v5644_v63 = vsub.s32 4, %v13907_v34  ;;  %v5453_v0 = vld [vmem:[%s13829_s24 + $0xab8] sm:$0xff] }
 0x551   : > { %8856 = vmatprep.subr.bf16.mxu1 %v9780_v12  ;;  %v9890_v12 = vcombine.high %v5356_v6, %v5364_v7  ;;  %v5461_v1 = vld [vmem:[%s13829_s24 + $0xaf8] sm:$0xff] }
 0x553   : > { %8775 = vmatpush1.bf16.msra.mxu0 %v9777_v14  ;;  %v5381_v14 = vld [vmem:[%s13829_s24 + $0x878] sm:$0xff] }
 0x554   : > { %8857 = vmatpush1.bf16.msra.mxu1 %v9779_v20  ;;  %8776 = vmatprep.subr.bf16.mxu0 %v9794_v21  ;;  %v9889_v20 = vcombine.low %v5356_v6, %v5364_v7  ;;  %v9891_v21 = vcombine.low %v5357_v8, %v5365_v9  ;;  %v9908_v23 = vcombine.high %v5373_v17, %v5381_v14  ;;  %v5656_v6 = vsub.s32 7, %v13907_v34  ;;  %v5468_v9 = vld [vmem:[%s13829_s24 + $0xb30] sm:$0xff] }
 0x555   : > { %8858 = vmatprep.subr.bf16.mxu1 %v9796_v22  ;;  %v9906_v22 = vcombine.high %v5372_v15, %v5380_v11  ;;  %v9988_v8 = vcombine.high %v5453_v0, %v5461_v1 }
 0x557   : > { %8777 = vmatpush1.bf16.msra.mxu0 %v9793_v16  ;;  %v5389_v16 = vld [vmem:[%s13829_s24 + $0x8b8] sm:$0xff] }
 0x558   : > { %8859 = vmatpush1.bf16.msra.mxu1 %v9795_v27  ;;  %8778 = vmatprep.subr.bf16.mxu0 %v9810_v59  ;;  %v5397_v27 = vld [vmem:[%s13829_s24 + $0x8f8] sm:$0xff]  ;;  %v9907_v59 = vcombine.low %v5373_v17, %v5381_v14  ;;  %v5657_v14 = vrot.slane %v14255_v56, %v5656_v6 }
 0x559   : > { %8860 = vmatprep.subr.bf16.mxu1 %v9812_v28  ;;  %v9922_v28 = vcombine.high %v5388_v18, %v5396_v25  ;;  %v9924_v31 = vcombine.high %v5389_v16, %v5397_v27 }
 0x55b   : > { %8779 = vmatpush1.bf16.msra.mxu0 %v9809_v33  ;;  %v5413_v33 = vld [vmem:[%s13829_s24 + $0x978] sm:$0xff] }
 0x55c   : > { %8861 = vmatpush1.bf16.msra.mxu1 %v9811_v39  ;;  %8780 = vmatprep.subr.bf16.mxu0 %v9826_v40  ;;  %v9921_v39 = vcombine.low %v5388_v18, %v5396_v25  ;;  %v9923_v40 = vcombine.low %v5389_v16, %v5397_v27  ;;  %v9940_v42 = vcombine.high %v5405_v32, %v5413_v33  ;;  %v5484_v18 = vld [vmem:[%s13829_s24 + $0xbb0] sm:$0xff] }
 0x55d   : > { %8862 = vmatprep.subr.bf16.mxu1 %v9828_v41  ;;  %v9938_v41 = vcombine.high %v5404_v29, %v5412_v30  ;;  %v5492_v25 = vld [vmem:[%s13829_s24 + $0xbf0] sm:$0xff] }
 0x55f   : > { %8781 = vmatpush1.bf16.msra.mxu0 %v9825_v47  ;;  %v9937_v47 = vcombine.low %v5404_v29, %v5412_v30 }
 0x560   : > { %8863 = vmatpush1.bf16.msra.mxu1 %v9827_v48  ;;  %8782 = vmatprep.subr.bf16.mxu0 %v9842_v49  ;;  %v9939_v48 = vcombine.low %v5405_v32, %v5413_v33  ;;  %v9954_v49 = vcombine.high %v5420_v43, %v5428_v44 }
 0x561   : > { %8864 = vmatprep.subr.bf16.mxu1 %v9844_v50  ;;  %v5436_v50 = vld [vmem:[%s13829_s24 + $0xa30] sm:$0xff] }
 0x563   : > { %8783 = vmatpush1.bf16.msra.mxu0 %v9841_v55 }
 0x564   : > { %8865 = vmatpush1.bf16.msra.mxu1 %v9843_v57  ;;  %8784 = vmatprep.subr.bf16.mxu0 %v9858_v58  ;;  %v9970_v57 = vcombine.high %v5436_v50, %v5444_v51  ;;  %v9972_v58 = vcombine.high %v5437_v52, %v5445_v53 }
 0x565   : > { %8866 = vmatprep.subr.bf16.mxu1 %v9860_v61  ;;  %v5452_v61 = vld [vmem:[%s13829_s24 + $0xab0] sm:$0xff] }
 0x566   : > { %v9986_v7 = vcombine.high %v5452_v61, %v5460_v62  ;;  %v9985_v17 = vcombine.low %v5452_v61, %v5460_v62 }
 0x567   : > { %8785 = vmatpush1.bf16.msra.mxu0 %v9857_v36  ;;  %v9969_v36 = vcombine.low %v5436_v50, %v5444_v51 }
 0x568   : > { %8867 = vmatpush1.bf16.msra.mxu1 %v9859_v2  ;;  %8786 = vmatprep.subr.bf16.mxu0 %v9874_v4  ;;  %v5652_v2 = vsub.s32 6, %v13907_v34  ;;  %v5648_v4 = vsub.s32 5, %v13907_v34 }
 0x569   : > { %8868 = vmatprep.subr.bf16.mxu1 %v9876_v5  ;;  %v9971_v5 = vcombine.low %v5437_v52, %v5445_v53  ;;  %v5516_v52 = vld [vmem:[%s13829_s24 + $0xcb0] sm:$0xff] }
 0x56a   : > { %v5653_v15 = vrot.slane %v14255_v56, %v5652_v2  ;;  %v5649_v11 = vrot.slane %v14255_v56, %v5648_v4  ;;  %v5524_v53 = vld [vmem:[%s13829_s24 + $0xcf0] sm:$0xff] }
 0x56b   : > { %8787 = vmatpush1.bf16.msra.mxu0 %v9873_v10  ;;  %v5476_v10 = vld [vmem:[%s13829_s24 + $0xb70] sm:$0xff]  ;;  %v10050_v61 = vcombine.high %v5516_v52, %v5524_v53 }
 0x56c   : > { %8869 = vmatpush1.bf16.msra.mxu1 %v9875_v24  ;;  %8788 = vmatprep.subr.bf16.mxu0 %v9890_v12  ;;  %v5645_v24 = vrot.slane %v14255_v56, %v5644_v63  ;;  %v5469_v12 = vld [vmem:[%s13829_s24 + $0xb38] sm:$0xff]  ;;  %v10001_v56 = vcombine.low %v5468_v9, %v5476_v10 }
 0x56d   : > { %8870 = vmatprep.subr.bf16.mxu1 %v9892_v13  ;;  %v5477_v13 = vld [vmem:[%s13829_s24 + $0xb78] sm:$0xff] }
 0x56f   : > { %8789 = vmatpush1.bf16.msra.mxu0 %v9889_v20  ;;  %v9987_v20 = vcombine.low %v5453_v0, %v5461_v1  ;;  %v5532_v0 = vld [vmem:[%s13829_s24 + $0xd30] sm:$0xff] }
 0x570   : > { %8871 = vmatpush1.bf16.msra.mxu1 %v9891_v21  ;;  %8799 = vmatprep.subr.bf16.mxu0 %v9906_v22  ;;  %v10002_v21 = vcombine.high %v5468_v9, %v5476_v10  ;;  %v5540_v1 = vld [vmem:[%s13829_s24 + $0xd70] sm:$0xff]  ;;  %v10049_v10 = vcombine.low %v5516_v52, %v5524_v53 }
 0x571   : > { %8881 = vmatprep.subr.bf16.mxu1 %v9908_v23  ;;  %v10004_v23 = vcombine.high %v5469_v12, %v5477_v13 }
 0x572   : > { %8791 = vmatmul.mubr.bf16.vlgmr.msra.gmra.mrb[16].mxu0 %v13937_v60 }
 0x573   : > { %8873 = vmatmul.mubr.bf16.vlgmr.msra.gmra.mrb[16].mxu1 %v13937_v60  ;;  %8800 = vmatpush1.bf16.msra.mxu0 %v9905_v26  ;;  %v5429_v60 = vld [vmem:[%s13829_s24 + $0x9f8] sm:$0xff] }
 0x574   : > { %8831 = vmatprep.mubr.bf16.mxu0 %v13945_v3  ;;  %8882 = vmatpush1.bf16.msra.mxu1 %v9907_v59  ;;  %v9955_v55 = vcombine.low %v5421_v46, %v5429_v60  ;;  %v5485_v59 = vld [vmem:[%s13829_s24 + $0xbb8] sm:$0xff] }
 0x575   : > { %8913 = vmatprep.mubr.bf16.mxu1 %v13945_v3  ;;  %8801 = vmatprep.subr.bf16.mxu0 %v9922_v28  ;;  %v9956_v3 = vcombine.high %v5421_v46, %v5429_v60  ;;  %v5493_v28 = vld [vmem:[%s13829_s24 + $0xbf8] sm:$0xff]  ;;  %v5500_v46 = vld [vmem:[%s13829_s24 + $0xc30] sm:$0xff] }
 0x576   : > { %8883 = vmatprep.subr.bf16.mxu1 %v9924_v31  ;;  %v10020_v44 = vcombine.high %v5485_v59, %v5493_v28  ;;  %v5508_v60 = vld [vmem:[%s13829_s24 + $0xc70] sm:$0xff] }
 0x577   : > { %8802 = vmatpush1.bf16.msra.mxu0 %v9921_v39  ;;  %v10034_v50 = vcombine.high %v5500_v46, %v5508_v60 }
 0x578   : > { %8884 = vmatpush1.bf16.msra.mxu1 %v9923_v40  ;;  %8803 = vmatprep.subr.bf16.mxu0 %v9938_v41  ;;  %v10003_v41 = vcombine.low %v5469_v12, %v5477_v13 }
 0x579   : > { %8885 = vmatprep.subr.bf16.mxu1 %v9940_v42  ;;  %v10018_v42 = vcombine.high %v5484_v18, %v5492_v25 }
 0x57b   : > { %8804 = vmatpush1.bf16.msra.mxu0 %v9937_v47  ;;  %v5501_v47 = vld [vmem:[%s13829_s24 + $0xc38] sm:$0xff] }
 0x57c   : > { %8886 = vmatpush1.bf16.msra.mxu1 %v9939_v48  ;;  %8805 = vmatprep.subr.bf16.mxu0 %v9954_v49  ;;  %v5509_v48 = vld [vmem:[%s13829_s24 + $0xc78] sm:$0xff]  ;;  %v10017_v49 = vcombine.low %v5484_v18, %v5492_v25 }
 0x57d   : > { %8887 = vmatprep.subr.bf16.mxu1 %v9956_v3  ;;  %v10019_v3 = vcombine.low %v5485_v59, %v5493_v28  ;;  %v10036_v51 = vcombine.high %v5501_v47, %v5509_v48  ;;  %v5557_v18 = vld [vmem:[%s13829_s24 + $0xdf8] sm:$0xff] }
 0x57f   : > { %8806 = vmatpush1.bf16.msra.mxu0 %v9953_v54  ;;  %v5517_v54 = vld [vmem:[%s13829_s24 + $0xcb8] sm:$0xff] }
 0x580   : > { %8888 = vmatpush1.bf16.msra.mxu1 %v9955_v55  ;;  %8807 = vmatprep.subr.bf16.mxu0 %v9970_v57  ;;  %v5525_v55 = vld [vmem:[%s13829_s24 + $0xcf8] sm:$0xff]  ;;  %v10033_v57 = vcombine.low %v5500_v46, %v5508_v60 }
 0x581   : > { %8889 = vmatprep.subr.bf16.mxu1 %v9972_v58  ;;  %v10035_v58 = vcombine.low %v5501_v47, %v5509_v48  ;;  %v10052_v62 = vcombine.high %v5517_v54, %v5525_v55  ;;  %v10051_v13 = vcombine.low %v5517_v54, %v5525_v55 }
 0x583   : > { %8808 = vmatpush1.bf16.msra.mxu0 %v9969_v36 }
 0x584   : > { %8890 = vmatpush1.bf16.msra.mxu1 %v9971_v5  ;;  %8809 = vmatprep.subr.bf16.mxu0 %v9986_v7  ;;  %v5533_v5 = vld [vmem:[%s13829_s24 + $0xd38] sm:$0xff] }
 0x585   : > { %v8505_v22 = vpop.f32.mrb[8].mxu0  ;;  %8891 = vmatprep.subr.bf16.mxu1 %v9988_v8  ;;  %v5541_v7 = vld [vmem:[%s13829_s24 + $0xd78] sm:$0xff] }
 0x586   : > { %v10176_v26 = vadd.f32 %v8505_v22, %v5645_v24  ;;  %v8587_v16 = vpop.f32.mrb[8].mxu1  ;;  %v8507_v27 = vpop.f32.mrb[9].mxu0 }
 0x587   : > { %v10178_v29 = vadd.f32 %v8587_v16, %v5653_v15  ;;  %v10177_v30 = vadd.f32 %v8507_v27, %v5649_v11  ;;  %v8589_v31 = vpop.f32.mrb[9].mxu1  ;;  %v8509_v32 = vpop.f32.mrb[10].mxu0  ;;  %8810 = vmatpush1.bf16.msra.mxu0 %v9985_v17  ;;  %v10066_v15 = vcombine.high %v5532_v0, %v5540_v1  ;;  %v10067_v27 = vcombine.low %v5533_v5, %v5541_v7 }
 0x588   : > { %11092 = vtanh.f32 %v10176_v26  ;;  %v10179_v33 = vadd.f32 %v8589_v31, %v5657_v14  ;;  %v8591_v39 = vpop.f32.mrb[10].mxu1  ;;  %8892 = vmatpush1.bf16.msra.mxu1 %v9987_v20  ;;  %v8510_v40 = vpop.f32.mrb[11].mxu0  ;;  %8811 = vmatprep.subr.bf16.mxu0 %v10002_v21  ;;  %v10068_v14 = vcombine.high %v5533_v5, %v5541_v7  ;;  %v5548_v20 = vld [vmem:[%s13829_s24 + $0xdb0] sm:$0xff]  ;;  %v10065_v26 = vcombine.low %v5532_v0, %v5540_v1  ;;  %v5565_v31 = vld [vmem:[%s13829_s24 + $0xe38] sm:$0xff] }
 0x589   : > { %11094 = vtanh.f32 %v10178_v29  ;;  %v8592_v43 = vpop.f32.mrb[11].mxu1  ;;  %8893 = vmatprep.subr.bf16.mxu1 %v10004_v23  ;;  %v5556_v21 = vld [vmem:[%s13829_s24 + $0xdf0] sm:$0xff]  ;;  %v5549_v23 = vld [vmem:[%s13829_s24 + $0xdb8] sm:$0xff] }
 0x58a   : > { %11096 = vtanh.f32 %v10177_v30  ;;  %v10082_v59 = vcombine.high %v5548_v20, %v5556_v21  ;;  %v10084_v28 = vcombine.high %v5549_v23, %v5557_v18  ;;  %v5564_v29 = vld [vmem:[%s13829_s24 + $0xe30] sm:$0xff]  ;;  %v5573_v32 = vld [vmem:[%s13829_s24 + $0xe78] sm:$0xff] }
 0x58b   : > { %11098 = vtanh.f32 %v10179_v33  ;;  %8812 = vmatpush1.bf16.msra.mxu0 %v10001_v56  ;;  %v5572_v30 = vld [vmem:[%s13829_s24 + $0xe70] sm:$0xff]  ;;  %v10081_v56 = vcombine.low %v5548_v20, %v5556_v21  ;;  %v10083_v33 = vcombine.low %v5549_v23, %v5557_v18  ;;  %v10100_v40 = vcombine.high %v5565_v31, %v5573_v32  ;;  %v5581_v43 = vld [vmem:[%s13829_s24 + $0xeb8] sm:$0xff] }
 0x58c   : > { %8894 = vmatpush1.bf16.msra.mxu1 %v10003_v41  ;;  %8813 = vmatprep.subr.bf16.mxu0 %v10018_v42  ;;  %v10098_v39 = vcombine.high %v5564_v29, %v5572_v30  ;;  %v5580_v41 = vld [vmem:[%s13829_s24 + $0xeb0] sm:$0xff]  ;;  %v10097_v46 = vcombine.low %v5564_v29, %v5572_v30  ;;  %v10099_v60 = vcombine.low %v5565_v31, %v5573_v32 }
 0x58d   : > { %8895 = vmatprep.subr.bf16.mxu1 %v10020_v44  ;;  %v5588_v42 = vld [vmem:[%s13829_s24 + $0xef0] sm:$0xff]  ;;  %v5589_v44 = vld [vmem:[%s13829_s24 + $0xef8] sm:$0xff] }
 0x58e   : > { %v10114_v47 = vcombine.high %v5580_v41, %v5588_v42  ;;  %v10116_v48 = vcombine.high %v5581_v43, %v5589_v44  ;;  %v10113_v52 = vcombine.low %v5580_v41, %v5588_v42  ;;  %v10115_v53 = vcombine.low %v5581_v43, %v5589_v44 }
 0x58f   : > { %8814 = vmatpush1.bf16.msra.mxu0 %v10017_v49  ;;  %v5596_v49 = vld [vmem:[%s13829_s24 + $0xf30] sm:$0xff] }
 0x590   : > { %8896 = vmatpush1.bf16.msra.mxu1 %v10019_v3  ;;  %8815 = vmatprep.subr.bf16.mxu0 %v10034_v50  ;;  %v5604_v3 = vld [vmem:[%s13829_s24 + $0xf70] sm:$0xff]  ;;  %v5597_v50 = vld [vmem:[%s13829_s24 + $0xf38] sm:$0xff] }
 0x591   : > { %8897 = vmatprep.subr.bf16.mxu1 %v10036_v51  ;;  %v5605_v51 = vld [vmem:[%s13829_s24 + $0xf78] sm:$0xff]  ;;  %v10130_v54 = vcombine.high %v5596_v49, %v5604_v3  ;;  %v10129_v0 = vcombine.low %v5596_v49, %v5604_v3 }
 0x592   : > { %v11093_v36 = vpop.eup %11092  ;;  %v10132_v55 = vcombine.high %v5597_v50, %v5605_v51  ;;  %v10131_v1 = vcombine.low %v5597_v50, %v5605_v51 }
 0x593   : > { %v11095_v8 = vpop.eup %11094  ;;  %v8942_v9 = vmul.f32 8.0, %v11093_v36  ;;  %8816 = vmatpush1.bf16.msra.mxu0 %v10033_v57  ;;  %v5612_v57 = vld [vmem:[%s13829_s24 + $0xfb0] sm:$0xff] }
 0x594   : > { %v11097_v24 = vpop.eup %11096  ;;  %v8944_v12 = vmul.f32 8.0, %v11095_v8  ;;  %8898 = vmatpush1.bf16.msra.mxu1 %v10035_v58  ;;  %8817 = vmatprep.subr.bf16.mxu0 %v10050_v61  ;;  %v5620_v58 = vld [vmem:[%s13829_s24 + $0xff0] sm:$0xff]  ;;  %v5613_v61 = vld [vmem:[%s13829_s24 + $0xfb8] sm:$0xff] }
 0x595   : > { %v11099_v11 = vpop.eup %11098  ;;  %v8943_v17 = vmul.f32 8.0, %v11097_v24  ;;  %8899 = vmatprep.subr.bf16.mxu1 %v10052_v62  ;;  %v5621_v62 = vld [vmem:[%s13829_s24 + $0xff8] sm:$0xff]  ;;  %v10146_v36 = vcombine.high %v5612_v57, %v5620_v58  ;;  %v10145_v7 = vcombine.low %v5612_v57, %v5620_v58 }
 0x596   : > { %v8945_v22 = vmul.f32 8.0, %v11099_v11  ;;  %v10148_v5 = vcombine.high %v5613_v61, %v5621_v62  ;;  %v10147_v8 = vcombine.low %v5613_v61, %v5621_v62 }
 0x597   : > { %v10162_v25 = vpack.c.bf16 %v8943_v17, %v8942_v9  ;;  %8818 = vmatpush1.bf16.msra.mxu0 %v10049_v10  ;;  %v5623_v9 = vld [vmem:[%s14248_s18 + $0x8] sm:$0xff] }
 0x598   : > { %v10163_v16 = vpack.c.bf16 %v8945_v22, %v8944_v12  ;;  %8900 = vmatpush1.bf16.msra.mxu1 %v10051_v13  ;;  %8819 = vmatprep.subr.bf16.mxu0 %v10066_v15  ;;  %v5661_v10 = vrot.slane %v5623_v9, %v13910_v35  ;;  %v5669_v24 = vrot.slane %v5623_v9, %v13996_v45 }
 0x599   : > { %9020 = vst [vmem:[%s14291_s11 + $0x10] sm:$0xff] %v10162_v25  ;;  %8901 = vmatprep.subr.bf16.mxu1 %v10068_v14  ;;  %v5665_v12 = vrot.slane %v5623_v9, %v13918_v37  ;;  %v5673_v13 = vrot.slane %v5623_v9, %v13921_v38  ;;  %v5677_v31 = vrot.slane %v5623_v9, %v5644_v63 }
 0x59a   : > { %9021 = vst [vmem:[%s14291_s11 + $0x18] sm:$0xff] %v10163_v16  ;;  %v5685_v32 = vrot.slane %v5623_v9, %v5652_v2 }
 0x59b   : > { %8820 = vmatpush1.bf16.msra.mxu0 %v10065_v26 }
 0x59c   : > { %8902 = vmatpush1.bf16.msra.mxu1 %v10067_v27  ;;  %8821 = vmatprep.subr.bf16.mxu0 %v10082_v59 }
 0x59d   : > { %8903 = vmatprep.subr.bf16.mxu1 %v10084_v28 }
 0x59f   : > { %8822 = vmatpush1.bf16.msra.mxu0 %v10081_v56  ;;  %v5681_v56 = vrot.slane %v5623_v9, %v5648_v4 }
 0x5a0   : > { %8904 = vmatpush1.bf16.msra.mxu1 %v10083_v33  ;;  %8823 = vmatprep.subr.bf16.mxu0 %v10098_v39  ;;  %v5689_v33 = vrot.slane %v5623_v9, %v5656_v6 }
 0x5a1   : > { %8905 = vmatprep.subr.bf16.mxu1 %v10100_v40 }
 0x5a3   : > { %8824 = vmatpush1.bf16.msra.mxu0 %v10097_v46 }
 0x5a4   : > { %8906 = vmatpush1.bf16.msra.mxu1 %v10099_v60  ;;  %8825 = vmatprep.subr.bf16.mxu0 %v10114_v47 }
 0x5a5   : > { %8907 = vmatprep.subr.bf16.mxu1 %v10116_v48 }
 0x5a7   : > { %8826 = vmatpush1.bf16.msra.mxu0 %v10113_v52 }
 0x5a8   : > { %8908 = vmatpush1.bf16.msra.mxu1 %v10115_v53  ;;  %8827 = vmatprep.subr.bf16.mxu0 %v10130_v54 }
 0x5a9   : > { %8909 = vmatprep.subr.bf16.mxu1 %v10132_v55 }
 0x5ab   : > { %8828 = vmatpush1.bf16.msra.mxu0 %v10129_v0 }
 0x5ac   : > { %8910 = vmatpush1.bf16.msra.mxu1 %v10131_v1  ;;  %8829 = vmatprep.subr.bf16.mxu0 %v10146_v36 }
 0x5ad   : > { %8911 = vmatprep.subr.bf16.mxu1 %v10148_v5 }
 0x5af   : > { %8830 = vmatpush1.bf16.msra.mxu0 %v10145_v7 }
 0x5b0   : > { %8912 = vmatpush1.bf16.msra.mxu1 %v10147_v8 }
 0x5b2   : > { %8832 = vmatmul.mubr.bf16.vlgmr.msra.gmra.mrb[16].mxu0 %v14017_v19 }
 0x5b3   : > { %8914 = vmatmul.mubr.bf16.vlgmr.msra.gmra.mrb[16].mxu1 %v14017_v19 }
 0x605   : > { %v8669_v15 = vpop.f32.mrb[12].mxu0 }
 0x606   : > { %v10180_v11 = vadd.f32 %v8669_v15, %v5661_v10  ;;  %v8751_v17 = vpop.f32.mrb[12].mxu1  ;;  %v8671_v14 = vpop.f32.mrb[13].mxu0 }
 0x607   : > { %v10182_v20 = vadd.f32 %v8751_v17, %v5669_v24  ;;  %v10181_v21 = vadd.f32 %v8671_v14, %v5665_v12  ;;  %v8753_v22 = vpop.f32.mrb[13].mxu1  ;;  %v8673_v23 = vpop.f32.mrb[14].mxu0 }
 0x608   : > { %11100 = vtanh.f32 %v10180_v11  ;;  %v10183_v18 = vadd.f32 %v8753_v22, %v5673_v13  ;;  %v8755_v19 = vpop.f32.mrb[14].mxu1  ;;  %v8674_v25 = vpop.f32.mrb[15].mxu0 }
 0x609   : > { %11102 = vtanh.f32 %v10182_v20  ;;  %v8756_v35 = vpop.f32.mrb[15].mxu1 }
 0x60a   : > { %11104 = vtanh.f32 %v10181_v21 }
 0x60b   : > { %11106 = vtanh.f32 %v10183_v18 }
 0x612   : > { %v11101_v37 = vpop.eup %11100 }
 0x613   : > { %v11103_v38 = vpop.eup %11102  ;;  %v8946_v45 = vmul.f32 8.0, %v11101_v37 }
 0x614   : > { %v11105_v26 = vpop.eup %11104  ;;  %v8948_v16 = vmul.f32 8.0, %v11103_v38 }
 0x615   : > { %v11107_v27 = vpop.eup %11106  ;;  %v8947_v59 = vmul.f32 8.0, %v11105_v26 }
 0x616   : > { %v8949_v28 = vmul.f32 8.0, %v11107_v27 }
 0x617   : > { %v10164_v29 = vpack.c.bf16 %v8947_v59, %v8946_v45 }
 0x618   : > { %v10165_v30 = vpack.c.bf16 %v8949_v28, %v8948_v16 }
 0x619   : > { %9022 = vst [vmem:[%s14291_s11 + $0x20] sm:$0xff] %v10164_v29 }
 0x61a   : > { %9023 = vst [vmem:[%s14291_s11 + $0x28] sm:$0xff] %v10165_v30 }
 0x685   : > { %v8833_v39 = vpop.f32.mrb[16].mxu0 }
 0x686   : > { %v10184_v40 = vadd.f32 %v8833_v39, %v5677_v31  ;;  %v8915_v41 = vpop.f32.mrb[16].mxu1  ;;  %v8835_v42 = vpop.f32.mrb[17].mxu0 }
 0x687   : > { %v10186_v43 = vadd.f32 %v8915_v41, %v5685_v32  ;;  %v10185_v44 = vadd.f32 %v8835_v42, %v5681_v56  ;;  %v8917_v46 = vpop.f32.mrb[17].mxu1  ;;  %v8837_v60 = vpop.f32.mrb[18].mxu0 }
 0x688   : > { %11108 = vtanh.f32 %v10184_v40  ;;  %v10187_v47 = vadd.f32 %v8917_v46, %v5689_v33  ;;  %v8919_v63 = vpop.f32.mrb[18].mxu1  ;;  %v8838_v48 = vpop.f32.mrb[19].mxu0 }
 0x689   : > { %11110 = vtanh.f32 %v10186_v43  ;;  %v8920_v2 = vpop.f32.mrb[19].mxu1 }
 0x68a   : > { %11112 = vtanh.f32 %v10185_v44 }
 0x68b   : > { %11114 = vtanh.f32 %v10187_v47 }
 0x692   : > { %v11109_v34 = vpop.eup %11108 }
 0x693   : > { %v11111_v4 = vpop.eup %11110  ;;  %v8950_v6 = vmul.f32 8.0, %v11109_v34 }
 0x694   : > { %v11113_v49 = vpop.eup %11112  ;;  %v8952_v3 = vmul.f32 8.0, %v11111_v4 }
 0x695   : > { %v11115_v50 = vpop.eup %11114  ;;  %v8951_v51 = vmul.f32 8.0, %v11113_v49 }
 0x696   : > { %v8953_v52 = vmul.f32 8.0, %v11115_v50 }
 0x697   : > { %v10166_v53 = vpack.c.bf16 %v8951_v51, %v8950_v6 }
 0x698   : > { %v10167_v54 = vpack.c.bf16 %v8953_v52, %v8952_v3 }
 0x699   : > { %9024 = vst [vmem:[%s14291_s11 + $0x30] sm:$0xff] %v10166_v53 }
 0x69a   : > { %9025 = vst [vmem:[%s14291_s11 + $0x38] sm:$0xff] %v10167_v54 }
 0x69b PF: > { %p12_p9 = scmp.ge.s32.totalorder %s11187_s22, 4   ;;  %s14502_s18 = smov %s11134_s19 }
 0x69c   : > { %s14503_s19 = smov %s11196_s25  ;;  %s14504_s20 = smov %s11187_s22 }
 0x69d   :  { %14 = sbr.rel (!%p12_p9) target bundleno = 2 (0x2), region = 101 }

</bundles_post_ra>
